<compile_context>
chip_gen: v7x
topology: tpu7x:2x2x1
jax: 0.10.0
libtpu: 0.0.40
codegen_flags: <defaults>
</compile_context>

<pallas_src>
from functools import partial

import jax
import jax.numpy as jnp
from jax.experimental import pallas as pl
from jax.experimental.pallas import tpu as pltpu

NEG_SLOPE = 0.2
# Operand dtype for the channel-mixing matmuls (accumulation stays f32 via
# preferred_element_type).  Set to jnp.bfloat16 for ~3-4x MXU throughput on
# v5e/v6e once compute-bound (re-validate with relaxed tolerance); kept f32
# here so the check against the reference stays tight.
MATMUL_DTYPE = jnp.float32


def _leaky_relu(x):
    return jnp.where(x > 0, x, NEG_SLOPE * x)


def residual_stack_kernel(x_ref, *refs, kernel_sizes, dilations_list, halo):
    """Fused ResidualStack forward.

    x_ref : (B, C, L) input block (whole array, one grid step)
    refs  : per conv in (kernel-size block, layer, conv) order:
              w_cat_ref (C, K*C)  with w_cat[co, t*C + ci] = torch_w[co, ci, t]
              bias_ref  (C, 1)
            followed by o_ref (B, C, L).
    """
    o_ref = refs[-1]
    w_refs = refs[:-1]
    B, C, L = x_ref.shape
    f32 = jnp.float32

    # Pack batch elements side by side on the lane axis -> (C, B*L).
    h0 = jnp.concatenate([x_ref[b].astype(f32) for b in range(B)], axis=1)

    # Lane-aligned zero halo used for "same" padding (hoisted, reused).
    zero_halo = jnp.zeros((C, halo), f32)

    def dilated_conv(a, w_cat, bias, k, d):
        # a: (C, B*L) activations.  One fused matmul over all K taps & batches.
        pad_left = ((k - 1) * d) // 2
        cols = []
        for b in range(B):
            a_b = a[:, b * L:(b + 1) * L]                          # aligned slice
            a_pad = jnp.concatenate([zero_halo, a_b, zero_halo], axis=1)
            taps = [a_pad[:, halo + t * d - pad_left:
                          halo + t * d - pad_left + L] for t in range(k)]
            cols.append(jnp.concatenate(taps, axis=0))             # (k*C, L)
        h_stack = jnp.concatenate(cols, axis=1)                    # (k*C, B*L)
        y = jnp.dot(w_cat.astype(MATMUL_DTYPE), h_stack.astype(MATMUL_DTYPE),
                    preferred_element_type=jnp.float32)
        return y + bias                                            # (C,1) bcast

    out = None
    widx = 0
    for k in kernel_sizes:                     # parallel branches (summed)
        h = h0
        for dils in dilations_list:            # sequential residual layers
            res = h
            for d in dils:                     # convs inside one layer
                w_cat = w_refs[widx][...]
                bias = w_refs[widx + 1][...]
                widx += 2
                h = dilated_conv(_leaky_relu(h), w_cat, bias, k, d)
            h = h + res                        # residual skip
        out = h if out is None else out + h    # torch.stack(...).sum(0)

    for b in range(B):
        o_ref[b] = out[:, b * L:(b + 1) * L].astype(o_ref.dtype)


def residual_stack(x, params, *, kernel_sizes, dilations_list):
    """x: (B, C, L) float32.
    params[(block_idx, layer_idx, conv_idx)] = (w (C, C, K), b (C,)) in PyTorch
    Conv1d layout (out_ch, in_ch, kernel)."""
    B, C, L = x.shape
    assert C % 8 == 0, "channels must be a multiple of 8 (sublane tiling)"
    assert L % 128 == 0, "length must be a multiple of 128 for lane-dense tiles"
    # TODO(synk): for production lengths, tile L (halo = full stack receptive
    # field) on a "parallel" grid axis sized for v7x's 64 MiB VMEM; and model
    # cached/causal cumulative-delay alignment, which is not needed here
    # (centered padding => all delays are 0).

    max_pad = 0
    for k in kernel_sizes:
        for dils in dilations_list:
            for d in dils:
                max_pad = max(max_pad, (k - 1) * d)
    halo = max(128, pl.cdiv(max_pad, 128) * 128)   # lane-aligned zero halo
    assert max_pad // 2 <= halo and max_pad - max_pad // 2 <= halo

    flat_inputs = []
    in_specs = [pl.BlockSpec((B, C, L), lambda i: (0, 0, 0))]
    flops = 0
    weight_bytes = 0
    for bi, k in enumerate(kernel_sizes):
        for li, dils in enumerate(dilations_list):
            for ci, d in enumerate(dils):
                w, b = params[(bi, li, ci)]
                assert w.shape == (C, C, k) and b.shape == (C,)
                # (C_out, C_in, K) -> (C_out, K*C_in) so all K taps are one matmul
                w_cat = jnp.transpose(w, (0, 2, 1)).reshape(C, k * C)
                bias = b.reshape(C, 1).astype(jnp.float32)
                flat_inputs += [w_cat, bias]
                in_specs += [pl.BlockSpec((C, k * C), lambda i: (0, 0)),
                             pl.BlockSpec((C, 1), lambda i: (0, 0))]
                flops += 2 * C * (k * C) * (B * L) + 3 * C * B * L
                weight_bytes += (w_cat.size + bias.size) * 4

    kernel = partial(residual_stack_kernel,
                     kernel_sizes=tuple(kernel_sizes),
                     dilations_list=tuple(tuple(d) for d in dilations_list),
                     halo=halo)

    bytes_accessed = 2 * B * C * L * 4 + weight_bytes
    return pl.pallas_call(
        kernel,
        out_shape=jax.ShapeDtypeStruct((B, C, L), x.dtype),
        grid=(1,),
        in_specs=in_specs,
        out_specs=pl.BlockSpec((B, C, L), lambda i: (0, 0, 0)),
        compiler_params=pltpu.CompilerParams(
            dimension_semantics=("arbitrary",)),
        cost_estimate=pl.CostEstimate(flops=int(flops), transcendentals=0,
                                      bytes_accessed=int(bytes_accessed)),
    )(x, *flat_inputs)


# ----------------------- plain-JAX reference ---------------------------------

def _conv1d_same_ref(x, w, b, dilation):
    K = w.shape[-1]
    L = x.shape[-1]
    pad_total = (K - 1) * dilation
    pad_l = pad_total // 2
    xp = jnp.pad(x, ((0, 0), (0, 0), (pad_l, pad_total - pad_l)))
    y = sum(jnp.einsum('oc,bcl->bol', w[:, :, t],
                       xp[:, :, t * dilation:t * dilation + L])
            for t in range(K))
    return y + b[None, :, None]


def residual_stack_reference(x, params, *, kernel_sizes, dilations_list):
    outs = []
    for bi, k in enumerate(kernel_sizes):
        h = x
        for li, dils in enumerate(dilations_list):
            res = h
            for ci, d in enumerate(dils):
                w, b = params[(bi, li, ci)]
                h = _leaky_relu(h)
                h = _conv1d_same_ref(h, w, b, d)
            h = h + res
        outs.append(h)
    return jnp.stack(outs, 0).sum(0)


if __name__ == "__main__":
    # Small shapes consistent with the module (Conv1d input is (N, C, L)).
    B, C, L = 2, 32, 256
    KERNEL_SIZES = (3, 5)
    DILATIONS_LIST = ((1, 1), (3, 1))

    key = jax.random.PRNGKey(0)
    key, kx = jax.random.split(key)
    x = jax.random.normal(kx, (B, C, L), dtype=jnp.float32)

    # Deterministic synthetic parameters, PyTorch Conv1d layout (C_out, C_in, K).
    params = {}
    for bi, k in enumerate(KERNEL_SIZES):
        for li, dils in enumerate(DILATIONS_LIST):
            for ci, d in enumerate(dils):
                key, kw, kb = jax.random.split(key, 3)
                w = jax.random.normal(kw, (C, C, k), dtype=jnp.float32) * 0.1
                b = jax.random.normal(kb, (C,), dtype=jnp.float32) * 0.1
                params[(bi, li, ci)] = (w, b)

    out = residual_stack(x, params, kernel_sizes=KERNEL_SIZES,
                         dilations_list=DILATIONS_LIST)
    out = jax.block_until_ready(out)

    ref = residual_stack_reference(x, params, kernel_sizes=KERNEL_SIZES,
                                   dilations_list=DILATIONS_LIST)
    assert out.shape == (B, C, L)
    assert jnp.allclose(out, ref, rtol=1e-4, atol=1e-4), "mismatch vs reference"

    print("KERNEL_OK")
</pallas_src>

<mosaic_0001>
module attributes {stable_mosaic.version = 11 : i64} {
  func.func @residual_stack_kernel(%arg0: i32, %arg1: memref<2x32x256xf32, #tpu.memory_space<vmem>>, %arg2: memref<32x96xf32, #tpu.memory_space<vmem>>, %arg3: memref<32x1xf32, #tpu.memory_space<vmem>>, %arg4: memref<32x96xf32, #tpu.memory_space<vmem>>, %arg5: memref<32x1xf32, #tpu.memory_space<vmem>>, %arg6: memref<32x96xf32, #tpu.memory_space<vmem>>, %arg7: memref<32x1xf32, #tpu.memory_space<vmem>>, %arg8: memref<32x96xf32, #tpu.memory_space<vmem>>, %arg9: memref<32x1xf32, #tpu.memory_space<vmem>>, %arg10: memref<32x160xf32, #tpu.memory_space<vmem>>, %arg11: memref<32x1xf32, #tpu.memory_space<vmem>>, %arg12: memref<32x160xf32, #tpu.memory_space<vmem>>, %arg13: memref<32x1xf32, #tpu.memory_space<vmem>>, %arg14: memref<32x160xf32, #tpu.memory_space<vmem>>, %arg15: memref<32x1xf32, #tpu.memory_space<vmem>>, %arg16: memref<32x160xf32, #tpu.memory_space<vmem>>, %arg17: memref<32x1xf32, #tpu.memory_space<vmem>>, %arg18: memref<2x32x256xf32, #tpu.memory_space<vmem>>) attributes {dimension_semantics = [#tpu.dimension_semantics<arbitrary>], iteration_bounds = array<i64: 1>, scalar_prefetch = 0 : i64, scratch_operands = 0 : i64, tpu.core_type = #tpu.core_type<tc>, window_params = [{pipeline_mode = #tpu.pipeline_mode<synchronous>, transform_indices = @transform_0, window_bounds = array<i64: 2, 32, 256>}, {pipeline_mode = #tpu.pipeline_mode<synchronous>, transform_indices = @transform_1, window_bounds = array<i64: 32, 96>}, {pipeline_mode = #tpu.pipeline_mode<synchronous>, transform_indices = @transform_2, window_bounds = array<i64: 32, 1>}, {pipeline_mode = #tpu.pipeline_mode<synchronous>, transform_indices = @transform_3, window_bounds = array<i64: 32, 96>}, {pipeline_mode = #tpu.pipeline_mode<synchronous>, transform_indices = @transform_4, window_bounds = array<i64: 32, 1>}, {pipeline_mode = #tpu.pipeline_mode<synchronous>, transform_indices = @transform_5, window_bounds = array<i64: 32, 96>}, {pipeline_mode = #tpu.pipeline_mode<synchronous>, transform_indices = @transform_6, window_bounds = array<i64: 32, 1>}, {pipeline_mode = #tpu.pipeline_mode<synchronous>, transform_indices = @transform_7, window_bounds = array<i64: 32, 96>}, {pipeline_mode = #tpu.pipeline_mode<synchronous>, transform_indices = @transform_8, window_bounds = array<i64: 32, 1>}, {pipeline_mode = #tpu.pipeline_mode<synchronous>, transform_indices = @transform_9, window_bounds = array<i64: 32, 160>}, {pipeline_mode = #tpu.pipeline_mode<synchronous>, transform_indices = @transform_10, window_bounds = array<i64: 32, 1>}, {pipeline_mode = #tpu.pipeline_mode<synchronous>, transform_indices = @transform_11, window_bounds = array<i64: 32, 160>}, {pipeline_mode = #tpu.pipeline_mode<synchronous>, transform_indices = @transform_12, window_bounds = array<i64: 32, 1>}, {pipeline_mode = #tpu.pipeline_mode<synchronous>, transform_indices = @transform_13, window_bounds = array<i64: 32, 160>}, {pipeline_mode = #tpu.pipeline_mode<synchronous>, transform_indices = @transform_14, window_bounds = array<i64: 32, 1>}, {pipeline_mode = #tpu.pipeline_mode<synchronous>, transform_indices = @transform_15, window_bounds = array<i64: 32, 160>}, {pipeline_mode = #tpu.pipeline_mode<synchronous>, transform_indices = @transform_16, window_bounds = array<i64: 32, 1>}, {pipeline_mode = #tpu.pipeline_mode<synchronous>, transform_indices = @transform_17, window_bounds = array<i64: 2, 32, 256>}]} {
    %c0 = arith.constant 0 : index
    %c0_0 = arith.constant 0 : index
    %c0_1 = arith.constant 0 : index
    %0 = vector.load %arg1[%c0, %c0_0, %c0_1] : memref<2x32x256xf32, #tpu.memory_space<vmem>>, vector<1x32x256xf32>
    %1 = vector.shape_cast %0 : vector<1x32x256xf32> to vector<32x256xf32>
    %c1 = arith.constant 1 : index
    %c0_2 = arith.constant 0 : index
    %c0_3 = arith.constant 0 : index
    %2 = vector.load %arg1[%c1, %c0_2, %c0_3] : memref<2x32x256xf32, #tpu.memory_space<vmem>>, vector<1x32x256xf32>
    %3 = vector.shape_cast %2 : vector<1x32x256xf32> to vector<32x256xf32>
    %4 = tpu.concatenate %1, %3 in 1 : vector<32x256xf32>, vector<32x256xf32> -> vector<32x512xf32>
    %cst = arith.constant 0.000000e+00 : f32
    %5 = vector.broadcast %cst : f32 to vector<32x128xf32>
    %c0_4 = arith.constant 0 : index
    %c0_5 = arith.constant 0 : index
    %6 = vector.load %arg2[%c0_4, %c0_5] : memref<32x96xf32, #tpu.memory_space<vmem>>, vector<32x96xf32>
    %c0_6 = arith.constant 0 : index
    %c0_7 = arith.constant 0 : index
    %7 = vector.load %arg3[%c0_6, %c0_7] : memref<32x1xf32, #tpu.memory_space<vmem>>, vector<32x1xf32>
    %cst_8 = arith.constant 0.000000e+00 : f32
    %8 = vector.broadcast %cst_8 : f32 to vector<32x512xf32>
    %9 = arith.cmpf ogt, %4, %8 : vector<32x512xf32>
    %cst_9 = arith.constant 2.000000e-01 : f32
    %10 = vector.broadcast %cst_9 : f32 to vector<32x512xf32>
    %11 = arith.mulf %10, %4 : vector<32x512xf32>
    %12 = arith.select %9, %4, %11 : vector<32x512xi1>, vector<32x512xf32>
    %13 = vector.extract_strided_slice %12 {offsets = [0, 0], sizes = [32, 256], strides = [1, 1]} : vector<32x512xf32> to vector<32x256xf32>
    %14 = tpu.concatenate %5, %13, %5 in 1 : vector<32x128xf32>, vector<32x256xf32>, vector<32x128xf32> -> vector<32x512xf32>
    %15 = vector.extract_strided_slice %14 {offsets = [0, 127], sizes = [32, 256], strides = [1, 1]} : vector<32x512xf32> to vector<32x256xf32>
    %16 = vector.extract_strided_slice %14 {offsets = [0, 128], sizes = [32, 256], strides = [1, 1]} : vector<32x512xf32> to vector<32x256xf32>
    %17 = vector.extract_strided_slice %14 {offsets = [0, 129], sizes = [32, 256], strides = [1, 1]} : vector<32x512xf32> to vector<32x256xf32>
    %18 = tpu.concatenate %15, %16, %17 in 0 : vector<32x256xf32>, vector<32x256xf32>, vector<32x256xf32> -> vector<96x256xf32>
    %19 = vector.extract_strided_slice %12 {offsets = [0, 256], sizes = [32, 256], strides = [1, 1]} : vector<32x512xf32> to vector<32x256xf32>
    %20 = tpu.concatenate %5, %19, %5 in 1 : vector<32x128xf32>, vector<32x256xf32>, vector<32x128xf32> -> vector<32x512xf32>
    %21 = vector.extract_strided_slice %20 {offsets = [0, 127], sizes = [32, 256], strides = [1, 1]} : vector<32x512xf32> to vector<32x256xf32>
    %22 = vector.extract_strided_slice %20 {offsets = [0, 128], sizes = [32, 256], strides = [1, 1]} : vector<32x512xf32> to vector<32x256xf32>
    %23 = vector.extract_strided_slice %20 {offsets = [0, 129], sizes = [32, 256], strides = [1, 1]} : vector<32x512xf32> to vector<32x256xf32>
    %24 = tpu.concatenate %21, %22, %23 in 0 : vector<32x256xf32>, vector<32x256xf32>, vector<32x256xf32> -> vector<96x256xf32>
    %25 = tpu.concatenate %18, %24 in 1 : vector<96x256xf32>, vector<96x256xf32> -> vector<96x512xf32>
    %cst_10 = arith.constant dense<0.000000e+00> : vector<32x512xf32>
    %26 = tpu.matmul %6, %25, %cst_10 {dimension_numbers = #tpu.dot_dimension_numbers<[1], [0], [0], [1], [0, 0, 1, 1], [], []>} : vector<32x96xf32>, vector<96x512xf32>, vector<32x512xf32> -> vector<32x512xf32>
    %27 = vector.broadcast %7 : vector<32x1xf32> to vector<32x512xf32>
    %28 = arith.addf %26, %27 : vector<32x512xf32>
    %c0_11 = arith.constant 0 : index
    %c0_12 = arith.constant 0 : index
    %29 = vector.load %arg4[%c0_11, %c0_12] : memref<32x96xf32, #tpu.memory_space<vmem>>, vector<32x96xf32>
    %c0_13 = arith.constant 0 : index
    %c0_14 = arith.constant 0 : index
    %30 = vector.load %arg5[%c0_13, %c0_14] : memref<32x1xf32, #tpu.memory_space<vmem>>, vector<32x1xf32>
    %cst_15 = arith.constant 0.000000e+00 : f32
    %31 = vector.broadcast %cst_15 : f32 to vector<32x512xf32>
    %32 = arith.cmpf ogt, %28, %31 : vector<32x512xf32>
    %cst_16 = arith.constant 2.000000e-01 : f32
    %33 = vector.broadcast %cst_16 : f32 to vector<32x512xf32>
    %34 = arith.mulf %33, %28 : vector<32x512xf32>
    %35 = arith.select %32, %28, %34 : vector<32x512xi1>, vector<32x512xf32>
    %36 = vector.extract_strided_slice %35 {offsets = [0, 0], sizes = [32, 256], strides = [1, 1]} : vector<32x512xf32> to vector<32x256xf32>
    %37 = tpu.concatenate %5, %36, %5 in 1 : vector<32x128xf32>, vector<32x256xf32>, vector<32x128xf32> -> vector<32x512xf32>
    %38 = vector.extract_strided_slice %37 {offsets = [0, 127], sizes = [32, 256], strides = [1, 1]} : vector<32x512xf32> to vector<32x256xf32>
    %39 = vector.extract_strided_slice %37 {offsets = [0, 128], sizes = [32, 256], strides = [1, 1]} : vector<32x512xf32> to vector<32x256xf32>
    %40 = vector.extract_strided_slice %37 {offsets = [0, 129], sizes = [32, 256], strides = [1, 1]} : vector<32x512xf32> to vector<32x256xf32>
    %41 = tpu.concatenate %38, %39, %40 in 0 : vector<32x256xf32>, vector<32x256xf32>, vector<32x256xf32> -> vector<96x256xf32>
    %42 = vector.extract_strided_slice %35 {offsets = [0, 256], sizes = [32, 256], strides = [1, 1]} : vector<32x512xf32> to vector<32x256xf32>
    %43 = tpu.concatenate %5, %42, %5 in 1 : vector<32x128xf32>, vector<32x256xf32>, vector<32x128xf32> -> vector<32x512xf32>
    %44 = vector.extract_strided_slice %43 {offsets = [0, 127], sizes = [32, 256], strides = [1, 1]} : vector<32x512xf32> to vector<32x256xf32>
    %45 = vector.extract_strided_slice %43 {offsets = [0, 128], sizes = [32, 256], strides = [1, 1]} : vector<32x512xf32> to vector<32x256xf32>
    %46 = vector.extract_strided_slice %43 {offsets = [0, 129], sizes = [32, 256], strides = [1, 1]} : vector<32x512xf32> to vector<32x256xf32>
    %47 = tpu.concatenate %44, %45, %46 in 0 : vector<32x256xf32>, vector<32x256xf32>, vector<32x256xf32> -> vector<96x256xf32>
    %48 = tpu.concatenate %41, %47 in 1 : vector<96x256xf32>, vector<96x256xf32> -> vector<96x512xf32>
    %cst_17 = arith.constant dense<0.000000e+00> : vector<32x512xf32>
    %49 = tpu.matmul %29, %48, %cst_17 {dimension_numbers = #tpu.dot_dimension_numbers<[1], [0], [0], [1], [0, 0, 1, 1], [], []>} : vector<32x96xf32>, vector<96x512xf32>, vector<32x512xf32> -> vector<32x512xf32>
    %50 = vector.broadcast %30 : vector<32x1xf32> to vector<32x512xf32>
    %51 = arith.addf %49, %50 : vector<32x512xf32>
    %52 = arith.addf %51, %4 : vector<32x512xf32>
    %c0_18 = arith.constant 0 : index
    %c0_19 = arith.constant 0 : index
    %53 = vector.load %arg6[%c0_18, %c0_19] : memref<32x96xf32, #tpu.memory_space<vmem>>, vector<32x96xf32>
    %c0_20 = arith.constant 0 : index
    %c0_21 = arith.constant 0 : index
    %54 = vector.load %arg7[%c0_20, %c0_21] : memref<32x1xf32, #tpu.memory_space<vmem>>, vector<32x1xf32>
    %cst_22 = arith.constant 0.000000e+00 : f32
    %55 = vector.broadcast %cst_22 : f32 to vector<32x512xf32>
    %56 = arith.cmpf ogt, %52, %55 : vector<32x512xf32>
    %cst_23 = arith.constant 2.000000e-01 : f32
    %57 = vector.broadcast %cst_23 : f32 to vector<32x512xf32>
    %58 = arith.mulf %57, %52 : vector<32x512xf32>
    %59 = arith.select %56, %52, %58 : vector<32x512xi1>, vector<32x512xf32>
    %60 = vector.extract_strided_slice %59 {offsets = [0, 0], sizes = [32, 256], strides = [1, 1]} : vector<32x512xf32> to vector<32x256xf32>
    %61 = tpu.concatenate %5, %60, %5 in 1 : vector<32x128xf32>, vector<32x256xf32>, vector<32x128xf32> -> vector<32x512xf32>
    %62 = vector.extract_strided_slice %61 {offsets = [0, 125], sizes = [32, 256], strides = [1, 1]} : vector<32x512xf32> to vector<32x256xf32>
    %63 = vector.extract_strided_slice %61 {offsets = [0, 128], sizes = [32, 256], strides = [1, 1]} : vector<32x512xf32> to vector<32x256xf32>
    %64 = vector.extract_strided_slice %61 {offsets = [0, 131], sizes = [32, 256], strides = [1, 1]} : vector<32x512xf32> to vector<32x256xf32>
    %65 = tpu.concatenate %62, %63, %64 in 0 : vector<32x256xf32>, vector<32x256xf32>, vector<32x256xf32> -> vector<96x256xf32>
    %66 = vector.extract_strided_slice %59 {offsets = [0, 256], sizes = [32, 256], strides = [1, 1]} : vector<32x512xf32> to vector<32x256xf32>
    %67 = tpu.concatenate %5, %66, %5 in 1 : vector<32x128xf32>, vector<32x256xf32>, vector<32x128xf32> -> vector<32x512xf32>
    %68 = vector.extract_strided_slice %67 {offsets = [0, 125], sizes = [32, 256], strides = [1, 1]} : vector<32x512xf32> to vector<32x256xf32>
    %69 = vector.extract_strided_slice %67 {offsets = [0, 128], sizes = [32, 256], strides = [1, 1]} : vector<32x512xf32> to vector<32x256xf32>
    %70 = vector.extract_strided_slice %67 {offsets = [0, 131], sizes = [32, 256], strides = [1, 1]} : vector<32x512xf32> to vector<32x256xf32>
    %71 = tpu.concatenate %68, %69, %70 in 0 : vector<32x256xf32>, vector<32x256xf32>, vector<32x256xf32> -> vector<96x256xf32>
    %72 = tpu.concatenate %65, %71 in 1 : vector<96x256xf32>, vector<96x256xf32> -> vector<96x512xf32>
    %cst_24 = arith.constant dense<0.000000e+00> : vector<32x512xf32>
    %73 = tpu.matmul %53, %72, %cst_24 {dimension_numbers = #tpu.dot_dimension_numbers<[1], [0], [0], [1], [0, 0, 1, 1], [], []>} : vector<32x96xf32>, vector<96x512xf32>, vector<32x512xf32> -> vector<32x512xf32>
    %74 = vector.broadcast %54 : vector<32x1xf32> to vector<32x512xf32>
    %75 = arith.addf %73, %74 : vector<32x512xf32>
    %c0_25 = arith.constant 0 : index
    %c0_26 = arith.constant 0 : index
    %76 = vector.load %arg8[%c0_25, %c0_26] : memref<32x96xf32, #tpu.memory_space<vmem>>, vector<32x96xf32>
    %c0_27 = arith.constant 0 : index
    %c0_28 = arith.constant 0 : index
    %77 = vector.load %arg9[%c0_27, %c0_28] : memref<32x1xf32, #tpu.memory_space<vmem>>, vector<32x1xf32>
    %cst_29 = arith.constant 0.000000e+00 : f32
    %78 = vector.broadcast %cst_29 : f32 to vector<32x512xf32>
    %79 = arith.cmpf ogt, %75, %78 : vector<32x512xf32>
    %cst_30 = arith.constant 2.000000e-01 : f32
    %80 = vector.broadcast %cst_30 : f32 to vector<32x512xf32>
    %81 = arith.mulf %80, %75 : vector<32x512xf32>
    %82 = arith.select %79, %75, %81 : vector<32x512xi1>, vector<32x512xf32>
    %83 = vector.extract_strided_slice %82 {offsets = [0, 0], sizes = [32, 256], strides = [1, 1]} : vector<32x512xf32> to vector<32x256xf32>
    %84 = tpu.concatenate %5, %83, %5 in 1 : vector<32x128xf32>, vector<32x256xf32>, vector<32x128xf32> -> vector<32x512xf32>
    %85 = vector.extract_strided_slice %84 {offsets = [0, 127], sizes = [32, 256], strides = [1, 1]} : vector<32x512xf32> to vector<32x256xf32>
    %86 = vector.extract_strided_slice %84 {offsets = [0, 128], sizes = [32, 256], strides = [1, 1]} : vector<32x512xf32> to vector<32x256xf32>
    %87 = vector.extract_strided_slice %84 {offsets = [0, 129], sizes = [32, 256], strides = [1, 1]} : vector<32x512xf32> to vector<32x256xf32>
    %88 = tpu.concatenate %85, %86, %87 in 0 : vector<32x256xf32>, vector<32x256xf32>, vector<32x256xf32> -> vector<96x256xf32>
    %89 = vector.extract_strided_slice %82 {offsets = [0, 256], sizes = [32, 256], strides = [1, 1]} : vector<32x512xf32> to vector<32x256xf32>
    %90 = tpu.concatenate %5, %89, %5 in 1 : vector<32x128xf32>, vector<32x256xf32>, vector<32x128xf32> -> vector<32x512xf32>
    %91 = vector.extract_strided_slice %90 {offsets = [0, 127], sizes = [32, 256], strides = [1, 1]} : vector<32x512xf32> to vector<32x256xf32>
    %92 = vector.extract_strided_slice %90 {offsets = [0, 128], sizes = [32, 256], strides = [1, 1]} : vector<32x512xf32> to vector<32x256xf32>
    %93 = vector.extract_strided_slice %90 {offsets = [0, 129], sizes = [32, 256], strides = [1, 1]} : vector<32x512xf32> to vector<32x256xf32>
    %94 = tpu.concatenate %91, %92, %93 in 0 : vector<32x256xf32>, vector<32x256xf32>, vector<32x256xf32> -> vector<96x256xf32>
    %95 = tpu.concatenate %88, %94 in 1 : vector<96x256xf32>, vector<96x256xf32> -> vector<96x512xf32>
    %cst_31 = arith.constant dense<0.000000e+00> : vector<32x512xf32>
    %96 = tpu.matmul %76, %95, %cst_31 {dimension_numbers = #tpu.dot_dimension_numbers<[1], [0], [0], [1], [0, 0, 1, 1], [], []>} : vector<32x96xf32>, vector<96x512xf32>, vector<32x512xf32> -> vector<32x512xf32>
    %97 = vector.broadcast %77 : vector<32x1xf32> to vector<32x512xf32>
    %98 = arith.addf %96, %97 : vector<32x512xf32>
    %99 = arith.addf %98, %52 : vector<32x512xf32>
    %c0_32 = arith.constant 0 : index
    %c0_33 = arith.constant 0 : index
    %100 = vector.load %arg10[%c0_32, %c0_33] : memref<32x160xf32, #tpu.memory_space<vmem>>, vector<32x160xf32>
    %c0_34 = arith.constant 0 : index
    %c0_35 = arith.constant 0 : index
    %101 = vector.load %arg11[%c0_34, %c0_35] : memref<32x1xf32, #tpu.memory_space<vmem>>, vector<32x1xf32>
    %cst_36 = arith.constant 0.000000e+00 : f32
    %102 = vector.broadcast %cst_36 : f32 to vector<32x512xf32>
    %103 = arith.cmpf ogt, %4, %102 : vector<32x512xf32>
    %cst_37 = arith.constant 2.000000e-01 : f32
    %104 = vector.broadcast %cst_37 : f32 to vector<32x512xf32>
    %105 = arith.mulf %104, %4 : vector<32x512xf32>
    %106 = arith.select %103, %4, %105 : vector<32x512xi1>, vector<32x512xf32>
    %107 = vector.extract_strided_slice %106 {offsets = [0, 0], sizes = [32, 256], strides = [1, 1]} : vector<32x512xf32> to vector<32x256xf32>
    %108 = tpu.concatenate %5, %107, %5 in 1 : vector<32x128xf32>, vector<32x256xf32>, vector<32x128xf32> -> vector<32x512xf32>
    %109 = vector.extract_strided_slice %108 {offsets = [0, 126], sizes = [32, 256], strides = [1, 1]} : vector<32x512xf32> to vector<32x256xf32>
    %110 = vector.extract_strided_slice %108 {offsets = [0, 127], sizes = [32, 256], strides = [1, 1]} : vector<32x512xf32> to vector<32x256xf32>
    %111 = vector.extract_strided_slice %108 {offsets = [0, 128], sizes = [32, 256], strides = [1, 1]} : vector<32x512xf32> to vector<32x256xf32>
    %112 = vector.extract_strided_slice %108 {offsets = [0, 129], sizes = [32, 256], strides = [1, 1]} : vector<32x512xf32> to vector<32x256xf32>
    %113 = vector.extract_strided_slice %108 {offsets = [0, 130], sizes = [32, 256], strides = [1, 1]} : vector<32x512xf32> to vector<32x256xf32>
    %114 = tpu.concatenate %109, %110, %111, %112, %113 in 0 : vector<32x256xf32>, vector<32x256xf32>, vector<32x256xf32>, vector<32x256xf32>, vector<32x256xf32> -> vector<160x256xf32>
    %115 = vector.extract_strided_slice %106 {offsets = [0, 256], sizes = [32, 256], strides = [1, 1]} : vector<32x512xf32> to vector<32x256xf32>
    %116 = tpu.concatenate %5, %115, %5 in 1 : vector<32x128xf32>, vector<32x256xf32>, vector<32x128xf32> -> vector<32x512xf32>
    %117 = vector.extract_strided_slice %116 {offsets = [0, 126], sizes = [32, 256], strides = [1, 1]} : vector<32x512xf32> to vector<32x256xf32>
    %118 = vector.extract_strided_slice %116 {offsets = [0, 127], sizes = [32, 256], strides = [1, 1]} : vector<32x512xf32> to vector<32x256xf32>
    %119 = vector.extract_strided_slice %116 {offsets = [0, 128], sizes = [32, 256], strides = [1, 1]} : vector<32x512xf32> to vector<32x256xf32>
    %120 = vector.extract_strided_slice %116 {offsets = [0, 129], sizes = [32, 256], strides = [1, 1]} : vector<32x512xf32> to vector<32x256xf32>
    %121 = vector.extract_strided_slice %116 {offsets = [0, 130], sizes = [32, 256], strides = [1, 1]} : vector<32x512xf32> to vector<32x256xf32>
    %122 = tpu.concatenate %117, %118, %119, %120, %121 in 0 : vector<32x256xf32>, vector<32x256xf32>, vector<32x256xf32>, vector<32x256xf32>, vector<32x256xf32> -> vector<160x256xf32>
    %123 = tpu.concatenate %114, %122 in 1 : vector<160x256xf32>, vector<160x256xf32> -> vector<160x512xf32>
    %cst_38 = arith.constant dense<0.000000e+00> : vector<32x512xf32>
    %124 = tpu.matmul %100, %123, %cst_38 {dimension_numbers = #tpu.dot_dimension_numbers<[1], [0], [0], [1], [0, 0, 1, 1], [], []>} : vector<32x160xf32>, vector<160x512xf32>, vector<32x512xf32> -> vector<32x512xf32>
    %125 = vector.broadcast %101 : vector<32x1xf32> to vector<32x512xf32>
    %126 = arith.addf %124, %125 : vector<32x512xf32>
    %c0_39 = arith.constant 0 : index
    %c0_40 = arith.constant 0 : index
    %127 = vector.load %arg12[%c0_39, %c0_40] : memref<32x160xf32, #tpu.memory_space<vmem>>, vector<32x160xf32>
    %c0_41 = arith.constant 0 : index
    %c0_42 = arith.constant 0 : index
    %128 = vector.load %arg13[%c0_41, %c0_42] : memref<32x1xf32, #tpu.memory_space<vmem>>, vector<32x1xf32>
    %cst_43 = arith.constant 0.000000e+00 : f32
    %129 = vector.broadcast %cst_43 : f32 to vector<32x512xf32>
    %130 = arith.cmpf ogt, %126, %129 : vector<32x512xf32>
    %cst_44 = arith.constant 2.000000e-01 : f32
    %131 = vector.broadcast %cst_44 : f32 to vector<32x512xf32>
    %132 = arith.mulf %131, %126 : vector<32x512xf32>
    %133 = arith.select %130, %126, %132 : vector<32x512xi1>, vector<32x512xf32>
    %134 = vector.extract_strided_slice %133 {offsets = [0, 0], sizes = [32, 256], strides = [1, 1]} : vector<32x512xf32> to vector<32x256xf32>
    %135 = tpu.concatenate %5, %134, %5 in 1 : vector<32x128xf32>, vector<32x256xf32>, vector<32x128xf32> -> vector<32x512xf32>
    %136 = vector.extract_strided_slice %135 {offsets = [0, 126], sizes = [32, 256], strides = [1, 1]} : vector<32x512xf32> to vector<32x256xf32>
    %137 = vector.extract_strided_slice %135 {offsets = [0, 127], sizes = [32, 256], strides = [1, 1]} : vector<32x512xf32> to vector<32x256xf32>
    %138 = vector.extract_strided_slice %135 {offsets = [0, 128], sizes = [32, 256], strides = [1, 1]} : vector<32x512xf32> to vector<32x256xf32>
    %139 = vector.extract_strided_slice %135 {offsets = [0, 129], sizes = [32, 256], strides = [1, 1]} : vector<32x512xf32> to vector<32x256xf32>
    %140 = vector.extract_strided_slice %135 {offsets = [0, 130], sizes = [32, 256], strides = [1, 1]} : vector<32x512xf32> to vector<32x256xf32>
    %141 = tpu.concatenate %136, %137, %138, %139, %140 in 0 : vector<32x256xf32>, vector<32x256xf32>, vector<32x256xf32>, vector<32x256xf32>, vector<32x256xf32> -> vector<160x256xf32>
    %142 = vector.extract_strided_slice %133 {offsets = [0, 256], sizes = [32, 256], strides = [1, 1]} : vector<32x512xf32> to vector<32x256xf32>
    %143 = tpu.concatenate %5, %142, %5 in 1 : vector<32x128xf32>, vector<32x256xf32>, vector<32x128xf32> -> vector<32x512xf32>
    %144 = vector.extract_strided_slice %143 {offsets = [0, 126], sizes = [32, 256], strides = [1, 1]} : vector<32x512xf32> to vector<32x256xf32>
    %145 = vector.extract_strided_slice %143 {offsets = [0, 127], sizes = [32, 256], strides = [1, 1]} : vector<32x512xf32> to vector<32x256xf32>
    %146 = vector.extract_strided_slice %143 {offsets = [0, 128], sizes = [32, 256], strides = [1, 1]} : vector<32x512xf32> to vector<32x256xf32>
    %147 = vector.extract_strided_slice %143 {offsets = [0, 129], sizes = [32, 256], strides = [1, 1]} : vector<32x512xf32> to vector<32x256xf32>
    %148 = vector.extract_strided_slice %143 {offsets = [0, 130], sizes = [32, 256], strides = [1, 1]} : vector<32x512xf32> to vector<32x256xf32>
    %149 = tpu.concatenate %144, %145, %146, %147, %148 in 0 : vector<32x256xf32>, vector<32x256xf32>, vector<32x256xf32>, vector<32x256xf32>, vector<32x256xf32> -> vector<160x256xf32>
    %150 = tpu.concatenate %141, %149 in 1 : vector<160x256xf32>, vector<160x256xf32> -> vector<160x512xf32>
    %cst_45 = arith.constant dense<0.000000e+00> : vector<32x512xf32>
    %151 = tpu.matmul %127, %150, %cst_45 {dimension_numbers = #tpu.dot_dimension_numbers<[1], [0], [0], [1], [0, 0, 1, 1], [], []>} : vector<32x160xf32>, vector<160x512xf32>, vector<32x512xf32> -> vector<32x512xf32>
    %152 = vector.broadcast %128 : vector<32x1xf32> to vector<32x512xf32>
    %153 = arith.addf %151, %152 : vector<32x512xf32>
    %154 = arith.addf %153, %4 : vector<32x512xf32>
    %c0_46 = arith.constant 0 : index
    %c0_47 = arith.constant 0 : index
    %155 = vector.load %arg14[%c0_46, %c0_47] : memref<32x160xf32, #tpu.memory_space<vmem>>, vector<32x160xf32>
    %c0_48 = arith.constant 0 : index
    %c0_49 = arith.constant 0 : index
    %156 = vector.load %arg15[%c0_48, %c0_49] : memref<32x1xf32, #tpu.memory_space<vmem>>, vector<32x1xf32>
    %cst_50 = arith.constant 0.000000e+00 : f32
    %157 = vector.broadcast %cst_50 : f32 to vector<32x512xf32>
    %158 = arith.cmpf ogt, %154, %157 : vector<32x512xf32>
    %cst_51 = arith.constant 2.000000e-01 : f32
    %159 = vector.broadcast %cst_51 : f32 to vector<32x512xf32>
    %160 = arith.mulf %159, %154 : vector<32x512xf32>
    %161 = arith.select %158, %154, %160 : vector<32x512xi1>, vector<32x512xf32>
    %162 = vector.extract_strided_slice %161 {offsets = [0, 0], sizes = [32, 256], strides = [1, 1]} : vector<32x512xf32> to vector<32x256xf32>
    %163 = tpu.concatenate %5, %162, %5 in 1 : vector<32x128xf32>, vector<32x256xf32>, vector<32x128xf32> -> vector<32x512xf32>
    %164 = vector.extract_strided_slice %163 {offsets = [0, 122], sizes = [32, 256], strides = [1, 1]} : vector<32x512xf32> to vector<32x256xf32>
    %165 = vector.extract_strided_slice %163 {offsets = [0, 125], sizes = [32, 256], strides = [1, 1]} : vector<32x512xf32> to vector<32x256xf32>
    %166 = vector.extract_strided_slice %163 {offsets = [0, 128], sizes = [32, 256], strides = [1, 1]} : vector<32x512xf32> to vector<32x256xf32>
    %167 = vector.extract_strided_slice %163 {offsets = [0, 131], sizes = [32, 256], strides = [1, 1]} : vector<32x512xf32> to vector<32x256xf32>
    %168 = vector.extract_strided_slice %163 {offsets = [0, 134], sizes = [32, 256], strides = [1, 1]} : vector<32x512xf32> to vector<32x256xf32>
    %169 = tpu.concatenate %164, %165, %166, %167, %168 in 0 : vector<32x256xf32>, vector<32x256xf32>, vector<32x256xf32>, vector<32x256xf32>, vector<32x256xf32> -> vector<160x256xf32>
    %170 = vector.extract_strided_slice %161 {offsets = [0, 256], sizes = [32, 256], strides = [1, 1]} : vector<32x512xf32> to vector<32x256xf32>
    %171 = tpu.concatenate %5, %170, %5 in 1 : vector<32x128xf32>, vector<32x256xf32>, vector<32x128xf32> -> vector<32x512xf32>
    %172 = vector.extract_strided_slice %171 {offsets = [0, 122], sizes = [32, 256], strides = [1, 1]} : vector<32x512xf32> to vector<32x256xf32>
    %173 = vector.extract_strided_slice %171 {offsets = [0, 125], sizes = [32, 256], strides = [1, 1]} : vector<32x512xf32> to vector<32x256xf32>
    %174 = vector.extract_strided_slice %171 {offsets = [0, 128], sizes = [32, 256], strides = [1, 1]} : vector<32x512xf32> to vector<32x256xf32>
    %175 = vector.extract_strided_slice %171 {offsets = [0, 131], sizes = [32, 256], strides = [1, 1]} : vector<32x512xf32> to vector<32x256xf32>
    %176 = vector.extract_strided_slice %171 {offsets = [0, 134], sizes = [32, 256], strides = [1, 1]} : vector<32x512xf32> to vector<32x256xf32>
    %177 = tpu.concatenate %172, %173, %174, %175, %176 in 0 : vector<32x256xf32>, vector<32x256xf32>, vector<32x256xf32>, vector<32x256xf32>, vector<32x256xf32> -> vector<160x256xf32>
    %178 = tpu.concatenate %169, %177 in 1 : vector<160x256xf32>, vector<160x256xf32> -> vector<160x512xf32>
    %cst_52 = arith.constant dense<0.000000e+00> : vector<32x512xf32>
    %179 = tpu.matmul %155, %178, %cst_52 {dimension_numbers = #tpu.dot_dimension_numbers<[1], [0], [0], [1], [0, 0, 1, 1], [], []>} : vector<32x160xf32>, vector<160x512xf32>, vector<32x512xf32> -> vector<32x512xf32>
    %180 = vector.broadcast %156 : vector<32x1xf32> to vector<32x512xf32>
    %181 = arith.addf %179, %180 : vector<32x512xf32>
    %c0_53 = arith.constant 0 : index
    %c0_54 = arith.constant 0 : index
    %182 = vector.load %arg16[%c0_53, %c0_54] : memref<32x160xf32, #tpu.memory_space<vmem>>, vector<32x160xf32>
    %c0_55 = arith.constant 0 : index
    %c0_56 = arith.constant 0 : index
    %183 = vector.load %arg17[%c0_55, %c0_56] : memref<32x1xf32, #tpu.memory_space<vmem>>, vector<32x1xf32>
    %cst_57 = arith.constant 0.000000e+00 : f32
    %184 = vector.broadcast %cst_57 : f32 to vector<32x512xf32>
    %185 = arith.cmpf ogt, %181, %184 : vector<32x512xf32>
    %cst_58 = arith.constant 2.000000e-01 : f32
    %186 = vector.broadcast %cst_58 : f32 to vector<32x512xf32>
    %187 = arith.mulf %186, %181 : vector<32x512xf32>
    %188 = arith.select %185, %181, %187 : vector<32x512xi1>, vector<32x512xf32>
    %189 = vector.extract_strided_slice %188 {offsets = [0, 0], sizes = [32, 256], strides = [1, 1]} : vector<32x512xf32> to vector<32x256xf32>
    %190 = tpu.concatenate %5, %189, %5 in 1 : vector<32x128xf32>, vector<32x256xf32>, vector<32x128xf32> -> vector<32x512xf32>
    %191 = vector.extract_strided_slice %190 {offsets = [0, 126], sizes = [32, 256], strides = [1, 1]} : vector<32x512xf32> to vector<32x256xf32>
    %192 = vector.extract_strided_slice %190 {offsets = [0, 127], sizes = [32, 256], strides = [1, 1]} : vector<32x512xf32> to vector<32x256xf32>
    %193 = vector.extract_strided_slice %190 {offsets = [0, 128], sizes = [32, 256], strides = [1, 1]} : vector<32x512xf32> to vector<32x256xf32>
    %194 = vector.extract_strided_slice %190 {offsets = [0, 129], sizes = [32, 256], strides = [1, 1]} : vector<32x512xf32> to vector<32x256xf32>
    %195 = vector.extract_strided_slice %190 {offsets = [0, 130], sizes = [32, 256], strides = [1, 1]} : vector<32x512xf32> to vector<32x256xf32>
    %196 = tpu.concatenate %191, %192, %193, %194, %195 in 0 : vector<32x256xf32>, vector<32x256xf32>, vector<32x256xf32>, vector<32x256xf32>, vector<32x256xf32> -> vector<160x256xf32>
    %197 = vector.extract_strided_slice %188 {offsets = [0, 256], sizes = [32, 256], strides = [1, 1]} : vector<32x512xf32> to vector<32x256xf32>
    %198 = tpu.concatenate %5, %197, %5 in 1 : vector<32x128xf32>, vector<32x256xf32>, vector<32x128xf32> -> vector<32x512xf32>
    %199 = vector.extract_strided_slice %198 {offsets = [0, 126], sizes = [32, 256], strides = [1, 1]} : vector<32x512xf32> to vector<32x256xf32>
    %200 = vector.extract_strided_slice %198 {offsets = [0, 127], sizes = [32, 256], strides = [1, 1]} : vector<32x512xf32> to vector<32x256xf32>
    %201 = vector.extract_strided_slice %198 {offsets = [0, 128], sizes = [32, 256], strides = [1, 1]} : vector<32x512xf32> to vector<32x256xf32>
    %202 = vector.extract_strided_slice %198 {offsets = [0, 129], sizes = [32, 256], strides = [1, 1]} : vector<32x512xf32> to vector<32x256xf32>
    %203 = vector.extract_strided_slice %198 {offsets = [0, 130], sizes = [32, 256], strides = [1, 1]} : vector<32x512xf32> to vector<32x256xf32>
    %204 = tpu.concatenate %199, %200, %201, %202, %203 in 0 : vector<32x256xf32>, vector<32x256xf32>, vector<32x256xf32>, vector<32x256xf32>, vector<32x256xf32> -> vector<160x256xf32>
    %205 = tpu.concatenate %196, %204 in 1 : vector<160x256xf32>, vector<160x256xf32> -> vector<160x512xf32>
    %cst_59 = arith.constant dense<0.000000e+00> : vector<32x512xf32>
    %206 = tpu.matmul %182, %205, %cst_59 {dimension_numbers = #tpu.dot_dimension_numbers<[1], [0], [0], [1], [0, 0, 1, 1], [], []>} : vector<32x160xf32>, vector<160x512xf32>, vector<32x512xf32> -> vector<32x512xf32>
    %207 = vector.broadcast %183 : vector<32x1xf32> to vector<32x512xf32>
    %208 = arith.addf %206, %207 : vector<32x512xf32>
    %209 = arith.addf %208, %154 : vector<32x512xf32>
    %210 = arith.addf %99, %209 : vector<32x512xf32>
    %211 = vector.extract_strided_slice %210 {offsets = [0, 0], sizes = [32, 256], strides = [1, 1]} : vector<32x512xf32> to vector<32x256xf32>
    %c0_60 = arith.constant 0 : index
    %c0_61 = arith.constant 0 : index
    %c0_62 = arith.constant 0 : index
    %212 = vector.load %arg18[%c0_60, %c0_61, %c0_62] : memref<2x32x256xf32, #tpu.memory_space<vmem>>, vector<1x32x256xf32>
    %213 = vector.shape_cast %212 : vector<1x32x256xf32> to vector<32x256xf32>
    %214 = vector.shape_cast %211 : vector<32x256xf32> to vector<1x32x256xf32>
    tpu.vector_store %arg18[%c0_60, %c0_61, %c0_62], %214 {strides = array<i32>} : memref<2x32x256xf32, #tpu.memory_space<vmem>>, vector<1x32x256xf32>,
    %215 = vector.extract_strided_slice %210 {offsets = [0, 256], sizes = [32, 256], strides = [1, 1]} : vector<32x512xf32> to vector<32x256xf32>
    %c1_63 = arith.constant 1 : index
    %c0_64 = arith.constant 0 : index
    %c0_65 = arith.constant 0 : index
    %216 = vector.load %arg18[%c1_63, %c0_64, %c0_65] : memref<2x32x256xf32, #tpu.memory_space<vmem>>, vector<1x32x256xf32>
    %217 = vector.shape_cast %216 : vector<1x32x256xf32> to vector<32x256xf32>
    %218 = vector.shape_cast %215 : vector<32x256xf32> to vector<1x32x256xf32>
    tpu.vector_store %arg18[%c1_63, %c0_64, %c0_65], %218 {strides = array<i32>} : memref<2x32x256xf32, #tpu.memory_space<vmem>>, vector<1x32x256xf32>,
    return
  }
  func.func @transform_0(%arg0: i32) -> (i32, i32, i32) {
    %c0_i32 = arith.constant 0 : i32
    %c0_i32_0 = arith.constant 0 : i32
    %c0_i32_1 = arith.constant 0 : i32
    %c0_i32_2 = arith.constant 0 : i32
    return %c0_i32, %c0_i32_0, %c0_i32_1 : i32, i32, i32
  }
  func.func @transform_1(%arg0: i32) -> (i32, i32) {
    %c0_i32 = arith.constant 0 : i32
    %c0_i32_0 = arith.constant 0 : i32
    %c0_i32_1 = arith.constant 0 : i32
    return %c0_i32, %c0_i32_0 : i32, i32
  }
  func.func @transform_2(%arg0: i32) -> (i32, i32) {
    %c0_i32 = arith.constant 0 : i32
    %c0_i32_0 = arith.constant 0 : i32
    %c0_i32_1 = arith.constant 0 : i32
    return %c0_i32, %c0_i32_0 : i32, i32
  }
  func.func @transform_3(%arg0: i32) -> (i32, i32) {
    %c0_i32 = arith.constant 0 : i32
    %c0_i32_0 = arith.constant 0 : i32
    %c0_i32_1 = arith.constant 0 : i32
    return %c0_i32, %c0_i32_0 : i32, i32
  }
  func.func @transform_4(%arg0: i32) -> (i32, i32) {
    %c0_i32 = arith.constant 0 : i32
    %c0_i32_0 = arith.constant 0 : i32
    %c0_i32_1 = arith.constant 0 : i32
    return %c0_i32, %c0_i32_0 : i32, i32
  }
  func.func @transform_5(%arg0: i32) -> (i32, i32) {
    %c0_i32 = arith.constant 0 : i32
    %c0_i32_0 = arith.constant 0 : i32
    %c0_i32_1 = arith.constant 0 : i32
    return %c0_i32, %c0_i32_0 : i32, i32
  }
  func.func @transform_6(%arg0: i32) -> (i32, i32) {
    %c0_i32 = arith.constant 0 : i32
    %c0_i32_0 = arith.constant 0 : i32
    %c0_i32_1 = arith.constant 0 : i32
    return %c0_i32, %c0_i32_0 : i32, i32
  }
  func.func @transform_7(%arg0: i32) -> (i32, i32) {
    %c0_i32 = arith.constant 0 : i32
    %c0_i32_0 = arith.constant 0 : i32
    %c0_i32_1 = arith.constant 0 : i32
    return %c0_i32, %c0_i32_0 : i32, i32
  }
  func.func @transform_8(%arg0: i32) -> (i32, i32) {
    %c0_i32 = arith.constant 0 : i32
    %c0_i32_0 = arith.constant 0 : i32
    %c0_i32_1 = arith.constant 0 : i32
    return %c0_i32, %c0_i32_0 : i32, i32
  }
  func.func @transform_9(%arg0: i32) -> (i32, i32) {
    %c0_i32 = arith.constant 0 : i32
    %c0_i32_0 = arith.constant 0 : i32
    %c0_i32_1 = arith.constant 0 : i32
    return %c0_i32, %c0_i32_0 : i32, i32
  }
  func.func @transform_10(%arg0: i32) -> (i32, i32) {
    %c0_i32 = arith.constant 0 : i32
    %c0_i32_0 = arith.constant 0 : i32
    %c0_i32_1 = arith.constant 0 : i32
    return %c0_i32, %c0_i32_0 : i32, i32
  }
  func.func @transform_11(%arg0: i32) -> (i32, i32) {
    %c0_i32 = arith.constant 0 : i32
    %c0_i32_0 = arith.constant 0 : i32
    %c0_i32_1 = arith.constant 0 : i32
    return %c0_i32, %c0_i32_0 : i32, i32
  }
  func.func @transform_12(%arg0: i32) -> (i32, i32) {
    %c0_i32 = arith.constant 0 : i32
    %c0_i32_0 = arith.constant 0 : i32
    %c0_i32_1 = arith.constant 0 : i32
    return %c0_i32, %c0_i32_0 : i32, i32
  }
  func.func @transform_13(%arg0: i32) -> (i32, i32) {
    %c0_i32 = arith.constant 0 : i32
    %c0_i32_0 = arith.constant 0 : i32
    %c0_i32_1 = arith.constant 0 : i32
    return %c0_i32, %c0_i32_0 : i32, i32
  }
  func.func @transform_14(%arg0: i32) -> (i32, i32) {
    %c0_i32 = arith.constant 0 : i32
    %c0_i32_0 = arith.constant 0 : i32
    %c0_i32_1 = arith.constant 0 : i32
    return %c0_i32, %c0_i32_0 : i32, i32
  }
  func.func @transform_15(%arg0: i32) -> (i32, i32) {
    %c0_i32 = arith.constant 0 : i32
    %c0_i32_0 = arith.constant 0 : i32
    %c0_i32_1 = arith.constant 0 : i32
    return %c0_i32, %c0_i32_0 : i32, i32
  }
  func.func @transform_16(%arg0: i32) -> (i32, i32) {
    %c0_i32 = arith.constant 0 : i32
    %c0_i32_0 = arith.constant 0 : i32
    %c0_i32_1 = arith.constant 0 : i32
    return %c0_i32, %c0_i32_0 : i32, i32
  }
  func.func @transform_17(%arg0: i32) -> (i32, i32, i32) {
    %c0_i32 = arith.constant 0 : i32
    %c0_i32_0 = arith.constant 0 : i32
    %c0_i32_1 = arith.constant 0 : i32
    %c0_i32_2 = arith.constant 0 : i32
    return %c0_i32, %c0_i32_0, %c0_i32_1 : i32, i32, i32
  }
}

</mosaic_0001>

<bundles_post_ra>
// kernel: tpu_custom_call.1
= control target key start
LH: loop header
LB: loop body
LE: loop exit
PB: predicated region body
PF: predicated region fallthrough
CT: control target
= control target key end

     0   :  { %s14028_s0 = inlined_call_operand.vmem [shape: f32[2,32,256], index: 0, kind: input, shape index: {}]   ;;  %s14029_s1 = inlined_call_operand.hbm [shape: f32[32,96], index: 1, kind: input, shape index: {}]   ;;  %s14030_s2 = inlined_call_operand.vmem [shape: f32[32,1], index: 2, kind: input, shape index: {}]   ;;  %s14031_s3 = inlined_call_operand.hbm [shape: f32[32,96], index: 3, kind: input, shape index: {}]   ;;  %s14032_s4 = inlined_call_operand.vmem [shape: f32[32,1], index: 4, kind: input, shape index: {}]   ;;  %s14033_s5 = inlined_call_operand.hbm [shape: f32[32,96], index: 5, kind: input, shape index: {}]   ;;  %s14034_s6 = inlined_call_operand.vmem [shape: f32[32,1], index: 6, kind: input, shape index: {}]   ;;  %s14035_s7 = inlined_call_operand.hbm [shape: f32[32,96], index: 7, kind: input, shape index: {}]   ;;  %s14036_s8 = inlined_call_operand.vmem [shape: f32[32,1], index: 8, kind: input, shape index: {}]   ;;  %s14037_s9 = inlined_call_operand.vmem [shape: f32[32,160], index: 9, kind: input, shape index: {}]   ;;  %s14038_s10 = inlined_call_operand.vmem [shape: f32[32,1], index: 10, kind: input, shape index: {}]   ;;  %s14039_s11 = inlined_call_operand.vmem [shape: f32[32,160], index: 11, kind: input, shape index: {}]   ;;  %s14040_s12 = inlined_call_operand.vmem [shape: f32[32,1], index: 12, kind: input, shape index: {}]   ;;  %s14041_s13 = inlined_call_operand.hbm [shape: f32[32,160], index: 13, kind: input, shape index: {}]   ;;  %s14042_s14 = inlined_call_operand.vmem [shape: f32[32,1], index: 14, kind: input, shape index: {}]   ;;  %s14043_s15 = inlined_call_operand.vmem [shape: f32[32,160], index: 15, kind: input, shape index: {}]   ;;  %s14044_s16 = inlined_call_operand.vmem [shape: f32[32,1], index: 16, kind: input, shape index: {}]   ;;  %s14045_s17 = inlined_call_operand.hbm [shape: f32[2,32,256], index: 17, kind: output, shape index: {}]  }
   0x1   :  { %14178 = sst [smem:[#allocation62_spill]] %s14028_s0 }
   0x2   :  { %14179 = sst [smem:[#allocation63_spill]] %s14029_s1 }
   0x3   :  { %14180 = sst [smem:[#allocation64_spill]] %s14045_s17 }
   0x4   :  { %22 = vsyncpa [#allocation3], 0 }
   0x5   :  { %23 = vsyncpa [#allocation6], 0 }
   0x6   :  { %24 = vsyncpa [#allocation9], 0 }
   0x7   :  { %25 = vsyncpa [#allocation4], 0  ;;  %s9443_s24 = smov [#allocation5]   ;;  %s9444_s26 = smov [#allocation8]  }
   0x8   :  { %s47_s25 = sshll.u32 %s9443_s24, 4  ;;  %s75_s27 = sshll.u32 %s9444_s26, 4  ;;  %s48_s25 = int_to_ptr.vmem [resolvable:$true] %s47_s25  ;;  %s9556_s27 = int_to_ptr.vmem [resolvable:$true] %s75_s27 }
   0x9   :  { %s9303_s0 = scalar_lea.hbm %s14031_s3, 512 }
   0xa   :  { %p9304_p0 = scmp.ne.s32.totalorder %s14031_s3, %s9303_s0  ;;  %p9307_p1 = scmp.lt.u32.totalorder %s9303_s0, %s14031_s3 }
   0xc   :  { %p9309_p2 = pnand %p9307_p1, %p9304_p0 }
   0xe   :  { %9312 = shalt.err (!%p9309_p2)
}
   0xf   :  { %s9313_s20 = scalar_lea.vmem %s48_s25, 512  ;;  %p9318_p4 = scmp.lt.s32.totalorder %s48_s25, %s48_s25 }
  0x10   :  { %p9314_p3 = scmp.ne.s32.totalorder %s48_s25, %s9313_s20  ;;  %p9319_p5 = scmp.lt.s32.totalorder %s9313_s20, %s9313_s20 }
  0x12   :  { %p9320_p6 = por %p9319_p5, %p9318_p4 }
  0x14   :  { %p9321_p7 = pnand %p9320_p6, %p9314_p3 }
  0x16   :  { %9324 = shalt.err (!%p9321_p7)
}
  0x17   :  { %s9445_s21 = smov 128   ;;  %s9446_s22 = smov 8  }
  0x18   :  { %53 = dma.hbm_to_vmem [thread:$0]  %s14031_s3, 512, %s48_s25, [#allocation6], %s9445_s21, %s9445_s21, %s9446_s22  }
  0x19   :  { %s9325_s29 = scalar_lea.hbm %s14035_s7, 512 }
  0x1a   :  { %p9326_p8 = scmp.ne.s32.totalorder %s14035_s7, %s9325_s29  ;;  %p9329_p9 = scmp.lt.u32.totalorder %s9325_s29, %s14035_s7 }
  0x1c   :  { %p9331_p10 = pnand %p9329_p9, %p9326_p8 }
  0x1e   :  { %9334 = shalt.err (!%p9331_p10)
}
  0x1f   :  { %s9335_s1 = scalar_lea.vmem %s9556_s27, 512  ;;  %p9340_p12 = scmp.lt.s32.totalorder %s9556_s27, %s9556_s27 }
  0x20   :  { %p9336_p11 = scmp.ne.s32.totalorder %s9556_s27, %s9335_s1  ;;  %p9341_p13 = scmp.lt.s32.totalorder %s9335_s1, %s9335_s1 }
  0x22   :  { %p9342_p0 = por %p9341_p13, %p9340_p12 }
  0x24   :  { %p9343_p1 = pnand %p9342_p0, %p9336_p11 }
  0x26   :  { %9346 = shalt.err (!%p9343_p1)
}
  0x27   :  { %81 = dma.hbm_to_vmem [thread:$0]  %s14035_s7, 512, %s9556_s27, [#allocation9], %s9445_s21, %s9445_s21, %s9446_s22  }
  0x28   :  { %s9447_s20 = smov [#allocation2]   ;;  %s9448_s24 = smov [#allocation7]  }
  0x29   :  { %s33_s23 = sshll.u32 %s9447_s20, 4  ;;  %s61_s26 = sshll.u32 %s9448_s24, 4  ;;  %s34_s23 = int_to_ptr.vmem [resolvable:$true] %s33_s23  ;;  %s9593_s26 = int_to_ptr.vmem [resolvable:$true] %s61_s26 }
  0x2a   :  { %s14181_s0 = sld [smem:[#allocation63_spill]] }
  0x30   :  { %s9347_s30 = scalar_lea.hbm %s14181_s0, 512 }
  0x31   :  { %p9348_p2 = scmp.ne.s32.totalorder %s14181_s0, %s9347_s30  ;;  %p9351_p3 = scmp.lt.u32.totalorder %s9347_s30, %s14181_s0 }
  0x33   :  { %p9353_p4 = pnand %p9351_p3, %p9348_p2 }
  0x35   :  { %9356 = shalt.err (!%p9353_p4)
}
  0x36   :  { %s9357_s7 = scalar_lea.vmem %s34_s23, 512  ;;  %p9362_p6 = scmp.lt.s32.totalorder %s34_s23, %s34_s23 }
  0x37   :  { %p9358_p5 = scmp.ne.s32.totalorder %s34_s23, %s9357_s7  ;;  %p9363_p7 = scmp.lt.s32.totalorder %s9357_s7, %s9357_s7 }
  0x39   :  { %p9364_p8 = por %p9363_p7, %p9362_p6 }
  0x3b   :  { %p9365_p9 = pnand %p9364_p8, %p9358_p5 }
  0x3d   :  { %9368 = shalt.err (!%p9365_p9)
}
  0x3e   :  { %39 = dma.hbm_to_vmem [thread:$0]  %s14181_s0, 512, %s34_s23, [#allocation3], %s9445_s21, %s9445_s21, %s9446_s22  }
  0x3f   :  { %s9369_s17 = scalar_lea.hbm %s14033_s5, 512 }
  0x40   :  { %p9370_p10 = scmp.ne.s32.totalorder %s14033_s5, %s9369_s17  ;;  %p9373_p11 = scmp.lt.u32.totalorder %s9369_s17, %s14033_s5 }
  0x42   :  { %p9375_p12 = pnand %p9373_p11, %p9370_p10 }
  0x44   :  { %9378 = shalt.err (!%p9375_p12)
}
  0x45   :  { %s9379_s18 = scalar_lea.vmem %s9593_s26, 512  ;;  %p9384_p0 = scmp.lt.s32.totalorder %s9593_s26, %s9593_s26 }
  0x46   :  { %p9380_p13 = scmp.ne.s32.totalorder %s9593_s26, %s9379_s18  ;;  %p9385_p1 = scmp.lt.s32.totalorder %s9379_s18, %s9379_s18 }
  0x48   :  { %p9386_p2 = por %p9385_p1, %p9384_p0 }
  0x4a   :  { %p9387_p3 = pnand %p9386_p2, %p9380_p13 }
  0x4c   :  { %9390 = shalt.err (!%p9387_p3)
}
  0x4d   :  { %67 = dma.hbm_to_vmem [thread:$0]  %s14033_s5, 512, %s9593_s26, [#allocation6], %s9445_s21, %s9445_s21, %s9446_s22  }
  0x4e   :  { %s9449_s19 = smov [#allocation10]   ;;  %s9391_s3 = scalar_lea.hbm %s14041_s13, 1024 }
  0x4f   :  { %s97_s1 = sshll.u32 %s9449_s19, 4  ;;  %p9392_p4 = scmp.ne.s32.totalorder %s14041_s13, %s9391_s3  ;;  %s98_s1 = int_to_ptr.vmem [resolvable:$true] %s97_s1 }
  0x50   :  { %p9395_p5 = scmp.lt.u32.totalorder %s9391_s3, %s14041_s13 }
  0x52   :  { %p9397_p6 = pnand %p9395_p5, %p9392_p4 }
  0x54   :  { %9400 = shalt.err (!%p9397_p6)
}
  0x55   :  { %s9401_s28 = scalar_lea.vmem %s98_s1, 1024  ;;  %p9406_p8 = scmp.lt.s32.totalorder %s98_s1, %s98_s1 }
  0x56   :  { %p9402_p7 = scmp.ne.s32.totalorder %s98_s1, %s9401_s28  ;;  %p9407_p9 = scmp.lt.s32.totalorder %s9401_s28, %s9401_s28 }
  0x58   :  { %p9408_p10 = por %p9407_p9, %p9406_p8 }
  0x5a   :  { %p9409_p11 = pnand %p9408_p10, %p9402_p7 }
  0x5c   :  { %9412 = shalt.err (!%p9409_p11)
}
  0x5d   :  { %s9450_s5 = smov 256   ;;  %s9451_s21 = smov 16  }
  0x5e   :  { %103 = dma.hbm_to_vmem [thread:$0]  %s14041_s13, 1024, %s98_s1, [#allocation9], %s9450_s5, %s9450_s5, %s9451_s21  }
  0x5f   :  { %9435 = dma.done.wait [#allocation3], 512  }
  0x60   :  { %9436 = vsyncadd [#allocation3], 4294966784 }
  0x61   :  { %9437 = dma.done.wait [#allocation6], 1024  }
  0x62   :  { %9438 = vsyncadd [#allocation6], 4294966272 }
  0x63   :  { %9439 = dma.done.wait [#allocation9], 1536  }
  0x64   :  { %9440 = vsyncadd [#allocation9], 4294965760  ;;  %v14049_v0 = vmov 0.0   ;;  %s14182_s18 = sld [smem:[#allocation62_spill]]  ;;  %s9453_s19 = smov 127  }
  0x65   :  { %631 = vmatprep.mubr.f32.mxu0 %v14049_v0  ;;  %720 = vmatprep.mubr.f32.mxu1 %v14049_v0  ;;  %s9454_s26 = smov 126   ;;  %s9455_s29 = smov 1  }
  0x66   :  { %s9457_s20 = smov 125   ;;  %s9458_s30 = smov 122  }
  0x67   :  { %s9459_s1 = smov 3   ;;  %s9461_s22 = smov 2  }
  0x68   :  { %s9463_s17 = smov 119  }
  0x6a   :  { %v5942_v1 = vld [vmem:[%s14182_s18 + $0x40] sm:$0xff]  ;;  %v5943_v2 = vld [vmem:[%s14182_s18 + $0x48] sm:$0xff]  ;;  %v5944_v8 = vld [vmem:[%s14182_s18 + $0x50] sm:$0xff] }
  0x6b   :  { %v125_v3 = vld [vmem:[%s14182_s18] sm:$0xff]  ;;  %vm152_vm0 = vcmp.gt.f32.partialorder %v5942_v1, 0.0  ;;  %vm153_vm1 = vcmp.gt.f32.partialorder %v5943_v2, 0.0  ;;  %v168_v4 = vmul.f32 0.2, %v5942_v1  ;;  %v126_v6 = vld [vmem:[%s14182_s18 + $0x8] sm:$0xff] }
  0x6c   :  { %v169_v5 = vmul.f32 0.2, %v5943_v2  ;;  %vm150_vm2 = vcmp.gt.f32.partialorder %v125_v3, 0.0  ;;  %v166_v7 = vmul.f32 0.2, %v125_v3  ;;  %v5945_v9 = vld [vmem:[%s14182_s18 + $0x58] sm:$0xff] }
  0x6d   :  { %v9665_v10 = vsel %vm152_vm0, %v5942_v1, %v168_v4  ;;  %vm151_vm3 = vcmp.gt.f32.partialorder %v126_v6, 0.0  ;;  %v167_v12 = vmul.f32 0.2, %v126_v6  ;;  %v127_v13 = vld [vmem:[%s14182_s18 + $0x10] sm:$0xff]  ;;  %v128_v14 = vld [vmem:[%s14182_s18 + $0x18] sm:$0xff]  ;;  %vm156_vm4 = vcmp.gt.f32.partialorder %v5944_v8, 0.0 }
  0x6e   :  { %v9667_v11 = vsel %vm153_vm1, %v5943_v2, %v169_v5  ;;  %v182_v16 = vsel %vm150_vm2, %v125_v3, %v166_v7  ;;  %vm157_vm5 = vcmp.gt.f32.partialorder %v5945_v9, 0.0  ;;  %v131_v17 = vld [vmem:[%s14182_s18 + $0x30] sm:$0xff]  ;;  %v132_v18 = vld [vmem:[%s14182_s18 + $0x38] sm:$0xff]  ;;  %v172_v20 = vmul.f32 0.2, %v5944_v8  ;;  %v129_v22 = vld [vmem:[%s14182_s18 + $0x20] sm:$0xff] }
  0x6f   :  { %v9677_v15 = vpack.i.bf16 %v9667_v11, %v9665_v10  ;;  %v183_v19 = vsel %vm151_vm3, %v126_v6, %v167_v12  ;;  %v173_v21 = vmul.f32 0.2, %v5945_v9  ;;  %vm154_vm6 = vcmp.gt.f32.partialorder %v127_v13, 0.0  ;;  %v130_v26 = vld [vmem:[%s14182_s18 + $0x28] sm:$0xff]  ;;  %v5948_v29 = vld [vmem:[%s14182_s18 + $0x70] sm:$0xff]  ;;  %v5949_v34 = vld [vmem:[%s14182_s18 + $0x78] sm:$0xff] }
  0x70   :  { %v9690_v23 = vpack.i.bf16 %v183_v19, %v182_v16  ;;  %vm155_vm7 = vcmp.gt.f32.partialorder %v128_v14, 0.0  ;;  %v170_v24 = vmul.f32 0.2, %v127_v13  ;;  %v171_v25 = vmul.f32 0.2, %v128_v14  ;;  %v5946_v37 = vld [vmem:[%s14182_s18 + $0x60] sm:$0xff] }
  0x71   :  { %6640 = vrot.lane.b32.xlu1 %v9677_v15, %s9453_s19  ;;  %v188_v27 = vsel %vm156_vm4, %v5944_v8, %v172_v20  ;;  %v189_v28 = vsel %vm157_vm5, %v5945_v9, %v173_v21  ;;  %vm162_vm8 = vcmp.gt.f32.partialorder %v131_v17, 0.0  ;;  %vm163_vm9 = vcmp.gt.f32.partialorder %v132_v18, 0.0  ;;  %v5947_v41 = vld [vmem:[%s14182_s18 + $0x68] sm:$0xff] }
  0x72   :  { %6630 = vrot.lane.b32.xlu0 %v9690_v23, %s9453_s19  ;;  %v9702_v30 = vpack.i.bf16 %v189_v28, %v188_v27  ;;  %v186_v31 = vsel %vm154_vm6, %v127_v13, %v170_v24  ;;  %v187_v32 = vsel %vm155_vm7, %v128_v14, %v171_v25  ;;  %v178_v33 = vmul.f32 0.2, %v131_v17 }
  0x73   :  { %v9708_v35 = vpack.i.bf16 %v187_v32, %v186_v31  ;;  %v179_v36 = vmul.f32 0.2, %v132_v18  ;;  %vm158_vm10 = vcmp.gt.f32.partialorder %v129_v22, 0.0  ;;  %vm159_vm11 = vcmp.gt.f32.partialorder %v130_v26, 0.0 }
  0x74   :  { %v194_v38 = vsel %vm162_vm8, %v131_v17, %v178_v33  ;;  %v174_v39 = vmul.f32 0.2, %v129_v22  ;;  %v175_v40 = vmul.f32 0.2, %v130_v26  ;;  %vm164_vm12 = vcmp.gt.f32.partialorder %v5948_v29, 0.0 }
  0x75   :  { %6645 = vrot.lane.b32.xlu1 %v9702_v30, %s9453_s19  ;;  %v195_v42 = vsel %vm163_vm9, %v132_v18, %v179_v36  ;;  %vm165_vm13 = vcmp.gt.f32.partialorder %v5949_v34, 0.0  ;;  %v180_v43 = vmul.f32 0.2, %v5948_v29  ;;  %v181_v44 = vmul.f32 0.2, %v5949_v34 }
  0x76   :  { %6635 = vrot.lane.b32.xlu0 %v9708_v35, %s9453_s19  ;;  %v6654_v45 = vpack.i.bf16 %v195_v42, %v194_v38  ;;  %v190_v46 = vsel %vm158_vm10, %v129_v22, %v174_v39  ;;  %v191_v47 = vsel %vm159_vm11, %v130_v26, %v175_v40  ;;  %vm160_vm14 = vcmp.gt.f32.partialorder %v5946_v37, 0.0 }
  0x77   :  { %v6649_v48 = vpack.i.bf16 %v191_v47, %v190_v46  ;;  %v196_v49 = vsel %vm164_vm12, %v5948_v29, %v180_v43  ;;  %v9721_v50 = vsel %vm165_vm13, %v5949_v34, %v181_v44  ;;  %vm161_vm15 = vcmp.gt.f32.partialorder %v5947_v41, 0.0 }
  0x78   :  { %v6664_v51 = vpack.i.bf16 %v9721_v50, %v196_v49  ;;  %v176_v52 = vmul.f32 0.2, %v5946_v37  ;;  %v177_v53 = vmul.f32 0.2, %v5947_v41  ;;  %v9728_v57 = vpack.i.bf16 %v186_v31, %v14049_v0 }
  0x79   :  { %6655 = vrot.lane.b32.xlu1 %v6654_v45, %s9453_s19  ;;  %v9734_v58 = vpack.i.bf16 %v188_v27, %v9667_v11  ;;  %v9739_v59 = vpack.i.bf16 %v9665_v10, %v187_v32  ;;  %v9743_v60 = vpack.i.bf16 %v194_v38, %v191_v47  ;;  %v9747_v61 = vpack.i.bf16 %v190_v46, %v189_v28 }
  0x7a   :  { %6650 = vrot.lane.b32.xlu0 %v6649_v48, %s9453_s19  ;;  %v192_v54 = vsel %vm160_vm14, %v5946_v37, %v176_v52  ;;  %v193_v55 = vsel %vm161_vm15, %v5947_v41, %v177_v53  ;;  %v9768_v1 = vpack.i.bf16 %v190_v46, %v14049_v0  ;;  %vm222_vm0 = vcmask 1039360  }
  0x7b   :  { %v6659_v56 = vpack.i.bf16 %v193_v55, %v192_v54  ;;  %v9751_v62 = vpack.i.bf16 %v196_v49, %v193_v55  ;;  %v9755_v63 = vpack.i.bf16 %v192_v54, %v195_v42  ;;  %vm246_vm1 = vcmask 1031168  }
  0x7c   :  { %vm373_vm2 = vcmask 7168   ;;  %vm554_vm3 = vcmask 785408  }
  0x7d   :  { %6665 = vrot.lane.b32.xlu1 %v6664_v51, %s9453_s19 }
  0x7e   :  { %6660 = vrot.lane.b32.xlu0 %v6659_v56, %s9453_s19 }
  0x81   :  { %6675 = vrot.lane.b32.xlu1 %v9728_v57, %s9454_s26 }
  0x82   :  { %6670 = vrot.lane.b32.xlu0 %v9690_v23, %s9454_s26 }
  0x85   :  { %6685 = vrot.lane.b32.xlu1 %v9734_v58, %s9454_s26 }
  0x86   :  { %6680 = vrot.lane.b32.xlu0 %v9739_v59, %s9454_s26 }
  0x89   :  { %6695 = vrot.lane.b32.xlu1 %v9743_v60, %s9454_s26 }
  0x8a   :  { %6690 = vrot.lane.b32.xlu0 %v9747_v61, %s9454_s26 }
  0x8d   :  { %6705 = vrot.lane.b32.xlu1 %v9751_v62, %s9454_s26 }
  0x8e   :  { %6700 = vrot.lane.b32.xlu0 %v9755_v63, %s9454_s26 }
  0x91   :  { %6710 = vrot.lane.b32.xlu1 %v9690_v23, %s9455_s29 }
  0x92   :  { %297 = vrot.lane.b32.xlu0 %v9721_v50, %s9454_s26 }
  0x95   :  { %6720 = vrot.lane.b32.xlu1 %v9677_v15, %s9455_s29 }
  0x96   :  { %6715 = vrot.lane.b32.xlu0 %v9708_v35, %s9455_s29 }
  0x99   :  { %6730 = vrot.lane.b32.xlu1 %v9768_v1, %s9455_s29 }
  0x9a   :  { %6725 = vrot.lane.b32.xlu0 %v9702_v30, %s9455_s29 }
  0x9d   :  { %6740 = vrot.lane.b32.xlu1 %v9755_v63, %s9455_s29 }
  0x9e   :  { %6735 = vrot.lane.b32.xlu0 %v9743_v60, %s9455_s29 }
  0xa2   :  { %6745 = vrot.lane.b32.xlu0 %v9751_v62, %s9455_s29 }
  0xe3   :  { %v6641_v2 = vpop.permute.xlu1 %6640 }
  0xe4   :  { %v6643_v3 = vunpack.i.h.bf16 %v6641_v2  ;;  %v9782_v4 = vunpack.i.l.bf16 %v6641_v2  ;;  %v6631_v5 = vpop.permute.xlu0 %6630 }
  0xe5   :  { %v9784_v7 = vunpack.i.l.bf16 %v6631_v5  ;;  %v6633_v17 = vunpack.i.h.bf16 %v6631_v5 }
  0xe6   :  { %v279_v11 = vsel %vm222_vm0, %v9782_v4, %v6643_v3 }
  0xe7   :  { %v6646_v6 = vpop.permute.xlu1 %6645  ;;  %v223_v43 = vsel %vm222_vm0, %v9784_v7, %v6633_v17 }
  0xe8   :  { %v9786_v8 = vunpack.i.h.bf16 %v6646_v6  ;;  %v9788_v9 = vunpack.i.l.bf16 %v6646_v6  ;;  %v6636_v10 = vpop.permute.xlu0 %6635  ;;  %v9843_v49 = vpack.i.bf16 %v223_v43, %v9721_v50 }
  0xe9   :  { %v6638_v12 = vunpack.i.h.bf16 %v6636_v10  ;;  %v9792_v13 = vunpack.i.l.bf16 %v6636_v10 }
  0xea   :  { %v6749_v14 = vpack.i.bf16 %v9784_v7, %v9786_v8  ;;  %v280_v16 = vsel %vm222_vm0, %v9788_v9, %v9786_v8 }
  0xeb   :  { %v6656_v18 = vpop.permute.xlu1 %6655  ;;  %v9799_v19 = vpack.i.bf16 %v280_v16, %v6643_v3  ;;  %v6754_v22 = vpack.i.bf16 %v9782_v4, %v9792_v13  ;;  %v9806_v24 = vpack.i.bf16 %v279_v11, %v6638_v12  ;;  %v224_v26 = vsel %vm222_vm0, %v9792_v13, %v6638_v12 }
  0xec   :  { %v6658_v20 = vunpack.i.h.bf16 %v6656_v18  ;;  %v9801_v21 = vunpack.i.l.bf16 %v6656_v18  ;;  %6750 = vrot.lane.b32.xlu1 %v6749_v14, %s9455_s29  ;;  %v6651_v25 = vpop.permute.xlu0 %6650  ;;  %v9811_v28 = vpack.i.bf16 %v224_v26, %v6633_v17 }
  0xed   :  { %v6653_v27 = vunpack.i.h.bf16 %v6651_v25  ;;  %6755 = vrot.lane.b32.xlu0 %v6754_v22, %s9455_s29  ;;  %v9815_v32 = vunpack.i.l.bf16 %v6651_v25 }
  0xee   :  { %14183 = vst [vmem:[#allocation16_spill] sm:$0xff] %v9801_v21  ;;  %v226_v31 = vsel %vm222_vm0, %v9801_v21, %v6658_v20 }
  0xef   :  { %v6666_v29 = vpop.permute.xlu1 %6665  ;;  %v9821_v36 = vpack.i.bf16 %v226_v31, %v6653_v27  ;;  %v9853_v3 = vsel %vm222_vm0, %v9815_v32, %v6653_v27 }
  0xf0   :  { %v9817_v33 = vunpack.i.h.bf16 %v6666_v29  ;;  %v9819_v34 = vunpack.i.l.bf16 %v6666_v29  ;;  %v6661_v37 = vpop.permute.xlu0 %6660  ;;  %v6794_v17 = vpack.i.bf16 %v9853_v3, %v9788_v9 }
  0xf1   :  { %v6663_v38 = vunpack.i.h.bf16 %v6661_v37  ;;  %v9823_v39 = vunpack.i.l.bf16 %v6661_v37 }
  0xf2   :  { %14184 = vst [vmem:[#allocation17_spill] sm:$0xff] %v9817_v33  ;;  %14185 = vst [vmem:[#allocation18_spill] sm:$0xff] %v9819_v34  ;;  %v6759_v40 = vpack.i.bf16 %v9815_v32, %v9817_v33  ;;  %v282_v41 = vsel %vm222_vm0, %v9819_v34, %v9817_v33 }
  0xf3   :  { %14186 = vst [vmem:[#allocation19_spill] sm:$0xff] %v9823_v39  ;;  %v6676_v42 = vpop.permute.xlu1 %6675  ;;  %v6764_v44 = vpack.i.bf16 %v9823_v39, %v9801_v21  ;;  %v281_v45 = vsel %vm222_vm0, %v9823_v39, %v6663_v38  ;;  %v9839_v48 = vpack.i.bf16 %v282_v41, %v6663_v38 }
  0xf4   :  { %6760 = vrot.lane.b32.xlu1 %v6759_v40, %s9455_s29  ;;  %v6671_v46 = vpop.permute.xlu0 %6670  ;;  %v9837_v47 = vpack.i.bf16 %v281_v45, %v6658_v20  ;;  %v6678_v52 = vunpack.i.h.bf16 %v6676_v42 }
  0xf5   :  { %14188 = vst [vmem:[#allocation21_spill] sm:$0xff] %v9839_v48  ;;  %6765 = vrot.lane.b32.xlu0 %v6764_v44, %s9455_s29  ;;  %v9859_v10 = vunpack.i.h.bf16 %v6671_v46  ;;  %v9877_v20 = vunpack.i.l.bf16 %v6671_v46 }
  0xf6   :  { %14187 = vst [vmem:[#allocation20_spill] sm:$0xff] %v9837_v47 }
  0xf7   :  { %v6686_v51 = vpop.permute.xlu1 %6685  ;;  %14192 = vst [vmem:[#allocation25_spill] sm:$0xff] %v9859_v10  ;;  %14196 = vst [vmem:[#allocation29_spill] sm:$0xff] %v9877_v20 }
  0xf8   :  { %6775 = vrot.lane.b32.xlu1 %v9843_v49, %s9455_s29  ;;  %v9847_v53 = vunpack.i.l.bf16 %v6686_v51  ;;  %v6681_v54 = vpop.permute.xlu0 %6680  ;;  %v6688_v5 = vunpack.i.h.bf16 %v6686_v51  ;;  %v9908_v51 = vsel %vm246_vm1, %v9877_v20, %v9859_v10 }
  0xf9   :  { %v6683_v55 = vunpack.i.h.bf16 %v6681_v54  ;;  %v9849_v56 = vunpack.i.l.bf16 %v6681_v54  ;;  %14204 = vst [vmem:[#allocation37_spill] sm:$0xff] %v9908_v51 }
  0xfa   :  { %14189 = vst [vmem:[#allocation22_spill] sm:$0xff] %v9847_v53 }
  0xfb   :  { %14190 = vst [vmem:[#allocation23_spill] sm:$0xff] %v9849_v56  ;;  %v6696_v2 = vpop.permute.xlu1 %6695  ;;  %v9855_v6 = vpack.i.bf16 %v6683_v55, %v6678_v52  ;;  %v9863_v12 = vsel %vm246_vm1, %v6683_v55, %v9847_v53  ;;  %v9867_v14 = vsel %vm246_vm1, %v6678_v52, %v9849_v56  ;;  %v9912_v55 = vunpack.i.l.bf16 %v6676_v42 }
  0xfc   :  { %6785 = vrot.lane.b32.xlu1 %v9806_v24, %s9455_s29  ;;  %v6691_v11 = vpop.permute.xlu0 %6690  ;;  %14193 = vst [vmem:[#allocation26_spill] sm:$0xff] %v9863_v12  ;;  %14194 = vst [vmem:[#allocation27_spill] sm:$0xff] %v9867_v14  ;;  %v9879_v22 = vunpack.i.l.bf16 %v6696_v2  ;;  %v6698_v29 = vunpack.i.h.bf16 %v6696_v2 }
  0xfd   :  { %14191 = vst [vmem:[#allocation24_spill] sm:$0xff] %v9855_v6  ;;  %v9869_v16 = vunpack.i.l.bf16 %v6691_v11  ;;  %6770 = vrot.lane.b32.xlu0 %v9855_v6, %s9455_s29  ;;  %v9881_v25 = vunpack.i.h.bf16 %v6691_v11  ;;  %14205 = vst [vmem:[#allocation38_spill] sm:$0xff] %v9912_v55 }
  0xfe   :  { %14197 = vst [vmem:[#allocation30_spill] sm:$0xff] %v9879_v22 }
  0xff   :  { %14195 = vst [vmem:[#allocation28_spill] sm:$0xff] %v9869_v16  ;;  %14198 = vst [vmem:[#allocation31_spill] sm:$0xff] %v9881_v25  ;;  %v6706_v26 = vpop.permute.xlu1 %6705  ;;  %v9890_v37 = vsel %vm246_vm1, %v6688_v5, %v9869_v16  ;;  %v251_v41 = vsel %vm246_vm1, %v9881_v25, %v9879_v22 }
 0x100   :  { %v9885_v31 = vunpack.i.l.bf16 %v6706_v26  ;;  %6795 = vrot.lane.b32.xlu1 %v6794_v17, %s9455_s29  ;;  %14200 = vst [vmem:[#allocation33_spill] sm:$0xff] %v9890_v37  ;;  %v6701_v38 = vpop.permute.xlu0 %6700  ;;  %v9897_v43 = vunpack.i.h.bf16 %v6706_v26  ;;  %v9903_v46 = vpack.i.bf16 %v251_v41, %v6688_v5  ;;  %v6814_v26 = vpack.i.bf16 %v9908_v51, %v9819_v34 }
 0x101   :  { %v6703_v44 = vunpack.i.h.bf16 %v6701_v38  ;;  %v9899_v45 = vunpack.i.l.bf16 %v6701_v38  ;;  %6780 = vrot.lane.b32.xlu0 %v9811_v28, %s9455_s29  ;;  %v250_v38 = vsel %vm246_vm1, %v9849_v56, %v9912_v55  ;;  %v302_v51 = vsel %vm246_vm1, %v9869_v16, %v9912_v55 }
 0x102   :  { %14199 = vst [vmem:[#allocation32_spill] sm:$0xff] %v9885_v31  ;;  %14201 = vst [vmem:[#allocation34_spill] sm:$0xff] %v9897_v43  ;;  %v6824_v27 = vpack.i.bf16 %v9863_v12, %v250_v38 }
 0x103   :  { %14202 = vst [vmem:[#allocation35_spill] sm:$0xff] %v9899_v45  ;;  %14203 = vst [vmem:[#allocation36_spill] sm:$0xff] %v9903_v46  ;;  %v6711_v52 = vpop.permute.xlu1 %6710  ;;  %v9918_v2 = vsel %vm246_vm1, %v6698_v29, %v9899_v45  ;;  %v9922_v5 = vsel %vm246_vm1, %v6703_v44, %v9885_v31  ;;  %v9945_v18 = vpack.i.bf16 %v6703_v44, %v6698_v29 }
 0x104   :  { %6805 = vrot.lane.b32.xlu1 %v9837_v47, %s9455_s29  ;;  %14206 = vst [vmem:[#allocation39_spill] sm:$0xff] %v9918_v2  ;;  %14207 = vst [vmem:[#allocation40_spill] sm:$0xff] %v9922_v5  ;;  %v9924_v11 = vpop.permute.xlu0 %297  ;;  %v6713_v54 = vunpack.i.h.bf16 %v6711_v52  ;;  %v6712_v42 = vunpack.i.l.bf16 %v6711_v52 }
 0x105   :  { %14208 = vst [vmem:[#allocation41_spill] sm:$0xff] %v9924_v11  ;;  %6790 = vrot.lane.b32.xlu0 %v9799_v19, %s9455_s29  ;;  %v9940_v41 = vsel %vm246_vm1, %v9897_v43, %v9924_v11  ;;  %14210 = vst [vmem:[#allocation43_spill] sm:$0xff] %v9945_v18 }
 0x106   :  { %14209 = vst [vmem:[#allocation42_spill] sm:$0xff] %v9940_v41  ;;  %v375_v34 = vsel %vm373_vm2, %v6712_v42, %v6713_v54 }
 0x107   :  { %v6721_v40 = vpop.permute.xlu1 %6720 }
 0x108   :  { %6815 = vrot.lane.b32.xlu1 %v6814_v26, %s9455_s29  ;;  %v6716_v0 = vpop.permute.xlu0 %6715  ;;  %v6723_v6 = vunpack.i.h.bf16 %v6721_v40  ;;  %v6722_v56 = vunpack.i.l.bf16 %v6721_v40  ;;  %v6834_v40 = vpack.i.bf16 %v9877_v20, %v302_v51  ;;  %v248_v51 = vsel %vm246_vm1, %v9859_v10, %v9912_v55 }
 0x109   :  { %6800 = vrot.lane.b32.xlu0 %v9821_v36, %s9455_s29  ;;  %v6718_v17 = vunpack.i.h.bf16 %v6716_v0  ;;  %v6717_v52 = vunpack.i.l.bf16 %v6716_v0 }
 0x10a   :  { %v487_v39 = vsel %vm373_vm2, %v6722_v56, %v6723_v6  ;;  %v6819_v6 = vpack.i.bf16 %v9867_v14, %v248_v51 }
 0x10b   :  { %v6731_v33 = vpop.permute.xlu1 %6730  ;;  %v377_v44 = vsel %vm373_vm2, %v6717_v52, %v6718_v17 }
 0x10c   :  { %6825 = vrot.lane.b32.xlu1 %v6824_v27, %s9455_s29  ;;  %v9955_v29 = vunpack.i.l.bf16 %v6731_v33  ;;  %v6726_v26 = vpop.permute.xlu0 %6725  ;;  %v6733_v38 = vunpack.i.h.bf16 %v6731_v33  ;;  %v6014_v12 = vpack.c.bf16 %v377_v44, %v375_v34 }
 0x10d   :  { %6810 = vrot.lane.b32.xlu0 %v9839_v48, %s9455_s29  ;;  %v6728_v0 = vunpack.i.h.bf16 %v6726_v26  ;;  %v6727_v16 = vunpack.i.l.bf16 %v6726_v26  ;;  %v300_v26 = vsel %vm246_vm1, %v9847_v53, %v9912_v55 }
 0x10e   :  { %14211 = vst [vmem:[#allocation44_spill] sm:$0xff] %v9955_v29  ;;  %v374_v54 = vsel %vm373_vm2, %v9955_v29, %v6712_v42  ;;  %v376_v27 = vsel %vm373_vm2, %v9955_v29, %v6717_v52  ;;  %6015 = vmatprep.subr.bf16.mxu0 %v6014_v12  ;;  %v486_v34 = vsel %vm373_vm2, %v9955_v29, %v6722_v56 }
 0x10f   :  { %v9969_v17 = vpop.permute.xlu1 %6740  ;;  %v6016_v33 = vpack.c.bf16 %v376_v27, %v374_v54  ;;  %v489_v44 = vsel %vm373_vm2, %v6727_v16, %v6728_v0  ;;  %v488_v52 = vsel %vm373_vm2, %v9955_v29, %v6727_v16  ;;  %v6829_v0 = vpack.i.bf16 %v9890_v37, %v300_v26 }
 0x110   :  { %6835 = vrot.lane.b32.xlu1 %v6834_v40, %s9455_s29  ;;  %v6742_v42 = vunpack.i.l.bf16 %v9969_v17  ;;  %v6736_v12 = vpop.permute.xlu0 %6735  ;;  %v6038_v54 = vpack.c.bf16 %v489_v44, %v487_v39  ;;  %v6040_v27 = vpack.c.bf16 %v488_v52, %v486_v34  ;;  %v378_v40 = vsel %vm373_vm2, %v9955_v29, %v6733_v38 }
 0x111   :  { %6017 = vmatpush1.bf16.msra.mxu0 %v6016_v33  ;;  %6820 = vrot.lane.b32.xlu0 %v6819_v6, %s9455_s29  ;;  %v6738_v56 = vunpack.i.h.bf16 %v6736_v12  ;;  %v6737_v51 = vunpack.i.l.bf16 %v6736_v12  ;;  %v254_v16 = vsel %vm246_vm1, %v9899_v45, %v9912_v55  ;;  %v252_v26 = vsel %vm246_vm1, %v9879_v22, %v9912_v55 }
 0x112   :  { %6039 = vmatprep.subr.bf16.mxu1 %v6038_v54  ;;  %v6849_v52 = vpack.i.bf16 %v9922_v5, %v254_v16  ;;  %v306_v12 = vsel %vm246_vm1, %v9924_v11, %v9912_v55  ;;  %v304_v54 = vsel %vm246_vm1, %v9885_v31, %v9912_v55  ;;  %v148_v16 = vld [vmem:[%s14030_s2 + $0x10] sm:$0xff] }
 0x113   :  { %6041 = vmatpush1.bf16.msra.mxu1 %v6040_v27  ;;  %v379_v39 = vsel %vm373_vm2, %v6733_v38, %v6737_v51  ;;  %v381_v33 = vsel %vm373_vm2, %v6738_v56, %v6742_v42  ;;  %v380_v34 = vsel %vm373_vm2, %v9955_v29, %v6738_v56  ;;  %v6844_v38 = vpack.i.bf16 %v9918_v2, %v252_v26  ;;  %v146_v56 = vld [vmem:[%s14030_s2] sm:$0xff]  ;;  %v147_v51 = vld [vmem:[%s14030_s2 + $0x8] sm:$0xff] }
 0x114   :  { %6840 = vrot.lane.b32.xlu1 %v9903_v46, %s9455_s29  ;;  %v6018_v6 = vpack.c.bf16 %v381_v33, %v379_v39  ;;  %v6020_v44 = vpack.c.bf16 %v380_v34, %v378_v40  ;;  %v6864_v42 = vpack.i.bf16 %v9881_v25, %v306_v12  ;;  %v6854_v27 = vpack.i.bf16 %v9940_v41, %v304_v54  ;;  %v6746_v39 = vpop.permute.xlu0 %6745 }
 0x115   :  { %6830 = vrot.lane.b32.xlu0 %v6829_v0, %s9455_s29  ;;  %v9456_v40 = vmov 0   ;;  %v149_v0 = vld [vmem:[%s14030_s2 + $0x18] sm:$0xff]  ;;  %v6747_v26 = vunpack.i.l.bf16 %v6746_v39 }
 0x116   :  { %6019 = vmatprep.subr.bf16.mxu0 %v6018_v6  ;;  %6869 = vset.pattern.permute.xlu0 %v9456_v40  ;;  %v6743_v6 = vunpack.i.h.bf16 %v9969_v17 }
 0x117   :  { %6021 = vmatpush1.bf16.msra.mxu0 %v6020_v44  ;;  %6870 = vset.pattern.permute.xlu1 %v9456_v40  ;;  %v6748_v44 = vunpack.i.h.bf16 %v6746_v39 }
 0x118   :  { %6850 = vrot.lane.b32.xlu1 %v6849_v52, %s9455_s29  ;;  %v490_v54 = vsel %vm373_vm2, %v9955_v29, %v6743_v6 }
 0x119   :  { %6845 = vrot.lane.b32.xlu0 %v6844_v38, %s9455_s29 }
 0x11c   :  { %6865 = vrot.lane.b32.xlu1 %v6864_v42, %s9455_s29 }
 0x11d   :  { %6855 = vrot.lane.b32.xlu0 %v6854_v27, %s9455_s29  ;;  %v492_v27 = vsel %vm373_vm2, %v9955_v29, %v6748_v44 }
 0x11e   :  { %v6044_v17 = vpack.c.bf16 %v492_v27, %v490_v54 }
 0x120   :  { %480 = vrot.lane.b32.xlu1 %v9897_v43, %s9455_s29 }
 0x121   :  { %6860 = vrot.lane.b32.xlu0 %v9945_v18, %s9455_s29 }
 0x124   :  { %541 = vperm.xlu1 %6870, %v147_v51  }
 0x125   :  { %536 = vperm.xlu0 %6869, %v146_v56   ;;  %v491_v56 = vsel %vm373_vm2, %v6743_v6, %v6747_v26 }
 0x128   :  { %546 = vperm.xlu1 %6870, %v148_v16  }
 0x129   :  { %551 = vperm.xlu0 %6869, %v149_v0  }
 0x15e   :  { %v6751_v33 = vpop.permute.xlu1 %6750 }
 0x15f   :  { %v6756_v52 = vpop.permute.xlu0 %6755  ;;  %v6753_v45 = vunpack.i.h.bf16 %v6751_v33 }
 0x160   :  { %v6757_v41 = vunpack.i.l.bf16 %v6756_v52  ;;  %v6758_v22 = vunpack.i.h.bf16 %v6756_v52 }
 0x166   :  { %v10029_v34 = vpop.permute.xlu1 %6760 }
 0x167   :  { %v10032_v42 = vpop.permute.xlu0 %6765 }
 0x168   :  { %v6767_v52 = vunpack.i.l.bf16 %v10032_v42 }
 0x16a   :  { %v6776_v12 = vpop.permute.xlu1 %6775 }
 0x16b   :  { %v6777_v38 = vunpack.i.l.bf16 %v6776_v12  ;;  %v6778_v43 = vunpack.i.h.bf16 %v6776_v12 }
 0x16d   :  { %v493_v51 = vsel %vm373_vm2, %v6748_v44, %v6777_v38  ;;  %v382_v27 = vsel %vm373_vm2, %v6753_v45, %v6778_v43 }
 0x16e   :  { %v6786_v40 = vpop.permute.xlu1 %6785  ;;  %v6042_v0 = vpack.c.bf16 %v493_v51, %v491_v56  ;;  %v6752_v51 = vunpack.i.l.bf16 %v6751_v33 }
 0x16f   :  { %v10040_v16 = vpop.permute.xlu0 %6770  ;;  %v6787_v25 = vunpack.i.l.bf16 %v6786_v40  ;;  %v6788_v26 = vunpack.i.h.bf16 %v6786_v40 }
 0x170   :  { %6043 = vmatprep.subr.bf16.mxu1 %v6042_v0 }
 0x171   :  { %6045 = vmatpush1.bf16.msra.mxu1 %v6044_v17 }
 0x172   :  { %v6796_v39 = vpop.permute.xlu1 %6795 }
 0x173   :  { %v6781_v18 = vpop.permute.xlu0 %6780  ;;  %v6798_v40 = vunpack.i.h.bf16 %v6796_v39 }
 0x174   :  { %v6783_v11 = vunpack.i.h.bf16 %v6781_v18  ;;  %v6782_v31 = vunpack.i.l.bf16 %v6781_v18  ;;  %v6797_v18 = vunpack.i.l.bf16 %v6796_v39 }
 0x176   :  { %v6806_v5 = vpop.permute.xlu1 %6805  ;;  %v383_v6 = vsel %vm373_vm2, %v6778_v43, %v6782_v31  ;;  %v385_v44 = vsel %vm373_vm2, %v6783_v11, %v6787_v25  ;;  %v384_v56 = vsel %vm373_vm2, %v6757_v41, %v6783_v11  ;;  %v494_v43 = vsel %vm373_vm2, %v6758_v22, %v6788_v26 }
 0x177   :  { %v6791_v38 = vpop.permute.xlu0 %6790  ;;  %v6022_v54 = vpack.c.bf16 %v385_v44, %v383_v6  ;;  %v6024_v17 = vpack.c.bf16 %v384_v56, %v382_v27  ;;  %v6807_v11 = vunpack.i.l.bf16 %v6806_v5  ;;  %v6808_v56 = vunpack.i.h.bf16 %v6806_v5 }
 0x178   :  { %v6793_v12 = vunpack.i.h.bf16 %v6791_v38  ;;  %v6792_v0 = vunpack.i.l.bf16 %v6791_v38  ;;  %v6763_v38 = vunpack.i.h.bf16 %v10029_v34 }
 0x179   :  { %6023 = vmatprep.subr.bf16.mxu0 %v6022_v54 }
 0x17a   :  { %v6816_v2 = vpop.permute.xlu1 %6815  ;;  %6025 = vmatpush1.bf16.msra.mxu0 %v6024_v17  ;;  %v495_v31 = vsel %vm373_vm2, %v6788_v26, %v6792_v0  ;;  %v497_v25 = vsel %vm373_vm2, %v6793_v12, %v6752_v51  ;;  %v496_v45 = vsel %vm373_vm2, %v6797_v18, %v6793_v12  ;;  %v386_v26 = vsel %vm373_vm2, %v6763_v38, %v6798_v40 }
 0x17b   :  { %v6801_v46 = vpop.permute.xlu0 %6800  ;;  %v6046_v6 = vpack.c.bf16 %v497_v25, %v495_v31  ;;  %v6048_v44 = vpack.c.bf16 %v496_v45, %v494_v43  ;;  %v6768_v31 = vunpack.i.h.bf16 %v10032_v42  ;;  %v6817_v25 = vunpack.i.l.bf16 %v6816_v2 }
 0x17c   :  { %v6803_v41 = vunpack.i.h.bf16 %v6801_v46  ;;  %v6802_v33 = vunpack.i.l.bf16 %v6801_v46  ;;  %v6762_v46 = vunpack.i.l.bf16 %v10029_v34 }
 0x17d   :  { %6047 = vmatprep.subr.bf16.mxu1 %v6046_v6 }
 0x17e   :  { %v6826_v54 = vpop.permute.xlu1 %6825  ;;  %6049 = vmatpush1.bf16.msra.mxu1 %v6048_v44  ;;  %v387_v27 = vsel %vm373_vm2, %v6798_v40, %v6802_v33  ;;  %v389_v39 = vsel %vm373_vm2, %v6803_v41, %v6807_v11  ;;  %v388_v12 = vsel %vm373_vm2, %v6767_v52, %v6803_v41  ;;  %v6818_v11 = vunpack.i.h.bf16 %v6816_v2 }
 0x17f   :  { %v6811_v51 = vpop.permute.xlu0 %6810  ;;  %v6026_v22 = vpack.c.bf16 %v389_v39, %v387_v27  ;;  %v6028_v18 = vpack.c.bf16 %v388_v12, %v386_v26  ;;  %v498_v41 = vsel %vm373_vm2, %v6768_v31, %v6808_v56  ;;  %v6827_v44 = vunpack.i.l.bf16 %v6826_v54 }
 0x180   :  { %v6813_v0 = vunpack.i.h.bf16 %v6811_v51  ;;  %v6812_v17 = vunpack.i.l.bf16 %v6811_v51  ;;  %v6772_v27 = vunpack.i.l.bf16 %v10040_v16  ;;  %v6828_v26 = vunpack.i.h.bf16 %v6826_v54 }
 0x181   :  { %6027 = vmatprep.subr.bf16.mxu0 %v6026_v22 }
 0x182   :  { %v6836_v6 = vpop.permute.xlu1 %6835  ;;  %6029 = vmatpush1.bf16.msra.mxu0 %v6028_v18  ;;  %v499_v5 = vsel %vm373_vm2, %v6808_v56, %v6812_v17  ;;  %v501_v45 = vsel %vm373_vm2, %v6813_v0, %v6762_v46  ;;  %v500_v34 = vsel %vm373_vm2, %v6817_v25, %v6813_v0 }
 0x183   :  { %v6838_v43 = vunpack.i.h.bf16 %v6836_v6  ;;  %v6821_v40 = vpop.permute.xlu0 %6820  ;;  %v6050_v33 = vpack.c.bf16 %v501_v45, %v499_v5  ;;  %v6052_v42 = vpack.c.bf16 %v500_v34, %v498_v41  ;;  %v6837_v17 = vunpack.i.l.bf16 %v6836_v6 }
 0x184   :  { %v6823_v52 = vunpack.i.h.bf16 %v6821_v40  ;;  %v6822_v38 = vunpack.i.l.bf16 %v6821_v40  ;;  %v6773_v5 = vunpack.i.h.bf16 %v10040_v16 }
 0x185   :  { %6051 = vmatprep.subr.bf16.mxu1 %v6050_v33  ;;  %v390_v51 = vsel %vm373_vm2, %v6838_v43, %v6818_v11 }
 0x186   :  { %v6841_v39 = vpop.permute.xlu1 %6840  ;;  %6053 = vmatpush1.bf16.msra.mxu1 %v6052_v42  ;;  %v391_v22 = vsel %vm373_vm2, %v6818_v11, %v6822_v38  ;;  %v393_v2 = vsel %vm373_vm2, %v6823_v52, %v6827_v44  ;;  %v392_v0 = vsel %vm373_vm2, %v6772_v27, %v6823_v52  ;;  %v502_v41 = vsel %vm373_vm2, %v6773_v5, %v6828_v26 }
 0x187   :  { %v6831_v12 = vpop.permute.xlu0 %6830  ;;  %v6842_v56 = vunpack.i.l.bf16 %v6841_v39  ;;  %v6030_v46 = vpack.c.bf16 %v393_v2, %v391_v22  ;;  %v6032_v25 = vpack.c.bf16 %v392_v0, %v390_v51  ;;  %v6843_v6 = vunpack.i.h.bf16 %v6841_v39 }
 0x188   :  { %v6833_v18 = vunpack.i.h.bf16 %v6831_v12  ;;  %v6832_v31 = vunpack.i.l.bf16 %v6831_v12 }
 0x189   :  { %6031 = vmatprep.subr.bf16.mxu0 %v6030_v46 }
 0x18a   :  { %v6851_v45 = vpop.permute.xlu1 %6850  ;;  %6033 = vmatpush1.bf16.msra.mxu0 %v6032_v25  ;;  %v503_v11 = vsel %vm373_vm2, %v6828_v26, %v6832_v31  ;;  %v505_v40 = vsel %vm373_vm2, %v6833_v18, %v6837_v17  ;;  %v504_v34 = vsel %vm373_vm2, %v6842_v56, %v6833_v18 }
 0x18b   :  { %v6852_v43 = vunpack.i.l.bf16 %v6851_v45  ;;  %v6846_v54 = vpop.permute.xlu0 %6845  ;;  %v6054_v33 = vpack.c.bf16 %v505_v40, %v503_v11  ;;  %v6056_v38 = vpack.c.bf16 %v504_v34, %v502_v41  ;;  %v6853_v12 = vunpack.i.h.bf16 %v6851_v45  ;;  %v142_v41 = vld [vmem:[#allocation2] sm:$0xff] }
 0x18c   :  { %v6848_v44 = vunpack.i.h.bf16 %v6846_v54  ;;  %v6847_v52 = vunpack.i.l.bf16 %v6846_v54  ;;  %v14212_v34 = vmov 0.0  }
 0x18d   :  { %6055 = vmatprep.subr.bf16.mxu1 %v6054_v33 }
 0x18e   :  { %v6866_v16 = vpop.permute.xlu1 %6865  ;;  %6057 = vmatpush1.bf16.msra.mxu1 %v6056_v38  ;;  %v395_v27 = vsel %vm373_vm2, %v6843_v6, %v6847_v52  ;;  %v397_v51 = vsel %vm373_vm2, %v6848_v44, %v6852_v43  ;;  %v143_v52 = vld [vmem:[#allocation2 + $0x8] sm:$0xff] }
 0x18f   :  { %v6867_v42 = vunpack.i.l.bf16 %v6866_v16  ;;  %v6856_v22 = vpop.permute.xlu0 %6855  ;;  %v6034_v2 = vpack.c.bf16 %v397_v51, %v395_v27  ;;  %v6868_v26 = vunpack.i.h.bf16 %v6866_v16 }
 0x190   :  { %v6858_v46 = vunpack.i.h.bf16 %v6856_v22  ;;  %v6857_v0 = vunpack.i.l.bf16 %v6856_v22 }
 0x191   :  { %6035 = vmatprep.subr.bf16.mxu0 %v6034_v2  ;;  %v394_v45 = vsel %vm373_vm2, %v6868_v26, %v6843_v6  ;;  %v144_v6 = vld [vmem:[#allocation2 + $0x10] sm:$0xff] }
 0x192   :  { %v507_v39 = vsel %vm373_vm2, %v6853_v12, %v6857_v0  ;;  %v509_v56 = vsel %vm373_vm2, %v6858_v46, %v6867_v42  ;;  %v481_v18 = vpop.permute.xlu1 %480 }
 0x193   :  { %v6861_v17 = vpop.permute.xlu0 %6860  ;;  %v6058_v31 = vpack.c.bf16 %v509_v56, %v507_v39  ;;  %v508_v43 = vsel %vm373_vm2, %v481_v18, %v6858_v46 }
 0x194   :  { %v6863_v25 = vunpack.i.h.bf16 %v6861_v17  ;;  %v6862_v5 = vunpack.i.l.bf16 %v6861_v17 }
 0x195   :  { %6059 = vmatprep.subr.bf16.mxu1 %v6058_v31 }
 0x196   :  { %v506_v11 = vsel %vm373_vm2, %v6863_v25, %v6853_v12  ;;  %v396_v40 = vsel %vm373_vm2, %v6862_v5, %v6848_v44  ;;  %v145_v44 = vld [vmem:[#allocation2 + $0x18] sm:$0xff] }
 0x197   :  { %v6060_v54 = vpack.c.bf16 %v508_v43, %v506_v11  ;;  %v6036_v33 = vpack.c.bf16 %v396_v40, %v394_v45 }
 0x199   :  { %6037 = vmatpush1.bf16.msra.mxu0 %v6036_v33  ;;  %6061 = vmatpush1.bf16.msra.mxu1 %v6060_v54 }
 0x19c   :  { %5950 = vmatmul.mubr.msk.f32.vlgmr.msra.gmra.mrb[0].mxu0 %vm554_vm3, %v142_v41  ;;  %5954 = vmatmul.mubr.msk.f32.vlgmr.msra.gmra.mrb[0].mxu1 %vm554_vm3, %v142_v41 }
 0x19d   :  { %637 = vmatprep.mubr.f32.mxu0 %v14212_v34  ;;  %726 = vmatprep.mubr.f32.mxu1 %v14212_v34 }
 0x1a0   :  { %5951 = vmatmul.mubr.msk.f32.gmra.mrb[2].mxu0 %vm554_vm3, %v143_v52  ;;  %5955 = vmatmul.mubr.msk.f32.gmra.mrb[2].mxu1 %vm554_vm3, %v143_v52 }
 0x1a1   :  { %643 = vmatprep.mubr.f32.mxu0 %v14212_v34  ;;  %732 = vmatprep.mubr.f32.mxu1 %v14212_v34 }
 0x1a3   :  { %v542_v26 = vpop.permute.xlu1 %541 }
 0x1a4   :  { %5952 = vmatmul.mubr.msk.f32.gmra.mrb[4].mxu0 %vm554_vm3, %v144_v6  ;;  %5956 = vmatmul.mubr.msk.f32.gmra.mrb[4].mxu1 %vm554_vm3, %v144_v6  ;;  %v537_v38 = vpop.permute.xlu0 %536 }
 0x1a5   :  { %649 = vmatprep.mubr.f32.mxu0 %v14212_v34  ;;  %738 = vmatprep.mubr.f32.mxu1 %v14212_v34 }
 0x1a8   :  { %5953 = vmatmul.mubr.msk.f32.gmra.mrb[6].mxu0 %vm554_vm3, %v145_v44  ;;  %5957 = vmatmul.mubr.msk.f32.gmra.mrb[6].mxu1 %vm554_vm3, %v145_v44 }
 0x1a9   :  { %1225 = vmatprep.mubr.f32.mxu0 %v14212_v34  ;;  %1314 = vmatprep.mubr.f32.mxu1 %v14212_v34 }
 0x26f   :  { %v633_v16 = vpop.f32.mrb[0].mxu0  ;;  %v722_v42 = vpop.f32.mrb[0].mxu1 }
 0x270   :  { %v634_v27 = vadd.f32 %v633_v16, %v537_v38  ;;  %v635_v51 = vpop.f32.mrb[1].mxu0  ;;  %v723_v22 = vadd.f32 %v722_v42, %v537_v38  ;;  %v724_v2 = vpop.f32.mrb[1].mxu1 }
 0x271   :  { %v636_v12 = vadd.f32 %v635_v51, %v537_v38  ;;  %v725_v46 = vadd.f32 %v724_v2, %v537_v38  ;;  %v547_v42 = vpop.permute.xlu1 %546 }
 0x272   :  { %vm753_vm4 = vcmp.gt.f32.partialorder %v634_v27, 0.0  ;;  %v769_v0 = vmul.f32 0.2, %v634_v27  ;;  %vm755_vm5 = vcmp.gt.f32.partialorder %v723_v22, 0.0  ;;  %v771_v39 = vmul.f32 0.2, %v723_v22 }
 0x273   :  { %vm754_vm6 = vcmp.gt.f32.partialorder %v636_v12, 0.0  ;;  %v770_v56 = vmul.f32 0.2, %v636_v12  ;;  %vm756_vm7 = vcmp.gt.f32.partialorder %v725_v46, 0.0  ;;  %v772_v17 = vmul.f32 0.2, %v725_v46 }
 0x274   :  { %v785_v18 = vsel %vm753_vm4, %v634_v27, %v769_v0  ;;  %v787_v31 = vsel %vm755_vm5, %v723_v22, %v771_v39  ;;  %v639_v25 = vpop.f32.mrb[2].mxu0  ;;  %v728_v5 = vpop.f32.mrb[2].mxu1 }
 0x275   :  { %v786_v11 = vsel %vm754_vm6, %v636_v12, %v770_v56  ;;  %v788_v43 = vsel %vm756_vm7, %v725_v46, %v772_v17  ;;  %v640_v45 = vadd.f32 %v639_v25, %v542_v26  ;;  %v729_v40 = vadd.f32 %v728_v5, %v542_v26  ;;  %v641_v54 = vpop.f32.mrb[3].mxu0  ;;  %v730_v33 = vpop.f32.mrb[3].mxu1 }
 0x276   :  { %v642_v41 = vadd.f32 %v641_v54, %v542_v26  ;;  %v731_v52 = vadd.f32 %v730_v33, %v542_v26  ;;  %v10096_v6 = vpack.i.bf16 %v786_v11, %v785_v18  ;;  %v10098_v44 = vpack.i.bf16 %v788_v43, %v787_v31 }
 0x277   :  { %vm757_vm8 = vcmp.gt.f32.partialorder %v640_v45, 0.0  ;;  %v773_v38 = vmul.f32 0.2, %v640_v45  ;;  %vm759_vm9 = vcmp.gt.f32.partialorder %v729_v40, 0.0  ;;  %v775_v16 = vmul.f32 0.2, %v729_v40 }
 0x278   :  { %vm758_vm10 = vcmp.gt.f32.partialorder %v642_v41, 0.0  ;;  %v774_v27 = vmul.f32 0.2, %v642_v41  ;;  %vm760_vm11 = vcmp.gt.f32.partialorder %v731_v52, 0.0  ;;  %v776_v51 = vmul.f32 0.2, %v731_v52  ;;  %6872 = vrot.lane.b32.xlu1 %v10096_v6, %s9453_s19 }
 0x279   :  { %v789_v22 = vsel %vm757_vm8, %v640_v45, %v773_v38  ;;  %v791_v2 = vsel %vm759_vm9, %v729_v40, %v775_v16  ;;  %v645_v12 = vpop.f32.mrb[4].mxu0  ;;  %v734_v46 = vpop.f32.mrb[4].mxu1 }
 0x27a   :  { %v790_v0 = vsel %vm758_vm10, %v642_v41, %v774_v27  ;;  %v792_v26 = vsel %vm760_vm11, %v731_v52, %v776_v51  ;;  %v646_v39 = vadd.f32 %v645_v12, %v547_v42  ;;  %v735_v56 = vadd.f32 %v734_v46, %v547_v42  ;;  %v647_v17 = vpop.f32.mrb[5].mxu0  ;;  %v736_v18 = vpop.f32.mrb[5].mxu1 }
 0x27b   :  { %v648_v31 = vadd.f32 %v647_v17, %v547_v42  ;;  %v737_v25 = vadd.f32 %v736_v18, %v547_v42  ;;  %v651_v5 = vpop.f32.mrb[6].mxu0  ;;  %v740_v11 = vpop.f32.mrb[6].mxu1  ;;  %v6896_v43 = vpack.i.bf16 %v790_v0, %v789_v22  ;;  %v6901_v54 = vpack.i.bf16 %v792_v26, %v791_v2 }
 0x27c   :  { %vm761_vm12 = vcmp.gt.f32.partialorder %v646_v39, 0.0  ;;  %v777_v33 = vmul.f32 0.2, %v646_v39  ;;  %vm763_vm13 = vcmp.gt.f32.partialorder %v735_v56, 0.0  ;;  %v779_v20 = vmul.f32 0.2, %v735_v56  ;;  %6877 = vrot.lane.b32.xlu1 %v10098_v44, %s9453_s19  ;;  %v552_v45 = vpop.permute.xlu0 %551 }
 0x27d   :  { %vm762_vm14 = vcmp.gt.f32.partialorder %v648_v31, 0.0  ;;  %v778_v40 = vmul.f32 0.2, %v648_v31  ;;  %vm764_vm15 = vcmp.gt.f32.partialorder %v737_v25, 0.0  ;;  %v780_v41 = vmul.f32 0.2, %v737_v25  ;;  %6897 = vrot.lane.b32.xlu0 %v6896_v43, %s9453_s19 }
 0x27e   :  { %v793_v52 = vsel %vm761_vm12, %v646_v39, %v777_v33  ;;  %v795_v38 = vsel %vm763_vm13, %v735_v56, %v779_v20  ;;  %v652_v16 = vadd.f32 %v651_v5, %v552_v45  ;;  %v741_v42 = vadd.f32 %v740_v11, %v552_v45  ;;  %v653_v27 = vpop.f32.mrb[7].mxu0  ;;  %v742_v51 = vpop.f32.mrb[7].mxu1 }
 0x27f   :  { %v794_v22 = vsel %vm762_vm14, %v648_v31, %v778_v40  ;;  %v796_v2 = vsel %vm764_vm15, %v737_v25, %v780_v41  ;;  %v654_v12 = vadd.f32 %v653_v27, %v552_v45  ;;  %v743_v46 = vadd.f32 %v742_v51, %v552_v45 }
 0x280   :  { %vm765_vm4 = vcmp.gt.f32.partialorder %v652_v16, 0.0  ;;  %v781_v0 = vmul.f32 0.2, %v652_v16  ;;  %vm767_vm5 = vcmp.gt.f32.partialorder %v741_v42, 0.0  ;;  %v783_v26 = vmul.f32 0.2, %v741_v42  ;;  %6882 = vrot.lane.b32.xlu1 %v10096_v6, %s9454_s26 }
 0x281   :  { %vm766_vm6 = vcmp.gt.f32.partialorder %v654_v12, 0.0  ;;  %v782_v17 = vmul.f32 0.2, %v654_v12  ;;  %vm768_vm7 = vcmp.gt.f32.partialorder %v743_v46, 0.0  ;;  %v784_v39 = vmul.f32 0.2, %v743_v46  ;;  %6902 = vrot.lane.b32.xlu0 %v6901_v54, %s9453_s19 }
 0x282   :  { %v797_v20 = vsel %vm765_vm4, %v652_v16, %v781_v0  ;;  %v799_v56 = vsel %vm767_vm5, %v741_v42, %v783_v26  ;;  %v6921_v25 = vpack.i.bf16 %v794_v22, %v793_v52  ;;  %v6926_v11 = vpack.i.bf16 %v796_v2, %v795_v38 }
 0x283   :  { %v798_v18 = vsel %vm766_vm6, %v654_v12, %v782_v17  ;;  %v800_v31 = vsel %vm768_vm7, %v743_v46, %v784_v39 }
 0x284   :  { %6887 = vrot.lane.b32.xlu1 %v10098_v44, %s9454_s26  ;;  %v6946_v5 = vpack.i.bf16 %v798_v18, %v797_v20  ;;  %v6951_v33 = vpack.i.bf16 %v800_v31, %v799_v56 }
 0x285   :  { %6907 = vrot.lane.b32.xlu0 %v6896_v43, %s9454_s26 }
 0x288   :  { %6892 = vrot.lane.b32.xlu1 %v10096_v6, %s9455_s29 }
 0x289   :  { %6912 = vrot.lane.b32.xlu0 %v6901_v54, %s9454_s26 }
 0x28c   :  { %6922 = vrot.lane.b32.xlu1 %v6921_v25, %s9453_s19 }
 0x28d   :  { %6917 = vrot.lane.b32.xlu0 %v6896_v43, %s9455_s29 }
 0x290   :  { %6927 = vrot.lane.b32.xlu1 %v6926_v11, %s9453_s19 }
 0x291   :  { %6947 = vrot.lane.b32.xlu0 %v6946_v5, %s9453_s19 }
 0x294   :  { %6932 = vrot.lane.b32.xlu1 %v6921_v25, %s9454_s26 }
 0x295   :  { %6952 = vrot.lane.b32.xlu0 %v6951_v33, %s9453_s19 }
 0x298   :  { %6937 = vrot.lane.b32.xlu1 %v6926_v11, %s9454_s26 }
 0x299   :  { %6957 = vrot.lane.b32.xlu0 %v6946_v5, %s9454_s26 }
 0x29c   :  { %6942 = vrot.lane.b32.xlu1 %v10098_v44, %s9455_s29 }
 0x29d   :  { %6962 = vrot.lane.b32.xlu0 %v6951_v33, %s9454_s26 }
 0x2a0   :  { %6972 = vrot.lane.b32.xlu1 %v6921_v25, %s9455_s29 }
 0x2a1   :  { %6967 = vrot.lane.b32.xlu0 %v6901_v54, %s9455_s29 }
 0x2a4   :  { %6977 = vrot.lane.b32.xlu1 %v6926_v11, %s9455_s29 }
 0x2a5   :  { %6982 = vrot.lane.b32.xlu0 %v6946_v5, %s9455_s29 }
 0x2a9   :  { %6987 = vrot.lane.b32.xlu0 %v6951_v33, %s9455_s29 }
 0x2ea   :  { %v6873_v6 = vpop.permute.xlu1 %6872 }
 0x2eb   :  { %v6875_v43 = vunpack.i.h.bf16 %v6873_v6  ;;  %v6874_v45 = vunpack.i.l.bf16 %v6873_v6 }
 0x2ed   :  { %v825_v40 = vsel %vm222_vm0, %v6874_v45, %v6875_v43 }
 0x2ee   :  { %v6878_v41 = vpop.permute.xlu1 %6877  ;;  %v6991_v52 = vpack.i.bf16 %v6875_v43, %v825_v40 }
 0x2ef   :  { %v6898_v44 = vpop.permute.xlu0 %6897  ;;  %v6880_v38 = vunpack.i.h.bf16 %v6878_v41  ;;  %v6879_v16 = vunpack.i.l.bf16 %v6878_v41 }
 0x2f0   :  { %6992 = vrot.lane.b32.xlu1 %v6991_v52, %s9455_s29  ;;  %v6900_v31 = vunpack.i.h.bf16 %v6898_v44  ;;  %v6899_v25 = vunpack.i.l.bf16 %v6898_v44 }
 0x2f1   :  { %v877_v54 = vsel %vm222_vm0, %v6879_v16, %v6880_v38 }
 0x2f2   :  { %v6883_v42 = vpop.permute.xlu1 %6882  ;;  %v6996_v27 = vpack.i.bf16 %v6880_v38, %v877_v54 }
 0x2f3   :  { %v6903_v51 = vpop.permute.xlu0 %6902  ;;  %v6885_v22 = vunpack.i.h.bf16 %v6883_v42  ;;  %v6884_v2 = vunpack.i.l.bf16 %v6883_v42 }
 0x2f4   :  { %v6904_v12 = vunpack.i.l.bf16 %v6903_v51  ;;  %6997 = vrot.lane.b32.xlu1 %v6996_v27, %s9455_s29  ;;  %v6905_v41 = vunpack.i.h.bf16 %v6903_v51  ;;  %v7011_v27 = vpack.i.bf16 %v6899_v25, %v6874_v45 }
 0x2f5   :  { %v845_v46 = vsel %vm246_vm1, %v6884_v2, %v6885_v22  ;;  %v846_v0 = vsel %vm246_vm1, %v6885_v22, %v9912_v55 }
 0x2f6   :  { %v6888_v26 = vpop.permute.xlu1 %6887  ;;  %v7016_v17 = vpack.i.bf16 %v6904_v12, %v6879_v16  ;;  %v7001_v39 = vpack.i.bf16 %v846_v0, %v845_v46  ;;  %v826_v16 = vsel %vm222_vm0, %v6899_v25, %v6900_v31 }
 0x2f7   :  { %v6908_v20 = vpop.permute.xlu0 %6907  ;;  %v6890_v56 = vunpack.i.h.bf16 %v6888_v26  ;;  %v6889_v18 = vunpack.i.l.bf16 %v6888_v26  ;;  %v7031_v51 = vpack.i.bf16 %v6900_v31, %v826_v16 }
 0x2f8   :  { %7017 = vrot.lane.b32.xlu0 %v7016_v17, %s9455_s29  ;;  %7002 = vrot.lane.b32.xlu1 %v7001_v39, %s9455_s29  ;;  %v6909_v52 = vunpack.i.l.bf16 %v6908_v20  ;;  %v6910_v39 = vunpack.i.h.bf16 %v6908_v20 }
 0x2f9   :  { %v897_v5 = vsel %vm246_vm1, %v6889_v18, %v6890_v56  ;;  %v898_v11 = vsel %vm246_vm1, %v6890_v56, %v9912_v55 }
 0x2fa   :  { %v6893_v33 = vpop.permute.xlu1 %6892  ;;  %v7006_v6 = vpack.i.bf16 %v898_v11, %v897_v5  ;;  %v7021_v5 = vpack.i.bf16 %v6909_v52, %v6884_v2 }
 0x2fb   :  { %v6913_v43 = vpop.permute.xlu0 %6912  ;;  %v6894_v38 = vunpack.i.l.bf16 %v6893_v33  ;;  %v6895_v54 = vunpack.i.h.bf16 %v6893_v33 }
 0x2fc   :  { %v6914_v40 = vunpack.i.l.bf16 %v6913_v43  ;;  %7007 = vrot.lane.b32.xlu1 %v7006_v6, %s9455_s29 }
 0x2fd   :  { %v969_v56 = vsel %vm373_vm2, %v9955_v29, %v6894_v38  ;;  %v970_v11 = vsel %vm373_vm2, %v6894_v38, %v6895_v54  ;;  %v847_v38 = vsel %vm246_vm1, %v6909_v52, %v6910_v39  ;;  %v848_v54 = vsel %vm246_vm1, %v6910_v39, %v9912_v55 }
 0x2fe   :  { %v10144_v42 = vpop.permute.xlu1 %6922  ;;  %v7026_v44 = vpack.i.bf16 %v6914_v40, %v6889_v18  ;;  %v878_v18 = vsel %vm222_vm0, %v6904_v12, %v6905_v41 }
 0x2ff   :  { %v6918_v22 = vpop.permute.xlu0 %6917  ;;  %v6925_v46 = vunpack.i.h.bf16 %v10144_v42  ;;  %v6924_v0 = vunpack.i.l.bf16 %v10144_v42  ;;  %v7036_v12 = vpack.i.bf16 %v6905_v41, %v878_v18  ;;  %v7041_v41 = vpack.i.bf16 %v848_v54, %v847_v38 }
 0x300   :  { %v6920_v26 = vunpack.i.h.bf16 %v6918_v22  ;;  %v6919_v17 = vunpack.i.l.bf16 %v6918_v22  ;;  %7027 = vrot.lane.b32.xlu0 %v7026_v44, %s9455_s29  ;;  %7012 = vrot.lane.b32.xlu1 %v7011_v27, %s9455_s29  ;;  %v6915_v22 = vunpack.i.h.bf16 %v6913_v43 }
 0x301   :  { %v827_v6 = vsel %vm222_vm0, %v6924_v0, %v6925_v46 }
 0x302   :  { %v971_v45 = vsel %vm373_vm2, %v9955_v29, %v6919_v17  ;;  %v6928_v25 = vpop.permute.xlu1 %6927  ;;  %v972_v33 = vsel %vm373_vm2, %v6919_v17, %v6920_v26  ;;  %v7051_v27 = vpack.i.bf16 %v6925_v46, %v827_v6  ;;  %v899_v18 = vsel %vm246_vm1, %v6914_v40, %v6915_v22 }
 0x303   :  { %v6948_v42 = vpop.permute.xlu0 %6947  ;;  %v6930_v44 = vunpack.i.h.bf16 %v6928_v25  ;;  %v6929_v31 = vunpack.i.l.bf16 %v6928_v25  ;;  %v6062_v20 = vpack.c.bf16 %v972_v33, %v970_v11  ;;  %v6064_v16 = vpack.c.bf16 %v971_v45, %v969_v56 }
 0x304   :  { %7032 = vrot.lane.b32.xlu0 %v7031_v51, %s9455_s29  ;;  %7022 = vrot.lane.b32.xlu1 %v7021_v5, %s9455_s29  ;;  %v900_v43 = vsel %vm246_vm1, %v6915_v22, %v9912_v55  ;;  %v6950_v25 = vunpack.i.h.bf16 %v6948_v42  ;;  %v6949_v11 = vunpack.i.l.bf16 %v6948_v42 }
 0x305   :  { %6063 = vmatprep.subr.bf16.mxu0 %v6062_v20  ;;  %v879_v51 = vsel %vm222_vm0, %v6929_v31, %v6930_v44  ;;  %v7046_v20 = vpack.i.bf16 %v900_v43, %v899_v18 }
 0x306   :  { %6065 = vmatpush1.bf16.msra.mxu0 %v6064_v16  ;;  %v10160_v2 = vpop.permute.xlu1 %6932  ;;  %v7056_v46 = vpack.i.bf16 %v6930_v44, %v879_v51  ;;  %v828_v42 = vsel %vm222_vm0, %v6949_v11, %v6950_v25  ;;  %v7066_v38 = vpack.i.bf16 %v6949_v11, %v6924_v0 }
 0x307   :  { %v6953_v26 = vpop.permute.xlu0 %6952  ;;  %v6935_v17 = vunpack.i.h.bf16 %v10160_v2  ;;  %v6934_v56 = vunpack.i.l.bf16 %v10160_v2 }
 0x308   :  { %7037 = vrot.lane.b32.xlu0 %v7036_v12, %s9455_s29  ;;  %7052 = vrot.lane.b32.xlu1 %v7051_v27, %s9455_s29  ;;  %v6954_v33 = vunpack.i.l.bf16 %v6953_v26  ;;  %v6955_v12 = vunpack.i.h.bf16 %v6953_v26  ;;  %v7086_v26 = vpack.i.bf16 %v6950_v25, %v828_v42 }
 0x309   :  { %v849_v39 = vsel %vm246_vm1, %v6934_v56, %v6935_v17  ;;  %v850_v45 = vsel %vm246_vm1, %v6935_v17, %v9912_v55 }
 0x30a   :  { %v10170_v5 = vpop.permute.xlu1 %6937  ;;  %v7061_v16 = vpack.i.bf16 %v850_v45, %v849_v39  ;;  %v7076_v27 = vpack.i.bf16 %v6954_v33, %v6929_v31  ;;  %v880_v0 = vsel %vm222_vm0, %v6954_v33, %v6955_v12 }
 0x30b   :  { %v6958_v52 = vpop.permute.xlu0 %6957  ;;  %v6940_v6 = vunpack.i.h.bf16 %v10170_v5  ;;  %v14071_v44 = vunpack.i.l.bf16 %v10170_v5 }
 0x30c   :  { %7042 = vrot.lane.b32.xlu0 %v7041_v41, %s9455_s29  ;;  %7057 = vrot.lane.b32.xlu1 %v7056_v46, %s9455_s29  ;;  %v6959_v18 = vunpack.i.l.bf16 %v6958_v52  ;;  %v6960_v31 = vunpack.i.h.bf16 %v6958_v52 }
 0x30d   :  { %v902_v54 = vsel %vm246_vm1, %v6940_v6, %v9912_v55  ;;  %v901_v22 = vsel %vm246_vm1, %v14071_v44, %v6940_v6 }
 0x30e   :  { %v6943_v40 = vpop.permute.xlu1 %6942  ;;  %v7081_v44 = vpack.i.bf16 %v6959_v18, %v6934_v56 }
 0x30f   :  { %v10182_v2 = vpop.permute.xlu0 %6962  ;;  %v6945_v17 = vunpack.i.h.bf16 %v6943_v40  ;;  %v6944_v51 = vunpack.i.l.bf16 %v6943_v40 }
 0x310   :  { %7047 = vrot.lane.b32.xlu0 %v7046_v20, %s9455_s29  ;;  %7062 = vrot.lane.b32.xlu1 %v7061_v16, %s9455_s29  ;;  %v7071_v20 = vpack.i.bf16 %v902_v54, %v901_v22  ;;  %v7091_v54 = vpack.i.bf16 %v6955_v12, %v880_v0  ;;  %v6965_v12 = vunpack.i.h.bf16 %v10182_v2  ;;  %v6964_v0 = vunpack.i.l.bf16 %v10182_v2 }
 0x311   :  { %v1081_v6 = vsel %vm373_vm2, %v9955_v29, %v6944_v51  ;;  %v1082_v25 = vsel %vm373_vm2, %v6944_v51, %v6945_v17  ;;  %v851_v51 = vsel %vm246_vm1, %v6959_v18, %v6960_v31 }
 0x312   :  { %v6973_v41 = vpop.permute.xlu1 %6972 }
 0x313   :  { %v6968_v46 = vpop.permute.xlu0 %6967  ;;  %v6975_v45 = vunpack.i.h.bf16 %v6973_v41  ;;  %v6974_v11 = vunpack.i.l.bf16 %v6973_v41  ;;  %v852_v41 = vsel %vm246_vm1, %v6960_v31, %v9912_v55 }
 0x314   :  { %v6970_v43 = vunpack.i.h.bf16 %v6968_v46  ;;  %v6969_v39 = vunpack.i.l.bf16 %v6968_v46  ;;  %7077 = vrot.lane.b32.xlu0 %v7076_v27, %s9455_s29  ;;  %7067 = vrot.lane.b32.xlu1 %v7066_v38, %s9455_s29  ;;  %v7096_v31 = vpack.i.bf16 %v852_v41, %v851_v51  ;;  %v752_v51 = vld [vmem:[%s14032_s4 + $0x18] sm:$0xff] }
 0x315   :  { %v973_v22 = vsel %vm373_vm2, %v9955_v29, %v6974_v11  ;;  %v974_v17 = vsel %vm373_vm2, %v6974_v11, %v6975_v45 }
 0x316   :  { %v1083_v40 = vsel %vm373_vm2, %v9955_v29, %v6969_v39  ;;  %v1084_v16 = vsel %vm373_vm2, %v6969_v39, %v6970_v43  ;;  %v6978_v27 = vpop.permute.xlu1 %6977 }
 0x317   :  { %v6983_v42 = vpop.permute.xlu0 %6982  ;;  %v6086_v46 = vpack.c.bf16 %v1084_v16, %v1082_v25  ;;  %v6088_v38 = vpack.c.bf16 %v1083_v40, %v1081_v6  ;;  %v6980_v43 = vunpack.i.h.bf16 %v6978_v27  ;;  %v6979_v39 = vunpack.i.l.bf16 %v6978_v27  ;;  %v749_v40 = vld [vmem:[%s14032_s4] sm:$0xff] }
 0x318   :  { %v6985_v33 = vunpack.i.h.bf16 %v6983_v42  ;;  %v6984_v52 = vunpack.i.l.bf16 %v6983_v42  ;;  %7087 = vrot.lane.b32.xlu0 %v7086_v26, %s9455_s29  ;;  %7072 = vrot.lane.b32.xlu1 %v7071_v20, %s9455_s29  ;;  %v903_v27 = vsel %vm246_vm1, %v6964_v0, %v6965_v12 }
 0x319   :  { %6087 = vmatprep.subr.bf16.mxu1 %v6086_v46  ;;  %v1085_v25 = vsel %vm373_vm2, %v9955_v29, %v6979_v39  ;;  %v1086_v16 = vsel %vm373_vm2, %v6979_v39, %v6980_v43 }
 0x31a   :  { %v975_v56 = vsel %vm373_vm2, %v9955_v29, %v6984_v52  ;;  %6089 = vmatpush1.bf16.msra.mxu1 %v6088_v38  ;;  %v976_v26 = vsel %vm373_vm2, %v6984_v52, %v6985_v33  ;;  %v751_v33 = vld [vmem:[%s14032_s4 + $0x10] sm:$0xff] }
 0x31b   :  { %v6988_v20 = vpop.permute.xlu0 %6987  ;;  %v6066_v6 = vpack.c.bf16 %v976_v26, %v974_v17  ;;  %v6068_v45 = vpack.c.bf16 %v975_v56, %v973_v22  ;;  %v750_v17 = vld [vmem:[%s14032_s4 + $0x8] sm:$0xff] }
 0x31c   :  { %v6990_v11 = vunpack.i.h.bf16 %v6988_v20  ;;  %v6989_v18 = vunpack.i.l.bf16 %v6988_v20  ;;  %7092 = vrot.lane.b32.xlu0 %v7091_v54, %s9455_s29  ;;  %7082 = vrot.lane.b32.xlu1 %v7081_v44, %s9455_s29  ;;  %v904_v44 = vsel %vm246_vm1, %v6965_v12, %v9912_v55  ;;  %v14213_v54 = vunpack.i.l.bf16 %v10170_v5 }
 0x31d   :  { %6067 = vmatprep.subr.bf16.mxu0 %v6066_v6  ;;  %v7101_v52 = vpack.i.bf16 %v904_v44, %v903_v27 }
 0x31e   :  { %v1087_v2 = vsel %vm373_vm2, %v9955_v29, %v6989_v18  ;;  %6069 = vmatpush1.bf16.msra.mxu0 %v6068_v45  ;;  %v1088_v42 = vsel %vm373_vm2, %v6989_v18, %v6990_v11  ;;  %v7106_v22 = vpack.i.bf16 %v6964_v0, %v14213_v54 }
 0x31f   :  { %v6090_v46 = vpack.c.bf16 %v1088_v42, %v1086_v16  ;;  %v6092_v38 = vpack.c.bf16 %v1087_v2, %v1085_v25 }
 0x320   :  { %7097 = vrot.lane.b32.xlu0 %v7096_v31, %s9455_s29  ;;  %1131 = vperm.xlu1 %6870, %v749_v40  }
 0x321   :  { %6091 = vmatprep.subr.bf16.mxu1 %v6090_v46 }
 0x322   :  { %6093 = vmatpush1.bf16.msra.mxu1 %v6092_v38 }
 0x324   :  { %7102 = vrot.lane.b32.xlu0 %v7101_v52, %s9455_s29  ;;  %1141 = vperm.xlu1 %6870, %v751_v33  }
 0x328   :  { %7107 = vrot.lane.b32.xlu0 %v7106_v22, %s9455_s29 }
 0x32c   :  { %1136 = vperm.xlu0 %6869, %v750_v17  }
 0x330   :  { %1146 = vperm.xlu0 %6869, %v752_v51  }
 0x362   :  { %v6993_v41 = vpop.permute.xlu1 %6992 }
 0x363   :  { %v6995_v0 = vunpack.i.h.bf16 %v6993_v41  ;;  %v6994_v20 = vunpack.i.l.bf16 %v6993_v41 }
 0x365   :  { %v978_v16 = vsel %vm373_vm2, %v6994_v20, %v6995_v0 }
 0x366   :  { %v6998_v56 = vpop.permute.xlu1 %6997 }
 0x367   :  { %v7000_v25 = vunpack.i.h.bf16 %v6998_v56  ;;  %v6999_v2 = vunpack.i.l.bf16 %v6998_v56 }
 0x36a   :  { %v10242_v43 = vpop.permute.xlu1 %7002  ;;  %v7018_v39 = vpop.permute.xlu0 %7017 }
 0x36b   :  { %v7019_v42 = vunpack.i.l.bf16 %v7018_v39  ;;  %v7020_v22 = vunpack.i.h.bf16 %v7018_v39 }
 0x36d   :  { %v1089_v41 = vsel %vm373_vm2, %v7019_v42, %v6999_v2 }
 0x36e   :  { %v10244_v26 = vpop.permute.xlu1 %7007 }
 0x36f   :  { %v7010_v42 = vunpack.i.h.bf16 %v10244_v26 }
 0x372   :  { %v10246_v5 = vpop.permute.xlu0 %7027  ;;  %v7013_v12 = vpop.permute.xlu1 %7012 }
 0x373   :  { %v7014_v6 = vunpack.i.l.bf16 %v7013_v12  ;;  %v7015_v18 = vunpack.i.h.bf16 %v7013_v12  ;;  %v1090_v12 = vsel %vm373_vm2, %v6999_v2, %v7000_v25  ;;  %v14080_v25 = vunpack.i.l.bf16 %v10244_v26 }
 0x375   :  { %v977_v44 = vsel %vm373_vm2, %v7014_v6, %v6994_v20 }
 0x376   :  { %v7033_v45 = vpop.permute.xlu0 %7032  ;;  %v10248_v11 = vpop.permute.xlu1 %7022 }
 0x377   :  { %v7035_v31 = vunpack.i.h.bf16 %v7033_v45  ;;  %v7034_v40 = vunpack.i.l.bf16 %v7033_v45 }
 0x379   :  { %v979_v27 = vsel %vm373_vm2, %v7015_v18, %v7034_v40  ;;  %v980_v46 = vsel %vm373_vm2, %v7034_v40, %v7035_v31  ;;  %v7005_v40 = vunpack.i.h.bf16 %v10242_v43 }
 0x37a   :  { %v7038_v38 = vpop.permute.xlu0 %7037  ;;  %v7053_v33 = vpop.permute.xlu1 %7052  ;;  %v6070_v52 = vpack.c.bf16 %v980_v46, %v978_v16  ;;  %v6072_v54 = vpack.c.bf16 %v979_v27, %v977_v44  ;;  %v7004_v16 = vunpack.i.l.bf16 %v10242_v43 }
 0x37b   :  { %v7040_v17 = vunpack.i.h.bf16 %v7038_v38  ;;  %v7039_v51 = vunpack.i.l.bf16 %v7038_v38  ;;  %v7055_v27 = vunpack.i.h.bf16 %v7053_v33  ;;  %v7054_v46 = vunpack.i.l.bf16 %v7053_v33 }
 0x37c   :  { %6071 = vmatprep.subr.bf16.mxu0 %v6070_v52 }
 0x37d   :  { %v1091_v56 = vsel %vm373_vm2, %v7020_v22, %v7039_v51  ;;  %6073 = vmatpush1.bf16.msra.mxu0 %v6072_v54  ;;  %v1092_v0 = vsel %vm373_vm2, %v7039_v51, %v7040_v17  ;;  %v986_v22 = vsel %vm373_vm2, %v7004_v16, %v7005_v40  ;;  %v7030_v17 = vunpack.i.h.bf16 %v10246_v5 }
 0x37e   :  { %v7043_v20 = vpop.permute.xlu0 %7042  ;;  %v7058_v6 = vpop.permute.xlu1 %7057  ;;  %v6094_v45 = vpack.c.bf16 %v1092_v0, %v1090_v12  ;;  %v6096_v18 = vpack.c.bf16 %v1091_v56, %v1089_v41  ;;  %v7025_v51 = vunpack.i.h.bf16 %v10248_v11  ;;  %v1098_v12 = vsel %vm373_vm2, %v14080_v25, %v7010_v42 }
 0x37f   :  { %v7045_v38 = vunpack.i.h.bf16 %v7043_v20  ;;  %v7044_v52 = vunpack.i.l.bf16 %v7043_v20  ;;  %v7060_v41 = vunpack.i.h.bf16 %v7058_v6  ;;  %v7059_v0 = vunpack.i.l.bf16 %v7058_v6 }
 0x380   :  { %6095 = vmatprep.subr.bf16.mxu1 %v6094_v45  ;;  %v982_v29 = vsel %vm373_vm2, %v7054_v46, %v7055_v27  ;;  %v7024_v6 = vunpack.i.l.bf16 %v10248_v11 }
 0x381   :  { %6097 = vmatpush1.bf16.msra.mxu1 %v6096_v18  ;;  %v988_v55 = vsel %vm373_vm2, %v7044_v52, %v7045_v38  ;;  %v987_v42 = vsel %vm373_vm2, %v7025_v51, %v7044_v52  ;;  %v1094_v38 = vsel %vm373_vm2, %v7059_v0, %v7060_v41 }
 0x382   :  { %v10258_v31 = vpop.permute.xlu0 %7047  ;;  %v10260_v39 = vpop.permute.xlu1 %7062 }
 0x383   :  { %v7050_v20 = vunpack.i.h.bf16 %v10258_v31  ;;  %v7049_v40 = vunpack.i.l.bf16 %v10258_v31  ;;  %v7065_v47 = vunpack.i.h.bf16 %v10260_v39 }
 0x386   :  { %v7078_v2 = vpop.permute.xlu0 %7077  ;;  %v7068_v44 = vpop.permute.xlu1 %7067 }
 0x387   :  { %v7069_v54 = vunpack.i.l.bf16 %v7068_v44  ;;  %v7070_v45 = vunpack.i.h.bf16 %v7068_v44  ;;  %v7079_v53 = vunpack.i.l.bf16 %v7078_v2  ;;  %v7080_v31 = vunpack.i.h.bf16 %v7078_v2 }
 0x389   :  { %v981_v37 = vsel %vm373_vm2, %v7069_v54, %v7054_v46  ;;  %v7064_v46 = vunpack.i.l.bf16 %v10260_v39  ;;  %v6078_v54 = vpack.c.bf16 %v988_v55, %v986_v22  ;;  %v1093_v11 = vsel %vm373_vm2, %v7079_v53, %v7059_v0 }
 0x38a   :  { %v7088_v56 = vpop.permute.xlu0 %7087  ;;  %v10269_v43 = vpop.permute.xlu1 %7072  ;;  %v1099_v53 = vsel %vm373_vm2, %v7030_v17, %v7049_v40 }
 0x38b   :  { %v7090_v33 = vunpack.i.h.bf16 %v7088_v56  ;;  %v7089_v18 = vunpack.i.l.bf16 %v7088_v56  ;;  %v7075_v0 = vunpack.i.h.bf16 %v10269_v43 }
 0x38d   :  { %v983_v10 = vsel %vm373_vm2, %v7070_v45, %v7089_v18  ;;  %v984_v14 = vsel %vm373_vm2, %v7089_v18, %v7090_v33  ;;  %v1100_v45 = vsel %vm373_vm2, %v7049_v40, %v7050_v20  ;;  %v14214_v20 = vunpack.i.l.bf16 %v10244_v26 }
 0x38e   :  { %v7093_v44 = vpop.permute.xlu0 %7092  ;;  %v7083_v56 = vpop.permute.xlu1 %7082  ;;  %v6074_v25 = vpack.c.bf16 %v984_v14, %v982_v29  ;;  %v6076_v48 = vpack.c.bf16 %v983_v10, %v981_v37  ;;  %v7029_v14 = vunpack.i.l.bf16 %v10246_v5  ;;  %v985_v37 = vsel %vm373_vm2, %v7024_v6, %v7004_v16 }
 0x38f   :  { %v7095_v21 = vunpack.i.h.bf16 %v7093_v44  ;;  %v7094_v27 = vunpack.i.l.bf16 %v7093_v44  ;;  %v7084_v51 = vunpack.i.l.bf16 %v7083_v56  ;;  %v6080_v41 = vpack.c.bf16 %v987_v42, %v985_v37 }
 0x390   :  { %6075 = vmatprep.subr.bf16.mxu0 %v6074_v25  ;;  %v7085_v25 = vunpack.i.h.bf16 %v7083_v56  ;;  %v7074_v5 = vunpack.i.l.bf16 %v10269_v43  ;;  %v1097_v17 = vsel %vm373_vm2, %v7029_v14, %v14214_v20  ;;  %v745_v43 = vld [vmem:[#allocation5] sm:$0xff] }
 0x391   :  { %v1095_v52 = vsel %vm373_vm2, %v7080_v31, %v7094_v27  ;;  %6077 = vmatpush1.bf16.msra.mxu0 %v6076_v48  ;;  %v1096_v10 = vsel %vm373_vm2, %v7094_v27, %v7095_v21  ;;  %v6102_v48 = vpack.c.bf16 %v1100_v45, %v1098_v12  ;;  %v990_v21 = vsel %vm373_vm2, %v7064_v46, %v7065_v47 }
 0x392   :  { %v7098_v29 = vpop.permute.xlu0 %7097  ;;  %6079 = vmatprep.subr.bf16.mxu0 %v6078_v54  ;;  %v6098_v2 = vpack.c.bf16 %v1096_v10, %v1094_v38  ;;  %v6100_v39 = vpack.c.bf16 %v1095_v52, %v1093_v11  ;;  %v989_v16 = vsel %vm373_vm2, %v7084_v51, %v7064_v46  ;;  %v6104_v44 = vpack.c.bf16 %v1099_v53, %v1097_v17  ;;  %v746_v11 = vld [vmem:[#allocation5 + $0x8] sm:$0xff]  ;;  %v747_v51 = vld [vmem:[#allocation5 + $0x10] sm:$0xff]  ;;  %v748_v10 = vld [vmem:[#allocation5 + $0x18] sm:$0xff] }
 0x393   :  { %v7100_v55 = vunpack.i.h.bf16 %v7098_v29  ;;  %v7099_v22 = vunpack.i.l.bf16 %v7098_v29  ;;  %v1102_v56 = vsel %vm373_vm2, %v7074_v5, %v7075_v0 }
 0x394   :  { %6099 = vmatprep.subr.bf16.mxu1 %v6098_v2 }
 0x395   :  { %v991_v33 = vsel %vm373_vm2, %v7085_v25, %v7099_v22  ;;  %6081 = vmatpush1.bf16.msra.mxu0 %v6080_v41  ;;  %6101 = vmatpush1.bf16.msra.mxu1 %v6100_v39  ;;  %v992_v18 = vsel %vm373_vm2, %v7099_v22, %v7100_v55  ;;  %v9271_v25 = vld [vmem:[%s14182_s18] sm:$0xff]  ;;  %v9272_v41 = vld [vmem:[%s14182_s18 + $0x8] sm:$0xff] }
 0x396   :  { %v7103_v40 = vpop.permute.xlu0 %7102  ;;  %6103 = vmatprep.subr.bf16.mxu1 %v6102_v48  ;;  %v6082_v6 = vpack.c.bf16 %v992_v18, %v990_v21  ;;  %v6084_v12 = vpack.c.bf16 %v991_v33, %v989_v16  ;;  %v9273_v33 = vld [vmem:[%s14182_s18 + $0x10] sm:$0xff] }
 0x397   :  { %v7105_v42 = vunpack.i.h.bf16 %v7103_v40  ;;  %v7104_v47 = vunpack.i.l.bf16 %v7103_v40 }
 0x398   :  { %6083 = vmatprep.subr.bf16.mxu0 %v6082_v6 }
 0x399   :  { %6085 = vmatpush1.bf16.msra.mxu0 %v6084_v12  ;;  %6105 = vmatpush1.bf16.msra.mxu1 %v6104_v44  ;;  %v1104_v31 = vsel %vm373_vm2, %v7104_v47, %v7105_v42 }
 0x39a   :  { %v7108_v27 = vpop.permute.xlu0 %7107  ;;  %v6106_v38 = vpack.c.bf16 %v1104_v31, %v1102_v56  ;;  %v9274_v31 = vld [vmem:[%s14182_s18 + $0x40] sm:$0xff] }
 0x39b   :  { %v7110_v26 = vunpack.i.h.bf16 %v7108_v27  ;;  %v7109_v46 = vunpack.i.l.bf16 %v7108_v27 }
 0x39c   :  { %5958 = vmatmul.mubr.msk.f32.vlgmr.msra.gmra.mrb[8].mxu0 %vm554_vm3, %v745_v43  ;;  %6107 = vmatprep.subr.bf16.mxu1 %v6106_v38  ;;  %v9275_v38 = vld [vmem:[%s14182_s18 + $0x48] sm:$0xff] }
 0x39d   :  { %v1101_v54 = vsel %vm373_vm2, %v7109_v46, %v7074_v5  ;;  %v1103_v45 = vsel %vm373_vm2, %v7110_v26, %v7104_v47  ;;  %1231 = vmatprep.mubr.f32.mxu0 %v14212_v34 }
 0x39e   :  { %v6108_v52 = vpack.c.bf16 %v1103_v45, %v1101_v54 }
 0x39f   :  { %v1132_v14 = vpop.permute.xlu1 %1131 }
 0x3a0   :  { %5959 = vmatmul.mubr.msk.f32.gmra.mrb[10].mxu0 %vm554_vm3, %v746_v11  ;;  %6109 = vmatpush1.bf16.msra.mxu1 %v6108_v52 }
 0x3a1   :  { %1237 = vmatprep.mubr.f32.mxu0 %v14212_v34 }
 0x3a3   :  { %5962 = vmatmul.mubr.msk.f32.vlgmr.msra.gmra.mrb[8].mxu1 %vm554_vm3, %v745_v43 }
 0x3a4   :  { %5960 = vmatmul.mubr.msk.f32.gmra.mrb[12].mxu0 %vm554_vm3, %v747_v51  ;;  %1320 = vmatprep.mubr.f32.mxu1 %v14212_v34 }
 0x3a5   :  { %1243 = vmatprep.mubr.f32.mxu0 %v14212_v34 }
 0x3a7   :  { %5963 = vmatmul.mubr.msk.f32.gmra.mrb[10].mxu1 %vm554_vm3, %v746_v11 }
 0x3a8   :  { %5961 = vmatmul.mubr.msk.f32.gmra.mrb[14].mxu0 %vm554_vm3, %v748_v10  ;;  %1326 = vmatprep.mubr.f32.mxu1 %v14212_v34 }
 0x3a9   :  { %1842 = vmatprep.mubr.f32.mxu0 %v14212_v34 }
 0x3ab   :  { %5964 = vmatmul.mubr.msk.f32.gmra.mrb[12].mxu1 %vm554_vm3, %v747_v51  ;;  %v1137_v22 = vpop.permute.xlu0 %1136 }
 0x3ac   :  { %1332 = vmatprep.mubr.f32.mxu1 %v14212_v34 }
 0x3af   :  { %5965 = vmatmul.mubr.msk.f32.gmra.mrb[14].mxu1 %vm554_vm3, %v748_v10 }
 0x3b0   :  { %1931 = vmatprep.mubr.f32.mxu1 %v14212_v34 }
 0x46f   :  { %v1227_v37 = vpop.f32.mrb[8].mxu0 }
 0x470   :  { %v1228_v29 = vadd.f32 %v1227_v37, %v1132_v14  ;;  %v1229_v2 = vpop.f32.mrb[9].mxu0  ;;  %v9276_v37 = vld [vmem:[%s14182_s18 + $0x18] sm:$0xff] }
 0x471   :  { %v1230_v39 = vadd.f32 %v1229_v2, %v1132_v14  ;;  %v9277_v2 = vld [vmem:[%s14182_s18 + $0x50] sm:$0xff] }
 0x472   :  { %v10325_v55 = vadd.f32 %v9271_v25, %v1228_v29 }
 0x473   :  { %v10330_v53 = vadd.f32 %v9272_v41, %v1230_v39  ;;  %v1233_v0 = vpop.f32.mrb[10].mxu0  ;;  %v1142_v41 = vpop.permute.xlu1 %1141 }
 0x474   :  { %14215 = vst [vmem:[#allocation45_spill] sm:$0xff] %v10325_v55  ;;  %vm1363_vm8 = vcmp.gt.f32.partialorder %v10325_v55, 0.0  ;;  %v1379_v48 = vmul.f32 0.2, %v10325_v55  ;;  %v1234_v21 = vadd.f32 %v1233_v0, %v1137_v22  ;;  %v1235_v5 = vpop.f32.mrb[11].mxu0 }
 0x475   :  { %14216 = vst [vmem:[#allocation46_spill] sm:$0xff] %v10330_v53  ;;  %vm1364_vm9 = vcmp.gt.f32.partialorder %v10330_v53, 0.0  ;;  %v1380_v16 = vmul.f32 0.2, %v10330_v53  ;;  %v1236_v56 = vadd.f32 %v1235_v5, %v1137_v22 }
 0x476   :  { %v10339_v18 = vadd.f32 %v9273_v33, %v1234_v21  ;;  %v1316_v20 = vpop.f32.mrb[8].mxu1  ;;  %v1395_v12 = vsel %vm1363_vm8, %v10325_v55, %v1379_v48 }
 0x477   :  { %v1317_v17 = vadd.f32 %v1316_v20, %v1132_v14  ;;  %v1239_v40 = vpop.f32.mrb[12].mxu0  ;;  %v1318_v6 = vpop.f32.mrb[9].mxu1  ;;  %v1396_v42 = vsel %vm1364_vm9, %v10330_v53, %v1380_v16  ;;  %v10368_v29 = vadd.f32 %v9276_v37, %v1236_v56 }
 0x478   :  { %14217 = vst [vmem:[#allocation47_spill] sm:$0xff] %v10339_v18  ;;  %vm1367_vm10 = vcmp.gt.f32.partialorder %v10339_v18, 0.0  ;;  %v1383_v47 = vmul.f32 0.2, %v10339_v18  ;;  %v1319_v44 = vadd.f32 %v1318_v6, %v1132_v14  ;;  %v1241_v43 = vpop.f32.mrb[13].mxu0  ;;  %v10355_v46 = vpack.i.bf16 %v1396_v42, %v1395_v12  ;;  %v1147_v16 = vpop.permute.xlu0 %1146  ;;  %v9278_v42 = vld [vmem:[%s14182_s18 + $0x58] sm:$0xff] }
 0x479   :  { %v10348_v27 = vadd.f32 %v9274_v31, %v1317_v17  ;;  %14220 = vst [vmem:[#allocation50_spill] sm:$0xff] %v10368_v29  ;;  %v1240_v17 = vadd.f32 %v1239_v40, %v1142_v41  ;;  %v1384_v12 = vmul.f32 0.2, %v10368_v29  ;;  %vm1368_vm14 = vcmp.gt.f32.partialorder %v10368_v29, 0.0 }
 0x47a   :  { %v10353_v26 = vadd.f32 %v9275_v38, %v1319_v44  ;;  %v1322_v54 = vpop.f32.mrb[10].mxu1  ;;  %v1399_v10 = vsel %vm1367_vm10, %v10339_v18, %v1383_v47  ;;  %7112 = vrot.lane.b32.xlu1 %v10355_v46, %s9457_s20  ;;  %v1242_v40 = vadd.f32 %v1241_v43, %v1142_v41  ;;  %v9279_v38 = vld [vmem:[%s14182_s18 + $0x20] sm:$0xff] }
 0x47b   :  { %14218 = vst [vmem:[#allocation48_spill] sm:$0xff] %v10348_v27  ;;  %vm1365_vm11 = vcmp.gt.f32.partialorder %v10348_v27, 0.0  ;;  %v1381_v45 = vmul.f32 0.2, %v10348_v27  ;;  %v1323_v11 = vadd.f32 %v1322_v54, %v1137_v22  ;;  %v1245_v52 = vpop.f32.mrb[14].mxu0  ;;  %v1324_v51 = vpop.f32.mrb[11].mxu1  ;;  %v7126_v48 = vpack.i.bf16 %v1399_v10, %v14212_v34 }
 0x47c   :  { %14219 = vst [vmem:[#allocation49_spill] sm:$0xff] %v10353_v26  ;;  %v1382_v14 = vmul.f32 0.2, %v10353_v26  ;;  %vm1366_vm12 = vcmp.gt.f32.partialorder %v10353_v26, 0.0  ;;  %v1247_v25 = vpop.f32.mrb[15].mxu0  ;;  %v1325_v0 = vadd.f32 %v1324_v51, %v1137_v22  ;;  %v1246_v6 = vadd.f32 %v1245_v52, %v1147_v16 }
 0x47d   :  { %v10374_v39 = vadd.f32 %v9277_v2, %v1323_v11  ;;  %v1397_v5 = vsel %vm1365_vm11, %v10348_v27, %v1381_v45  ;;  %7127 = vrot.lane.b32.xlu0 %v7126_v48, %s9458_s30  ;;  %v10401_v54 = vadd.f32 %v9279_v38, %v1240_v17  ;;  %v9280_v45 = vld [vmem:[%s14182_s18 + $0x30] sm:$0xff]  ;;  %v1400_v37 = vsel %vm1368_vm14, %v10368_v29, %v1384_v12  ;;  %v9281_v2 = vld [vmem:[%s14182_s18 + $0x28] sm:$0xff] }
 0x47e   :  { %v1328_v21 = vpop.f32.mrb[12].mxu1  ;;  %v1398_v22 = vsel %vm1366_vm12, %v10353_v26, %v1382_v14  ;;  %v10390_v47 = vadd.f32 %v9278_v42, %v1325_v0  ;;  %v10406_v11 = vadd.f32 %v9280_v45, %v1246_v6  ;;  %v10413_v0 = vadd.f32 %v9281_v2, %v1242_v40  ;;  %v9282_v42 = vld [vmem:[%s14182_s18 + $0x70] sm:$0xff] }
 0x47f   :  { %14221 = vst [vmem:[#allocation51_spill] sm:$0xff] %v10374_v39  ;;  %v1385_v33 = vmul.f32 0.2, %v10374_v39  ;;  %v1330_v20 = vpop.f32.mrb[13].mxu1  ;;  %vm1369_vm13 = vcmp.gt.f32.partialorder %v10374_v39, 0.0  ;;  %v10392_v44 = vpack.i.bf16 %v1398_v22, %v1397_v5  ;;  %14223 = vst [vmem:[#allocation53_spill] sm:$0xff] %v10401_v54  ;;  %v1329_v48 = vadd.f32 %v1328_v21, %v1142_v41 }
 0x480   :  { %14222 = vst [vmem:[#allocation52_spill] sm:$0xff] %v10390_v47  ;;  %14224 = vst [vmem:[#allocation54_spill] sm:$0xff] %v10406_v11  ;;  %v1386_v51 = vmul.f32 0.2, %v10390_v47  ;;  %vm1370_vm15 = vcmp.gt.f32.partialorder %v10390_v47, 0.0  ;;  %vm1371_vm4 = vcmp.gt.f32.partialorder %v10401_v54, 0.0  ;;  %v1248_v6 = vadd.f32 %v1247_v25, %v1147_v16 }
 0x481   :  { %7117 = vrot.lane.b32.xlu1 %v10392_v44, %s9457_s20  ;;  %v1401_v31 = vsel %vm1369_vm13, %v10374_v39, %v1385_v33  ;;  %14225 = vst [vmem:[#allocation55_spill] sm:$0xff] %v10413_v0  ;;  %v1331_v33 = vadd.f32 %v1330_v20, %v1142_v41  ;;  %v1387_v17 = vmul.f32 0.2, %v10401_v54  ;;  %v1391_v12 = vmul.f32 0.2, %v10406_v11  ;;  %v9283_v25 = vld [vmem:[%s14182_s18 + $0x60] sm:$0xff] }
 0x482   :  { %v1334_v56 = vpop.f32.mrb[14].mxu1  ;;  %v7131_v43 = vpack.i.bf16 %v1401_v31, %v1398_v22  ;;  %v7136_v22 = vpack.i.bf16 %v1400_v37, %v1399_v10  ;;  %v7146_v41 = vpack.i.bf16 %v1397_v5, %v1400_v37  ;;  %v1402_v21 = vsel %vm1370_vm15, %v10390_v47, %v1386_v51  ;;  %v9285_v5 = vld [vmem:[%s14182_s18 + $0x38] sm:$0xff] }
 0x483   :  { %v1336_v52 = vpop.f32.mrb[15].mxu1  ;;  %v1335_v14 = vadd.f32 %v1334_v56, %v1147_v16  ;;  %v1388_v20 = vmul.f32 0.2, %v10413_v0  ;;  %vm1375_vm5 = vcmp.gt.f32.partialorder %v10406_v11, 0.0  ;;  %v10433_v10 = vadd.f32 %v9283_v25, %v1329_v48  ;;  %v9284_v56 = vld [vmem:[%s14182_s18 + $0x68] sm:$0xff] }
 0x484   :  { %7132 = vrot.lane.b32.xlu0 %v7131_v43, %s9458_s30  ;;  %v10438_v38 = vadd.f32 %v9284_v56, %v1331_v33  ;;  %vm1372_vm6 = vcmp.gt.f32.partialorder %v10413_v0, 0.0  ;;  %v10446_v45 = vadd.f32 %v9285_v5, %v1248_v6  ;;  %v7141_v43 = vpack.i.bf16 %v1402_v21, %v1401_v31 }
 0x485   :  { %7122 = vrot.lane.b32.xlu1 %v10355_v46, %s9458_s30  ;;  %v10425_v40 = vadd.f32 %v9282_v42, %v1335_v14  ;;  %14227 = vst [vmem:[#allocation57_spill] sm:$0xff] %v10433_v10  ;;  %v1403_v51 = vsel %vm1371_vm4, %v10401_v54, %v1387_v17  ;;  %v1337_v37 = vadd.f32 %v1336_v52, %v1147_v16  ;;  %v1389_v33 = vmul.f32 0.2, %v10433_v10  ;;  %v9286_v17 = vld [vmem:[%s14182_s18 + $0x78] sm:$0xff] }
 0x486   :  { %14228 = vst [vmem:[#allocation58_spill] sm:$0xff] %v10438_v38  ;;  %14229 = vst [vmem:[#allocation59_spill] sm:$0xff] %v10446_v45  ;;  %v7151_v2 = vpack.i.bf16 %v1403_v51, %v1402_v21  ;;  %v1407_v48 = vsel %vm1375_vm5, %v10406_v11, %v1391_v12  ;;  %v1390_v42 = vmul.f32 0.2, %v10438_v38  ;;  %v1404_v31 = vsel %vm1372_vm6, %v10413_v0, %v1388_v20 }
 0x487   :  { %14226 = vst [vmem:[#allocation56_spill] sm:$0xff] %v10425_v40  ;;  %v1393_v14 = vmul.f32 0.2, %v10425_v40  ;;  %vm1377_vm7 = vcmp.gt.f32.partialorder %v10425_v40, 0.0  ;;  %vm1373_vm8 = vcmp.gt.f32.partialorder %v10433_v10, 0.0  ;;  %vm1374_vm9 = vcmp.gt.f32.partialorder %v10438_v38, 0.0 }
 0x488   :  { %7137 = vrot.lane.b32.xlu0 %v7136_v22, %s9457_s20  ;;  %v7166_v16 = vpack.i.bf16 %v1407_v48, %v1404_v31  ;;  %v1392_v52 = vmul.f32 0.2, %v10446_v45  ;;  %v10465_v6 = vadd.f32 %v9286_v17, %v1337_v37  ;;  %v7156_v12 = vpack.i.bf16 %v1404_v31, %v1403_v51 }
 0x489   :  { %7147 = vrot.lane.b32.xlu1 %v7146_v41, %s9458_s30  ;;  %v1409_v41 = vsel %vm1377_vm7, %v10425_v40, %v1393_v14  ;;  %vm1376_vm10 = vcmp.gt.f32.partialorder %v10446_v45, 0.0  ;;  %v1406_v21 = vsel %vm1374_vm9, %v10438_v38, %v1390_v42  ;;  %v1405_v20 = vsel %vm1373_vm8, %v10433_v10, %v1389_v33 }
 0x48a   :  { %14230 = vst [vmem:[#allocation60_spill] sm:$0xff] %v10465_v6  ;;  %v7171_v25 = vpack.i.bf16 %v1409_v41, %v1406_v21  ;;  %v1394_v56 = vmul.f32 0.2, %v10465_v6  ;;  %v7161_v5 = vpack.i.bf16 %v1406_v21, %v1405_v20  ;;  %v1408_v37 = vsel %vm1376_vm10, %v10446_v45, %v1392_v52 }
 0x48b   :  { %vm1378_vm11 = vcmp.gt.f32.partialorder %v10465_v6, 0.0  ;;  %v7176_v14 = vpack.i.bf16 %v1408_v37, %v1407_v48  ;;  %v7201_v42 = vpack.i.bf16 %v1405_v20, %v1408_v37  ;;  %v7211_v48 = vpack.i.bf16 %v1403_v51, %v14212_v34 }
 0x48c   :  { %7142 = vrot.lane.b32.xlu0 %v7141_v43, %s9457_s20  ;;  %vm1435_vm12 = vcmask 1022976   ;;  %vm1458_vm13 = vcmask 998400   ;;  %vm1585_vm14 = vcmask 23552  }
 0x48d   :  { %7152 = vrot.lane.b32.xlu1 %v7151_v2, %s9458_s30  ;;  %v1410_v2 = vsel %vm1378_vm11, %v10465_v6, %v1394_v56 }
 0x48e   :  { %v7181_v33 = vpack.i.bf16 %v1410_v2, %v1409_v41 }
 0x490   :  { %7167 = vrot.lane.b32.xlu0 %v7166_v16, %s9458_s30 }
 0x491   :  { %7157 = vrot.lane.b32.xlu1 %v7156_v12, %s9457_s20 }
 0x494   :  { %7172 = vrot.lane.b32.xlu0 %v7171_v25, %s9458_s30 }
 0x495   :  { %7162 = vrot.lane.b32.xlu1 %v7161_v5, %s9457_s20 }
 0x498   :  { %7177 = vrot.lane.b32.xlu0 %v7176_v14, %s9457_s20 }
 0x499   :  { %7192 = vrot.lane.b32.xlu1 %v7136_v22, %s9459_s1 }
 0x49c   :  { %7182 = vrot.lane.b32.xlu0 %v7181_v33, %s9457_s20 }
 0x49d   :  { %7202 = vrot.lane.b32.xlu1 %v7201_v42, %s9458_s30 }
 0x4a0   :  { %7187 = vrot.lane.b32.xlu0 %v10355_v46, %s9459_s1 }
 0x4a1   :  { %1509 = vrot.lane.b32.xlu1 %v1410_v2, %s9458_s30 }
 0x4a4   :  { %7197 = vrot.lane.b32.xlu0 %v10392_v44, %s9459_s1 }
 0x4a5   :  { %7207 = vrot.lane.b32.xlu1 %v7141_v43, %s9459_s1 }
 0x4a8   :  { %7212 = vrot.lane.b32.xlu0 %v7211_v48, %s9459_s1 }
 0x4a9   :  { %7217 = vrot.lane.b32.xlu1 %v7166_v16, %s9459_s1 }
 0x4ac   :  { %7227 = vrot.lane.b32.xlu0 %v7201_v42, %s9459_s1 }
 0x4ad   :  { %7222 = vrot.lane.b32.xlu1 %v7171_v25, %s9459_s1 }
 0x4ec   :  { %v7113_v22 = vpop.permute.xlu1 %7112 }
 0x4ed   :  { %v7115_v46 = vunpack.i.h.bf16 %v7113_v22  ;;  %v7114_v31 = vunpack.i.l.bf16 %v7113_v22 }
 0x4ef   :  { %v1436_v52 = vsel %vm1435_vm12, %v7114_v31, %v7115_v46  ;;  %v7128_v44 = vpop.permute.xlu0 %7127 }
 0x4f0   :  { %v7231_v17 = vpack.i.bf16 %v1436_v52, %v1410_v2  ;;  %v7130_v48 = vunpack.i.h.bf16 %v7128_v44 }
 0x4f2   :  { %7232 = vrot.lane.b32.xlu0 %v7231_v17, %s9459_s1  ;;  %v10505_v17 = vunpack.i.l.bf16 %v7128_v44 }
 0x4f3   :  { %v7118_v43 = vpop.permute.xlu1 %7117 }
 0x4f4   :  { %v7120_v16 = vunpack.i.h.bf16 %v7118_v43  ;;  %v7119_v41 = vunpack.i.l.bf16 %v7118_v43 }
 0x4f6   :  { %v10496_v51 = vpop.permute.xlu0 %7132  ;;  %v1491_v5 = vsel %vm1435_vm12, %v7119_v41, %v7120_v16 }
 0x4f7   :  { %v10498_v12 = vpop.permute.xlu1 %7122  ;;  %v7134_v43 = vunpack.i.l.bf16 %v10496_v51  ;;  %v7135_v47 = vunpack.i.h.bf16 %v10496_v51 }
 0x4f8   :  { %v7124_v45 = vunpack.i.l.bf16 %v10498_v12 }
 0x4fa   :  { %v7138_v21 = vpop.permute.xlu0 %7137 }
 0x4fb   :  { %v7140_v20 = vunpack.i.h.bf16 %v7138_v21  ;;  %v7139_v25 = vunpack.i.l.bf16 %v7138_v21  ;;  %v7148_v56 = vpop.permute.xlu1 %7147 }
 0x4fc   :  { %v7150_v33 = vunpack.i.h.bf16 %v7148_v56  ;;  %v7149_v2 = vunpack.i.l.bf16 %v7148_v56 }
 0x4fd   :  { %v7246_v37 = vpack.i.bf16 %v1491_v5, %v7140_v20  ;;  %v7236_v14 = vpack.i.bf16 %v7119_v41, %v7139_v25  ;;  %v1437_v21 = vsel %vm1435_vm12, %v7139_v25, %v7140_v20 }
 0x4fe   :  { %v7143_v42 = vpop.permute.xlu0 %7142  ;;  %v7241_v5 = vpack.i.bf16 %v7150_v33, %v7130_v48  ;;  %v1511_v56 = vsel %vm1458_vm13, %v7150_v33, %v7134_v43  ;;  %v1462_v6 = vsel %vm1458_vm13, %v7149_v2, %v10505_v17  ;;  %v7256_v20 = vpack.i.bf16 %v1437_v21, %v7115_v46 }
 0x4ff   :  { %v7145_v22 = vunpack.i.h.bf16 %v7143_v42  ;;  %v10501_v52 = vpop.permute.xlu1 %7152  ;;  %7247 = vrot.lane.b32.xlu0 %v7246_v37, %s9459_s1  ;;  %7237 = vrot.lane.b32.xlu1 %v7236_v14, %s9459_s1  ;;  %v7144_v40 = vunpack.i.l.bf16 %v7143_v42  ;;  %v7271_v44 = vpack.i.bf16 %v1511_v56, %v1462_v6  ;;  %v7125_v6 = vunpack.i.h.bf16 %v10498_v12 }
 0x500   :  { %v7154_v38 = vunpack.i.l.bf16 %v10501_v52  ;;  %v1461_v21 = vsel %vm1458_vm13, %v7130_v48, %v7149_v2 }
 0x501   :  { %v7251_v41 = vpack.i.bf16 %v7114_v31, %v7145_v22  ;;  %v1492_v31 = vsel %vm1435_vm12, %v7144_v40, %v7145_v22  ;;  %v1460_v12 = vsel %vm1458_vm13, %v7125_v6, %v10505_v17 }
 0x502   :  { %v10513_v37 = vpop.permute.xlu0 %7167  ;;  %v1514_v25 = vsel %vm1458_vm13, %v7154_v38, %v10505_v17  ;;  %v7261_v22 = vpack.i.bf16 %v1492_v31, %v7120_v16  ;;  %v14091_v16 = vunpack.i.h.bf16 %v10501_v52  ;;  %v1513_v2 = vsel %vm1458_vm13, %v7135_v47, %v7154_v38 }
 0x503   :  { %v10515_v14 = vpop.permute.xlu1 %7157  ;;  %7252 = vrot.lane.b32.xlu0 %v7251_v41, %s9459_s1  ;;  %7242 = vrot.lane.b32.xlu1 %v7241_v5, %s9459_s1  ;;  %v7281_v46 = vpack.i.bf16 %v7124_v45, %v1514_v25  ;;  %v14092_v5 = vunpack.i.l.bf16 %v10513_v37  ;;  %v1512_v25 = vsel %vm1458_vm13, %v7134_v43, %v10505_v17 }
 0x504   :  { %v14094_v33 = vunpack.i.h.bf16 %v10515_v14  ;;  %v14093_v42 = vunpack.i.l.bf16 %v10515_v14  ;;  %v7276_v38 = vpack.i.bf16 %v1513_v2, %v1512_v25 }
 0x505   :  { %v1463_v51 = vsel %vm1458_vm13, %v14091_v16, %v14092_v5 }
 0x506   :  { %v10524_v10 = vpop.permute.xlu0 %7172  ;;  %v1438_v41 = vsel %vm1435_vm12, %v14093_v42, %v14094_v33 }
 0x507   :  { %v10527_v11 = vpop.permute.xlu1 %7162  ;;  %7272 = vrot.lane.b32.xlu0 %v7271_v44, %s9459_s1  ;;  %7257 = vrot.lane.b32.xlu1 %v7256_v20, %s9459_s1  ;;  %v7286_v48 = vpack.i.bf16 %v1438_v41, %v7144_v40  ;;  %v7266_v20 = vpack.i.bf16 %v1461_v21, %v1460_v12  ;;  %v7291_v12 = vpack.i.bf16 %v1463_v51, %v7135_v47 }
 0x508   :  { %v7164_v16 = vunpack.i.l.bf16 %v10527_v11  ;;  %v7165_v2 = vunpack.i.h.bf16 %v10527_v11 }
 0x50a   :  { %v7178_v56 = vpop.permute.xlu0 %7177  ;;  %v1493_v11 = vsel %vm1435_vm12, %v7164_v16, %v7165_v2 }
 0x50b   :  { %v10540_v44 = vpop.permute.xlu1 %7192  ;;  %7282 = vrot.lane.b32.xlu0 %v7281_v46, %s9459_s1  ;;  %7262 = vrot.lane.b32.xlu1 %v7261_v22, %s9459_s1  ;;  %v7179_v22 = vunpack.i.l.bf16 %v7178_v56  ;;  %v7180_v5 = vunpack.i.h.bf16 %v7178_v56 }
 0x50c   :  { %v7195_v40 = vunpack.i.h.bf16 %v10540_v44  ;;  %v7194_v21 = vunpack.i.l.bf16 %v10540_v44  ;;  %v1459_v44 = vsel %vm1458_vm13, %v7124_v45, %v7125_v6 }
 0x50d   :  { %v1439_v25 = vsel %vm1435_vm12, %v7179_v22, %v7180_v5 }
 0x50e   :  { %v7183_v31 = vpop.permute.xlu0 %7182  ;;  %v1589_v56 = vsel %vm1585_vm14, %v7194_v21, %v7195_v40 }
 0x50f   :  { %v10555_v46 = vpop.permute.xlu1 %7202  ;;  %7287 = vrot.lane.b32.xlu0 %v7286_v48, %s9459_s1  ;;  %7267 = vrot.lane.b32.xlu1 %v7266_v20, %s9459_s1  ;;  %v7184_v41 = vunpack.i.l.bf16 %v7183_v31  ;;  %v7296_v48 = vpack.i.bf16 %v7164_v16, %v7179_v22  ;;  %v7185_v20 = vunpack.i.h.bf16 %v7183_v31  ;;  %v14231_v22 = vunpack.i.h.bf16 %v10515_v14 }
 0x510   :  { %v7205_v45 = vunpack.i.h.bf16 %v10555_v46 }
 0x511   :  { %v7301_v47 = vpack.i.bf16 %v1459_v44, %v7184_v41  ;;  %v1494_v40 = vsel %vm1435_vm12, %v7184_v41, %v7185_v20 }
 0x512   :  { %v7188_v42 = vpop.permute.xlu0 %7187 }
 0x513   :  { %v7190_v43 = vunpack.i.h.bf16 %v7188_v42  ;;  %v7189_v33 = vunpack.i.l.bf16 %v7188_v42  ;;  %v10562_v39 = vpop.permute.xlu1 %1509  ;;  %7292 = vrot.lane.b32.xlu0 %v7291_v12, %s9459_s1  ;;  %7277 = vrot.lane.b32.xlu1 %v7276_v38, %s9459_s1  ;;  %v7306_v38 = vpack.i.bf16 %v1493_v11, %v7180_v5  ;;  %v7321_v11 = vpack.i.bf16 %v1494_v40, %v7165_v2 }
 0x515   :  { %v1587_v51 = vsel %vm1585_vm14, %v7189_v33, %v7190_v43  ;;  %v7316_v43 = vpack.i.bf16 %v1439_v25, %v14231_v22 }
 0x516   :  { %v7198_v42 = vpop.permute.xlu0 %7197  ;;  %v6110_v0 = vpack.c.bf16 %v1589_v56, %v1587_v51  ;;  %v7174_v51 = vunpack.i.l.bf16 %v10524_v10  ;;  %v7170_v56 = vunpack.i.h.bf16 %v10513_v37 }
 0x517   :  { %v7200_v54 = vunpack.i.h.bf16 %v7198_v42  ;;  %v7199_v26 = vunpack.i.l.bf16 %v7198_v42  ;;  %v7208_v12 = vpop.permute.xlu1 %7207  ;;  %7302 = vrot.lane.b32.xlu0 %v7301_v47, %s9459_s1  ;;  %7297 = vrot.lane.b32.xlu1 %v7296_v48, %s9459_s1  ;;  %v7204_v47 = vunpack.i.l.bf16 %v10555_v46  ;;  %v14232_v42 = vunpack.i.l.bf16 %v10515_v14 }
 0x518   :  { %v7210_v6 = vunpack.i.h.bf16 %v7208_v12  ;;  %v7209_v31 = vunpack.i.l.bf16 %v7208_v12  ;;  %6111 = vmatprep.subr.bf16.mxu0 %v6110_v0  ;;  %v1515_v25 = vsel %vm1458_vm13, %v7205_v45, %v7174_v51 }
 0x519   :  { %v1699_v44 = vsel %vm1585_vm14, %v7199_v26, %v7200_v54  ;;  %v7311_v0 = vpack.i.bf16 %v14232_v42, %v7185_v20 }
 0x51a   :  { %v7213_v48 = vpop.permute.xlu0 %7212  ;;  %v1701_v16 = vsel %vm1585_vm14, %v7209_v31, %v7210_v6 }
 0x51b   :  { %v10585_v5 = vunpack.i.l.bf16 %v7213_v48  ;;  %v7218_v41 = vpop.permute.xlu1 %7217  ;;  %7307 = vrot.lane.b32.xlu0 %v7306_v38, %s9459_s1  ;;  %7317 = vrot.lane.b32.xlu1 %v7316_v43, %s9459_s1  ;;  %v6134_v54 = vpack.c.bf16 %v1701_v16, %v1699_v44  ;;  %v7215_v12 = vunpack.i.h.bf16 %v7213_v48  ;;  %v1465_v38 = vsel %vm1458_vm13, %v7170_v56, %v7204_v47 }
 0x51c   :  { %v7220_v46 = vunpack.i.h.bf16 %v7218_v41  ;;  %v7219_v22 = vunpack.i.l.bf16 %v7218_v41  ;;  %v1466_v43 = vsel %vm1458_vm13, %v7204_v47, %v10505_v17  ;;  %v7175_v47 = vunpack.i.h.bf16 %v10524_v10 }
 0x51d   :  { %6135 = vmatprep.subr.bf16.mxu1 %v6134_v54  ;;  %v1586_v6 = vsel %vm1585_vm14, %v10585_v5, %v7189_v33  ;;  %v1588_v14 = vsel %vm1585_vm14, %v10585_v5, %v7194_v21  ;;  %v1698_v20 = vsel %vm1585_vm14, %v10585_v5, %v7199_v26  ;;  %v1700_v2 = vsel %vm1585_vm14, %v10585_v5, %v7209_v31 }
 0x51e   :  { %v10599_v44 = vpop.permute.xlu0 %7227  ;;  %v6112_v48 = vpack.c.bf16 %v1588_v14, %v1586_v6  ;;  %v6136_v33 = vpack.c.bf16 %v1700_v2, %v1698_v20  ;;  %v14233_v26 = vunpack.i.l.bf16 %v10513_v37  ;;  %v1590_v16 = vsel %vm1585_vm14, %v10585_v5, %v7215_v12  ;;  %v1360_v14 = vld [vmem:[%s14034_s6 + $0x8] sm:$0xff] }
 0x51f   :  { %v7229_v40 = vunpack.i.l.bf16 %v10599_v44  ;;  %7312 = vrot.lane.b32.xlu0 %v7311_v0, %s9459_s1  ;;  %7322 = vrot.lane.b32.xlu1 %v7321_v11, %s9459_s1  ;;  %v1592_v31 = vsel %vm1585_vm14, %v10585_v5, %v7220_v46  ;;  %v7331_v42 = vpack.i.bf16 %v1515_v25, %v1466_v43  ;;  %v1591_v41 = vsel %vm1585_vm14, %v7215_v12, %v7219_v22 }
 0x520   :  { %v1464_v21 = vsel %vm1458_vm13, %v14233_v26, %v10505_v17  ;;  %6113 = vmatpush1.bf16.msra.mxu0 %v6112_v48  ;;  %6137 = vmatpush1.bf16.msra.mxu1 %v6136_v33  ;;  %v1517_v37 = vsel %vm1458_vm13, %v7175_v47, %v10562_v39  ;;  %v1518_v10 = vsel %vm1458_vm13, %v10562_v39, %v10505_v17 }
 0x521   :  { %v7326_v0 = vpack.i.bf16 %v1465_v38, %v1464_v21  ;;  %v1593_v54 = vsel %vm1585_vm14, %v7220_v46, %v7229_v40  ;;  %v6116_v6 = vpack.c.bf16 %v1592_v31, %v1590_v16  ;;  %v1516_v25 = vsel %vm1458_vm13, %v7174_v51, %v10505_v17  ;;  %v1359_v17 = vld [vmem:[%s14034_s6] sm:$0xff] }
 0x522   :  { %v6114_v11 = vpack.c.bf16 %v1593_v54, %v1591_v41  ;;  %v7336_v12 = vpack.i.bf16 %v1517_v37, %v1516_v25  ;;  %v14234_v46 = vunpack.i.h.bf16 %v10501_v52  ;;  %v7341_v39 = vpack.i.bf16 %v7205_v45, %v7170_v56  ;;  %v1362_v52 = vld [vmem:[%s14034_s6 + $0x18] sm:$0xff]  ;;  %v1361_v45 = vld [vmem:[%s14034_s6 + $0x10] sm:$0xff]  ;;  %s9460_s6 = smov 124  }
 0x523   :  { %7332 = vrot.lane.b32.xlu0 %v7331_v42, %s9459_s1  ;;  %7327 = vrot.lane.b32.xlu1 %v7326_v0, %s9459_s1 }
 0x524   :  { %6115 = vmatprep.subr.bf16.mxu0 %v6114_v11  ;;  %v7346_v22 = vpack.i.bf16 %v14234_v46, %v1518_v10 }
 0x525   :  { %6117 = vmatpush1.bf16.msra.mxu0 %v6116_v6 }
 0x527   :  { %7347 = vrot.lane.b32.xlu0 %v7346_v22, %s9459_s1  ;;  %7337 = vrot.lane.b32.xlu1 %v7336_v12, %s9459_s1 }
 0x52b   :  { %1692 = vrot.lane.b32.xlu0 %v7175_v47, %s9459_s1  ;;  %7342 = vrot.lane.b32.xlu1 %v7341_v39, %s9459_s1 }
 0x52f   :  { %1753 = vperm.xlu0 %6869, %v1360_v14   ;;  %1748 = vperm.xlu1 %6870, %v1359_v17  }
 0x533   :  { %1763 = vperm.xlu0 %6869, %v1362_v52   ;;  %1758 = vperm.xlu1 %6870, %v1361_v45  }
 0x537   :  { %2578 = vrot.lane.b32.xlu0 %v14212_v34, %s9453_s19  ;;  %7357 = vrot.lane.b32.xlu1 %v9728_v57, %s9457_s20 }
 0x53b   :  { %7352 = vrot.lane.b32.xlu0 %v9690_v23, %s9457_s20  ;;  %7367 = vrot.lane.b32.xlu1 %v9734_v58, %s9457_s20 }
 0x53f   :  { %7362 = vrot.lane.b32.xlu0 %v9739_v59, %s9457_s20  ;;  %7377 = vrot.lane.b32.xlu1 %v9743_v60, %s9457_s20 }
 0x543   :  { %7372 = vrot.lane.b32.xlu0 %v9747_v61, %s9457_s20  ;;  %7387 = vrot.lane.b32.xlu1 %v9751_v62, %s9457_s20 }
 0x547   :  { %7382 = vrot.lane.b32.xlu0 %v9755_v63, %s9457_s20  ;;  %7392 = vrot.lane.b32.xlu1 %v9690_v23, %s9460_s6 }
 0x54b   :  { %2655 = vrot.lane.b32.xlu0 %v9721_v50, %s9457_s20  ;;  %7402 = vrot.lane.b32.xlu1 %v9739_v59, %s9460_s6 }
 0x54f   :  { %7397 = vrot.lane.b32.xlu0 %v9728_v57, %s9460_s6  ;;  %7412 = vrot.lane.b32.xlu1 %v9747_v61, %s9460_s6  ;;  %v7223_v57 = vpop.permute.xlu1 %7222 }
 0x550   :  { %v7225_v59 = vunpack.i.h.bf16 %v7223_v57  ;;  %v7224_v61 = vunpack.i.l.bf16 %v7223_v57 }
 0x553   :  { %7407 = vrot.lane.b32.xlu0 %v9734_v58, %s9460_s6  ;;  %7422 = vrot.lane.b32.xlu1 %v9755_v63, %s9460_s6  ;;  %v7230_v58 = vunpack.i.h.bf16 %v10599_v44 }
 0x557   :  { %7417 = vrot.lane.b32.xlu0 %v9743_v60, %s9460_s6  ;;  %2679 = vrot.lane.b32.xlu1 %v9721_v50, %s9460_s6 }
 0x55b   :  { %7427 = vrot.lane.b32.xlu0 %v9751_v62, %s9460_s6  ;;  %7437 = vrot.lane.b32.xlu1 %v9708_v35, %s9461_s22  ;;  %v1702_v35 = vsel %vm1585_vm14, %v10585_v5, %v7230_v58 }
 0x55f   :  { %7432 = vrot.lane.b32.xlu0 %v9690_v23, %s9461_s22  ;;  %7447 = vrot.lane.b32.xlu1 %v9702_v30, %s9461_s22  ;;  %v1704_v23 = vsel %vm1585_vm14, %v10585_v5, %v7225_v59  ;;  %v1703_v30 = vsel %vm1585_vm14, %v7230_v58, %v7224_v61 }
 0x563   :  { %7442 = vrot.lane.b32.xlu0 %v9677_v15, %s9461_s22  ;;  %7457 = vrot.lane.b32.xlu1 %v9743_v60, %s9461_s22  ;;  %v6140_v60 = vpack.c.bf16 %v1704_v23, %v1702_v35 }
 0x564   :  { %v7233_v50 = vpop.permute.xlu0 %7232 }
 0x565   :  { %v7234_v51 = vunpack.i.l.bf16 %v7233_v50  ;;  %v7235_v43 = vunpack.i.h.bf16 %v7233_v50 }
 0x567   :  { %7452 = vrot.lane.b32.xlu0 %v9768_v1, %s9461_s22  ;;  %7467 = vrot.lane.b32.xlu1 %v9751_v62, %s9461_s22  ;;  %v1705_v15 = vsel %vm1585_vm14, %v7225_v59, %v7234_v51 }
 0x568   :  { %v6138_v56 = vpack.c.bf16 %v1705_v15, %v1703_v30 }
 0x56a   :  { %6139 = vmatprep.subr.bf16.mxu1 %v6138_v56 }
 0x56b   :  { %6141 = vmatpush1.bf16.msra.mxu1 %v6140_v60  ;;  %7462 = vrot.lane.b32.xlu0 %v9755_v63, %s9461_s22 }
 0x56c   :  { %7477 = vrot.lane.b32.xlu1 %v9811_v28, %s9461_s22 }
 0x56f   :  { %7472 = vrot.lane.b32.xlu0 %v9843_v49, %s9461_s22 }
 0x570   :  { %7487 = vrot.lane.b32.xlu1 %v9799_v19, %s9461_s22 }
 0x571   :  { %v7248_v62 = vpop.permute.xlu0 %7247  ;;  %v7238_v1 = vpop.permute.xlu1 %7237 }
 0x572   :  { %v7249_v28 = vunpack.i.l.bf16 %v7248_v62  ;;  %v7239_v48 = vunpack.i.l.bf16 %v7238_v1  ;;  %v7250_v31 = vunpack.i.h.bf16 %v7248_v62  ;;  %v7240_v54 = vunpack.i.h.bf16 %v7238_v1 }
 0x573   :  { %7482 = vrot.lane.b32.xlu0 %v9806_v24, %s9461_s22 }
 0x574   :  { %v1706_v46 = vsel %vm1585_vm14, %v7240_v54, %v7250_v31 }
 0x575   :  { %v7253_v5 = vpop.permute.xlu0 %7252  ;;  %v10713_v20 = vpop.permute.xlu1 %7242 }
 0x576   :  { %v7255_v38 = vunpack.i.h.bf16 %v7253_v5  ;;  %v7254_v42 = vunpack.i.l.bf16 %v7253_v5  ;;  %v7245_v57 = vunpack.i.h.bf16 %v10713_v20  ;;  %v7244_v58 = vunpack.i.l.bf16 %v10713_v20 }
 0x578   :  { %v1594_v40 = vsel %vm1585_vm14, %v7255_v38, %v7235_v43 }
 0x579   :  { %v10715_v63 = vpop.permute.xlu0 %7272  ;;  %v7258_v44 = vpop.permute.xlu1 %7257 }
 0x57a   :  { %v7260_v2 = vunpack.i.h.bf16 %v7258_v44  ;;  %v7259_v49 = vunpack.i.l.bf16 %v7258_v44  ;;  %v7275_v61 = vunpack.i.h.bf16 %v10715_v63  ;;  %v7274_v23 = vunpack.i.l.bf16 %v10715_v63 }
 0x57c   :  { %v1596_v19 = vsel %vm1585_vm14, %v7239_v48, %v7260_v2  ;;  %v1595_v33 = vsel %vm1585_vm14, %v7235_v43, %v7259_v49  ;;  %v1597_v24 = vsel %vm1585_vm14, %v7260_v2, %v7249_v28 }
 0x57d   :  { %v10721_v26 = vpop.permute.xlu0 %7282  ;;  %v7263_v21 = vpop.permute.xlu1 %7262  ;;  %v6118_v47 = vpack.c.bf16 %v1597_v24, %v1595_v33  ;;  %v6120_v16 = vpack.c.bf16 %v1596_v19, %v1594_v40 }
 0x57e   :  { %v7265_v0 = vunpack.i.h.bf16 %v7263_v21  ;;  %v7264_v41 = vunpack.i.l.bf16 %v7263_v21  ;;  %v7285_v30 = vunpack.i.h.bf16 %v10721_v26  ;;  %v7284_v15 = vunpack.i.l.bf16 %v10721_v26 }
 0x57f   :  { %6119 = vmatprep.subr.bf16.mxu0 %v6118_v47 }
 0x580   :  { %6121 = vmatpush1.bf16.msra.mxu0 %v6120_v16  ;;  %v1707_v37 = vsel %vm1585_vm14, %v7250_v31, %v7264_v41  ;;  %v1709_v10 = vsel %vm1585_vm14, %v7265_v0, %v7254_v42 }
 0x581   :  { %v7288_v11 = vpop.permute.xlu0 %7287  ;;  %v10725_v6 = vpop.permute.xlu1 %7267  ;;  %v6142_v25 = vpack.c.bf16 %v1709_v10, %v1707_v37 }
 0x582   :  { %v7289_v12 = vunpack.i.l.bf16 %v7288_v11  ;;  %v7270_v59 = vunpack.i.h.bf16 %v10725_v6  ;;  %v7290_v56 = vunpack.i.h.bf16 %v7288_v11  ;;  %v7269_v1 = vunpack.i.l.bf16 %v10725_v6 }
 0x583   :  { %6143 = vmatprep.subr.bf16.mxu1 %v6142_v25 }
 0x584   :  { %v1708_v22 = vsel %vm1585_vm14, %v7289_v12, %v7265_v0  ;;  %v1605_v48 = vsel %vm1585_vm14, %v7270_v59, %v7274_v23 }
 0x585   :  { %v10729_v39 = vpop.permute.xlu0 %7292  ;;  %v7278_v14 = vpop.permute.xlu1 %7277  ;;  %v6144_v17 = vpack.c.bf16 %v1708_v22, %v1706_v46 }
 0x586   :  { %v7294_v50 = vunpack.i.l.bf16 %v10729_v39  ;;  %v7280_v51 = vunpack.i.h.bf16 %v7278_v14  ;;  %v7279_v35 = vunpack.i.l.bf16 %v7278_v14  ;;  %v7295_v43 = vunpack.i.h.bf16 %v10729_v39  ;;  %v1356_v39 = vld [vmem:[#allocation7 + $0x8] sm:$0xff] }
 0x587   :  { %6145 = vmatpush1.bf16.msra.mxu1 %v6144_v17 }
 0x588   :  { %v1716_v63 = vsel %vm1585_vm14, %v7294_v50, %v7280_v51  ;;  %v1715_v40 = vsel %vm1585_vm14, %v7275_v61, %v7279_v35  ;;  %v1717_v10 = vsel %vm1585_vm14, %v7280_v51, %v7284_v15  ;;  %v1714_v51 = vsel %vm1585_vm14, %v7245_v57, %v7275_v61 }
 0x589   :  { %v7303_v52 = vpop.permute.xlu0 %7302  ;;  %v7298_v45 = vpop.permute.xlu1 %7297  ;;  %v6150_v15 = vpack.c.bf16 %v1717_v10, %v1715_v40 }
 0x58a   :  { %v7305_v44 = vunpack.i.h.bf16 %v7303_v52  ;;  %v7304_v19 = vunpack.i.l.bf16 %v7303_v52  ;;  %v7300_v33 = vunpack.i.h.bf16 %v7298_v45  ;;  %v7299_v24 = vunpack.i.l.bf16 %v7298_v45 }
 0x58c   :  { %v1603_v37 = vsel %vm1585_vm14, %v7305_v44, %v7269_v1  ;;  %v1602_v46 = vsel %vm1585_vm14, %v7285_v30, %v7305_v44  ;;  %v6152_v44 = vpack.c.bf16 %v1716_v63, %v1714_v51 }
 0x58d   :  { %v7308_v60 = vpop.permute.xlu0 %7307  ;;  %v7318_v62 = vpop.permute.xlu1 %7317 }
 0x58e   :  { %v7309_v5 = vunpack.i.l.bf16 %v7308_v60  ;;  %v7320_v20 = vunpack.i.h.bf16 %v7318_v62  ;;  %v7319_v38 = vunpack.i.l.bf16 %v7318_v62  ;;  %v7310_v28 = vunpack.i.h.bf16 %v7308_v60 }
 0x58f   :  { %v6126_v60 = vpack.c.bf16 %v1605_v48, %v1603_v37 }
 0x590   :  { %v1599_v2 = vsel %vm1585_vm14, %v7290_v56, %v7319_v38  ;;  %v1601_v49 = vsel %vm1585_vm14, %v7320_v20, %v7309_v5  ;;  %v1710_v41 = vsel %vm1585_vm14, %v7300_v33, %v7310_v28  ;;  %v1600_v54 = vsel %vm1585_vm14, %v7299_v24, %v7320_v20 }
 0x591   :  { %v7313_v26 = vpop.permute.xlu0 %7312  ;;  %v7323_v21 = vpop.permute.xlu1 %7322  ;;  %v6122_v47 = vpack.c.bf16 %v1601_v49, %v1599_v2 }
 0x592   :  { %v7315_v16 = vunpack.i.h.bf16 %v7313_v26  ;;  %v7314_v31 = vunpack.i.l.bf16 %v7313_v26  ;;  %v7325_v42 = vunpack.i.h.bf16 %v7323_v21  ;;  %v7324_v0 = vunpack.i.l.bf16 %v7323_v21 }
 0x593   :  { %6123 = vmatprep.subr.bf16.mxu0 %v6122_v47 }
 0x594   :  { %v1598_v11 = vsel %vm1585_vm14, %v7315_v16, %v7290_v56  ;;  %v1712_v6 = vsel %vm1585_vm14, %v7304_v19, %v7325_v42  ;;  %v1711_v25 = vsel %vm1585_vm14, %v7310_v28, %v7324_v0  ;;  %v1713_v12 = vsel %vm1585_vm14, %v7325_v42, %v7314_v31  ;;  %v1355_v42 = vld [vmem:[#allocation7] sm:$0xff] }
 0x595   :  { %v7333_v22 = vpop.permute.xlu0 %7332  ;;  %v7328_v14 = vpop.permute.xlu1 %7327  ;;  %v6124_v17 = vpack.c.bf16 %v1600_v54, %v1598_v11  ;;  %v6146_v52 = vpack.c.bf16 %v1713_v12, %v1711_v25  ;;  %v6148_v45 = vpack.c.bf16 %v1712_v6, %v1710_v41  ;;  %v1604_v56 = vsel %vm1585_vm14, %v7244_v58, %v7270_v59  ;;  %v1358_v41 = vld [vmem:[#allocation7 + $0x18] sm:$0xff] }
 0x596   :  { %v7334_v50 = vunpack.i.l.bf16 %v7333_v22  ;;  %v7330_v35 = vunpack.i.h.bf16 %v7328_v14  ;;  %v7329_v23 = vunpack.i.l.bf16 %v7328_v14  ;;  %v6128_v20 = vpack.c.bf16 %v1604_v56, %v1602_v46  ;;  %v14239_v14 = vld [vmem:[#allocation21_spill] sm:$0xff]  ;;  %v14247_v56 = vld [vmem:[#allocation23_spill] sm:$0xff] }
 0x597   :  { %6125 = vmatpush1.bf16.msra.mxu0 %v6124_v17  ;;  %6147 = vmatprep.subr.bf16.mxu1 %v6146_v52  ;;  %v7335_v57 = vunpack.i.h.bf16 %v7333_v22  ;;  %v14238_v22 = vld [vmem:[#allocation19_spill] sm:$0xff]  ;;  %v14240_v17 = vld [vmem:[#allocation17_spill] sm:$0xff] }
 0x598   :  { %6127 = vmatprep.subr.bf16.mxu0 %v6126_v60  ;;  %6149 = vmatpush1.bf16.msra.mxu1 %v6148_v45  ;;  %v1607_v30 = vsel %vm1585_vm14, %v7295_v43, %v7329_v23  ;;  %v1609_v62 = vsel %vm1585_vm14, %v7330_v35, %v7334_v50  ;;  %v14241_v45 = vld [vmem:[#allocation18_spill] sm:$0xff]  ;;  %v14242_v50 = vld [vmem:[#allocation37_spill] sm:$0xff]  ;;  %v14243_v23 = vld [vmem:[#allocation27_spill] sm:$0xff] }
 0x599   :  { %v7348_v1 = vpop.permute.xlu0 %7347  ;;  %v7338_v5 = vpop.permute.xlu1 %7337  ;;  %6151 = vmatprep.subr.bf16.mxu1 %v6150_v15  ;;  %v6130_v38 = vpack.c.bf16 %v1609_v62, %v1607_v30  ;;  %v14244_v60 = vld [vmem:[#allocation25_spill] sm:$0xff]  ;;  %v14246_v15 = vld [vmem:[#allocation26_spill] sm:$0xff] }
 0x59a   :  { %v7349_v61 = vunpack.i.l.bf16 %v7348_v1  ;;  %v7340_v28 = vunpack.i.h.bf16 %v7338_v5  ;;  %v7339_v48 = vunpack.i.l.bf16 %v7338_v5  ;;  %v7350_v58 = vunpack.i.h.bf16 %v7348_v1  ;;  %v14249_v62 = vld [vmem:[#allocation33_spill] sm:$0xff]  ;;  %v14250_v1 = vld [vmem:[#allocation22_spill] sm:$0xff] }
 0x59b   :  { %6129 = vmatpush1.bf16.msra.mxu0 %v6128_v20  ;;  %v14245_v51 = vpack.i.bf16 %v14243_v23, %v14244_v60  ;;  %v14248_v30 = vpack.i.bf16 %v14246_v15, %v14247_v56  ;;  %v14251_v5 = vpack.i.bf16 %v14249_v62, %v14250_v1  ;;  %v14252_v20 = vld [vmem:[#allocation29_spill] sm:$0xff] }
 0x59c   :  { %6131 = vmatprep.subr.bf16.mxu0 %v6130_v38  ;;  %6153 = vmatpush1.bf16.msra.mxu1 %v6152_v44  ;;  %v1719_v59 = vsel %vm1585_vm14, %v7335_v57, %v7339_v48  ;;  %v1721_v2 = vsel %vm1585_vm14, %v7340_v28, %v7349_v61  ;;  %v1606_v63 = vsel %vm1585_vm14, %v7350_v58, %v7295_v43  ;;  %v1357_v43 = vld [vmem:[#allocation7 + $0x10] sm:$0xff]  ;;  %v14253_v38 = vld [vmem:[#allocation28_spill] sm:$0xff] }
 0x59d   :  { %v1693_v49 = vpop.permute.xlu0 %1692  ;;  %v7343_v40 = vpop.permute.xlu1 %7342  ;;  %v6154_v19 = vpack.c.bf16 %v1721_v2, %v1719_v59  ;;  %v14254_v44 = vpack.i.bf16 %v14252_v20, %v14253_v38  ;;  %v14256_v61 = vld [vmem:[#allocation36_spill] sm:$0xff]  ;;  %v14258_v48 = vld [vmem:[#allocation30_spill] sm:$0xff]  ;;  %v14261_v2 = vld [vmem:[#allocation35_spill] sm:$0xff] }
 0x59e   :  { %v7345_v33 = vunpack.i.h.bf16 %v7343_v40  ;;  %v7344_v24 = vunpack.i.l.bf16 %v7343_v40  ;;  %v1720_v26 = vsel %vm1585_vm14, %v1693_v49, %v7340_v28  ;;  %v14257_v28 = vld [vmem:[#allocation39_spill] sm:$0xff]  ;;  %v14260_v59 = vld [vmem:[#allocation40_spill] sm:$0xff]  ;;  %v14263_v40 = vld [vmem:[#allocation42_spill] sm:$0xff] }
 0x59f   :  { %6155 = vmatprep.subr.bf16.mxu1 %v6154_v19  ;;  %v14259_v58 = vpack.i.bf16 %v14257_v28, %v14258_v48  ;;  %v14262_v49 = vpack.i.bf16 %v14260_v59, %v14261_v2  ;;  %v14264_v19 = vld [vmem:[#allocation32_spill] sm:$0xff] }
 0x5a0   :  { %v1718_v21 = vsel %vm1585_vm14, %v7345_v33, %v7335_v57  ;;  %v1608_v47 = vsel %vm1585_vm14, %v7344_v24, %v7330_v35  ;;  %v14255_v57 = vld [vmem:[#allocation24_spill] sm:$0xff]  ;;  %v14265_v33 = vpack.i.bf16 %v14263_v40, %v14264_v19 }
 0x5a1   :  { %v6132_v16 = vpack.c.bf16 %v1608_v47, %v1606_v63  ;;  %v6156_v31 = vpack.c.bf16 %v1720_v26, %v1718_v21 }
 0x5a3   :  { %6133 = vmatpush1.bf16.msra.mxu0 %v6132_v16  ;;  %6157 = vmatpush1.bf16.msra.mxu1 %v6156_v31 }
 0x5a6   :  { %5966 = vmatmul.mubr.msk.f32.vlgmr.msra.gmra.mrb[16].mxu0 %vm554_vm3, %v1355_v42  ;;  %5970 = vmatmul.mubr.msk.f32.vlgmr.msra.gmra.mrb[16].mxu1 %vm554_vm3, %v1355_v42 }
 0x5a7   :  { %1848 = vmatprep.mubr.f32.mxu0 %v14212_v34  ;;  %1937 = vmatprep.mubr.f32.mxu1 %v14212_v34 }
 0x5aa   :  { %5967 = vmatmul.mubr.msk.f32.gmra.mrb[18].mxu0 %vm554_vm3, %v1356_v39  ;;  %5971 = vmatmul.mubr.msk.f32.gmra.mrb[18].mxu1 %vm554_vm3, %v1356_v39 }
 0x5ab   :  { %1854 = vmatprep.mubr.f32.mxu0 %v14212_v34  ;;  %1943 = vmatprep.mubr.f32.mxu1 %v14212_v34 }
 0x5ae   :  { %v10777_v0 = vpop.permute.xlu0 %1753  ;;  %5968 = vmatmul.mubr.msk.f32.gmra.mrb[20].mxu0 %vm554_vm3, %v1357_v43  ;;  %5972 = vmatmul.mubr.msk.f32.gmra.mrb[20].mxu1 %vm554_vm3, %v1357_v43  ;;  %v1749_v24 = vpop.permute.xlu1 %1748 }
 0x5af   :  { %1860 = vmatprep.mubr.f32.mxu0 %v14212_v34  ;;  %1949 = vmatprep.mubr.f32.mxu1 %v14212_v34 }
 0x5b2   :  { %v10783_v54 = vpop.permute.xlu0 %1763  ;;  %5969 = vmatmul.mubr.msk.f32.gmra.mrb[22].mxu0 %vm554_vm3, %v1358_v41  ;;  %5973 = vmatmul.mubr.msk.f32.gmra.mrb[22].mxu1 %vm554_vm3, %v1358_v41  ;;  %v10863_v63 = vpop.permute.xlu1 %1758 }
 0x5b3   :  { %2436 = vmatprep.mubr.f32.mxu0 %v14212_v34  ;;  %2525 = vmatprep.mubr.f32.mxu1 %v14212_v34 }
 0x5b6   :  { %v10789_v37 = vpop.permute.xlu0 %2578  ;;  %v10865_v26 = vpop.permute.xlu1 %7357 }
 0x5b7   :  { %14235 = vst [vmem:[#allocation61_spill] sm:$0xff] %v10789_v37  ;;  %v2580_v10 = vsel %vm222_vm0, %v10789_v37, %v9784_v7  ;;  %v2581_v11 = vsel %vm222_vm0, %v10789_v37, %v9792_v13  ;;  %v2637_v25 = vsel %vm222_vm0, %v10789_v37, %v9782_v4  ;;  %v2638_v46 = vsel %vm222_vm0, %v10789_v37, %v9788_v9  ;;  %v14237_v13 = vld [vmem:[#allocation16_spill] sm:$0xff] }
 0x5b8   :  { %v7491_v6 = vpack.i.bf16 %v2580_v10, %v9786_v8  ;;  %v7496_v12 = vpack.i.bf16 %v2637_v25, %v2581_v11  ;;  %v7501_v7 = vpack.i.bf16 %v9853_v3, %v2638_v46  ;;  %v2582_v4 = vsel %vm222_vm0, %v10789_v37, %v9815_v32  ;;  %v14236_v8 = vld [vmem:[#allocation20_spill] sm:$0xff] }
 0x5b9   :  { %v2583_v9 = vsel %vm222_vm0, %v10789_v37, %v14237_v13  ;;  %v2639_v3 = vsel %vm222_vm0, %v10789_v37, %v14238_v22  ;;  %v2640_v32 = vsel %vm222_vm0, %v10789_v37, %v14241_v45 }
 0x5ba   :  { %7492 = vrot.lane.b32.xlu0 %v7491_v6, %s9461_s22  ;;  %7497 = vrot.lane.b32.xlu1 %v7496_v12, %s9461_s22  ;;  %v7526_v52 = vpack.i.bf16 %v2639_v3, %v2583_v9  ;;  %v7531_v35 = vpack.i.bf16 %v14242_v50, %v2640_v32  ;;  %v10867_v21 = vpop.permute.xlu0 %7352  ;;  %v10869_v47 = vpop.permute.xlu1 %7367 }
 0x5be   :  { %7502 = vrot.lane.b32.xlu0 %v7501_v7, %s9461_s22  ;;  %7507 = vrot.lane.b32.xlu1 %v9821_v36, %s9461_s22  ;;  %v7521_v36 = vpack.i.bf16 %v2582_v4, %v14240_v17  ;;  %v10871_v16 = vpop.permute.xlu0 %7362  ;;  %v10873_v31 = vpop.permute.xlu1 %7377 }
 0x5c2   :  { %7512 = vrot.lane.b32.xlu0 %v14236_v8, %s9461_s22  ;;  %7517 = vrot.lane.b32.xlu1 %v14239_v14, %s9461_s22  ;;  %v10875_v42 = vpop.permute.xlu0 %7372  ;;  %v10877_v39 = vpop.permute.xlu1 %7387 }
 0x5c6   :  { %7522 = vrot.lane.b32.xlu0 %v7521_v36, %s9461_s22  ;;  %7527 = vrot.lane.b32.xlu1 %v7526_v52, %s9461_s22  ;;  %v10879_v43 = vpop.permute.xlu0 %7382  ;;  %v10881_v13 = vpop.permute.xlu1 %7392 }
 0x5ca   :  { %7532 = vrot.lane.b32.xlu0 %v7531_v35, %s9461_s22  ;;  %7537 = vrot.lane.b32.xlu1 %v14245_v51, %s9461_s22  ;;  %v10885_v60 = vpop.permute.xlu0 %2655 }
 0x5ce   :  { %7542 = vrot.lane.b32.xlu0 %v14248_v30, %s9461_s22  ;;  %7547 = vrot.lane.b32.xlu1 %v14251_v5, %s9461_s22  ;;  %v10902_v40 = vpop.permute.xlu0 %7397 }
 0x5d2   :  { %7552 = vrot.lane.b32.xlu0 %v14254_v44, %s9461_s22  ;;  %7557 = vrot.lane.b32.xlu1 %v14255_v57, %s9461_s22 }
 0x5d6   :  { %7562 = vrot.lane.b32.xlu0 %v14256_v61, %s9461_s22  ;;  %7567 = vrot.lane.b32.xlu1 %v14259_v58, %s9461_s22 }
 0x5da   :  { %7572 = vrot.lane.b32.xlu0 %v14262_v49, %s9461_s22  ;;  %7577 = vrot.lane.b32.xlu1 %v14265_v33, %s9461_s22 }
 0x679   :  { %v1844_v41 = vpop.f32.mrb[16].mxu0  ;;  %v1933_v10 = vpop.f32.mrb[16].mxu1 }
 0x67a   :  { %v1845_v11 = vadd.f32 %v1844_v41, %v1749_v24  ;;  %v1934_v6 = vadd.f32 %v1933_v10, %v1749_v24  ;;  %v1846_v25 = vpop.f32.mrb[17].mxu0  ;;  %v1935_v12 = vpop.f32.mrb[17].mxu1 }
 0x67b   :  { %v1847_v46 = vadd.f32 %v1846_v25, %v1749_v24  ;;  %v1936_v7 = vadd.f32 %v1935_v12, %v1749_v24 }
 0x67c   :  { %vm1964_vm15 = vcmp.gt.f32.partialorder %v1845_v11, 0.0  ;;  %v1980_v4 = vmul.f32 0.2, %v1845_v11  ;;  %vm1966_vm4 = vcmp.gt.f32.partialorder %v1934_v6, 0.0  ;;  %v1982_v8 = vmul.f32 0.2, %v1934_v6 }
 0x67d   :  { %vm1965_vm5 = vcmp.gt.f32.partialorder %v1847_v46, 0.0  ;;  %v1981_v9 = vmul.f32 0.2, %v1847_v46  ;;  %vm1967_vm6 = vcmp.gt.f32.partialorder %v1936_v7, 0.0  ;;  %v1983_v22 = vmul.f32 0.2, %v1936_v7 }
 0x67e   :  { %v1996_v3 = vsel %vm1964_vm15, %v1845_v11, %v1980_v4  ;;  %v1998_v14 = vsel %vm1966_vm4, %v1934_v6, %v1982_v8  ;;  %v1850_v17 = vpop.f32.mrb[18].mxu0  ;;  %v1939_v36 = vpop.f32.mrb[18].mxu1 }
 0x67f   :  { %v1997_v52 = vsel %vm1965_vm5, %v1847_v46, %v1981_v9  ;;  %v1999_v45 = vsel %vm1967_vm6, %v1936_v7, %v1983_v22  ;;  %v1851_v32 = vadd.f32 %v1850_v17, %v10777_v0  ;;  %v1940_v50 = vadd.f32 %v1939_v36, %v10777_v0  ;;  %v1852_v35 = vpop.f32.mrb[19].mxu0  ;;  %v1941_v23 = vpop.f32.mrb[19].mxu1 }
 0x680   :  { %v10887_v51 = vpack.i.bf16 %v1997_v52, %v1996_v3  ;;  %v10889_v15 = vpack.i.bf16 %v1999_v45, %v1998_v14  ;;  %v1853_v5 = vadd.f32 %v1852_v35, %v10777_v0  ;;  %v1942_v20 = vadd.f32 %v1941_v23, %v10777_v0  ;;  %v10900_v0 = vpop.permute.xlu1 %7402 }
 0x681   :  { %vm1968_vm7 = vcmp.gt.f32.partialorder %v1851_v32, 0.0  ;;  %v1984_v56 = vmul.f32 0.2, %v1851_v32  ;;  %v1856_v30 = vpop.f32.mrb[20].mxu0  ;;  %v1945_v62 = vpop.f32.mrb[20].mxu1  ;;  %vm1970_vm8 = vcmp.gt.f32.partialorder %v1940_v50, 0.0 }
 0x682   :  { %v1986_v1 = vmul.f32 0.2, %v1940_v50  ;;  %v1947_v38 = vpop.f32.mrb[21].mxu1  ;;  %7607 = vrot.lane.b32.xlu0 %v10889_v15, %s9455_s29  ;;  %v1858_v44 = vpop.f32.mrb[21].mxu0  ;;  %7582 = vrot.lane.b32.xlu1 %v10887_v51, %s9453_s19  ;;  %v1857_v61 = vadd.f32 %v1856_v30, %v10863_v63  ;;  %v1946_v28 = vadd.f32 %v1945_v62, %v10863_v63  ;;  %vm1969_vm9 = vcmp.gt.f32.partialorder %v1853_v5, 0.0 }
 0x683   :  { %v2000_v57 = vsel %vm1968_vm7, %v1851_v32, %v1984_v56  ;;  %v1948_v48 = vadd.f32 %v1947_v38, %v10863_v63  ;;  %v1985_v59 = vmul.f32 0.2, %v1853_v5  ;;  %vm1971_vm10 = vcmp.gt.f32.partialorder %v1942_v20, 0.0 }
 0x684   :  { %v2002_v58 = vsel %vm1970_vm8, %v1940_v50, %v1986_v1  ;;  %v1987_v2 = vmul.f32 0.2, %v1942_v20  ;;  %vm1972_vm11 = vcmp.gt.f32.partialorder %v1857_v61, 0.0  ;;  %v1988_v49 = vmul.f32 0.2, %v1857_v61  ;;  %v10912_v52 = vpop.permute.xlu1 %7412  ;;  %v10916_v50 = vpop.permute.xlu0 %7407 }
 0x685   :  { %vm1974_vm14 = vcmp.gt.f32.partialorder %v1946_v28, 0.0  ;;  %v2001_v19 = vsel %vm1969_vm9, %v1853_v5, %v1985_v59  ;;  %v1990_v33 = vmul.f32 0.2, %v1946_v28  ;;  %vm1975_vm15 = vcmp.gt.f32.partialorder %v1948_v48, 0.0  ;;  %v1862_v41 = vpop.f32.mrb[22].mxu0  ;;  %v1951_v6 = vpop.f32.mrb[22].mxu1 }
 0x686   :  { %v1991_v24 = vmul.f32 0.2, %v1948_v48  ;;  %7587 = vrot.lane.b32.xlu1 %v10887_v51, %s9454_s26  ;;  %v7631_v10 = vpack.i.bf16 %v2001_v19, %v2000_v57  ;;  %v2003_v11 = vsel %vm1971_vm10, %v1942_v20, %v1987_v2  ;;  %v1864_v25 = vpop.f32.mrb[23].mxu0  ;;  %v2004_v46 = vsel %vm1972_vm11, %v1857_v61, %v1988_v49  ;;  %v1953_v7 = vpop.f32.mrb[23].mxu1 }
 0x687   :  { %v7636_v12 = vpack.i.bf16 %v2003_v11, %v2002_v58  ;;  %v2006_v4 = vsel %vm1974_vm14, %v1946_v28, %v1990_v33  ;;  %v1859_v9 = vadd.f32 %v1858_v44, %v10863_v63  ;;  %v1863_v22 = vadd.f32 %v1862_v41, %v10783_v54  ;;  %v14267_v33 = vld [vmem:[#allocation41_spill] sm:$0xff] }
 0x688   :  { %v2007_v8 = vsel %vm1975_vm15, %v1948_v48, %v1991_v24  ;;  %7612 = vrot.lane.b32.xlu0 %v7631_v10, %s9453_s19  ;;  %v1952_v14 = vadd.f32 %v1951_v6, %v10783_v54  ;;  %v1865_v63 = vadd.f32 %v1864_v25, %v10783_v54  ;;  %v1954_v32 = vadd.f32 %v1953_v7, %v10783_v54  ;;  %v10922_v54 = vpop.permute.xlu1 %7422  ;;  %v10926_v57 = vpop.permute.xlu0 %7417  ;;  %v14268_v24 = vld [vmem:[#allocation31_spill] sm:$0xff] }
 0x689   :  { %v7666_v3 = vpack.i.bf16 %v2007_v8, %v2006_v4  ;;  %vm1973_vm4 = vcmp.gt.f32.partialorder %v1859_v9, 0.0  ;;  %v1989_v17 = vmul.f32 0.2, %v1859_v9  ;;  %vm1976_vm5 = vcmp.gt.f32.partialorder %v1863_v22, 0.0 }
 0x68a   :  { %7592 = vrot.lane.b32.xlu1 %v10889_v15, %s9453_s19  ;;  %v1992_v36 = vmul.f32 0.2, %v1863_v22  ;;  %vm1978_vm6 = vcmp.gt.f32.partialorder %v1952_v14, 0.0  ;;  %v1994_v45 = vmul.f32 0.2, %v1952_v14  ;;  %vm1977_vm7 = vcmp.gt.f32.partialorder %v1865_v63, 0.0 }
 0x68b   :  { %v2005_v35 = vsel %vm1973_vm4, %v1859_v9, %v1989_v17  ;;  %v1993_v62 = vmul.f32 0.2, %v1865_v63  ;;  %vm1979_vm8 = vcmp.gt.f32.partialorder %v1954_v32, 0.0  ;;  %v1995_v1 = vmul.f32 0.2, %v1954_v32 }
 0x68c   :  { %v2008_v23 = vsel %vm1976_vm5, %v1863_v22, %v1992_v36  ;;  %7617 = vrot.lane.b32.xlu0 %v7631_v10, %s9454_s26  ;;  %v7661_v56 = vpack.i.bf16 %v2005_v35, %v2004_v46  ;;  %v2010_v30 = vsel %vm1978_vm6, %v1952_v14, %v1994_v45  ;;  %v10932_v61 = vpop.permute.xlu0 %7427  ;;  %v14099_v59 = vunpack.i.h.bf16 %v10865_v26  ;;  %v14269_v46 = vld [vmem:[#allocation43_spill] sm:$0xff]  ;;  %v14270_v22 = vld [vmem:[#allocation34_spill] sm:$0xff] }
 0x68d   :  { %v2009_v5 = vsel %vm1977_vm7, %v1865_v63, %v1993_v62  ;;  %v2011_v20 = vsel %vm1979_vm8, %v1954_v32, %v1995_v1  ;;  %v10952_v2 = vunpack.i.l.bf16 %v10865_v26  ;;  %v14101_v49 = vunpack.i.l.bf16 %v10871_v16 }
 0x68e   :  { %7597 = vrot.lane.b32.xlu1 %v10889_v15, %s9454_s26  ;;  %v7711_v38 = vpack.i.bf16 %v2009_v5, %v2008_v23  ;;  %v7716_v44 = vpack.i.bf16 %v2011_v20, %v2010_v30  ;;  %v10930_v15 = vpop.permute.xlu1 %2679  ;;  %v7686_v41 = vpack.i.bf16 %v14268_v24, %v14267_v33  ;;  %v14100_v6 = vunpack.i.l.bf16 %v10867_v21 }
 0x68f   :  { %14266 = vst [vmem:[#allocation20_spill] sm:$0xff] %v10952_v2  ;;  %vm2628_vm9 = vcmask 1014784   ;;  %vm2803_vm10 = vcmask 15360  }
 0x690   :  { %7622 = vrot.lane.b32.xlu0 %v7636_v12, %s9453_s19 }
 0x692   :  { %7602 = vrot.lane.b32.xlu1 %v10887_v51, %s9455_s29  ;;  %v10937_v28 = vpop.permute.xlu1 %7437  ;;  %v10940_v51 = vpop.permute.xlu0 %7432 }
 0x694   :  { %7627 = vrot.lane.b32.xlu0 %v7636_v12, %s9454_s26 }
 0x696   :  { %7637 = vrot.lane.b32.xlu1 %v7636_v12, %s9455_s29  ;;  %v10944_v48 = vpop.permute.xlu1 %7447  ;;  %v10946_v58 = vpop.permute.xlu0 %7442  ;;  %v2604_v12 = vsel %vm1435_vm12, %v14099_v59, %v14101_v49 }
 0x698   :  { %7632 = vrot.lane.b32.xlu0 %v7631_v10, %s9455_s29  ;;  %v7355_v10 = vunpack.i.h.bf16 %v10867_v21 }
 0x69a   :  { %7642 = vrot.lane.b32.xlu1 %v7661_v56, %s9453_s19  ;;  %v10956_v19 = vpop.permute.xlu1 %7457  ;;  %v10962_v11 = vpop.permute.xlu0 %7452  ;;  %v2603_v25 = vsel %vm1435_vm12, %v7355_v10, %v10952_v2  ;;  %v2602_v7 = vsel %vm1435_vm12, %v14100_v6, %v7355_v10 }
 0x69b   :  { %v7706_v8 = vpack.i.bf16 %v2604_v12, %v2603_v25 }
 0x69c   :  { %7667 = vrot.lane.b32.xlu0 %v7666_v3, %s9455_s29 }
 0x69e   :  { %7647 = vrot.lane.b32.xlu1 %v7661_v56, %s9454_s26  ;;  %v10978_v4 = vpop.permute.xlu1 %7467  ;;  %v10980_v9 = vpop.permute.xlu0 %7462 }
 0x6a0   :  { %7672 = vrot.lane.b32.xlu0 %v7711_v38, %s9453_s19 }
 0x6a2   :  { %7652 = vrot.lane.b32.xlu1 %v7666_v3, %s9453_s19  ;;  %v10986_v14 = vpop.permute.xlu1 %7477  ;;  %v10989_v17 = vpop.permute.xlu0 %7472 }
 0x6a4   :  { %7677 = vrot.lane.b32.xlu0 %v7711_v38, %s9454_s26 }
 0x6a6   :  { %7657 = vrot.lane.b32.xlu1 %v7666_v3, %s9454_s26  ;;  %v7701_v3 = vpack.i.bf16 %v2602_v7, %v14270_v22  ;;  %v10992_v36 = vpop.permute.xlu1 %7487  ;;  %v10994_v45 = vpop.permute.xlu0 %7482 }
 0x6a8   :  { %7682 = vrot.lane.b32.xlu0 %v7716_v44, %s9453_s19 }
 0x6aa   :  { %7662 = vrot.lane.b32.xlu1 %v7661_v56, %s9455_s29  ;;  %v10996_v63 = vpop.permute.xlu1 %7497  ;;  %v10998_v32 = vpop.permute.xlu0 %7492 }
 0x6ac   :  { %7687 = vrot.lane.b32.xlu0 %v7686_v41, %s9461_s22 }
 0x6ae   :  { %7692 = vrot.lane.b32.xlu1 %v14269_v46, %s9461_s22  ;;  %v11000_v35 = vpop.permute.xlu1 %7507  ;;  %v11002_v23 = vpop.permute.xlu0 %7502 }
 0x6af   :  { %14271 = vst [vmem:[#allocation16_spill] sm:$0xff] %v11000_v35  ;;  %14272 = vst [vmem:[#allocation19_spill] sm:$0xff] %v11002_v23 }
 0x6b0   :  { %7697 = vrot.lane.b32.xlu0 %v7716_v44, %s9454_s26 }
 0x6b2   :  { %7707 = vrot.lane.b32.xlu1 %v7706_v8, %s9461_s22  ;;  %v11004_v56 = vpop.permute.xlu1 %7517  ;;  %v11006_v30 = vpop.permute.xlu0 %7512 }
 0x6b3   :  { %14273 = vst [vmem:[#allocation21_spill] sm:$0xff] %v11004_v56  ;;  %14274 = vst [vmem:[#allocation17_spill] sm:$0xff] %v11006_v30 }
 0x6b4   :  { %7702 = vrot.lane.b32.xlu0 %v7701_v3, %s9461_s22 }
 0x6b6   :  { %7717 = vrot.lane.b32.xlu1 %v7716_v44, %s9455_s29  ;;  %v11008_v62 = vpop.permute.xlu1 %7527  ;;  %v11010_v1 = vpop.permute.xlu0 %7522 }
 0x6b7   :  { %14275 = vst [vmem:[#allocation18_spill] sm:$0xff] %v11008_v62  ;;  %14276 = vst [vmem:[#allocation37_spill] sm:$0xff] %v11010_v1 }
 0x6b8   :  { %7712 = vrot.lane.b32.xlu0 %v7711_v38, %s9455_s29 }
 0x6ba   :  { %v11012_v5 = vpop.permute.xlu1 %7537  ;;  %v11014_v20 = vpop.permute.xlu0 %7532 }
 0x6bb   :  { %14277 = vst [vmem:[#allocation27_spill] sm:$0xff] %v11012_v5  ;;  %14278 = vst [vmem:[#allocation25_spill] sm:$0xff] %v11014_v20 }
 0x6be   :  { %v11016_v38 = vpop.permute.xlu1 %7547  ;;  %v11018_v44 = vpop.permute.xlu0 %7542 }
 0x6bf   :  { %14279 = vst [vmem:[#allocation26_spill] sm:$0xff] %v11016_v38  ;;  %14280 = vst [vmem:[#allocation23_spill] sm:$0xff] %v11018_v44 }
 0x6c2   :  { %v11020_v33 = vpop.permute.xlu1 %7557  ;;  %v11022_v24 = vpop.permute.xlu0 %7552 }
 0x6c3   :  { %14281 = vst [vmem:[#allocation33_spill] sm:$0xff] %v11020_v33  ;;  %14282 = vst [vmem:[#allocation22_spill] sm:$0xff] %v11022_v24 }
 0x6c6   :  { %v11024_v41 = vpop.permute.xlu1 %7567  ;;  %v11026_v10 = vpop.permute.xlu0 %7562 }
 0x6c7   :  { %14283 = vst [vmem:[#allocation29_spill] sm:$0xff] %v11024_v41  ;;  %14284 = vst [vmem:[#allocation28_spill] sm:$0xff] %v11026_v10  ;;  %v14287_v10 = vld [vmem:[#allocation38_spill] sm:$0xff] }
 0x6ca   :  { %v11028_v25 = vpop.permute.xlu1 %7577  ;;  %v11030_v12 = vpop.permute.xlu0 %7572 }
 0x6cb   :  { %14285 = vst [vmem:[#allocation24_spill] sm:$0xff] %v11028_v25  ;;  %14286 = vst [vmem:[#allocation36_spill] sm:$0xff] %v11030_v12 }
 0x6f4   :  { %v7583_v46 = vpop.permute.xlu1 %7582  ;;  %v11032_v7 = vpop.permute.xlu0 %7607 }
 0x6f5   :  { %v7585_v8 = vunpack.i.h.bf16 %v7583_v46  ;;  %v7584_v22 = vunpack.i.l.bf16 %v7583_v46  ;;  %v7609_v5 = vunpack.i.l.bf16 %v11032_v7 }
 0x6f7   :  { %v2036_v3 = vsel %vm222_vm0, %v7584_v22, %v7585_v8 }
 0x6f8   :  { %v7721_v59 = vpack.i.bf16 %v2036_v3, %v7584_v22  ;;  %v7588_v6 = vpop.permute.xlu1 %7587 }
 0x6f9   :  { %v7590_v49 = vunpack.i.h.bf16 %v7588_v6  ;;  %v7589_v27 = vunpack.i.l.bf16 %v7588_v6 }
 0x6fa   :  { %7722 = vrot.lane.b32.xlu1 %v7721_v59, %s9455_s29  ;;  %v7613_v29 = vpop.permute.xlu0 %7612 }
 0x6fb   :  { %v2056_v18 = vsel %vm246_vm1, %v7589_v27, %v7590_v49  ;;  %v7615_v53 = vunpack.i.h.bf16 %v7613_v29  ;;  %v7614_v55 = vunpack.i.l.bf16 %v7613_v29  ;;  %v2057_v62 = vsel %vm246_vm1, %v7590_v49, %v14287_v10 }
 0x6fc   :  { %v7726_v37 = vpack.i.bf16 %v2056_v18, %v7589_v27  ;;  %v11037_v34 = vpop.permute.xlu1 %7592 }
 0x6fd   :  { %v7595_v25 = vunpack.i.h.bf16 %v11037_v34  ;;  %v14116_v46 = vunpack.i.l.bf16 %v11037_v34  ;;  %v2037_v41 = vsel %vm222_vm0, %v7614_v55, %v7615_v53  ;;  %v7741_v20 = vpack.i.bf16 %v7614_v55, %v7585_v8 }
 0x6fe   :  { %7727 = vrot.lane.b32.xlu1 %v7726_v37, %s9455_s29  ;;  %v7618_v22 = vpop.permute.xlu0 %7617  ;;  %v7761_v6 = vpack.i.bf16 %v7615_v53, %v2037_v41 }
 0x6ff   :  { %v2088_v59 = vsel %vm222_vm0, %v14116_v46, %v7595_v25  ;;  %v7620_v3 = vunpack.i.h.bf16 %v7618_v22  ;;  %v7619_v12 = vunpack.i.l.bf16 %v7618_v22 }
 0x700   :  { %v7731_v29 = vpack.i.bf16 %v7595_v25, %v2088_v59  ;;  %v11046_v18 = vpop.permute.xlu1 %7597 }
 0x701   :  { %v7600_v27 = vunpack.i.h.bf16 %v11046_v18  ;;  %v14123_v38 = vunpack.i.l.bf16 %v11046_v18  ;;  %v2059_v33 = vsel %vm246_vm1, %v7620_v3, %v14287_v10  ;;  %v2058_v37 = vsel %vm246_vm1, %v7619_v12, %v7620_v3 }
 0x702   :  { %7732 = vrot.lane.b32.xlu0 %v7731_v29, %s9455_s29  ;;  %7762 = vrot.lane.b32.xlu1 %v7761_v6, %s9455_s29  ;;  %v7623_v46 = vpop.permute.xlu0 %7622  ;;  %v7766_v44 = vpack.i.bf16 %v2059_v33, %v2058_v37  ;;  %v7610_v6 = vunpack.i.h.bf16 %v11032_v7  ;;  %v7746_v55 = vpack.i.bf16 %v7619_v12, %v2057_v62 }
 0x703   :  { %v2109_v53 = vsel %vm246_vm1, %v7600_v27, %v14287_v10  ;;  %v2108_v41 = vsel %vm246_vm1, %v14123_v38, %v7600_v27  ;;  %v7625_v25 = vunpack.i.h.bf16 %v7623_v46  ;;  %v7624_v22 = vunpack.i.l.bf16 %v7623_v46  ;;  %v14288_v46 = vld [vmem:[#allocation44_spill] sm:$0xff] }
 0x704   :  { %v7603_v59 = vpop.permute.xlu1 %7602  ;;  %v7736_v24 = vpack.i.bf16 %v2109_v53, %v2108_v41  ;;  %v2292_v53 = vsel %vm373_vm2, %v14288_v46, %v7609_v5 }
 0x705   :  { %v2089_v3 = vsel %vm222_vm0, %v7624_v22, %v7625_v25  ;;  %v7604_v33 = vunpack.i.l.bf16 %v7603_v59  ;;  %v7605_v7 = vunpack.i.h.bf16 %v7603_v59 }
 0x706   :  { %7737 = vrot.lane.b32.xlu0 %v7736_v24, %s9455_s29  ;;  %7767 = vrot.lane.b32.xlu1 %v7766_v44, %s9455_s29  ;;  %v7628_v29 = vpop.permute.xlu0 %7627  ;;  %v7771_v56 = vpack.i.bf16 %v7625_v25, %v2089_v3 }
 0x707   :  { %v7630_v35 = vunpack.i.h.bf16 %v7628_v29  ;;  %v7629_v27 = vunpack.i.l.bf16 %v7628_v29  ;;  %v2181_v62 = vsel %vm373_vm2, %v7604_v33, %v7605_v7 }
 0x708   :  { %v7638_v38 = vpop.permute.xlu1 %7637 }
 0x709   :  { %v7640_v37 = vunpack.i.h.bf16 %v7638_v38  ;;  %v7639_v41 = vunpack.i.l.bf16 %v7638_v38  ;;  %v2111_v44 = vsel %vm246_vm1, %v7630_v35, %v14287_v10  ;;  %v2110_v24 = vsel %vm246_vm1, %v7629_v27, %v7630_v35 }
 0x70a   :  { %7742 = vrot.lane.b32.xlu0 %v7741_v20, %s9455_s29  ;;  %7772 = vrot.lane.b32.xlu1 %v7771_v56, %s9455_s29  ;;  %v7633_v8 = vpop.permute.xlu0 %7632  ;;  %v2293_v38 = vsel %vm373_vm2, %v7609_v5, %v7610_v6  ;;  %v2180_v35 = vsel %vm373_vm2, %v14288_v46, %v7604_v33  ;;  %v7776_v20 = vpack.i.bf16 %v2111_v44, %v2110_v24 }
 0x70b   :  { %v2294_v25 = vsel %vm373_vm2, %v14288_v46, %v7639_v41  ;;  %v2295_v3 = vsel %vm373_vm2, %v7639_v41, %v7640_v37  ;;  %v7635_v49 = vunpack.i.h.bf16 %v7633_v8  ;;  %v7634_v29 = vunpack.i.l.bf16 %v7633_v8 }
 0x70c   :  { %v7643_v1 = vpop.permute.xlu1 %7642  ;;  %v6182_v30 = vpack.c.bf16 %v2295_v3, %v2293_v38  ;;  %v6184_v23 = vpack.c.bf16 %v2294_v25, %v2292_v53  ;;  %v14289_v53 = vunpack.i.l.bf16 %v11037_v34  ;;  %v14290_v8 = vunpack.i.l.bf16 %v11046_v18 }
 0x70d   :  { %v2182_v56 = vsel %vm373_vm2, %v14288_v46, %v7634_v29  ;;  %v2183_v12 = vsel %vm373_vm2, %v7634_v29, %v7635_v49  ;;  %v7645_v44 = vunpack.i.h.bf16 %v7643_v1  ;;  %v7644_v24 = vunpack.i.l.bf16 %v7643_v1 }
 0x70e   :  { %6183 = vmatprep.subr.bf16.mxu1 %v6182_v30  ;;  %7747 = vrot.lane.b32.xlu0 %v7746_v55, %s9455_s29  ;;  %v11085_v5 = vpop.permute.xlu0 %7667  ;;  %v6158_v59 = vpack.c.bf16 %v2183_v12, %v2181_v62  ;;  %v6160_v6 = vpack.c.bf16 %v2182_v56, %v2180_v35  ;;  %v7751_v37 = vpack.i.bf16 %v7624_v22, %v14289_v53 }
 0x70f   :  { %7777 = vrot.lane.b32.xlu1 %v7776_v20, %s9455_s29  ;;  %6185 = vmatpush1.bf16.msra.mxu1 %v6184_v23  ;;  %v7756_v25 = vpack.i.bf16 %v7629_v27, %v14290_v8  ;;  %v2038_v34 = vsel %vm222_vm0, %v7644_v24, %v7645_v44 }
 0x710   :  { %v7648_v41 = vpop.permute.xlu1 %7647  ;;  %6159 = vmatprep.subr.bf16.mxu0 %v6158_v59  ;;  %v7781_v29 = vpack.i.bf16 %v2038_v34, %v7644_v24  ;;  %v7369_v34 = vunpack.i.l.bf16 %v10869_v47 }
 0x711   :  { %v7650_v33 = vunpack.i.h.bf16 %v7648_v41  ;;  %v7649_v7 = vunpack.i.l.bf16 %v7648_v41  ;;  %6161 = vmatpush1.bf16.msra.mxu0 %v6160_v6 }
 0x712   :  { %7752 = vrot.lane.b32.xlu0 %v7751_v37, %s9455_s29  ;;  %v7673_v30 = vpop.permute.xlu0 %7672 }
 0x713   :  { %v2060_v55 = vsel %vm246_vm1, %v7649_v7, %v7650_v33  ;;  %v7675_v62 = vunpack.i.h.bf16 %v7673_v30  ;;  %v7674_v18 = vunpack.i.l.bf16 %v7673_v30  ;;  %v2061_v59 = vsel %vm246_vm1, %v7650_v33, %v14287_v10 }
 0x714   :  { %v7786_v38 = vpack.i.bf16 %v2060_v55, %v7649_v7  ;;  %v7653_v23 = vpop.permute.xlu1 %7652 }
 0x715   :  { %v7655_v22 = vunpack.i.h.bf16 %v7653_v23  ;;  %v7654_v3 = vunpack.i.l.bf16 %v7653_v23  ;;  %v2039_v30 = vsel %vm222_vm0, %v7674_v18, %v7675_v62 }
 0x716   :  { %7757 = vrot.lane.b32.xlu0 %v7756_v25, %s9455_s29  ;;  %7787 = vrot.lane.b32.xlu1 %v7786_v38, %s9455_s29  ;;  %v7678_v1 = vpop.permute.xlu0 %7677  ;;  %v7821_v33 = vpack.i.bf16 %v7675_v62, %v2039_v30  ;;  %v7801_v38 = vpack.i.bf16 %v7674_v18, %v7645_v44  ;;  %v14292_v62 = vunpack.i.l.bf16 %v10871_v16 }
 0x717   :  { %v2090_v49 = vsel %vm222_vm0, %v7654_v3, %v7655_v22  ;;  %v7679_v35 = vunpack.i.l.bf16 %v7678_v1 }
 0x718   :  { %v7791_v20 = vpack.i.bf16 %v7655_v22, %v2090_v49  ;;  %v7658_v56 = vpop.permute.xlu1 %7657  ;;  %v14128_v22 = vunpack.i.h.bf16 %v10871_v16  ;;  %v2605_v18 = vsel %vm1435_vm12, %v14292_v62, %v10952_v2 }
 0x719   :  { %v7660_v27 = vunpack.i.h.bf16 %v7658_v56  ;;  %v7659_v12 = vunpack.i.l.bf16 %v7658_v56  ;;  %v7806_v41 = vpack.i.bf16 %v7679_v35, %v2061_v59 }
 0x71a   :  { %7782 = vrot.lane.b32.xlu0 %v7781_v29, %s9455_s29  ;;  %7792 = vrot.lane.b32.xlu1 %v7791_v20, %s9455_s29  ;;  %v7683_v6 = vpop.permute.xlu0 %7682  ;;  %v2657_v44 = vsel %vm1435_vm12, %v14128_v22, %v7369_v34 }
 0x71b   :  { %v2113_v53 = vsel %vm246_vm1, %v7660_v27, %v14287_v10  ;;  %v2112_v37 = vsel %vm246_vm1, %v7659_v12, %v7660_v27  ;;  %v7685_v55 = vunpack.i.h.bf16 %v7683_v6  ;;  %v7684_v8 = vunpack.i.l.bf16 %v7683_v6 }
 0x71c   :  { %v11105_v24 = vpop.permute.xlu1 %7662  ;;  %v7796_v7 = vpack.i.bf16 %v2113_v53, %v2112_v37  ;;  %v7669_v53 = vunpack.i.l.bf16 %v11085_v5  ;;  %v7680_v37 = vunpack.i.h.bf16 %v7678_v1 }
 0x71d   :  { %v2091_v49 = vsel %vm222_vm0, %v7684_v8, %v7685_v55  ;;  %v7811_v56 = vpack.i.bf16 %v7684_v8, %v7654_v3  ;;  %v7370_v3 = vunpack.i.h.bf16 %v10869_v47  ;;  %v7665_v62 = vunpack.i.h.bf16 %v11105_v24 }
 0x71e   :  { %7807 = vrot.lane.b32.xlu0 %v7806_v41, %s9455_s29  ;;  %7797 = vrot.lane.b32.xlu1 %v7796_v7, %s9455_s29  ;;  %v11110_v25 = vpop.permute.xlu0 %7687  ;;  %v7831_v20 = vpack.i.bf16 %v7685_v55, %v2091_v49  ;;  %v2658_v41 = vsel %vm1435_vm12, %v7369_v34, %v10952_v2  ;;  %v7670_v7 = vunpack.i.h.bf16 %v11085_v5  ;;  %v7374_v49 = vunpack.i.l.bf16 %v10875_v42 }
 0x71f   :  { %v2296_v34 = vsel %vm373_vm2, %v14288_v46, %v7669_v53  ;;  %v2063_v5 = vsel %vm246_vm1, %v7680_v37, %v14287_v10 }
 0x720   :  { %v11112_v23 = vpop.permute.xlu1 %7692 }
 0x722   :  { %7822 = vrot.lane.b32.xlu0 %v7821_v33, %s9455_s29  ;;  %7802 = vrot.lane.b32.xlu1 %v7801_v38, %s9455_s29  ;;  %v7698_v29 = vpop.permute.xlu0 %7697  ;;  %v7836_v38 = vpack.i.bf16 %v2657_v44, %v2605_v18 }
 0x723   :  { %v7700_v27 = vunpack.i.h.bf16 %v7698_v29  ;;  %v7699_v59 = vunpack.i.l.bf16 %v7698_v29  ;;  %v7664_v29 = vunpack.i.l.bf16 %v11105_v24  ;;  %v2660_v24 = vsel %vm1435_vm12, %v7374_v49, %v10952_v2 }
 0x724   :  { %v11119_v6 = vpop.permute.xlu1 %7707 }
 0x725   :  { %14291 = vst [vmem:[#allocation39_spill] sm:$0xff] %v11119_v6  ;;  %v2115_v55 = vsel %vm246_vm1, %v7700_v27, %v14287_v10  ;;  %v2114_v8 = vsel %vm246_vm1, %v7699_v59, %v7700_v27  ;;  %v7816_v33 = vpack.i.bf16 %v7699_v59, %v7659_v12  ;;  %v2297_v59 = vsel %vm373_vm2, %v7669_v53, %v7670_v7 }
 0x726   :  { %7832 = vrot.lane.b32.xlu0 %v7831_v20, %s9455_s29  ;;  %7812 = vrot.lane.b32.xlu1 %v7811_v56, %s9455_s29  ;;  %v11135_v30 = vpop.permute.xlu0 %7702  ;;  %v2062_v56 = vsel %vm246_vm1, %v7679_v35, %v7680_v37  ;;  %v7846_v18 = vpack.i.bf16 %v2115_v55, %v2114_v8  ;;  %v2659_v35 = vsel %vm1435_vm12, %v7370_v3, %v7374_v49  ;;  %v7379_v55 = vunpack.i.l.bf16 %v10873_v31 }
 0x727   :  { %v2184_v37 = vsel %vm373_vm2, %v14288_v46, %v7664_v29  ;;  %v2185_v53 = vsel %vm373_vm2, %v7664_v29, %v7665_v62  ;;  %v7375_v8 = vunpack.i.h.bf16 %v10875_v42  ;;  %v7380_v42 = vunpack.i.h.bf16 %v10873_v31 }
 0x728   :  { %v7718_v1 = vpop.permute.xlu1 %7717  ;;  %v14294_v62 = vunpack.i.h.bf16 %v10865_v26  ;;  %v7390_v31 = vunpack.i.h.bf16 %v10877_v39 }
 0x729   :  { %v7720_v47 = vunpack.i.h.bf16 %v7718_v1  ;;  %v7719_v20 = vunpack.i.l.bf16 %v7718_v1  ;;  %v2606_v29 = vsel %vm1435_vm12, %v7375_v8, %v7379_v55 }
 0x72a   :  { %7837 = vrot.lane.b32.xlu0 %v7836_v38, %s9461_s22  ;;  %7817 = vrot.lane.b32.xlu1 %v7816_v33, %s9455_s29  ;;  %v7713_v12 = vpop.permute.xlu0 %7712  ;;  %v7826_v33 = vpack.i.bf16 %v2063_v5, %v2062_v56  ;;  %v7384_v5 = vunpack.i.l.bf16 %v10879_v43  ;;  %v7841_v56 = vpack.i.bf16 %v2659_v35, %v2658_v41  ;;  %v2607_v41 = vsel %vm1435_vm12, %v7379_v55, %v10952_v2 }
 0x72b   :  { %v2298_v27 = vsel %vm373_vm2, %v14288_v46, %v7719_v20  ;;  %v2299_v44 = vsel %vm373_vm2, %v7719_v20, %v7720_v47  ;;  %v7715_v1 = vunpack.i.h.bf16 %v7713_v12  ;;  %v7714_v22 = vunpack.i.l.bf16 %v7713_v12 }
 0x72c   :  { %v6186_v10 = vpack.c.bf16 %v2299_v44, %v2297_v59  ;;  %v6188_v6 = vpack.c.bf16 %v2298_v27, %v2296_v34  ;;  %v7389_v20 = vunpack.i.l.bf16 %v10877_v39  ;;  %v2608_v59 = vsel %vm1435_vm12, %v7380_v42, %v7384_v5 }
 0x72d   :  { %v2186_v38 = vsel %vm373_vm2, %v14288_v46, %v7714_v22  ;;  %v2187_v7 = vsel %vm373_vm2, %v7714_v22, %v7715_v1  ;;  %v14293_v46 = vunpack.i.l.bf16 %v10867_v21  ;;  %v7385_v22 = vunpack.i.h.bf16 %v10879_v43 }
 0x72e   :  { %6187 = vmatprep.subr.bf16.mxu1 %v6186_v10  ;;  %7847 = vrot.lane.b32.xlu0 %v7846_v18, %s9455_s29  ;;  %v6162_v47 = vpack.c.bf16 %v2187_v7, %v2185_v53  ;;  %v6164_v49 = vpack.c.bf16 %v2186_v38, %v2184_v37  ;;  %v14295_v21 = vunpack.i.h.bf16 %v10871_v16  ;;  %v2609_v43 = vsel %vm1435_vm12, %v7384_v5, %v10952_v2 }
 0x72f   :  { %7827 = vrot.lane.b32.xlu1 %v7826_v33, %s9455_s29  ;;  %6189 = vmatpush1.bf16.msra.mxu1 %v6188_v6  ;;  %v7851_v34 = vpack.i.bf16 %v14293_v46, %v2660_v24  ;;  %v7861_v6 = vpack.i.bf16 %v2606_v29, %v7370_v3  ;;  %v2661_v27 = vsel %vm1435_vm12, %v7385_v22, %v7389_v20  ;;  %v7395_v16 = vunpack.i.h.bf16 %v10881_v13  ;;  %s9464_s29 = smov 6  }
 0x730   :  { %6163 = vmatprep.subr.bf16.mxu0 %v6162_v47  ;;  %v7856_v12 = vpack.i.bf16 %v14295_v21, %v14294_v62  ;;  %v7871_v26 = vpack.i.bf16 %v2661_v27, %v2609_v43  ;;  %v7394_v3 = vunpack.i.l.bf16 %v10881_v13  ;;  %v2664_v44 = vsel %vm1435_vm12, %v10885_v60, %v10952_v2 }
 0x731   :  { %6165 = vmatpush1.bf16.msra.mxu0 %v6164_v49  ;;  %v7866_v18 = vpack.i.bf16 %v2608_v59, %v2607_v41  ;;  %v2663_v39 = vsel %vm1435_vm12, %v7390_v31, %v10885_v60  ;;  %v2662_v1 = vsel %vm1435_vm12, %v7389_v20, %v10952_v2  ;;  %v7881_v10 = vpack.i.bf16 %v7375_v8, %v2664_v44 }
 0x732   :  { %7852 = vrot.lane.b32.xlu0 %v7851_v34, %s9461_s22  ;;  %v2629_v35 = vsel %vm2628_vm9, %v7394_v3, %v7395_v16  ;;  %v7876_v13 = vpack.i.bf16 %v2663_v39, %v2662_v1  ;;  %v7405_v24 = vunpack.i.h.bf16 %v10900_v0  ;;  %v7409_v37 = vunpack.i.l.bf16 %v10916_v50 }
 0x733   :  { %7842 = vrot.lane.b32.xlu1 %v7841_v56, %s9461_s22  ;;  %v7404_v33 = vunpack.i.l.bf16 %v10900_v0  ;;  %v7400_v38 = vunpack.i.h.bf16 %v10902_v40  ;;  %v11206_v60 = vunpack.i.l.bf16 %v10902_v40  ;;  %v7891_v53 = vpack.i.bf16 %v2629_v35, %v7390_v31  ;;  %v2577_v35 = vld [vmem:[%s14038_s10 + $0x18] sm:$0xff] }
 0x734   :  { %v7886_v7 = vpack.i.bf16 %v7385_v22, %v7380_v42  ;;  %v7414_v55 = vunpack.i.l.bf16 %v10912_v52  ;;  %v2681_v8 = vsel %vm2628_vm9, %v7405_v24, %v7409_v37  ;;  %v7410_v49 = vunpack.i.h.bf16 %v10916_v50 }
 0x735   :  { %14296 = vst [vmem:[#allocation30_spill] sm:$0xff] %v11206_v60  ;;  %v2632_v47 = vsel %vm2628_vm9, %v7404_v33, %v11206_v60  ;;  %v2631_v0 = vsel %vm2628_vm9, %v7400_v38, %v7404_v33  ;;  %v2630_v40 = vsel %vm2628_vm9, %v7395_v16, %v11206_v60  ;;  %v7415_v46 = vunpack.i.h.bf16 %v10912_v52 }
 0x736   :  { %7862 = vrot.lane.b32.xlu0 %v7861_v6, %s9461_s22  ;;  %v7901_v20 = vpack.i.bf16 %v2681_v8, %v2632_v47  ;;  %v2684_v34 = vsel %vm2628_vm9, %v7414_v55, %v11206_v60  ;;  %v7419_v29 = vunpack.i.l.bf16 %v10926_v57  ;;  %v7896_v22 = vpack.i.bf16 %v2631_v0, %v2630_v40 }
 0x737   :  { %7857 = vrot.lane.b32.xlu1 %v7856_v12, %s9461_s22  ;;  %v2682_v5 = vsel %vm2628_vm9, %v7409_v37, %v11206_v60  ;;  %v2683_v50 = vsel %vm2628_vm9, %v7410_v49, %v7414_v55  ;;  %v7425_v56 = vunpack.i.h.bf16 %v10922_v54  ;;  %v7911_v42 = vpack.i.bf16 %v7394_v3, %v2684_v34 }
 0x738   :  { %v7424_v52 = vunpack.i.l.bf16 %v10922_v54  ;;  %v2633_v6 = vsel %vm2628_vm9, %v7415_v46, %v7419_v29  ;;  %v7429_v62 = vunpack.i.l.bf16 %v10932_v61  ;;  %v7906_v21 = vpack.i.bf16 %v2683_v50, %v2682_v5 }
 0x739   :  { %v7420_v12 = vunpack.i.h.bf16 %v10926_v57  ;;  %v7921_v27 = vpack.i.bf16 %v2633_v6, %v7410_v49  ;;  %v7916_v43 = vpack.i.bf16 %v7405_v24, %v7400_v38  ;;  %v2634_v54 = vsel %vm2628_vm9, %v7419_v29, %v11206_v60 }
 0x73a   :  { %7872 = vrot.lane.b32.xlu0 %v7871_v26, %s9461_s22  ;;  %v2636_v41 = vsel %vm2628_vm9, %v7424_v52, %v11206_v60  ;;  %v2685_v31 = vsel %vm2628_vm9, %v7425_v56, %v7429_v62  ;;  %v7430_v26 = vunpack.i.h.bf16 %v10932_v61  ;;  %v2688_v16 = vsel %vm2628_vm9, %v10930_v15, %v11206_v60 }
 0x73b   :  { %7867 = vrot.lane.b32.xlu1 %v7866_v18, %s9461_s22  ;;  %v2635_v59 = vsel %vm2628_vm9, %v7420_v12, %v7424_v52  ;;  %v7931_v57 = vpack.i.bf16 %v2685_v31, %v2636_v41  ;;  %v2686_v44 = vsel %vm2628_vm9, %v7429_v62, %v11206_v60  ;;  %v7941_v61 = vpack.i.bf16 %v7415_v46, %v2688_v16 }
 0x73c   :  { %v7926_v3 = vpack.i.bf16 %v2635_v59, %v2634_v54  ;;  %v2687_v18 = vsel %vm2628_vm9, %v7430_v26, %v10930_v15  ;;  %v7946_v1 = vpack.i.bf16 %v7425_v56, %v7420_v12  ;;  %v2574_v15 = vld [vmem:[%s14038_s10] sm:$0xff]  ;;  %v11286_v5 = vunpack.i.l.bf16 %v10962_v11 }
 0x73d   :  { %v7936_v39 = vpack.i.bf16 %v2687_v18, %v2686_v44  ;;  %v7470_v50 = vunpack.i.h.bf16 %v10978_v4  ;;  %v7469_v12 = vunpack.i.l.bf16 %v10978_v4 }
 0x73e   :  { %7882 = vrot.lane.b32.xlu0 %v7881_v10, %s9461_s22  ;;  %v2575_v10 = vld [vmem:[%s14038_s10 + $0x8] sm:$0xff] }
 0x73f   :  { %7877 = vrot.lane.b32.xlu1 %v7876_v13, %s9461_s22  ;;  %v2576_v13 = vld [vmem:[%s14038_s10 + $0x10] sm:$0xff]  ;;  %s9462_s10 = smov 116  }
 0x742   :  { %7892 = vrot.lane.b32.xlu0 %v7891_v53, %s9461_s22 }
 0x743   :  { %7887 = vrot.lane.b32.xlu1 %v7886_v7, %s9461_s22 }
 0x746   :  { %7902 = vrot.lane.b32.xlu0 %v7901_v20, %s9461_s22 }
 0x747   :  { %7897 = vrot.lane.b32.xlu1 %v7896_v22, %s9461_s22  ;;  %v14130_v22 = vunpack.i.h.bf16 %v10962_v11 }
 0x74a   :  { %7912 = vrot.lane.b32.xlu0 %v7911_v42, %s9461_s22 }
 0x74b   :  { %7907 = vrot.lane.b32.xlu1 %v7906_v21, %s9461_s22 }
 0x74e   :  { %7922 = vrot.lane.b32.xlu0 %v7921_v27, %s9461_s22  ;;  %v7465_v27 = vunpack.i.h.bf16 %v10980_v9 }
 0x74f   :  { %7917 = vrot.lane.b32.xlu1 %v7916_v43, %s9461_s22 }
 0x752   :  { %7932 = vrot.lane.b32.xlu0 %v7931_v57, %s9461_s22  ;;  %v7474_v57 = vunpack.i.l.bf16 %v10989_v17 }
 0x753   :  { %7927 = vrot.lane.b32.xlu1 %v7926_v3, %s9461_s22 }
 0x756   :  { %7942 = vrot.lane.b32.xlu0 %v7941_v61, %s9461_s22 }
 0x757   :  { %7937 = vrot.lane.b32.xlu1 %v7936_v39, %s9461_s22 }
 0x75a   :  { %2990 = vrot.lane.b32.xlu0 %v7430_v26, %s9461_s22 }
 0x75b   :  { %7947 = vrot.lane.b32.xlu1 %v7946_v1, %s9461_s22  ;;  %v7484_v1 = vunpack.i.l.bf16 %v10994_v45 }
 0x75e   :  { %3083 = vperm.xlu0 %6869, %v2575_v10  }
 0x75f   :  { %3078 = vperm.xlu1 %6870, %v2574_v15  }
 0x762   :  { %3093 = vperm.xlu0 %6869, %v2577_v35  }
 0x763   :  { %3088 = vperm.xlu1 %6870, %v2576_v13   ;;  %v11311_v13 = vsel %vm2803_vm10, %v11286_v5, %v14130_v22 }
 0x76c   :  { %v7723_v24 = vpop.permute.xlu1 %7722 }
 0x76d   :  { %v7725_v8 = vunpack.i.h.bf16 %v7723_v24  ;;  %v7724_v47 = vunpack.i.l.bf16 %v7723_v24  ;;  %v11315_v24 = vsel %vm2803_vm10, %v11286_v5, %v7470_v50 }
 0x76f   :  { %v2188_v43 = vsel %vm373_vm2, %v7724_v47, %v7725_v8  ;;  %v7479_v47 = vunpack.i.l.bf16 %v10986_v14 }
 0x770   :  { %v11270_v37 = vpop.permute.xlu1 %7727 }
 0x771   :  { %v7729_v61 = vunpack.i.l.bf16 %v11270_v37 }
 0x774   :  { %v11272_v33 = vpop.permute.xlu0 %7732  ;;  %v7763_v38 = vpop.permute.xlu1 %7762 }
 0x775   :  { %v7765_v0 = vunpack.i.h.bf16 %v7763_v38  ;;  %v7764_v49 = vunpack.i.l.bf16 %v7763_v38  ;;  %v7735_v46 = vunpack.i.h.bf16 %v11272_v33  ;;  %v7734_v34 = vunpack.i.l.bf16 %v11272_v33  ;;  %v14303_v33 = vld [vmem:[#allocation21_spill] sm:$0xff] }
 0x776   :  { %v7480_v38 = vunpack.i.h.bf16 %v10986_v14  ;;  %v7490_v14 = vunpack.i.h.bf16 %v10992_v36  ;;  %v7520_v22 = vunpack.i.h.bf16 %v14303_v33 }
 0x777   :  { %v2191_v41 = vsel %vm373_vm2, %v7764_v49, %v7765_v0  ;;  %v2301_v59 = vsel %vm373_vm2, %v7734_v34, %v7735_v46  ;;  %v7485_v0 = vunpack.i.h.bf16 %v10994_v45  ;;  %v7489_v45 = vunpack.i.l.bf16 %v10992_v36 }
 0x778   :  { %v11274_v53 = vpop.permute.xlu0 %7737  ;;  %v11276_v7 = vpop.permute.xlu1 %7767 }
 0x77c   :  { %v7743_v56 = vpop.permute.xlu0 %7742  ;;  %v7773_v42 = vpop.permute.xlu1 %7772 }
 0x77d   :  { %v7745_v52 = vunpack.i.h.bf16 %v7743_v56  ;;  %v7744_v6 = vunpack.i.l.bf16 %v7743_v56  ;;  %v7775_v62 = vunpack.i.h.bf16 %v7773_v42  ;;  %v7774_v21 = vunpack.i.l.bf16 %v7773_v42 }
 0x77e   :  { %v11325_v56 = vsel %vm2803_vm10, %v7465_v27, %v7469_v12  ;;  %v11328_v42 = vsel %vm2803_vm10, %v7470_v50, %v7474_v57  ;;  %v7494_v12 = vunpack.i.l.bf16 %v10998_v32 }
 0x77f   :  { %v2190_v31 = vsel %vm373_vm2, %v7745_v52, %v7764_v49  ;;  %v2189_v54 = vsel %vm373_vm2, %v7725_v8, %v7744_v6  ;;  %v2303_v26 = vsel %vm373_vm2, %v7774_v21, %v7775_v62  ;;  %v7475_v8 = vunpack.i.h.bf16 %v10989_v17 }
 0x780   :  { %v11298_v16 = vpop.permute.xlu0 %7747  ;;  %v6166_v3 = vpack.c.bf16 %v2191_v41, %v2189_v54  ;;  %v6190_v4 = vpack.c.bf16 %v2303_v26, %v2301_v59  ;;  %v6168_v44 = vpack.c.bf16 %v2190_v31, %v2188_v43  ;;  %v11332_v52 = vsel %vm2803_vm10, %v11286_v5, %v7465_v27 }
 0x781   :  { %v11322_v49 = vpop.permute.xlu1 %7777  ;;  %v11335_v62 = vsel %vm2803_vm10, %v7480_v38, %v7484_v1  ;;  %v7495_v43 = vunpack.i.h.bf16 %v10998_v32  ;;  %v11346_v31 = vsel %vm2803_vm10, %v7475_v8, %v7479_v47  ;;  %v7499_v54 = vunpack.i.l.bf16 %v10996_v63  ;;  %v14302_v32 = vld [vmem:[#allocation16_spill] sm:$0xff] }
 0x782   :  { %6167 = vmatprep.subr.bf16.mxu0 %v6166_v3  ;;  %6191 = vmatprep.subr.bf16.mxu1 %v6190_v4  ;;  %v14298_v3 = vld [vmem:[#allocation17_spill] sm:$0xff]  ;;  %v7510_v27 = vunpack.i.h.bf16 %v14302_v32  ;;  %v7509_v15 = vunpack.i.l.bf16 %v14302_v32  ;;  %v7779_v60 = vunpack.i.l.bf16 %v11322_v49 }
 0x783   :  { %6169 = vmatpush1.bf16.msra.mxu0 %v6168_v44  ;;  %v7514_v4 = vunpack.i.l.bf16 %v14298_v3  ;;  %v14299_v44 = vld [vmem:[#allocation37_spill] sm:$0xff] }
 0x784   :  { %v7753_v46 = vpop.permute.xlu0 %7752  ;;  %v7525_v1 = vunpack.i.h.bf16 %v14299_v44  ;;  %v7524_v47 = vunpack.i.l.bf16 %v14299_v44  ;;  %v11375_v44 = vsel %vm2803_vm10, %v7499_v54, %v7480_v38 }
 0x785   :  { %v7755_v6 = vunpack.i.h.bf16 %v7753_v46  ;;  %v7754_v17 = vunpack.i.l.bf16 %v7753_v46  ;;  %v11363_v46 = vsel %vm2803_vm10, %v7495_v43, %v7475_v8  ;;  %v7515_v8 = vunpack.i.h.bf16 %v14298_v3 }
 0x786   :  { %14300 = vst [vmem:[#allocation40_spill] sm:$0xff] %v11363_v46  ;;  %v11389_v32 = vsel %vm2803_vm10, %v7510_v27, %v7514_v4  ;;  %v11392_v38 = vsel %vm2803_vm10, %v7520_v22, %v7524_v47 }
 0x787   :  { %v2300_v50 = vsel %vm373_vm2, %v7754_v17, %v7734_v34  ;;  %v2302_v41 = vsel %vm373_vm2, %v7755_v6, %v7774_v21  ;;  %v11356_v34 = vsel %vm2803_vm10, %v7485_v0, %v7489_v45  ;;  %v14297_v21 = vld [vmem:[#allocation19_spill] sm:$0xff]  ;;  %v7500_v6 = vunpack.i.h.bf16 %v10996_v63  ;;  %v14301_v17 = vld [vmem:[#allocation18_spill] sm:$0xff]  ;;  %14305 = vst [vmem:[#allocation42_spill] sm:$0xff] %v11389_v32  ;;  %14306 = vst [vmem:[#allocation32_spill] sm:$0xff] %v11392_v38 }
 0x788   :  { %v11349_v59 = vpop.permute.xlu0 %7757  ;;  %v11351_v26 = vpop.permute.xlu1 %7787  ;;  %v6192_v36 = vpack.c.bf16 %v2302_v41, %v2300_v50  ;;  %v7504_v57 = vunpack.i.l.bf16 %v14297_v21  ;;  %v7529_v50 = vunpack.i.l.bf16 %v14301_v17  ;;  %v11368_v41 = vsel %vm2803_vm10, %v7490_v14, %v7494_v12 }
 0x789   :  { %v7505_v45 = vunpack.i.h.bf16 %v14297_v21  ;;  %v7519_v63 = vunpack.i.l.bf16 %v14303_v33  ;;  %v7530_v43 = vunpack.i.h.bf16 %v14301_v17  ;;  %v14308_v33 = vld [vmem:[#allocation25_spill] sm:$0xff]  ;;  %v7730_v17 = vunpack.i.h.bf16 %v11270_v37 }
 0x78a   :  { %6193 = vmatpush1.bf16.msra.mxu1 %v6192_v36  ;;  %v11383_v21 = vsel %vm2803_vm10, %v7504_v57, %v7490_v14  ;;  %v11395_v54 = vsel %vm2803_vm10, %v7529_v50, %v7510_v27  ;;  %v7534_v3 = vunpack.i.l.bf16 %v14308_v33  ;;  %v11401_v14 = vsel %vm2803_vm10, %v7500_v6, %v7485_v0 }
 0x78b   :  { %v11386_v35 = vsel %vm2803_vm10, %v7525_v1, %v7505_v45  ;;  %14307 = vst [vmem:[#allocation41_spill] sm:$0xff] %v11395_v54  ;;  %v11408_v1 = vsel %vm2803_vm10, %v7505_v45, %v7509_v15  ;;  %v11411_v27 = vsel %vm2803_vm10, %v7530_v43, %v7515_v8  ;;  %v11422_v6 = vsel %vm2803_vm10, %v7515_v8, %v7519_v63  ;;  %v14311_v15 = vld [vmem:[#allocation27_spill] sm:$0xff] }
 0x78c   :  { %v7783_v36 = vpop.permute.xlu0 %7782  ;;  %v11380_v12 = vpop.permute.xlu1 %7792  ;;  %14304 = vst [vmem:[#allocation35_spill] sm:$0xff] %v11386_v35  ;;  %14309 = vst [vmem:[#allocation31_spill] sm:$0xff] %v11408_v1  ;;  %v11431_v18 = vsel %vm2803_vm10, %v7534_v3, %v7520_v22  ;;  %v7539_v37 = vunpack.i.l.bf16 %v14311_v15  ;;  %v11435_v0 = vsel %vm373_vm2, %v7729_v61, %v7730_v17  ;;  %v7749_v8 = vunpack.i.l.bf16 %v11298_v16 }
 0x78d   :  { %14310 = vst [vmem:[#allocation43_spill] sm:$0xff] %v11422_v6  ;;  %v7740_v63 = vunpack.i.h.bf16 %v11274_v53  ;;  %v7739_v45 = vunpack.i.l.bf16 %v11274_v53  ;;  %v7785_v10 = vunpack.i.h.bf16 %v7783_v36  ;;  %v7784_v39 = vunpack.i.l.bf16 %v7783_v36 }
 0x78e   :  { %v7770_v43 = vunpack.i.h.bf16 %v11276_v7  ;;  %v7769_v57 = vunpack.i.l.bf16 %v11276_v7  ;;  %v7750_v22 = vunpack.i.h.bf16 %v11298_v16  ;;  %v7780_v3 = vunpack.i.h.bf16 %v11322_v49 }
 0x78f   :  { %v7795_v53 = vunpack.i.h.bf16 %v11380_v12  ;;  %v7794_v36 = vunpack.i.l.bf16 %v11380_v12  ;;  %v2197_v2 = vsel %vm373_vm2, %v7730_v17, %v7749_v8  ;;  %v2192_v7 = vsel %vm373_vm2, %v7784_v39, %v7785_v10 }
 0x790   :  { %v11413_v47 = vpop.permute.xlu0 %7807  ;;  %v11415_v50 = vpop.permute.xlu1 %7797  ;;  %v2199_v6 = vsel %vm373_vm2, %v7769_v57, %v7770_v43  ;;  %v7760_v39 = vunpack.i.h.bf16 %v11349_v59 }
 0x794   :  { %v7823_v40 = vpop.permute.xlu0 %7822  ;;  %v7803_v55 = vpop.permute.xlu1 %7802 }
 0x795   :  { %v7825_v61 = vunpack.i.h.bf16 %v7823_v40  ;;  %v7824_v29 = vunpack.i.l.bf16 %v7823_v40  ;;  %v7805_v20 = vunpack.i.h.bf16 %v7803_v55  ;;  %v7804_v4 = vunpack.i.l.bf16 %v7803_v55 }
 0x796   :  { %v2198_v40 = vsel %vm373_vm2, %v7750_v22, %v7769_v57  ;;  %v7790_v57 = vunpack.i.h.bf16 %v11351_v26  ;;  %v6260_v22 = vpack.c.bf16 %v11431_v18, %v11411_v27 }
 0x797   :  { %v2194_v16 = vsel %vm373_vm2, %v7805_v20, %v7824_v29  ;;  %v2193_v35 = vsel %vm373_vm2, %v7785_v10, %v7804_v4  ;;  %v2195_v54 = vsel %vm373_vm2, %v7824_v29, %v7825_v61  ;;  %v7759_v20 = vunpack.i.l.bf16 %v11349_v59 }
 0x798   :  { %v7833_v1 = vpop.permute.xlu0 %7832  ;;  %v7813_v55 = vpop.permute.xlu1 %7812  ;;  %v6170_v32 = vpack.c.bf16 %v2195_v54, %v2193_v35  ;;  %v6172_v49 = vpack.c.bf16 %v2194_v16, %v2192_v7  ;;  %v6174_v10 = vpack.c.bf16 %v2199_v6, %v2197_v2  ;;  %v2311_v29 = vsel %vm373_vm2, %v7779_v60, %v7780_v3 }
 0x799   :  { %v7835_v38 = vunpack.i.h.bf16 %v7833_v1  ;;  %v7834_v12 = vunpack.i.l.bf16 %v7833_v1  ;;  %v7815_v46 = vunpack.i.h.bf16 %v7813_v55  ;;  %v7814_v17 = vunpack.i.l.bf16 %v7813_v55 }
 0x79a   :  { %6171 = vmatprep.subr.bf16.mxu0 %v6170_v32  ;;  %v2305_v35 = vsel %vm373_vm2, %v7794_v36, %v7795_v53  ;;  %v7789_v1 = vunpack.i.l.bf16 %v11351_v26  ;;  %v6176_v6 = vpack.c.bf16 %v2198_v40, %v11435_v0  ;;  %v14312_v3 = vunpack.i.h.bf16 %v14308_v33 }
 0x79b   :  { %v2306_v4 = vsel %vm373_vm2, %v7815_v46, %v7834_v12  ;;  %v2304_v8 = vsel %vm373_vm2, %v7814_v17, %v7794_v36  ;;  %6173 = vmatpush1.bf16.msra.mxu0 %v6172_v49  ;;  %v2307_v54 = vsel %vm373_vm2, %v7834_v12, %v7835_v38  ;;  %v2309_v46 = vsel %vm373_vm2, %v7739_v45, %v7740_v63 }
 0x79c   :  { %v11463_v43 = vpop.permute.xlu0 %7837  ;;  %v7818_v59 = vpop.permute.xlu1 %7817  ;;  %6175 = vmatprep.subr.bf16.mxu0 %v6174_v10  ;;  %v6194_v2 = vpack.c.bf16 %v2307_v54, %v2305_v35  ;;  %v6196_v32 = vpack.c.bf16 %v2306_v4, %v2304_v8  ;;  %v11472_v38 = vsel %vm2803_vm10, %v14312_v3, %v7539_v37  ;;  %v2308_v26 = vsel %vm373_vm2, %v7759_v20, %v7739_v45 }
 0x79d   :  { %v2310_v61 = vsel %vm373_vm2, %v7760_v39, %v7779_v60  ;;  %v7809_v53 = vunpack.i.l.bf16 %v11413_v47  ;;  %v6198_v36 = vpack.c.bf16 %v2311_v29, %v2309_v46  ;;  %v7800_v0 = vunpack.i.h.bf16 %v11415_v50 }
 0x79e   :  { %6195 = vmatprep.subr.bf16.mxu1 %v6194_v2  ;;  %v7799_v63 = vunpack.i.l.bf16 %v11415_v50  ;;  %v7819_v7 = vunpack.i.l.bf16 %v7818_v59  ;;  %v14313_v16 = vunpack.i.h.bf16 %v10940_v51  ;;  %v14314_v37 = vunpack.i.l.bf16 %v10940_v51 }
 0x79f   :  { %6177 = vmatpush1.bf16.msra.mxu0 %v6176_v6  ;;  %6197 = vmatpush1.bf16.msra.mxu1 %v6196_v32  ;;  %v2200_v45 = vsel %vm373_vm2, %v7789_v1, %v7790_v57  ;;  %v14315_v55 = vunpack.i.h.bf16 %v10937_v28  ;;  %v14316_v49 = vunpack.i.l.bf16 %v10937_v28  ;;  %v14317_v50 = vunpack.i.h.bf16 %v10946_v58 }
 0x7a0   :  { %v2805_v40 = vsel %vm2803_vm10, %v14314_v37, %v14313_v16  ;;  %v7848_v60 = vpop.permute.xlu0 %7847  ;;  %6199 = vmatprep.subr.bf16.mxu1 %v6198_v36  ;;  %v14318_v17 = vunpack.i.l.bf16 %v10946_v58  ;;  %v14319_v20 = vunpack.i.h.bf16 %v10944_v48  ;;  %v14320_v10 = vunpack.i.l.bf16 %v10944_v48 }
 0x7a1   :  { %v2807_v12 = vsel %vm2803_vm10, %v14316_v49, %v14315_v55  ;;  %v7820_v4 = vunpack.i.h.bf16 %v7818_v59  ;;  %v7850_v8 = vunpack.i.h.bf16 %v7848_v60  ;;  %v7849_v35 = vunpack.i.l.bf16 %v7848_v60  ;;  %v7828_v54 = vpop.permute.xlu1 %7827  ;;  %v14321_v55 = vld [vmem:[#allocation23_spill] sm:$0xff] }
 0x7a2   :  { %v2997_v39 = vsel %vm2803_vm10, %v14318_v17, %v14317_v50  ;;  %v2999_v29 = vsel %vm2803_vm10, %v14320_v10, %v14319_v20  ;;  %v6200_v1 = vpack.c.bf16 %v2310_v61, %v2308_v26  ;;  %v7810_v2 = vunpack.i.h.bf16 %v11413_v47  ;;  %v14322_v17 = vld [vmem:[#allocation22_spill] sm:$0xff] }
 0x7a3   :  { %v7830_v32 = vunpack.i.h.bf16 %v7828_v54  ;;  %v7829_v6 = vunpack.i.l.bf16 %v7828_v54  ;;  %v2201_v46 = vsel %vm373_vm2, %v7790_v57, %v7809_v53  ;;  %v2312_v3 = vsel %vm373_vm2, %v7819_v7, %v7799_v63 }
 0x7a4   :  { %v2314_v36 = vsel %vm373_vm2, %v7820_v4, %v7849_v35  ;;  %6201 = vmatpush1.bf16.msra.mxu1 %v6200_v1  ;;  %v2313_v16 = vsel %vm373_vm2, %v7799_v63, %v7800_v0  ;;  %v2315_v37 = vsel %vm373_vm2, %v7849_v35, %v7850_v8  ;;  %v11507_v60 = vpop.permute.xlu0 %7852  ;;  %v7545_v49 = vunpack.i.h.bf16 %v14321_v55 }
 0x7a5   :  { %v2202_v59 = vsel %vm373_vm2, %v7810_v2, %v7829_v6  ;;  %v2203_v26 = vsel %vm373_vm2, %v7829_v6, %v7830_v32  ;;  %v6202_v47 = vpack.c.bf16 %v2315_v37, %v2313_v16  ;;  %v6204_v61 = vpack.c.bf16 %v2314_v36, %v2312_v3  ;;  %v11512_v53 = vpop.permute.xlu1 %7842  ;;  %v14328_v32 = vld [vmem:[#allocation28_spill] sm:$0xff]  ;;  %v14333_v16 = vld [vmem:[#allocation26_spill] sm:$0xff] }
 0x7a6   :  { %v7544_v57 = vunpack.i.l.bf16 %v14321_v55  ;;  %v6178_v7 = vpack.c.bf16 %v2203_v26, %v2201_v46  ;;  %v6180_v50 = vpack.c.bf16 %v2202_v59, %v2200_v45  ;;  %v7555_v0 = vunpack.i.h.bf16 %v14322_v17  ;;  %v1956_v45 = vld [vmem:[#allocation8] sm:$0xff] }
 0x7a7   :  { %6203 = vmatprep.subr.bf16.mxu1 %v6202_v47  ;;  %v6246_v63 = vpack.c.bf16 %v2999_v29, %v2997_v39  ;;  %v14323_v20 = vunpack.i.l.bf16 %v10946_v58  ;;  %v14324_v4 = vunpack.i.l.bf16 %v10944_v48  ;;  %v7554_v35 = vunpack.i.l.bf16 %v14322_v17  ;;  %v14327_v48 = vld [vmem:[#allocation33_spill] sm:$0xff]  ;;  %v14334_v26 = vld [vmem:[#allocation36_spill] sm:$0xff] }
 0x7a8   :  { %6179 = vmatprep.subr.bf16.mxu0 %v6178_v7  ;;  %6205 = vmatpush1.bf16.msra.mxu1 %v6204_v61  ;;  %v6206_v54 = vpack.c.bf16 %v2807_v12, %v2805_v40  ;;  %v14325_v1 = vunpack.i.l.bf16 %v10940_v51  ;;  %v14326_v58 = vunpack.i.l.bf16 %v10937_v28  ;;  %v7559_v2 = vunpack.i.l.bf16 %v14327_v48  ;;  %v11534_v46 = vpop.permute.xlu0 %7862 }
 0x7a9   :  { %v2996_v10 = vsel %vm2803_vm10, %v11286_v5, %v14323_v20  ;;  %v2998_v8 = vsel %vm2803_vm10, %v11286_v5, %v14324_v4  ;;  %v7564_v6 = vunpack.i.l.bf16 %v14328_v32  ;;  %6181 = vmatpush1.bf16.msra.mxu0 %v6180_v50  ;;  %6247 = vmatprep.subr.bf16.mxu1 %v6246_v63  ;;  %v14329_v40 = vunpack.i.l.bf16 %v10956_v19  ;;  %v11549_v61 = vpop.permute.xlu1 %7857  ;;  %v14337_v4 = vld [vmem:[#allocation29_spill] sm:$0xff] }
 0x7aa   :  { %v2804_v39 = vsel %vm2803_vm10, %v11286_v5, %v14325_v1  ;;  %v2806_v29 = vsel %vm2803_vm10, %v11286_v5, %v14326_v58  ;;  %v14330_v51 = vunpack.i.h.bf16 %v10962_v11  ;;  %v14331_v3 = vunpack.i.l.bf16 %v10980_v9  ;;  %6207 = vmatprep.subr.bf16.mxu0 %v6206_v54 }
 0x7ab   :  { %v14332_v28 = vunpack.i.h.bf16 %v10956_v19  ;;  %v7550_v37 = vunpack.i.h.bf16 %v14333_v16  ;;  %v7549_v59 = vunpack.i.l.bf16 %v14333_v16  ;;  %v7574_v47 = vunpack.i.l.bf16 %v14334_v26  ;;  %5978 = vmatmul.mubr.msk.f32.vlgmr.msra.gmra.mrb[24].mxu1 %vm554_vm3, %v1956_v45 }
 0x7ac   :  { %v2809_v12 = vsel %vm2803_vm10, %v14330_v51, %v14329_v40  ;;  %v6248_v7 = vpack.c.bf16 %v2998_v8, %v2996_v10  ;;  %v14335_v11 = vunpack.i.h.bf16 %v14308_v33  ;;  %v7560_v9 = vunpack.i.h.bf16 %v14327_v48  ;;  %5974 = vmatmul.mubr.msk.f32.vlgmr.msra.gmra.mrb[24].mxu0 %vm554_vm3, %v1956_v45  ;;  %v11582_v19 = vpop.permute.xlu0 %7872  ;;  %v14341_v48 = vld [vmem:[#allocation24_spill] sm:$0xff] }
 0x7ad   :  { %v2811_v36 = vsel %vm2803_vm10, %v14332_v28, %v14331_v3  ;;  %v6208_v17 = vpack.c.bf16 %v2806_v29, %v2804_v39  ;;  %v14336_v63 = vunpack.i.h.bf16 %v14311_v15  ;;  %v7570_v1 = vunpack.i.h.bf16 %v14337_v4  ;;  %v11589_v40 = vpop.permute.xlu1 %7867 }
 0x7ae   :  { %v11554_v50 = vsel %vm2803_vm10, %v7555_v0, %v14335_v11  ;;  %6249 = vmatpush1.bf16.msra.mxu1 %v6248_v7  ;;  %v6210_v10 = vpack.c.bf16 %v2811_v36, %v2809_v12  ;;  %v14338_v33 = vmov %v14332_v28  ;;  %v11570_v8 = vsel %vm2803_vm10, %v7550_v37, %v7554_v35  ;;  %v1957_v35 = vld [vmem:[#allocation8 + $0x8] sm:$0xff] }
 0x7af   :  { %v11561_v20 = vsel %vm2803_vm10, %v14336_v63, %v7544_v57  ;;  %v2810_v0 = vsel %vm2803_vm10, %v11286_v5, %v14338_v33  ;;  %v14339_v54 = vmov %v14336_v63  ;;  %v7565_v57 = vunpack.i.h.bf16 %v14328_v32  ;;  %6209 = vmatpush1.bf16.msra.mxu0 %v6208_v17 }
 0x7b0   :  { %v11575_v39 = vsel %vm2803_vm10, %v7559_v2, %v14339_v54  ;;  %v11579_v58 = vsel %vm2803_vm10, %v7564_v6, %v7550_v37  ;;  %v7569_v45 = vunpack.i.l.bf16 %v14337_v4  ;;  %v14340_v29 = vpack.c.bf16 %v11328_v42, %v11325_v56  ;;  %6211 = vmatprep.subr.bf16.mxu0 %v6210_v10  ;;  %v11615_v36 = vpop.permute.xlu0 %7882  ;;  %v14345_v4 = vld [vmem:[#allocation39_spill] sm:$0xff]  ;;  %v14347_v54 = vld [vmem:[#allocation40_spill] sm:$0xff] }
 0x7b1   :  { %v7575_v15 = vunpack.i.h.bf16 %v14334_v26  ;;  %v7579_v2 = vunpack.i.l.bf16 %v14341_v48  ;;  %v6252_v32 = vpack.c.bf16 %v11315_v24, %v11332_v52  ;;  %v11594_v6 = vsel %vm2803_vm10, %v7570_v1, %v7574_v47 }
 0x7b2   :  { %6251 = vmatprep.subr.bf16.mxu1 %v14340_v29  ;;  %v14342_v51 = vmov 0.0   ;;  %v7690_v12 = vunpack.i.h.bf16 %v11110_v25  ;;  %v7689_v56 = vunpack.i.l.bf16 %v11110_v25  ;;  %v7694_v42 = vunpack.i.l.bf16 %v11112_v23  ;;  %v14349_v29 = vld [vmem:[#allocation32_spill] sm:$0xff] }
 0x7b3   :  { %2442 = vmatprep.mubr.f32.mxu0 %v14342_v51  ;;  %v6212_v3 = vpack.c.bf16 %v2810_v0, %v11311_v13  ;;  %2531 = vmatprep.mubr.f32.mxu1 %v14342_v51  ;;  %v11605_v28 = vsel %vm2803_vm10, %v7560_v9, %v7545_v49  ;;  %v7704_v24 = vunpack.i.l.bf16 %v11135_v30  ;;  %v6222_v52 = vpack.c.bf16 %v11561_v20, %v11472_v38 }
 0x7b4   :  { %6253 = vmatpush1.bf16.msra.mxu1 %v6252_v32  ;;  %v3013_v25 = vsel %vm2803_vm10, %v7545_v49, %v7549_v59  ;;  %5975 = vmatmul.mubr.msk.f32.gmra.mrb[26].mxu0 %vm554_vm3, %v1957_v35  ;;  %v7580_v13 = vunpack.i.h.bf16 %v14341_v48  ;;  %v14343_v16 = vpack.c.bf16 %v11368_v41, %v11356_v34  ;;  %v6224_v26 = vpack.c.bf16 %v11575_v39, %v11554_v50  ;;  %v1958_v49 = vld [vmem:[#allocation8 + $0x10] sm:$0xff]  ;;  %v11626_v59 = vpop.permute.xlu1 %7877 }
 0x7b5   :  { %6213 = vmatpush1.bf16.msra.mxu0 %v6212_v3  ;;  %v6262_v37 = vpack.c.bf16 %v11570_v8, %v3013_v25  ;;  %v11624_v55 = vsel %vm2803_vm10, %v7565_v57, %v7569_v45  ;;  %v14344_v47 = vpack.c.bf16 %v11335_v62, %v11346_v31  ;;  %v6264_v7 = vpack.c.bf16 %v11579_v58, %v11605_v28  ;;  %v11668_v45 = vpop.permute.xlu0 %7892 }
 0x7b6   :  { %6255 = vmatprep.subr.bf16.mxu1 %v14343_v16  ;;  %v6226_v34 = vpack.c.bf16 %v11594_v6, %v11624_v55  ;;  %v11636_v41 = vsel %vm2803_vm10, %v7575_v15, %v7579_v2  ;;  %5979 = vmatmul.mubr.msk.f32.gmra.mrb[26].mxu1 %vm554_vm3, %v1957_v35  ;;  %v11640_v11 = vsel %vm2803_vm10, %v7690_v12, %v7565_v57  ;;  %v7695_v9 = vunpack.i.h.bf16 %v11112_v23  ;;  %v14350_v35 = vld [vmem:[#allocation43_spill] sm:$0xff]  ;;  %v14352_v12 = vld [vmem:[#allocation42_spill] sm:$0xff] }
 0x7b7   :  { %6215 = vmatprep.subr.bf16.mxu0 %v14344_v47  ;;  %v11644_v17 = vsel %vm2803_vm10, %v7694_v42, %v7570_v1  ;;  %v11647_v62 = vsel %vm2803_vm10, %v7580_v13, %v7689_v56  ;;  %2448 = vmatprep.mubr.f32.mxu0 %v14342_v51  ;;  %v7705_v31 = vunpack.i.h.bf16 %v11135_v30  ;;  %v11653_v63 = vsel %vm2803_vm10, %v7704_v24, %v7580_v13  ;;  %v2567_v13 = vld [vmem:[%s14037_s9 + $0x8] sm:$0xff]  ;;  %v14356_v47 = vld [vmem:[#allocation35_spill] sm:$0xff] }
 0x7b8   :  { %2537 = vmatprep.mubr.f32.mxu1 %v14342_v51  ;;  %v7709_v10 = vunpack.i.l.bf16 %v14345_v4  ;;  %v7839_v33 = vunpack.i.l.bf16 %v11463_v43  ;;  %v14346_v23 = vpack.c.bf16 %v11383_v21, %v11401_v14  ;;  %5976 = vmatmul.mubr.msk.f32.gmra.mrb[28].mxu0 %vm554_vm3, %v1958_v49  ;;  %v7855_v1 = vunpack.i.h.bf16 %v11507_v60  ;;  %v1959_v14 = vld [vmem:[#allocation8 + $0x18] sm:$0xff] }
 0x7b9   :  { %v7854_v0 = vunpack.i.l.bf16 %v11507_v60  ;;  %v7845_v8 = vunpack.i.h.bf16 %v11512_v53  ;;  %v7844_v30 = vunpack.i.l.bf16 %v11512_v53  ;;  %v14348_v57 = vpack.c.bf16 %v11375_v44, %v14347_v54  ;;  %v11677_v53 = vpop.permute.xlu1 %7887  ;;  %v14353_v44 = vld [vmem:[#allocation31_spill] sm:$0xff]  ;;  %2454 = vmatprep.mubr.f32.mxu0 %v14342_v51  ;;  %v11707_v27 = vpop.permute.xlu0 %7902 }
 0x7ba   :  { %6257 = vmatpush1.bf16.msra.mxu1 %v14346_v23  ;;  %v14351_v21 = vpack.c.bf16 %v14349_v29, %v14350_v35  ;;  %v7710_v48 = vunpack.i.h.bf16 %v14345_v4  ;;  %v7864_v2 = vunpack.i.l.bf16 %v11534_v46  ;;  %v7860_v60 = vunpack.i.h.bf16 %v11549_v61 }
 0x7bb   :  { %6217 = vmatpush1.bf16.msra.mxu0 %v14348_v57  ;;  %v7859_v32 = vunpack.i.l.bf16 %v11549_v61  ;;  %v14354_v56 = vpack.c.bf16 %v14352_v12, %v14353_v44  ;;  %5980 = vmatmul.mubr.msk.f32.gmra.mrb[28].mxu1 %vm554_vm3, %v1958_v49  ;;  %v3016_v42 = vsel %vm2803_vm10, %v7695_v9, %v7575_v15  ;;  %v7840_v3 = vunpack.i.h.bf16 %v11463_v43  ;;  %v14355_v49 = vld [vmem:[#allocation41_spill] sm:$0xff] }
 0x7bc   :  { %6259 = vmatprep.subr.bf16.mxu1 %v14351_v21  ;;  %v6266_v24 = vpack.c.bf16 %v11647_v62, %v11636_v41  ;;  %v6228_v25 = vpack.c.bf16 %v11644_v17, %v11640_v11  ;;  %2543 = vmatprep.mubr.f32.mxu1 %v14342_v51  ;;  %v6268_v61 = vpack.c.bf16 %v11653_v63, %v3016_v42  ;;  %vm3096_vm2 = vcmask 261120  }
 0x7bd   :  { %6219 = vmatprep.subr.bf16.mxu0 %v14354_v56  ;;  %v2829_v15 = vsel %vm2803_vm10, %v7705_v31, %v7709_v10  ;;  %v2831_v43 = vsel %vm2803_vm10, %v7710_v48, %v7839_v33  ;;  %5977 = vmatmul.mubr.msk.f32.gmra.mrb[30].mxu0 %vm554_vm3, %v1959_v14  ;;  %v11702_v16 = vsel %vm2803_vm10, %v7855_v1, %v7705_v31  ;;  %v7879_v62 = vunpack.i.l.bf16 %v11626_v59  ;;  %v11715_v31 = vpop.permute.xlu1 %7897 }
 0x7be   :  { %6261 = vmatpush1.bf16.msra.mxu1 %v6260_v22  ;;  %v14357_v18 = vpack.c.bf16 %v14355_v49, %v14356_v47  ;;  %v3021_v22 = vsel %vm2803_vm10, %v7840_v3, %v7844_v30  ;;  %v3023_v41 = vsel %vm2803_vm10, %v7845_v8, %v7854_v0  ;;  %v3022_v11 = vsel %vm2803_vm10, %v7864_v2, %v7845_v8 }
 0x7bf   :  { %6263 = vmatprep.subr.bf16.mxu1 %v6262_v37  ;;  %v3020_v9 = vsel %vm2803_vm10, %v7860_v60, %v7840_v3  ;;  %v2830_v17 = vsel %vm2803_vm10, %v7859_v32, %v7710_v48  ;;  %5981 = vmatmul.mubr.msk.f32.gmra.mrb[30].mxu1 %vm554_vm3, %v1959_v14  ;;  %v7875_v37 = vunpack.i.h.bf16 %v11582_v19  ;;  %v7874_v63 = vunpack.i.l.bf16 %v11582_v19 }
 0x7c0   :  { %6221 = vmatpush1.bf16.msra.mxu0 %v14357_v18  ;;  %v7884_v4 = vunpack.i.l.bf16 %v11615_v36  ;;  %v7880_v10 = vunpack.i.h.bf16 %v11626_v59  ;;  %5982 = vmatprep.mubr.msk.f32.mxu0 %vm3096_vm2, %v2567_v13  ;;  %v7870_v33 = vunpack.i.h.bf16 %v11589_v40  ;;  %v7869_v23 = vunpack.i.l.bf16 %v11589_v40 }
 0x7c1   :  { %6223 = vmatprep.subr.bf16.mxu0 %v6222_v52  ;;  %5986 = vmatprep.mubr.msk.f32.mxu1 %vm3096_vm2, %v2567_v13  ;;  %v7885_v38 = vunpack.i.h.bf16 %v11615_v36  ;;  %v7889_v20 = vunpack.i.l.bf16 %v11677_v53  ;;  %v7865_v19 = vunpack.i.h.bf16 %v11534_v46  ;;  %v11738_v52 = vpop.permute.xlu0 %7912  ;;  %v6230_v59 = vpack.c.bf16 %v2831_v43, %v2829_v15  ;;  %v7908_v8 = vpop.permute.xlu1 %7907 }
 0x7c2   :  { %6265 = vmatpush1.bf16.msra.mxu1 %v6264_v7  ;;  %v6270_v1 = vpack.c.bf16 %v3023_v41, %v3021_v22  ;;  %v6232_v40 = vpack.c.bf16 %v2830_v17, %v11702_v16  ;;  %v7894_v36 = vunpack.i.l.bf16 %v11668_v45  ;;  %v7890_v0 = vunpack.i.h.bf16 %v11677_v53 }
 0x7c3   :  { %6267 = vmatprep.subr.bf16.mxu1 %v6266_v24  ;;  %v6272_v46 = vpack.c.bf16 %v3022_v11, %v3020_v9  ;;  %v3025_v50 = vsel %vm2803_vm10, %v7875_v37, %v7879_v62  ;;  %v7914_v39 = vunpack.i.l.bf16 %v11738_v52  ;;  %v7910_v58 = vunpack.i.h.bf16 %v7908_v8 }
 0x7c4   :  { %6225 = vmatpush1.bf16.msra.mxu0 %v6224_v26  ;;  %v7909_v28 = vunpack.i.l.bf16 %v7908_v8  ;;  %v3027_v26 = vsel %vm2803_vm10, %v7880_v10, %v7884_v4  ;;  %v2832_v7 = vsel %vm2803_vm10, %v7885_v38, %v7865_v19  ;;  %v2834_v30 = vsel %vm2803_vm10, %v7889_v20, %v7870_v33 }
 0x7c5   :  { %6227 = vmatprep.subr.bf16.mxu0 %v6226_v34  ;;  %v2833_v54 = vsel %vm2803_vm10, %v7865_v19, %v7869_v23  ;;  %v2835_v57 = vsel %vm2803_vm10, %v7870_v33, %v7874_v63  ;;  %v7905_v6 = vunpack.i.h.bf16 %v11707_v27  ;;  %v7904_v55 = vunpack.i.l.bf16 %v11707_v27  ;;  %v11757_v35 = vpop.permute.xlu0 %7922  ;;  %v7918_v2 = vpop.permute.xlu1 %7917 }
 0x7c6   :  { %6269 = vmatpush1.bf16.msra.mxu1 %v6268_v61  ;;  %v7900_v34 = vunpack.i.h.bf16 %v11715_v31  ;;  %v7899_v29 = vunpack.i.l.bf16 %v11715_v31  ;;  %v7895_v21 = vunpack.i.h.bf16 %v11668_v45  ;;  %v3026_v14 = vsel %vm2803_vm10, %v7894_v36, %v7880_v10 }
 0x7c7   :  { %6271 = vmatprep.subr.bf16.mxu1 %v6270_v1  ;;  %v3024_v48 = vsel %vm2803_vm10, %v7890_v0, %v7875_v37  ;;  %v6274_v60 = vpack.c.bf16 %v3027_v26, %v3025_v50  ;;  %v7924_v32 = vunpack.i.l.bf16 %v11757_v35  ;;  %v7920_v53 = vunpack.i.h.bf16 %v7918_v2 }
 0x7c8   :  { %6229 = vmatpush1.bf16.msra.mxu0 %v6228_v25  ;;  %v3029_v12 = vsel %vm2803_vm10, %v7905_v6, %v7909_v28  ;;  %v3031_v44 = vsel %vm2803_vm10, %v7910_v58, %v7914_v39  ;;  %v7919_v56 = vunpack.i.l.bf16 %v7918_v2  ;;  %v6234_v42 = vpack.c.bf16 %v2835_v57, %v2833_v54  ;;  %v2568_v54 = vld [vmem:[%s14037_s9 + $0x10] sm:$0xff]  ;;  %v2571_v57 = vld [vmem:[%s14037_s9 + $0x28] sm:$0xff] }
 0x7c9   :  { %6231 = vmatprep.subr.bf16.mxu0 %v6230_v59  ;;  %v6236_v3 = vpack.c.bf16 %v2834_v30, %v2832_v7  ;;  %v7933_v45 = vpop.permute.xlu0 %7932  ;;  %v6276_v24 = vpack.c.bf16 %v3026_v14, %v3024_v48  ;;  %v2837_v25 = vsel %vm2803_vm10, %v7895_v21, %v7899_v29  ;;  %v2839_v61 = vsel %vm2803_vm10, %v7900_v34, %v7904_v55  ;;  %v7928_v16 = vpop.permute.xlu1 %7927  ;;  %v2566_v7 = vld [vmem:[%s14037_s9] sm:$0xff]  ;;  %v2569_v30 = vld [vmem:[%s14037_s9 + $0x18] sm:$0xff] }
 0x7ca   :  { %6273 = vmatpush1.bf16.msra.mxu1 %v6272_v46  ;;  %v7915_v15 = vunpack.i.h.bf16 %v11738_v52  ;;  %v7925_v43 = vunpack.i.h.bf16 %v11757_v35  ;;  %v7934_v13 = vunpack.i.l.bf16 %v7933_v45  ;;  %v6278_v49 = vpack.c.bf16 %v3031_v44, %v3029_v12  ;;  %v2573_v55 = vld [vmem:[%s14037_s9 + $0x38] sm:$0xff] }
 0x7cb   :  { %6275 = vmatprep.subr.bf16.mxu1 %v6274_v60  ;;  %v3030_v47 = vsel %vm2803_vm10, %v7924_v32, %v7910_v58  ;;  %v3028_v18 = vsel %vm2803_vm10, %v7920_v53, %v7905_v6  ;;  %v7930_v27 = vunpack.i.h.bf16 %v7928_v16  ;;  %v7929_v22 = vunpack.i.l.bf16 %v7928_v16  ;;  %v2570_v6 = vld [vmem:[%s14037_s9 + $0x20] sm:$0xff] }
 0x7cc   :  { %6233 = vmatpush1.bf16.msra.mxu0 %v6232_v40  ;;  %v2838_v41 = vsel %vm2803_vm10, %v7919_v56, %v7900_v34  ;;  %v6238_v11 = vpack.c.bf16 %v2839_v61, %v2837_v25  ;;  %v2836_v31 = vsel %vm2803_vm10, %v7915_v15, %v7895_v21  ;;  %v6280_v4 = vpack.c.bf16 %v3030_v47, %v3028_v18  ;;  %v2572_v34 = vld [vmem:[%s14037_s9 + $0x30] sm:$0xff] }
 0x7cd   :  { %6235 = vmatprep.subr.bf16.mxu0 %v6234_v42  ;;  %v7943_v9 = vpop.permute.xlu0 %7942  ;;  %v2841_v17 = vsel %vm2803_vm10, %v7925_v43, %v7929_v22  ;;  %v2843_v62 = vsel %vm2803_vm10, %v7930_v27, %v7934_v13  ;;  %v7938_v63 = vpop.permute.xlu1 %7937  ;;  %v7935_v10 = vunpack.i.h.bf16 %v7933_v45  ;;  %v6240_v38 = vpack.c.bf16 %v2838_v41, %v2836_v31 }
 0x7ce   :  { %6277 = vmatpush1.bf16.msra.mxu1 %v6276_v24  ;;  %v7944_v37 = vunpack.i.l.bf16 %v7943_v9  ;;  %v7940_v33 = vunpack.i.h.bf16 %v7938_v63  ;;  %v7939_v23 = vunpack.i.l.bf16 %v7938_v63  ;;  %v6242_v20 = vpack.c.bf16 %v2843_v62, %v2841_v17 }
 0x7cf   :  { %6279 = vmatprep.subr.bf16.mxu1 %v6278_v49  ;;  %v7945_v19 = vunpack.i.h.bf16 %v7943_v9 }
 0x7d0   :  { %6237 = vmatpush1.bf16.msra.mxu0 %v6236_v3  ;;  %v3033_v52 = vsel %vm2803_vm10, %v7935_v10, %v7939_v23  ;;  %v3035_v59 = vsel %vm2803_vm10, %v7940_v33, %v7944_v37 }
 0x7d1   :  { %6239 = vmatprep.subr.bf16.mxu0 %v6238_v11  ;;  %v2991_v1 = vpop.permute.xlu0 %2990  ;;  %v7948_v40 = vpop.permute.xlu1 %7947  ;;  %v6282_v36 = vpack.c.bf16 %v3035_v59, %v3033_v52  ;;  %v2840_v46 = vsel %vm2803_vm10, %v7945_v19, %v7925_v43 }
 0x7d2   :  { %6281 = vmatpush1.bf16.msra.mxu1 %v6280_v4  ;;  %v7950_v0 = vunpack.i.h.bf16 %v7948_v40  ;;  %v7949_v8 = vunpack.i.l.bf16 %v7948_v40  ;;  %v3034_v50 = vsel %vm2803_vm10, %v2991_v1, %v7940_v33 }
 0x7d3   :  { %6283 = vmatprep.subr.bf16.mxu1 %v6282_v36 }
 0x7d4   :  { %6241 = vmatpush1.bf16.msra.mxu0 %v6240_v38  ;;  %v3032_v39 = vsel %vm2803_vm10, %v7950_v0, %v7935_v10  ;;  %v2842_v58 = vsel %vm2803_vm10, %v7949_v8, %v7930_v27 }
 0x7d5   :  { %6243 = vmatprep.subr.bf16.mxu0 %v6242_v20  ;;  %v6244_v28 = vpack.c.bf16 %v2842_v58, %v2840_v46  ;;  %v6284_v26 = vpack.c.bf16 %v3034_v50, %v3032_v39 }
 0x7d7   :  { %6285 = vmatpush1.bf16.msra.mxu1 %v6284_v26 }
 0x7d8   :  { %6245 = vmatpush1.bf16.msra.mxu0 %v6244_v28 }
 0x7da   :  { %3263 = vmatmul.mubr.f32.vlgmr.msra.gmra.mrb[32].mxu1 %v2566_v7 }
 0x7db   :  { %3174 = vmatmul.mubr.f32.vlgmr.msra.gmra.mrb[32].mxu0 %v2566_v7  ;;  %5987 = vmatprep.mubr.msk.f32.mxu1 %vm3096_vm2, %v2569_v30 }
 0x7dc   :  { %5983 = vmatprep.mubr.msk.f32.mxu0 %vm3096_vm2, %v2569_v30 }
 0x7dd   :  { %v3084_v56 = vpop.permute.xlu0 %3083 }
 0x7de   :  { %3269 = vmatmul.mubr.f32.gmra.mrb[34].mxu1 %v2568_v54  ;;  %v3079_v29 = vpop.permute.xlu1 %3078 }
 0x7df   :  { %3180 = vmatmul.mubr.f32.gmra.mrb[34].mxu0 %v2568_v54  ;;  %5988 = vmatprep.mubr.msk.f32.mxu1 %vm3096_vm2, %v2571_v57 }
 0x7e0   :  { %5984 = vmatprep.mubr.msk.f32.mxu0 %vm3096_vm2, %v2571_v57 }
 0x7e1   :  { %v3094_v39 = vpop.permute.xlu0 %3093 }
 0x7e2   :  { %3275 = vmatmul.mubr.f32.gmra.mrb[36].mxu1 %v2570_v6  ;;  %v3089_v17 = vpop.permute.xlu1 %3088 }
 0x7e3   :  { %3186 = vmatmul.mubr.f32.gmra.mrb[36].mxu0 %v2570_v6  ;;  %5989 = vmatprep.mubr.msk.f32.mxu1 %vm3096_vm2, %v2573_v55 }
 0x7e4   :  { %5985 = vmatprep.mubr.msk.f32.mxu0 %vm3096_vm2, %v2573_v55 }
 0x7e6   :  { %3281 = vmatmul.mubr.f32.gmra.mrb[38].mxu1 %v2572_v34 }
 0x7e7   :  { %3192 = vmatmul.mubr.f32.gmra.mrb[38].mxu0 %v2572_v34 }
 0x8ad   :  { %v3264_v21 = vpop.f32.mrb[32].mxu1 }
 0x8ae   :  { %v3175_v35 = vpop.f32.mrb[32].mxu0  ;;  %v3265_v48 = vadd.f32 %v3264_v21, %v3079_v29  ;;  %v3266_v60 = vpop.f32.mrb[33].mxu1 }
 0x8af   :  { %v3176_v14 = vadd.f32 %v3175_v35, %v3079_v29  ;;  %v3177_v2 = vpop.f32.mrb[33].mxu0  ;;  %v3267_v53 = vadd.f32 %v3266_v60, %v3079_v29 }
 0x8b0   :  { %v3178_v32 = vadd.f32 %v3177_v2, %v3079_v29  ;;  %vm3301_vm11 = vcmp.gt.f32.partialorder %v3265_v48, 0.0  ;;  %v3317_v44 = vmul.f32 0.2, %v3265_v48 }
 0x8b1   :  { %vm3299_vm3 = vcmp.gt.f32.partialorder %v3176_v14, 0.0  ;;  %v3315_v12 = vmul.f32 0.2, %v3176_v14  ;;  %vm3302_vm15 = vcmp.gt.f32.partialorder %v3267_v53, 0.0  ;;  %v3318_v3 = vmul.f32 0.2, %v3267_v53 }
 0x8b2   :  { %vm3300_vm14 = vcmp.gt.f32.partialorder %v3178_v32, 0.0  ;;  %v3316_v42 = vmul.f32 0.2, %v3178_v32  ;;  %v3333_v24 = vsel %vm3301_vm11, %v3265_v48, %v3317_v44  ;;  %v3181_v25 = vpop.f32.mrb[34].mxu0  ;;  %v3270_v61 = vpop.f32.mrb[34].mxu1 }
 0x8b3   :  { %v3331_v45 = vsel %vm3299_vm3, %v3176_v14, %v3315_v12  ;;  %v3334_v43 = vsel %vm3302_vm15, %v3267_v53, %v3318_v3  ;;  %v3182_v13 = vadd.f32 %v3181_v25, %v3084_v56  ;;  %v3271_v16 = vadd.f32 %v3270_v61, %v3084_v56  ;;  %v3183_v49 = vpop.f32.mrb[35].mxu0  ;;  %v3272_v47 = vpop.f32.mrb[35].mxu1 }
 0x8b4   :  { %v3332_v15 = vsel %vm3300_vm14, %v3178_v32, %v3316_v42  ;;  %v3184_v18 = vadd.f32 %v3183_v49, %v3084_v56  ;;  %v3273_v27 = vadd.f32 %v3272_v47, %v3084_v56  ;;  %v11810_v41 = vpack.i.bf16 %v3334_v43, %v3333_v24 }
 0x8b5   :  { %v11808_v22 = vpack.i.bf16 %v3332_v15, %v3331_v45  ;;  %vm3303_vm4 = vcmp.gt.f32.partialorder %v3182_v13, 0.0  ;;  %v3319_v11 = vmul.f32 0.2, %v3182_v13  ;;  %vm3305_vm5 = vcmp.gt.f32.partialorder %v3271_v16, 0.0  ;;  %v3276_v10 = vpop.f32.mrb[36].mxu1 }
 0x8b6   :  { %v3321_v9 = vmul.f32 0.2, %v3271_v16  ;;  %vm3304_vm6 = vcmp.gt.f32.partialorder %v3184_v18, 0.0  ;;  %v3320_v62 = vmul.f32 0.2, %v3184_v18  ;;  %vm3306_vm7 = vcmp.gt.f32.partialorder %v3273_v27, 0.0 }
 0x8b7   :  { %v3322_v31 = vmul.f32 0.2, %v3273_v27  ;;  %7952 = vrot.lane.b32.xlu1 %v11808_v22, %s9453_s19  ;;  %v3335_v37 = vsel %vm3303_vm4, %v3182_v13, %v3319_v11  ;;  %v3187_v4 = vpop.f32.mrb[36].mxu0  ;;  %v3277_v20 = vadd.f32 %v3276_v10, %v3089_v17  ;;  %v3278_v52 = vpop.f32.mrb[37].mxu1 }
 0x8b8   :  { %v3337_v63 = vsel %vm3305_vm5, %v3271_v16, %v3321_v9  ;;  %v3336_v33 = vsel %vm3304_vm6, %v3184_v18, %v3320_v62  ;;  %v3188_v38 = vadd.f32 %v3187_v4, %v3089_v17  ;;  %v3189_v19 = vpop.f32.mrb[37].mxu0  ;;  %v3279_v1 = vadd.f32 %v3278_v52, %v3089_v17  ;;  %v14358_v52 = vld [vmem:[#allocation20_spill] sm:$0xff] }
 0x8b9   :  { %v3338_v23 = vsel %vm3306_vm7, %v3273_v27, %v3322_v31  ;;  %v3190_v59 = vadd.f32 %v3189_v19, %v3089_v17  ;;  %v3282_v36 = vpop.f32.mrb[38].mxu1  ;;  %v8001_v0 = vpack.i.bf16 %v3336_v33, %v3335_v37  ;;  %vm3309_vm3 = vcmp.gt.f32.partialorder %v3277_v20, 0.0 }
 0x8ba   :  { %v3193_v40 = vpop.f32.mrb[38].mxu0  ;;  %v8006_v8 = vpack.i.bf16 %v3338_v23, %v3337_v63  ;;  %vm3307_vm8 = vcmp.gt.f32.partialorder %v3188_v38, 0.0  ;;  %v3323_v46 = vmul.f32 0.2, %v3188_v38  ;;  %v3325_v50 = vmul.f32 0.2, %v3277_v20 }
 0x8bb   :  { %7957 = vrot.lane.b32.xlu1 %v11810_v41, %s9453_s19  ;;  %vm3308_vm11 = vcmp.gt.f32.partialorder %v3190_v59, 0.0  ;;  %v3324_v58 = vmul.f32 0.2, %v3190_v59  ;;  %vm3310_vm14 = vcmp.gt.f32.partialorder %v3279_v1, 0.0  ;;  %v3326_v28 = vmul.f32 0.2, %v3279_v1  ;;  %8002 = vrot.lane.b32.xlu0 %v8001_v0, %s9453_s19 }
 0x8bc   :  { %v3339_v26 = vsel %vm3307_vm8, %v3188_v38, %v3323_v46  ;;  %v3341_v7 = vsel %vm3309_vm3, %v3277_v20, %v3325_v50  ;;  %v3194_v30 = vadd.f32 %v3193_v40, %v3094_v39  ;;  %v3283_v54 = vadd.f32 %v3282_v36, %v3094_v39  ;;  %v3195_v57 = vpop.f32.mrb[39].mxu0  ;;  %v3284_v6 = vpop.f32.mrb[39].mxu1 }
 0x8bd   :  { %v3340_v55 = vsel %vm3308_vm11, %v3190_v59, %v3324_v58  ;;  %v3342_v34 = vsel %vm3310_vm14, %v3279_v1, %v3326_v28  ;;  %v3196_v29 = vadd.f32 %v3195_v57, %v3094_v39  ;;  %v3285_v35 = vadd.f32 %v3284_v6, %v3094_v39 }
 0x8be   :  { %vm3311_vm15 = vcmp.gt.f32.partialorder %v3194_v30, 0.0  ;;  %v3327_v21 = vmul.f32 0.2, %v3194_v30  ;;  %vm3313_vm4 = vcmp.gt.f32.partialorder %v3283_v54, 0.0  ;;  %v3329_v14 = vmul.f32 0.2, %v3283_v54 }
 0x8bf   :  { %7962 = vrot.lane.b32.xlu1 %v11808_v22, %s9454_s26  ;;  %vm3312_vm5 = vcmp.gt.f32.partialorder %v3196_v29, 0.0  ;;  %v3328_v48 = vmul.f32 0.2, %v3196_v29  ;;  %vm3314_vm6 = vcmp.gt.f32.partialorder %v3285_v35, 0.0  ;;  %v3330_v2 = vmul.f32 0.2, %v3285_v35  ;;  %8007 = vrot.lane.b32.xlu0 %v8006_v8, %s9453_s19 }
 0x8c0   :  { %v3343_v60 = vsel %vm3311_vm15, %v3194_v30, %v3327_v21  ;;  %v3345_v32 = vsel %vm3313_vm4, %v3283_v54, %v3329_v14  ;;  %v8051_v44 = vpack.i.bf16 %v3340_v55, %v3339_v26  ;;  %v8056_v42 = vpack.i.bf16 %v3342_v34, %v3341_v7  ;;  %v14359_v14 = vld [vmem:[#allocation61_spill] sm:$0xff] }
 0x8c1   :  { %v3344_v53 = vsel %vm3312_vm5, %v3196_v29, %v3328_v48  ;;  %v3346_v12 = vsel %vm3314_vm6, %v3285_v35, %v3330_v2 }
 0x8c2   :  { %v8101_v56 = vpack.i.bf16 %v3344_v53, %v3343_v60  ;;  %v8106_v3 = vpack.i.bf16 %v3346_v12, %v3345_v32 }
 0x8c3   :  { %7967 = vrot.lane.b32.xlu1 %v11810_v41, %s9454_s26  ;;  %8012 = vrot.lane.b32.xlu0 %v8001_v0, %s9454_s26 }
 0x8c7   :  { %7972 = vrot.lane.b32.xlu1 %v11808_v22, %s9457_s20  ;;  %8017 = vrot.lane.b32.xlu0 %v8006_v8, %s9454_s26 }
 0x8cb   :  { %7977 = vrot.lane.b32.xlu1 %v11810_v41, %s9457_s20  ;;  %8022 = vrot.lane.b32.xlu0 %v8001_v0, %s9457_s20 }
 0x8cf   :  { %7982 = vrot.lane.b32.xlu1 %v11808_v22, %s9460_s6  ;;  %8027 = vrot.lane.b32.xlu0 %v8006_v8, %s9457_s20 }
 0x8d3   :  { %7987 = vrot.lane.b32.xlu1 %v11810_v41, %s9460_s6  ;;  %8032 = vrot.lane.b32.xlu0 %v8001_v0, %s9460_s6 }
 0x8d7   :  { %7992 = vrot.lane.b32.xlu1 %v11808_v22, %s9461_s22  ;;  %8037 = vrot.lane.b32.xlu0 %v8006_v8, %s9460_s6 }
 0x8db   :  { %7997 = vrot.lane.b32.xlu1 %v11810_v41, %s9461_s22  ;;  %8042 = vrot.lane.b32.xlu0 %v8001_v0, %s9461_s22 }
 0x8df   :  { %8052 = vrot.lane.b32.xlu1 %v8051_v44, %s9453_s19  ;;  %8047 = vrot.lane.b32.xlu0 %v8006_v8, %s9461_s22 }
 0x8e3   :  { %8057 = vrot.lane.b32.xlu1 %v8056_v42, %s9453_s19  ;;  %8102 = vrot.lane.b32.xlu0 %v8101_v56, %s9453_s19 }
 0x8e7   :  { %8062 = vrot.lane.b32.xlu1 %v8051_v44, %s9454_s26  ;;  %8107 = vrot.lane.b32.xlu0 %v8106_v3, %s9453_s19 }
 0x8eb   :  { %8067 = vrot.lane.b32.xlu1 %v8056_v42, %s9454_s26  ;;  %8112 = vrot.lane.b32.xlu0 %v8101_v56, %s9454_s26 }
 0x8ef   :  { %8072 = vrot.lane.b32.xlu1 %v8051_v44, %s9457_s20  ;;  %8117 = vrot.lane.b32.xlu0 %v8106_v3, %s9454_s26 }
 0x8f3   :  { %8077 = vrot.lane.b32.xlu1 %v8056_v42, %s9457_s20  ;;  %8122 = vrot.lane.b32.xlu0 %v8101_v56, %s9457_s20 }
 0x8f7   :  { %8082 = vrot.lane.b32.xlu1 %v8051_v44, %s9460_s6  ;;  %8127 = vrot.lane.b32.xlu0 %v8106_v3, %s9457_s20 }
 0x8fb   :  { %8087 = vrot.lane.b32.xlu1 %v8056_v42, %s9460_s6  ;;  %8132 = vrot.lane.b32.xlu0 %v8101_v56, %s9460_s6 }
 0x8ff   :  { %8092 = vrot.lane.b32.xlu1 %v8051_v44, %s9461_s22  ;;  %8137 = vrot.lane.b32.xlu0 %v8106_v3, %s9460_s6 }
 0x903   :  { %8097 = vrot.lane.b32.xlu1 %v8056_v42, %s9461_s22  ;;  %8142 = vrot.lane.b32.xlu0 %v8101_v56, %s9461_s22 }
 0x907   :  { %8147 = vrot.lane.b32.xlu0 %v8106_v3, %s9461_s22 }
 0x929   :  { %v11862_v45 = vpop.permute.xlu1 %7952 }
 0x92a   :  { %v7955_v24 = vunpack.i.h.bf16 %v11862_v45  ;;  %v7954_v25 = vunpack.i.l.bf16 %v11862_v45 }
 0x92c   :  { %v3372_v61 = vsel %vm222_vm0, %v7954_v25, %v7955_v24 }
 0x92d   :  { %v8151_v15 = vpack.i.bf16 %v7955_v24, %v3372_v61  ;;  %v7958_v43 = vpop.permute.xlu1 %7957  ;;  %v11869_v13 = vpop.permute.xlu0 %8002  ;;  %v3371_v24 = vsel %vm222_vm0, %v14359_v14, %v7954_v25 }
 0x92e   :  { %v7960_v16 = vunpack.i.h.bf16 %v7958_v43  ;;  %v7959_v49 = vunpack.i.l.bf16 %v7958_v43  ;;  %v8005_v35 = vunpack.i.h.bf16 %v11869_v13  ;;  %v8004_v21 = vunpack.i.l.bf16 %v11869_v13 }
 0x92f   :  { %8152 = vrot.lane.b32.xlu1 %v8151_v15, %s9461_s22 }
 0x930   :  { %v3472_v47 = vsel %vm222_vm0, %v7959_v49, %v7960_v16  ;;  %v3471_v60 = vsel %vm222_vm0, %v14359_v14, %v7959_v49  ;;  %v3374_v56 = vsel %vm222_vm0, %v8004_v21, %v8005_v35  ;;  %v3373_v42 = vsel %vm222_vm0, %v14359_v14, %v8004_v21 }
 0x931   :  { %v8156_v18 = vpack.i.bf16 %v7960_v16, %v3472_v47  ;;  %v7963_v27 = vpop.permute.xlu1 %7962  ;;  %v11873_v22 = vpop.permute.xlu0 %8007  ;;  %v8211_v13 = vpack.i.bf16 %v8005_v35, %v3374_v56  ;;  %v8201_v47 = vpack.i.bf16 %v3373_v42, %v3371_v24 }
 0x932   :  { %v7965_v41 = vunpack.i.h.bf16 %v7963_v27  ;;  %v7964_v11 = vunpack.i.l.bf16 %v7963_v27  ;;  %v8009_v30 = vunpack.i.l.bf16 %v11873_v22  ;;  %v8010_v32 = vunpack.i.h.bf16 %v11873_v22 }
 0x933   :  { %8157 = vrot.lane.b32.xlu1 %v8156_v18, %s9461_s22 }
 0x934   :  { %v3395_v9 = vsel %vm246_vm1, %v7964_v11, %v7965_v41  ;;  %v3473_v48 = vsel %vm222_vm0, %v14359_v14, %v8009_v30  ;;  %v3474_v61 = vsel %vm222_vm0, %v8009_v30, %v8010_v32 }
 0x935   :  { %v8161_v17 = vpack.i.bf16 %v7965_v41, %v3395_v9  ;;  %v7968_v62 = vpop.permute.xlu1 %7967  ;;  %v11877_v31 = vpop.permute.xlu0 %8012  ;;  %v8206_v44 = vpack.i.bf16 %v3473_v48, %v3471_v60  ;;  %v8216_v27 = vpack.i.bf16 %v8010_v32, %v3474_v61 }
 0x936   :  { %v7970_v37 = vunpack.i.h.bf16 %v7968_v62  ;;  %v7969_v63 = vunpack.i.l.bf16 %v7968_v62  ;;  %v8014_v28 = vunpack.i.l.bf16 %v11877_v31  ;;  %v8015_v15 = vunpack.i.h.bf16 %v11877_v31 }
 0x937   :  { %8162 = vrot.lane.b32.xlu1 %v8161_v17, %s9461_s22 }
 0x938   :  { %v3495_v4 = vsel %vm246_vm1, %v7969_v63, %v7970_v37  ;;  %v8181_v6 = vpack.i.bf16 %v8014_v28, %v7964_v11  ;;  %v3396_v45 = vsel %vm246_vm1, %v8014_v28, %v8015_v15 }
 0x939   :  { %v8166_v10 = vpack.i.bf16 %v7970_v37, %v3495_v4  ;;  %v7973_v33 = vpop.permute.xlu1 %7972  ;;  %v11881_v23 = vpop.permute.xlu0 %8017 }
 0x93a   :  { %v7975_v38 = vunpack.i.h.bf16 %v7973_v33  ;;  %v7974_v20 = vunpack.i.l.bf16 %v7973_v33  ;;  %v8019_v19 = vunpack.i.l.bf16 %v11881_v23  ;;  %v8020_v25 = vunpack.i.h.bf16 %v11881_v23 }
 0x93b   :  { %8167 = vrot.lane.b32.xlu1 %v8166_v10, %s9461_s22 }
 0x93c   :  { %v3416_v59 = vsel %vm1435_vm12, %v7975_v38, %v14358_v52  ;;  %v3415_v1 = vsel %vm1435_vm12, %v7974_v20, %v7975_v38  ;;  %v8186_v40 = vpack.i.bf16 %v8019_v19, %v7969_v63 }
 0x93d   :  { %v7978_v36 = vpop.permute.xlu1 %7977  ;;  %v8171_v0 = vpack.i.bf16 %v3416_v59, %v3415_v1  ;;  %v11890_v8 = vpop.permute.xlu0 %8022  ;;  %v8221_v59 = vpack.i.bf16 %v8015_v15, %v3396_v45 }
 0x93e   :  { %v7980_v46 = vunpack.i.h.bf16 %v7978_v36  ;;  %v7979_v50 = vunpack.i.l.bf16 %v7978_v36  ;;  %8187 = vrot.lane.b32.xlu0 %v8186_v40, %s9461_s22  ;;  %v8024_v55 = vunpack.i.l.bf16 %v11890_v8  ;;  %v3496_v36 = vsel %vm246_vm1, %v8019_v19, %v8020_v25 }
 0x93f   :  { %8172 = vrot.lane.b32.xlu1 %v8171_v0, %s9461_s22  ;;  %v8025_v0 = vunpack.i.h.bf16 %v11890_v8  ;;  %v8226_v48 = vpack.i.bf16 %v8020_v25, %v3496_v36 }
 0x940   :  { %v3516_v39 = vsel %vm1435_vm12, %v7980_v46, %v14358_v52  ;;  %v3515_v58 = vsel %vm1435_vm12, %v7979_v50, %v7980_v46  ;;  %v8191_v53 = vpack.i.bf16 %v8024_v55, %v7974_v20 }
 0x941   :  { %v11898_v26 = vpop.permute.xlu1 %7982  ;;  %v8176_v7 = vpack.i.bf16 %v3516_v39, %v3515_v58  ;;  %v11901_v54 = vpop.permute.xlu0 %8027  ;;  %v3418_v60 = vsel %vm1435_vm12, %v8025_v0, %v14358_v52 }
 0x942   :  { %v8029_v57 = vunpack.i.l.bf16 %v11901_v54 }
 0x943   :  { %8177 = vrot.lane.b32.xlu1 %v8176_v7, %s9461_s22 }
 0x944   :  { %v8196_v34 = vpack.i.bf16 %v8029_v57, %v7979_v50 }
 0x945   :  { %v11908_v29 = vpop.permute.xlu1 %7987  ;;  %v11914_v2 = vpop.permute.xlu0 %8032 }
 0x946   :  { %8197 = vrot.lane.b32.xlu0 %v8196_v34, %s9461_s22 }
 0x947   :  { %8182 = vrot.lane.b32.xlu1 %v8181_v6, %s9461_s22 }
 0x949   :  { %v7993_v12 = vpop.permute.xlu1 %7992  ;;  %v11926_v3 = vpop.permute.xlu0 %8037 }
 0x94a   :  { %8207 = vrot.lane.b32.xlu0 %v8206_v44, %s9461_s22  ;;  %v7994_v43 = vunpack.i.l.bf16 %v7993_v12  ;;  %v7995_v16 = vunpack.i.h.bf16 %v7993_v12  ;;  %v3417_v12 = vsel %vm1435_vm12, %v8024_v55, %v8025_v0  ;;  %v8030_v44 = vunpack.i.h.bf16 %v11901_v54 }
 0x94b   :  { %8192 = vrot.lane.b32.xlu1 %v8191_v53, %s9461_s22  ;;  %v8034_v0 = vunpack.i.l.bf16 %v11914_v2 }
 0x94c   :  { %v3659_v11 = vsel %vm2803_vm10, %v11286_v5, %v7994_v43  ;;  %v3660_v37 = vsel %vm2803_vm10, %v7994_v43, %v7995_v16  ;;  %v3518_v8 = vsel %vm1435_vm12, %v8030_v44, %v14358_v52  ;;  %v3517_v55 = vsel %vm1435_vm12, %v8029_v57, %v8030_v44 }
 0x94d   :  { %v7998_v49 = vpop.permute.xlu1 %7997  ;;  %v8043_v18 = vpop.permute.xlu0 %8042 }
 0x94e   :  { %v8045_v22 = vunpack.i.h.bf16 %v8043_v18  ;;  %v8044_v41 = vunpack.i.l.bf16 %v8043_v18  ;;  %8212 = vrot.lane.b32.xlu0 %v8211_v13, %s9461_s22  ;;  %v7999_v9 = vunpack.i.l.bf16 %v7998_v49  ;;  %v8000_v62 = vunpack.i.h.bf16 %v7998_v49 }
 0x94f   :  { %8202 = vrot.lane.b32.xlu1 %v8201_v47, %s9461_s22  ;;  %v8231_v13 = vpack.i.bf16 %v3418_v60, %v3417_v12  ;;  %v7984_v12 = vunpack.i.l.bf16 %v11898_v26 }
 0x950   :  { %v3661_v17 = vsel %vm2803_vm10, %v11286_v5, %v8044_v41  ;;  %v3662_v63 = vsel %vm2803_vm10, %v8044_v41, %v8045_v22  ;;  %v3851_v46 = vsel %vm2803_vm10, %v11286_v5, %v7999_v9  ;;  %v3852_v23 = vsel %vm2803_vm10, %v7999_v9, %v8000_v62 }
 0x951   :  { %v11944_v31 = vpop.permute.xlu1 %8052  ;;  %v8048_v4 = vpop.permute.xlu0 %8047  ;;  %v6286_v38 = vpack.c.bf16 %v3662_v63, %v3660_v37  ;;  %v6288_v20 = vpack.c.bf16 %v3661_v17, %v3659_v11  ;;  %v8236_v41 = vpack.i.bf16 %v3518_v8, %v3517_v55 }
 0x952   :  { %v8055_v10 = vunpack.i.h.bf16 %v11944_v31  ;;  %v8054_v33 = vunpack.i.l.bf16 %v11944_v31  ;;  %v8050_v1 = vunpack.i.h.bf16 %v8048_v4  ;;  %v8049_v40 = vunpack.i.l.bf16 %v8048_v4  ;;  %8217 = vrot.lane.b32.xlu0 %v8216_v27, %s9461_s22 }
 0x953   :  { %6287 = vmatprep.subr.bf16.mxu0 %v6286_v38 }
 0x954   :  { %v3376_v50 = vsel %vm222_vm0, %v8054_v33, %v8055_v10  ;;  %v3853_v39 = vsel %vm2803_vm10, %v11286_v5, %v8049_v40  ;;  %6289 = vmatpush1.bf16.msra.mxu0 %v6288_v20  ;;  %v3854_v19 = vsel %vm2803_vm10, %v8049_v40, %v8050_v1 }
 0x955   :  { %v8241_v58 = vpack.i.bf16 %v8055_v10, %v3376_v50  ;;  %v11962_v28 = vpop.permute.xlu1 %8057  ;;  %v11966_v7 = vpop.permute.xlu0 %8102  ;;  %v6326_v34 = vpack.c.bf16 %v3854_v19, %v3852_v23  ;;  %v6328_v35 = vpack.c.bf16 %v3853_v39, %v3851_v46  ;;  %v14360_v39 = vld [vmem:[#allocation30_spill] sm:$0xff] }
 0x956   :  { %v8060_v30 = vunpack.i.h.bf16 %v11962_v28  ;;  %v8059_v6 = vunpack.i.l.bf16 %v11962_v28  ;;  %8222 = vrot.lane.b32.xlu0 %v8221_v59, %s9461_s22  ;;  %v8035_v59 = vunpack.i.h.bf16 %v11914_v2  ;;  %v8104_v60 = vunpack.i.l.bf16 %v11966_v7 }
 0x957   :  { %8242 = vrot.lane.b32.xlu1 %v8241_v58, %s9461_s22  ;;  %6327 = vmatprep.subr.bf16.mxu1 %v6326_v34 }
 0x958   :  { %v3476_v21 = vsel %vm222_vm0, %v8059_v6, %v8060_v30  ;;  %6329 = vmatpush1.bf16.msra.mxu1 %v6328_v35  ;;  %v3442_v58 = vsel %vm2628_vm9, %v8035_v59, %v14360_v39  ;;  %v3441_v35 = vsel %vm2628_vm9, %v8034_v0, %v8035_v59 }
 0x959   :  { %v8246_v32 = vpack.i.bf16 %v8060_v30, %v3476_v21  ;;  %v8063_v53 = vpop.permute.xlu1 %8062  ;;  %v11981_v56 = vpop.permute.xlu0 %8107  ;;  %v8040_v21 = vunpack.i.h.bf16 %v11926_v3 }
 0x95a   :  { %v8065_v42 = vunpack.i.h.bf16 %v8063_v53  ;;  %v8064_v24 = vunpack.i.l.bf16 %v8063_v53  ;;  %8227 = vrot.lane.b32.xlu0 %v8226_v48, %s9461_s22  ;;  %v8039_v48 = vunpack.i.l.bf16 %v11926_v3  ;;  %v7985_v53 = vunpack.i.h.bf16 %v11898_v26 }
 0x95b   :  { %8247 = vrot.lane.b32.xlu1 %v8246_v32, %s9461_s22  ;;  %v3542_v3 = vsel %vm2628_vm9, %v8040_v21, %v14360_v39 }
 0x95c   :  { %v3397_v61 = vsel %vm246_vm1, %v8064_v24, %v8065_v42  ;;  %v3440_v8 = vsel %vm2628_vm9, %v7985_v53, %v14360_v39  ;;  %v3439_v55 = vsel %vm2628_vm9, %v7984_v12, %v7985_v53 }
 0x95d   :  { %v8251_v15 = vpack.i.bf16 %v8065_v42, %v3397_v61  ;;  %v8068_v43 = vpop.permute.xlu1 %8067  ;;  %v11991_v16 = vpop.permute.xlu0 %8112  ;;  %v7990_v61 = vunpack.i.h.bf16 %v11908_v29 }
 0x95e   :  { %v8070_v49 = vunpack.i.h.bf16 %v8068_v43  ;;  %v8069_v47 = vunpack.i.l.bf16 %v8068_v43  ;;  %8232 = vrot.lane.b32.xlu0 %v8231_v13, %s9461_s22  ;;  %v8114_v1 = vunpack.i.l.bf16 %v11991_v16  ;;  %v3377_v43 = vsel %vm222_vm0, %v14359_v14, %v8104_v60 }
 0x95f   :  { %8252 = vrot.lane.b32.xlu1 %v8251_v15, %s9461_s22  ;;  %v3541_v15 = vsel %vm2628_vm9, %v8039_v48, %v8040_v21 }
 0x960   :  { %v3497_v18 = vsel %vm246_vm1, %v8069_v47, %v8070_v49  ;;  %v8271_v23 = vpack.i.bf16 %v8114_v1, %v8064_v24  ;;  %v8301_v24 = vpack.i.bf16 %v3442_v58, %v3441_v35 }
 0x961   :  { %v8256_v27 = vpack.i.bf16 %v8070_v49, %v3497_v18  ;;  %v8073_v22 = vpop.permute.xlu1 %8072  ;;  %v11996_v45 = vpop.permute.xlu0 %8117  ;;  %v7989_v49 = vunpack.i.l.bf16 %v11908_v29  ;;  %v8109_v18 = vunpack.i.l.bf16 %v11981_v56 }
 0x962   :  { %v8075_v25 = vunpack.i.h.bf16 %v8073_v22  ;;  %v8074_v11 = vunpack.i.l.bf16 %v8073_v22  ;;  %v8119_v54 = vunpack.i.l.bf16 %v11996_v45  ;;  %8237 = vrot.lane.b32.xlu0 %v8236_v41, %s9461_s22  ;;  %v8311_v41 = vpack.i.bf16 %v3542_v3, %v3541_v15 }
 0x963   :  { %8257 = vrot.lane.b32.xlu1 %v8256_v27, %s9461_s22 }
 0x964   :  { %v3420_v57 = vsel %vm1435_vm12, %v8075_v25, %v14358_v52  ;;  %v3419_v9 = vsel %vm1435_vm12, %v8074_v11, %v8075_v25  ;;  %v8276_v17 = vpack.i.bf16 %v8119_v54, %v8069_v47  ;;  %v3375_v47 = vsel %vm222_vm0, %v14359_v14, %v8054_v33 }
 0x965   :  { %v8078_v62 = vpop.permute.xlu1 %8077  ;;  %v8261_v37 = vpack.i.bf16 %v3420_v57, %v3419_v9  ;;  %v12006_v63 = vpop.permute.xlu0 %8122  ;;  %v8291_v25 = vpack.i.bf16 %v3377_v43, %v3375_v47  ;;  %v8296_v9 = vpack.i.bf16 %v3440_v8, %v3439_v55  ;;  %v8105_v33 = vunpack.i.h.bf16 %v11966_v7 }
 0x966   :  { %v8080_v4 = vunpack.i.h.bf16 %v8078_v62  ;;  %v8079_v10 = vunpack.i.l.bf16 %v8078_v62  ;;  %8277 = vrot.lane.b32.xlu0 %v8276_v17, %s9461_s22  ;;  %v8124_v19 = vunpack.i.l.bf16 %v12006_v63  ;;  %v3539_v17 = vsel %vm2628_vm9, %v7989_v49, %v7990_v61 }
 0x967   :  { %8262 = vrot.lane.b32.xlu1 %v8261_v37, %s9461_s22  ;;  %v8321_v62 = vpack.i.bf16 %v8039_v48, %v7989_v49  ;;  %v3475_v7 = vsel %vm222_vm0, %v14359_v14, %v8059_v6  ;;  %v3378_v53 = vsel %vm222_vm0, %v8104_v60, %v8105_v33  ;;  %v8316_v8 = vpack.i.bf16 %v8034_v0, %v7984_v12 }
 0x968   :  { %v3520_v38 = vsel %vm1435_vm12, %v8080_v4, %v14358_v52  ;;  %v3519_v20 = vsel %vm1435_vm12, %v8079_v10, %v8080_v4  ;;  %v8281_v44 = vpack.i.bf16 %v8124_v19, %v8074_v11  ;;  %v3540_v11 = vsel %vm2628_vm9, %v7990_v61, %v14360_v39 }
 0x969   :  { %v12015_v40 = vpop.permute.xlu1 %8082  ;;  %v8266_v36 = vpack.i.bf16 %v3520_v38, %v3519_v20  ;;  %v12018_v46 = vpop.permute.xlu0 %8127  ;;  %v3477_v4 = vsel %vm222_vm0, %v14359_v14, %v8109_v18  ;;  %v8346_v55 = vpack.i.bf16 %v8105_v33, %v3378_v53  ;;  %v8115_v47 = vunpack.i.h.bf16 %v11991_v16  ;;  %v3297_v33 = vld [vmem:[%s14040_s12 + $0x10] sm:$0xff] }
 0x96a   :  { %v8129_v50 = vunpack.i.l.bf16 %v12018_v46  ;;  %v8085_v15 = vunpack.i.h.bf16 %v12015_v40  ;;  %v8084_v60 = vunpack.i.l.bf16 %v12015_v40  ;;  %v8120_v12 = vunpack.i.h.bf16 %v11996_v45  ;;  %v3295_v45 = vld [vmem:[%s14040_s12] sm:$0xff] }
 0x96b   :  { %8267 = vrot.lane.b32.xlu1 %v8266_v36, %s9461_s22  ;;  %v3398_v0 = vsel %vm246_vm1, %v8114_v1, %v8115_v47  ;;  %v8125_v1 = vunpack.i.h.bf16 %v12006_v63 }
 0x96c   :  { %v8286_v30 = vpack.i.bf16 %v8129_v50, %v8079_v10  ;;  %v3444_v40 = vsel %vm2628_vm9, %v8085_v15, %v14360_v39  ;;  %v3498_v16 = vsel %vm246_vm1, %v8119_v54, %v8120_v12 }
 0x96d   :  { %v12029_v34 = vpop.permute.xlu1 %8087  ;;  %v12037_v32 = vpop.permute.xlu0 %8132 }
 0x96e   :  { %8287 = vrot.lane.b32.xlu0 %v8286_v30, %s9461_s22 }
 0x96f   :  { %8272 = vrot.lane.b32.xlu1 %v8271_v23, %s9461_s22 }
 0x971   :  { %v8093_v42 = vpop.permute.xlu1 %8092  ;;  %v12051_v13 = vpop.permute.xlu0 %8137 }
 0x972   :  { %8302 = vrot.lane.b32.xlu0 %v8301_v24, %s9461_s22  ;;  %v8095_v27 = vunpack.i.h.bf16 %v8093_v42  ;;  %v8094_v22 = vunpack.i.l.bf16 %v8093_v42  ;;  %v8341_v42 = vpack.i.bf16 %v3477_v4, %v3475_v7  ;;  %v8306_v24 = vpack.i.bf16 %v3540_v11, %v3539_v17  ;;  %v3298_v7 = vld [vmem:[%s14040_s12 + $0x18] sm:$0xff] }
 0x973   :  { %8282 = vrot.lane.b32.xlu1 %v8281_v44, %s9461_s22  ;;  %v8110_v44 = vunpack.i.h.bf16 %v11981_v56  ;;  %v8134_v11 = vunpack.i.l.bf16 %v12037_v32  ;;  %v3422_v17 = vsel %vm1435_vm12, %v8125_v1, %v14358_v52 }
 0x974   :  { %v3663_v10 = vsel %vm2803_vm10, %v11286_v5, %v8094_v22  ;;  %v3664_v38 = vsel %vm2803_vm10, %v8094_v22, %v8095_v27  ;;  %v3443_v27 = vsel %vm2628_vm9, %v8084_v60, %v8085_v15  ;;  %v8090_v22 = vunpack.i.h.bf16 %v12029_v34 }
 0x975   :  { %v8143_v57 = vpop.permute.xlu0 %8142  ;;  %v8098_v29 = vpop.permute.xlu1 %8097  ;;  %v3478_v49 = vsel %vm222_vm0, %v8109_v18, %v8110_v44  ;;  %v8326_v2 = vpack.i.bf16 %v3444_v40, %v3443_v27 }
 0x976   :  { %v8145_v37 = vunpack.i.h.bf16 %v8143_v57  ;;  %v8144_v31 = vunpack.i.l.bf16 %v8143_v57  ;;  %8312 = vrot.lane.b32.xlu0 %v8311_v41, %s9461_s22  ;;  %v8100_v59 = vunpack.i.h.bf16 %v8098_v29  ;;  %v8099_v36 = vunpack.i.l.bf16 %v8098_v29 }
 0x977   :  { %8292 = vrot.lane.b32.xlu1 %v8291_v25, %s9461_s22  ;;  %v8089_v41 = vunpack.i.l.bf16 %v12029_v34  ;;  %v8351_v26 = vpack.i.bf16 %v8110_v44, %v3478_v49  ;;  %v3544_v18 = vsel %vm2628_vm9, %v8090_v22, %v14360_v39  ;;  %v8356_v34 = vpack.i.bf16 %v8115_v47, %v3398_v0 }
 0x978   :  { %v3665_v20 = vsel %vm2803_vm10, %v11286_v5, %v8144_v31  ;;  %v3666_v58 = vsel %vm2803_vm10, %v8144_v31, %v8145_v37  ;;  %v3855_v61 = vsel %vm2803_vm10, %v11286_v5, %v8099_v36  ;;  %v3856_v6 = vsel %vm2803_vm10, %v8099_v36, %v8100_v59 }
 0x979   :  { %v8148_v23 = vpop.permute.xlu0 %8147  ;;  %v6290_v30 = vpack.c.bf16 %v3666_v58, %v3664_v38  ;;  %v6292_v35 = vpack.c.bf16 %v3665_v20, %v3663_v10  ;;  %v3543_v25 = vsel %vm2628_vm9, %v8089_v41, %v8090_v22  ;;  %v8361_v29 = vpack.i.bf16 %v8120_v12, %v3498_v16 }
 0x97a   :  { %v8150_v21 = vunpack.i.h.bf16 %v8148_v23  ;;  %v8149_v48 = vunpack.i.l.bf16 %v8148_v23  ;;  %8322 = vrot.lane.b32.xlu0 %v8321_v62, %s9461_s22  ;;  %v8331_v57 = vpack.i.bf16 %v3544_v18, %v3543_v25  ;;  %v3421_v62 = vsel %vm1435_vm12, %v8124_v19, %v8125_v1 }
 0x97b   :  { %8297 = vrot.lane.b32.xlu1 %v8296_v9, %s9461_s22  ;;  %6291 = vmatprep.subr.bf16.mxu0 %v6290_v30  ;;  %v8336_v9 = vpack.i.bf16 %v8134_v11, %v8084_v60  ;;  %v8130_v37 = vunpack.i.h.bf16 %v12018_v46  ;;  %v8366_v54 = vpack.i.bf16 %v3422_v17, %v3421_v62  ;;  %v8135_v19 = vunpack.i.h.bf16 %v12037_v32  ;;  %v3296_v30 = vld [vmem:[%s14040_s12 + $0x8] sm:$0xff] }
 0x97c   :  { %v3857_v28 = vsel %vm2803_vm10, %v11286_v5, %v8149_v48  ;;  %6293 = vmatpush1.bf16.msra.mxu0 %v6292_v35  ;;  %v3858_v3 = vsel %vm2803_vm10, %v8149_v48, %v8150_v21  ;;  %v8140_v20 = vunpack.i.h.bf16 %v12051_v13  ;;  %v8139_v46 = vunpack.i.l.bf16 %v12051_v13 }
 0x97d   :  { %v6330_v43 = vpack.c.bf16 %v3858_v3, %v3856_v6  ;;  %v6332_v56 = vpack.c.bf16 %v3857_v28, %v3855_v61  ;;  %v3522_v31 = vsel %vm1435_vm12, %v8130_v37, %v14358_v52  ;;  %v3521_v63 = vsel %vm1435_vm12, %v8129_v50, %v8130_v37  ;;  %v3288_v50 = vld [vmem:[%s14039_s11 + $0x8] sm:$0xff] }
 0x97e   :  { %8342 = vrot.lane.b32.xlu0 %v8341_v42, %s9461_s22  ;;  %v8371_v4 = vpack.i.bf16 %v3522_v31, %v3521_v63  ;;  %v3446_v10 = vsel %vm2628_vm9, %v8135_v19, %v14360_v39  ;;  %v3445_v38 = vsel %vm2628_vm9, %v8134_v11, %v8135_v19  ;;  %5990 = vmatprep.mubr.msk.f32.mxu0 %vm3096_vm2, %v3288_v50 }
 0x97f   :  { %8307 = vrot.lane.b32.xlu1 %v8306_v24, %s9461_s22  ;;  %6331 = vmatprep.subr.bf16.mxu1 %v6330_v43  ;;  %v8376_v32 = vpack.i.bf16 %v3446_v10, %v3445_v38  ;;  %v3546_v59 = vsel %vm2628_vm9, %v8140_v20, %v14360_v39  ;;  %v3545_v36 = vsel %vm2628_vm9, %v8139_v46, %v8140_v20 }
 0x980   :  { %6333 = vmatpush1.bf16.msra.mxu1 %v6332_v56  ;;  %5994 = vmatprep.mubr.msk.f32.mxu1 %vm3096_vm2, %v3288_v50  ;;  %v8381_v13 = vpack.i.bf16 %v3546_v59, %v3545_v36  ;;  %v8386_v58 = vpack.i.bf16 %v8139_v46, %v8089_v41 }
 0x982   :  { %8347 = vrot.lane.b32.xlu0 %v8346_v55, %s9461_s22 }
 0x983   :  { %8317 = vrot.lane.b32.xlu1 %v8316_v8, %s9461_s22 }
 0x986   :  { %8352 = vrot.lane.b32.xlu0 %v8351_v26, %s9461_s22 }
 0x987   :  { %8327 = vrot.lane.b32.xlu1 %v8326_v2, %s9461_s22 }
 0x98a   :  { %8357 = vrot.lane.b32.xlu0 %v8356_v34, %s9461_s22 }
 0x98b   :  { %8332 = vrot.lane.b32.xlu1 %v8331_v57, %s9461_s22 }
 0x98e   :  { %8362 = vrot.lane.b32.xlu0 %v8361_v29, %s9461_s22 }
 0x98f   :  { %8337 = vrot.lane.b32.xlu1 %v8336_v9, %s9461_s22 }
 0x992   :  { %8367 = vrot.lane.b32.xlu0 %v8366_v54, %s9461_s22 }
 0x993   :  { %3933 = vperm.xlu1 %6870, %v3295_v45  }
 0x996   :  { %8372 = vrot.lane.b32.xlu0 %v8371_v4, %s9461_s22 }
 0x997   :  { %3943 = vperm.xlu1 %6870, %v3297_v33  }
 0x99a   :  { %8377 = vrot.lane.b32.xlu0 %v8376_v32, %s9461_s22 }
 0x99e   :  { %8382 = vrot.lane.b32.xlu0 %v8381_v13, %s9461_s22 }
 0x9a1   :  { %v8153_v23 = vpop.permute.xlu1 %8152 }
 0x9a2   :  { %8387 = vrot.lane.b32.xlu0 %v8386_v58, %s9461_s22  ;;  %v8155_v3 = vunpack.i.h.bf16 %v8153_v23  ;;  %v8154_v15 = vunpack.i.l.bf16 %v8153_v23 }
 0x9a4   :  { %v3668_v27 = vsel %vm2803_vm10, %v8154_v15, %v8155_v3 }
 0x9a5   :  { %v8158_v35 = vpop.permute.xlu1 %8157 }
 0x9a6   :  { %3938 = vperm.xlu0 %6869, %v3296_v30   ;;  %v8160_v47 = vunpack.i.h.bf16 %v8158_v35  ;;  %v8159_v40 = vunpack.i.l.bf16 %v8158_v35 }
 0x9a8   :  { %v3860_v1 = vsel %vm2803_vm10, %v8159_v40, %v8160_v47 }
 0x9a9   :  { %v12171_v21 = vpop.permute.xlu1 %8162 }
 0x9aa   :  { %3948 = vperm.xlu0 %6869, %v3298_v7   ;;  %v8165_v59 = vunpack.i.h.bf16 %v12171_v21  ;;  %v8164_v36 = vunpack.i.l.bf16 %v12171_v21 }
 0x9ac   :  { %v12234_v21 = vsel %vm2803_vm10, %v8164_v36, %v8165_v59 }
 0x9ad   :  { %v12173_v48 = vpop.permute.xlu1 %8167 }
 0x9ae   :  { %v8170_v13 = vunpack.i.h.bf16 %v12173_v48  ;;  %v8169_v58 = vunpack.i.l.bf16 %v12173_v48 }
 0x9b0   :  { %v12177_v44 = vpop.permute.xlu0 %8187 }
 0x9b1   :  { %v12175_v53 = vpop.permute.xlu1 %8172  ;;  %v8189_v35 = vunpack.i.l.bf16 %v12177_v44  ;;  %v8190_v48 = vunpack.i.h.bf16 %v12177_v44 }
 0x9b2   :  { %v8175_v7 = vunpack.i.h.bf16 %v12175_v53 }
 0x9b5   :  { %v12179_v42 = vpop.permute.xlu1 %8177 }
 0x9b6   :  { %v8180_v3 = vunpack.i.h.bf16 %v12179_v42 }
 0x9b8   :  { %v12181_v24 = vpop.permute.xlu0 %8197 }
 0x9b9   :  { %v12183_v61 = vpop.permute.xlu1 %8182 }
 0x9ba   :  { %v8185_v44 = vunpack.i.h.bf16 %v12183_v61 }
 0x9bc   :  { %v8208_v28 = vpop.permute.xlu0 %8207 }
 0x9bd   :  { %v12185_v6 = vpop.permute.xlu1 %8192  ;;  %v8209_v22 = vunpack.i.l.bf16 %v8208_v28  ;;  %v8210_v25 = vunpack.i.h.bf16 %v8208_v28  ;;  %v8174_v28 = vunpack.i.l.bf16 %v12175_v53  ;;  %v12245_v53 = vsel %vm2803_vm10, %v8189_v35, %v8169_v58 }
 0x9bf   :  { %v3859_v57 = vsel %vm2803_vm10, %v8209_v22, %v8159_v40  ;;  %v12248_v40 = vsel %vm2803_vm10, %v8174_v28, %v8175_v7  ;;  %v8184_v22 = vunpack.i.l.bf16 %v12183_v61 }
 0x9c0   :  { %v8213_v60 = vpop.permute.xlu0 %8212 }
 0x9c1   :  { %v8203_v43 = vpop.permute.xlu1 %8202  ;;  %v8215_v56 = vunpack.i.h.bf16 %v8213_v60  ;;  %v8214_v8 = vunpack.i.l.bf16 %v8213_v60  ;;  %v8199_v60 = vunpack.i.l.bf16 %v12181_v24 }
 0x9c2   :  { %v8205_v55 = vunpack.i.h.bf16 %v8203_v43  ;;  %v8204_v49 = vunpack.i.l.bf16 %v8203_v43 }
 0x9c3   :  { %v3670_v2 = vsel %vm2803_vm10, %v8214_v8, %v8215_v56 }
 0x9c4   :  { %v3669_v41 = vsel %vm2803_vm10, %v8205_v55, %v8214_v8  ;;  %v3667_v26 = vsel %vm2803_vm10, %v8204_v49, %v8154_v15  ;;  %v8218_v0 = vpop.permute.xlu0 %8217  ;;  %v6294_v12 = vpack.c.bf16 %v3670_v2, %v3668_v27  ;;  %v8179_v15 = vunpack.i.l.bf16 %v12179_v42 }
 0x9c5   :  { %v6296_v18 = vpack.c.bf16 %v3669_v41, %v3667_v26  ;;  %v8220_v34 = vunpack.i.h.bf16 %v8218_v0  ;;  %v8219_v11 = vunpack.i.l.bf16 %v8218_v0  ;;  %v12242_v49 = vsel %vm2803_vm10, %v8169_v58, %v8170_v13 }
 0x9c6   :  { %6295 = vmatprep.subr.bf16.mxu0 %v6294_v12  ;;  %v8200_v27 = vunpack.i.h.bf16 %v12181_v24  ;;  %v12254_v41 = vsel %vm2803_vm10, %v8179_v15, %v8180_v3  ;;  %v12257_v26 = vsel %vm2803_vm10, %v8199_v60, %v8179_v15  ;;  %v8194_v2 = vunpack.i.l.bf16 %v12185_v6 }
 0x9c7   :  { %v3861_v16 = vsel %vm2803_vm10, %v8210_v25, %v8219_v11  ;;  %6297 = vmatpush1.bf16.msra.mxu0 %v6296_v18  ;;  %v3862_v29 = vsel %vm2803_vm10, %v8219_v11, %v8220_v34 }
 0x9c8   :  { %v8223_v9 = vpop.permute.xlu0 %8222  ;;  %v6334_v62 = vpack.c.bf16 %v3862_v29, %v3860_v1  ;;  %v6336_v37 = vpack.c.bf16 %v3861_v16, %v3859_v57 }
 0x9c9   :  { %v12195_v17 = vpop.permute.xlu1 %8242  ;;  %v8225_v43 = vunpack.i.h.bf16 %v8223_v9  ;;  %v8224_v56 = vunpack.i.l.bf16 %v8223_v9  ;;  %v12279_v9 = vsel %vm2803_vm10, %v8184_v22, %v8164_v36 }
 0x9ca   :  { %6335 = vmatprep.subr.bf16.mxu1 %v6334_v62  ;;  %v8245_v0 = vunpack.i.h.bf16 %v12195_v17  ;;  %v8244_v12 = vunpack.i.l.bf16 %v12195_v17  ;;  %v8195_v17 = vunpack.i.h.bf16 %v12185_v6 }
 0x9cb   :  { %6337 = vmatpush1.bf16.msra.mxu1 %v6336_v37  ;;  %v12263_v18 = vsel %vm2803_vm10, %v8185_v44, %v8224_v56  ;;  %v3678_v11 = vsel %vm2803_vm10, %v8224_v56, %v8225_v43 }
 0x9cc   :  { %v8228_v45 = vpop.permute.xlu0 %8227  ;;  %v3672_v59 = vsel %vm2803_vm10, %v8244_v12, %v8245_v0  ;;  %v6304_v36 = vpack.c.bf16 %v12263_v18, %v12279_v9 }
 0x9cd   :  { %v12197_v54 = vpop.permute.xlu1 %8247  ;;  %v8230_v42 = vunpack.i.h.bf16 %v8228_v45  ;;  %v8229_v47 = vunpack.i.l.bf16 %v8228_v45  ;;  %v12285_v45 = vsel %vm2803_vm10, %v8194_v2, %v8174_v28 }
 0x9ce   :  { %v8250_v24 = vunpack.i.h.bf16 %v12197_v54  ;;  %v8249_v25 = vunpack.i.l.bf16 %v12197_v54 }
 0x9cf   :  { %v12271_v57 = vsel %vm2803_vm10, %v8190_v48, %v8229_v47  ;;  %v12276_v29 = vsel %vm2803_vm10, %v8229_v47, %v8230_v42 }
 0x9d0   :  { %v12199_v31 = vpop.permute.xlu0 %8232  ;;  %v3864_v58 = vsel %vm2803_vm10, %v8249_v25, %v8250_v24  ;;  %v6342_v6 = vpack.c.bf16 %v12276_v29, %v12242_v49 }
 0x9d1   :  { %v12201_v63 = vpop.permute.xlu1 %8252  ;;  %v8235_v16 = vunpack.i.h.bf16 %v12199_v31  ;;  %v8234_v1 = vunpack.i.l.bf16 %v12199_v31  ;;  %v6302_v31 = vpack.c.bf16 %v3678_v11, %v12234_v21 }
 0x9d2   :  { %v8255_v62 = vunpack.i.h.bf16 %v12201_v63  ;;  %v8254_v37 = vunpack.i.l.bf16 %v12201_v63  ;;  %v6344_v63 = vpack.c.bf16 %v12271_v57, %v12245_v53 }
 0x9d3   :  { %v12297_v3 = vsel %vm2803_vm10, %v8234_v1, %v8235_v16  ;;  %v12300_v15 = vsel %vm2803_vm10, %v8195_v17, %v8234_v1 }
 0x9d4   :  { %v12205_v33 = vpop.permute.xlu0 %8237  ;;  %v3680_v43 = vsel %vm2803_vm10, %v8254_v37, %v8255_v62  ;;  %v6310_v0 = vpack.c.bf16 %v12297_v3, %v12248_v40 }
 0x9d5   :  { %v12203_v19 = vpop.permute.xlu1 %8257  ;;  %v8240_v60 = vunpack.i.h.bf16 %v12205_v33  ;;  %v8239_v21 = vunpack.i.l.bf16 %v12205_v33 }
 0x9d6   :  { %v8260_v47 = vunpack.i.h.bf16 %v12203_v19  ;;  %v8259_v33 = vunpack.i.l.bf16 %v12203_v19 }
 0x9d7   :  { %v12320_v29 = vsel %vm2803_vm10, %v8239_v21, %v8240_v60 }
 0x9d8   :  { %v12209_v10 = vpop.permute.xlu0 %8277  ;;  %v3872_v3 = vsel %vm2803_vm10, %v8259_v33, %v8260_v47  ;;  %v6350_v60 = vpack.c.bf16 %v12320_v29, %v12254_v41 }
 0x9d9   :  { %v12207_v4 = vpop.permute.xlu1 %8262  ;;  %v8279_v16 = vunpack.i.l.bf16 %v12209_v10 }
 0x9da   :  { %v8265_v1 = vunpack.i.h.bf16 %v12207_v4 }
 0x9dd   :  { %v12211_v38 = vpop.permute.xlu1 %8267 }
 0x9de   :  { %v8270_v17 = vunpack.i.h.bf16 %v12211_v38 }
 0x9e0   :  { %v12213_v20 = vpop.permute.xlu0 %8287 }
 0x9e1   :  { %v12215_v46 = vpop.permute.xlu1 %8272 }
 0x9e2   :  { %v8274_v9 = vunpack.i.l.bf16 %v12215_v46 }
 0x9e4   :  { %v12217_v50 = vpop.permute.xlu0 %8302 }
 0x9e5   :  { %v12219_v32 = vpop.permute.xlu1 %8282 }
 0x9e6   :  { %v8284_v47 = vunpack.i.l.bf16 %v12219_v32 }
 0x9e8   :  { %v12225_v23 = vpop.permute.xlu0 %8312 }
 0x9e9   :  { %v8293_v30 = vpop.permute.xlu1 %8292 }
 0x9ea   :  { %v8294_v54 = vunpack.i.l.bf16 %v8293_v30  ;;  %v8295_v35 = vunpack.i.h.bf16 %v8293_v30 }
 0x9ec   :  { %v12237_v8 = vpop.permute.xlu0 %8322  ;;  %v3671_v56 = vsel %vm2803_vm10, %v8294_v54, %v8244_v12  ;;  %v12315_v12 = vsel %vm2803_vm10, %v8200_v27, %v8239_v21  ;;  %v8264_v27 = vunpack.i.l.bf16 %v12207_v4  ;;  %v6312_v4 = vpack.c.bf16 %v12300_v15, %v12285_v45 }
 0x9ed   :  { %v12239_v55 = vpop.permute.xlu1 %8297  ;;  %v8280_v21 = vunpack.i.h.bf16 %v12209_v10 }
 0x9ee   :  { %v8299_v10 = vunpack.i.l.bf16 %v12239_v55 }
 0x9f0   :  { %v8343_v61 = vpop.permute.xlu0 %8342 }
 0x9f1   :  { %v12267_v34 = vpop.permute.xlu1 %8307  ;;  %v8344_v49 = vunpack.i.l.bf16 %v8343_v61  ;;  %v8345_v18 = vunpack.i.h.bf16 %v8343_v61 }
 0x9f3   :  { %v3863_v40 = vsel %vm2803_vm10, %v8344_v49, %v8249_v25 }
 0x9f4   :  { %v8348_v13 = vpop.permute.xlu0 %8347 }
 0x9f5   :  { %v8350_v7 = vunpack.i.h.bf16 %v8348_v13  ;;  %v8349_v28 = vunpack.i.l.bf16 %v8348_v13  ;;  %v12304_v48 = vpop.permute.xlu1 %8317 }
 0x9f6   :  { %v8320_v53 = vunpack.i.h.bf16 %v12304_v48  ;;  %v8319_v57 = vunpack.i.l.bf16 %v12304_v48 }
 0x9f7   :  { %v3673_v30 = vsel %vm2803_vm10, %v8295_v35, %v8349_v28  ;;  %v3674_v42 = vsel %vm2803_vm10, %v8349_v28, %v8350_v7  ;;  %v8269_v35 = vunpack.i.l.bf16 %v12211_v38  ;;  %v8275_v7 = vunpack.i.h.bf16 %v12215_v46 }
 0x9f8   :  { %v8353_v44 = vpop.permute.xlu0 %8352  ;;  %v6298_v22 = vpack.c.bf16 %v3674_v42, %v3672_v59  ;;  %v6300_v2 = vpack.c.bf16 %v3673_v30, %v3671_v56  ;;  %v3871_v56 = vsel %vm2803_vm10, %v8279_v16, %v8259_v33  ;;  %v3688_v42 = vsel %vm2803_vm10, %v8264_v27, %v8265_v1 }
 0x9f9   :  { %v8355_v24 = vunpack.i.h.bf16 %v8353_v44  ;;  %v8354_v11 = vunpack.i.l.bf16 %v8353_v44  ;;  %v12328_v62 = vpop.permute.xlu1 %8327  ;;  %v8300_v44 = vunpack.i.h.bf16 %v12239_v55  ;;  %v8285_v55 = vunpack.i.h.bf16 %v12219_v32 }
 0x9fa   :  { %6299 = vmatprep.subr.bf16.mxu0 %v6298_v22  ;;  %v8314_v1 = vunpack.i.l.bf16 %v12225_v23  ;;  %v8310_v32 = vunpack.i.h.bf16 %v12267_v34 }
 0x9fb   :  { %v3865_v19 = vsel %vm2803_vm10, %v8345_v18, %v8354_v11  ;;  %6301 = vmatpush1.bf16.msra.mxu0 %v6300_v2  ;;  %v3866_v61 = vsel %vm2803_vm10, %v8354_v11, %v8355_v24  ;;  %v8304_v18 = vunpack.i.l.bf16 %v12217_v50 }
 0x9fc   :  { %v8358_v54 = vpop.permute.xlu0 %8357  ;;  %6303 = vmatprep.subr.bf16.mxu0 %v6302_v31  ;;  %v6338_v59 = vpack.c.bf16 %v3866_v61, %v3864_v58  ;;  %v6340_v13 = vpack.c.bf16 %v3865_v19, %v3863_v40  ;;  %v6352_v31 = vpack.c.bf16 %v12315_v12, %v12257_v26  ;;  %v3679_v58 = vsel %vm2803_vm10, %v8274_v9, %v8254_v37 }
 0x9fd   :  { %v8360_v25 = vunpack.i.h.bf16 %v8358_v54  ;;  %v8359_v28 = vunpack.i.l.bf16 %v8358_v54  ;;  %v12346_v37 = vsel %vm2803_vm10, %v8269_v35, %v8270_v17  ;;  %v12352_v22 = vpop.permute.xlu1 %8332  ;;  %v3687_v40 = vsel %vm2803_vm10, %v8284_v47, %v8264_v27 }
 0x9fe   :  { %6339 = vmatprep.subr.bf16.mxu1 %v6338_v59  ;;  %v8335_v12 = vunpack.i.h.bf16 %v12352_v22 }
 0x9ff   :  { %v3681_v38 = vsel %vm2803_vm10, %v8275_v7, %v8359_v28  ;;  %6305 = vmatpush1.bf16.msra.mxu0 %v6304_v36  ;;  %6341 = vmatpush1.bf16.msra.mxu1 %v6340_v13  ;;  %v3682_v46 = vsel %vm2803_vm10, %v8359_v28, %v8360_v25  ;;  %v8290_v36 = vunpack.i.h.bf16 %v12213_v20  ;;  %v3693_v25 = vsel %vm2803_vm10, %v8320_v53, %v8304_v18  ;;  %v3289_v53 = vld [vmem:[%s14039_s11 + $0x10] sm:$0xff] }
 0xa00   :  { %v8363_v49 = vpop.permute.xlu0 %8362  ;;  %6343 = vmatprep.subr.bf16.mxu1 %v6342_v6  ;;  %v6306_v45 = vpack.c.bf16 %v3682_v46, %v3680_v43  ;;  %v6308_v15 = vpack.c.bf16 %v3681_v38, %v3679_v58  ;;  %v8289_v6 = vunpack.i.l.bf16 %v12213_v20  ;;  %v8305_v43 = vunpack.i.h.bf16 %v12217_v50 }
 0xa01   :  { %v8365_v41 = vunpack.i.h.bf16 %v8363_v49  ;;  %v8364_v30 = vunpack.i.l.bf16 %v8363_v49  ;;  %v8315_v20 = vunpack.i.h.bf16 %v12225_v23  ;;  %v3692_v50 = vsel %vm2803_vm10, %v8299_v10, %v8300_v44  ;;  %v8338_v61 = vpop.permute.xlu1 %8337 }
 0xa02   :  { %6307 = vmatprep.subr.bf16.mxu0 %v6306_v45  ;;  %v3879_v19 = vsel %vm2803_vm10, %v8289_v6, %v8269_v35  ;;  %v3694_v54 = vsel %vm2803_vm10, %v8304_v18, %v8305_v43  ;;  %v3691_v28 = vsel %vm2803_vm10, %v8319_v57, %v8299_v10  ;;  %v8329_v35 = vunpack.i.l.bf16 %v12328_v62 }
 0xa03   :  { %v3873_v2 = vsel %vm2803_vm10, %v8280_v21, %v8364_v30  ;;  %6309 = vmatpush1.bf16.msra.mxu0 %v6308_v15  ;;  %6345 = vmatpush1.bf16.msra.mxu1 %v6344_v63  ;;  %v3874_v33 = vsel %vm2803_vm10, %v8364_v30, %v8365_v41  ;;  %v8309_v63 = vunpack.i.l.bf16 %v12267_v34  ;;  %v6318_v7 = vpack.c.bf16 %v3694_v54, %v3692_v50  ;;  %v3292_v50 = vld [vmem:[%s14039_s11 + $0x28] sm:$0xff] }
 0xa04   :  { %v8368_v24 = vpop.permute.xlu0 %8367  ;;  %6311 = vmatprep.subr.bf16.mxu0 %v6310_v0  ;;  %v6346_v11 = vpack.c.bf16 %v3874_v33, %v3872_v3  ;;  %v6348_v16 = vpack.c.bf16 %v3873_v2, %v3871_v56  ;;  %v3886_v34 = vsel %vm2803_vm10, %v8314_v1, %v8315_v20  ;;  %v8330_v3 = vunpack.i.h.bf16 %v12328_v62  ;;  %v3290_v20 = vld [vmem:[%s14039_s11 + $0x18] sm:$0xff] }
 0xa05   :  { %v8370_v29 = vunpack.i.h.bf16 %v8368_v24  ;;  %v8369_v9 = vunpack.i.l.bf16 %v8368_v24  ;;  %v3884_v38 = vsel %vm2803_vm10, %v8309_v63, %v8310_v32  ;;  %v8325_v46 = vunpack.i.h.bf16 %v12237_v8  ;;  %v3291_v32 = vld [vmem:[%s14039_s11 + $0x20] sm:$0xff] }
 0xa06   :  { %6347 = vmatprep.subr.bf16.mxu1 %v6346_v11  ;;  %v8324_v21 = vunpack.i.l.bf16 %v12237_v8  ;;  %v8340_v45 = vunpack.i.h.bf16 %v8338_v61  ;;  %v6320_v30 = vpack.c.bf16 %v3693_v25, %v3691_v28 }
 0xa07   :  { %v3689_v0 = vsel %vm2803_vm10, %v8285_v55, %v8369_v9  ;;  %6313 = vmatpush1.bf16.msra.mxu0 %v6312_v4  ;;  %6349 = vmatpush1.bf16.msra.mxu1 %v6348_v16  ;;  %v3690_v23 = vsel %vm2803_vm10, %v8369_v9, %v8370_v29  ;;  %v8339_v4 = vunpack.i.l.bf16 %v8338_v61  ;;  %v3885_v44 = vsel %vm2803_vm10, %v8325_v46, %v8314_v1 }
 0xa08   :  { %v8373_v27 = vpop.permute.xlu0 %8372  ;;  %6351 = vmatprep.subr.bf16.mxu1 %v6350_v60  ;;  %v6314_v17 = vpack.c.bf16 %v3690_v23, %v3688_v42  ;;  %v6316_v48 = vpack.c.bf16 %v3689_v0, %v3687_v40  ;;  %v3883_v26 = vsel %vm2803_vm10, %v8324_v21, %v8309_v63  ;;  %v3696_v42 = vsel %vm2803_vm10, %v8329_v35, %v8330_v3  ;;  %v3294_v63 = vld [vmem:[%s14039_s11 + $0x38] sm:$0xff]  ;;  %v3293_v0 = vld [vmem:[%s14039_s11 + $0x30] sm:$0xff] }
 0xa09   :  { %v8375_v59 = vunpack.i.h.bf16 %v8373_v27  ;;  %v8374_v13 = vunpack.i.l.bf16 %v8373_v27  ;;  %v3695_v8 = vsel %vm2803_vm10, %v8339_v4, %v8329_v35  ;;  %v6360_v18 = vpack.c.bf16 %v3885_v44, %v3883_v26  ;;  %v9289_v4 = vld [vmem:[%s14182_s18 + $0x10] sm:$0xff]  ;;  %v9291_v26 = vld [vmem:[%s14182_s18 + $0x48] sm:$0xff] }
 0xa0a   :  { %6315 = vmatprep.subr.bf16.mxu0 %v6314_v17 }
 0xa0b   :  { %v3881_v60 = vsel %vm2803_vm10, %v8290_v36, %v8374_v13  ;;  %6317 = vmatpush1.bf16.msra.mxu0 %v6316_v48  ;;  %6353 = vmatpush1.bf16.msra.mxu1 %v6352_v31  ;;  %v3882_v58 = vsel %vm2803_vm10, %v8374_v13, %v8375_v59  ;;  %v6358_v31 = vpack.c.bf16 %v3886_v34, %v3884_v38  ;;  %v8334_v36 = vunpack.i.l.bf16 %v12352_v22  ;;  %v3287_v22 = vld [vmem:[%s14039_s11] sm:$0xff]  ;;  %v9288_v13 = vld [vmem:[%s14182_s18 + $0x8] sm:$0xff] }
 0xa0c   :  { %v8378_v56 = vpop.permute.xlu0 %8377  ;;  %6319 = vmatprep.subr.bf16.mxu0 %v6318_v7  ;;  %v6354_v62 = vpack.c.bf16 %v3882_v58, %v12346_v37  ;;  %v6356_v49 = vpack.c.bf16 %v3881_v60, %v3879_v19  ;;  %v9287_v48 = vld [vmem:[%s14182_s18] sm:$0xff] }
 0xa0d   :  { %v8380_v15 = vunpack.i.h.bf16 %v8378_v56  ;;  %v8379_v41 = vunpack.i.l.bf16 %v8378_v56  ;;  %v3888_v55 = vsel %vm2803_vm10, %v8334_v36, %v8335_v12 }
 0xa0e   :  { %6355 = vmatprep.subr.bf16.mxu1 %v6354_v62 }
 0xa0f   :  { %v3697_v47 = vsel %vm2803_vm10, %v8340_v45, %v8379_v41  ;;  %6321 = vmatpush1.bf16.msra.mxu0 %v6320_v30  ;;  %6357 = vmatpush1.bf16.msra.mxu1 %v6356_v49  ;;  %v3698_v37 = vsel %vm2803_vm10, %v8379_v41, %v8380_v15  ;;  %v9290_v41 = vld [vmem:[%s14182_s18 + $0x40] sm:$0xff] }
 0xa10   :  { %v8383_v10 = vpop.permute.xlu0 %8382  ;;  %6359 = vmatprep.subr.bf16.mxu1 %v6358_v31  ;;  %v6322_v6 = vpack.c.bf16 %v3698_v37, %v3696_v42  ;;  %v6324_v43 = vpack.c.bf16 %v3697_v47, %v3695_v8 }
 0xa11   :  { %v8385_v2 = vunpack.i.h.bf16 %v8383_v10  ;;  %v8384_v33 = vunpack.i.l.bf16 %v8383_v10 }
 0xa12   :  { %6323 = vmatprep.subr.bf16.mxu0 %v6322_v6  ;;  %v3934_v23 = vpop.permute.xlu1 %3933 }
 0xa13   :  { %6325 = vmatpush1.bf16.msra.mxu0 %v6324_v43  ;;  %6361 = vmatpush1.bf16.msra.mxu1 %v6360_v18  ;;  %v3890_v24 = vsel %vm2803_vm10, %v8384_v33, %v8385_v2 }
 0xa14   :  { %v8388_v11 = vpop.permute.xlu0 %8387  ;;  %v6362_v16 = vpack.c.bf16 %v3890_v24, %v3888_v55  ;;  %v9293_v55 = vld [vmem:[%s14182_s18 + $0x18] sm:$0xff] }
 0xa15   :  { %v8390_v1 = vunpack.i.h.bf16 %v8388_v11  ;;  %v8389_v29 = vunpack.i.l.bf16 %v8388_v11 }
 0xa16   :  { %4028 = vmatmul.mubr.f32.vlgmr.msra.gmra.mrb[40].mxu0 %v3287_v22  ;;  %6363 = vmatprep.subr.bf16.mxu1 %v6362_v16 }
 0xa17   :  { %v3887_v9 = vsel %vm2803_vm10, %v8389_v29, %v8334_v36  ;;  %v3889_v40 = vsel %vm2803_vm10, %v8390_v1, %v8384_v33  ;;  %5991 = vmatprep.mubr.msk.f32.mxu0 %vm3096_vm2, %v3290_v20  ;;  %v9292_v33 = vld [vmem:[%s14182_s18 + $0x50] sm:$0xff] }
 0xa18   :  { %v6364_v57 = vpack.c.bf16 %v3889_v40, %v3887_v9 }
 0xa1a   :  { %4034 = vmatmul.mubr.f32.gmra.mrb[42].mxu0 %v3289_v53  ;;  %6365 = vmatpush1.bf16.msra.mxu1 %v6364_v57 }
 0xa1b   :  { %5992 = vmatprep.mubr.msk.f32.mxu0 %vm3096_vm2, %v3292_v50 }
 0xa1d   :  { %4117 = vmatmul.mubr.f32.vlgmr.msra.gmra.mrb[40].mxu1 %v3287_v22 }
 0xa1e   :  { %4040 = vmatmul.mubr.f32.gmra.mrb[44].mxu0 %v3291_v32  ;;  %5995 = vmatprep.mubr.msk.f32.mxu1 %vm3096_vm2, %v3290_v20 }
 0xa1f   :  { %5993 = vmatprep.mubr.msk.f32.mxu0 %vm3096_vm2, %v3294_v63 }
 0xa21   :  { %4123 = vmatmul.mubr.f32.gmra.mrb[42].mxu1 %v3289_v53 }
 0xa22   :  { %4046 = vmatmul.mubr.f32.gmra.mrb[46].mxu0 %v3293_v0  ;;  %5996 = vmatprep.mubr.msk.f32.mxu1 %vm3096_vm2, %v3292_v50  ;;  %v9294_v50 = vld [vmem:[%s14182_s18 + $0x58] sm:$0xff] }
 0xa25   :  { %4129 = vmatmul.mubr.f32.gmra.mrb[44].mxu1 %v3291_v32  ;;  %v3939_v59 = vpop.permute.xlu0 %3938 }
 0xa26   :  { %5997 = vmatprep.mubr.msk.f32.mxu1 %vm3096_vm2, %v3294_v63 }
 0xa29   :  { %4135 = vmatmul.mubr.f32.gmra.mrb[46].mxu1 %v3293_v0 }
 0xae9   :  { %v4029_v19 = vpop.f32.mrb[40].mxu0 }
 0xaea   :  { %v4030_v61 = vadd.f32 %v4029_v19, %v3934_v23  ;;  %v4031_v27 = vpop.f32.mrb[41].mxu0 }
 0xaeb   :  { %v4032_v17 = vadd.f32 %v4031_v27, %v3934_v23 }
 0xaec   :  { %v12431_v54 = vadd.f32 %v9287_v48, %v4030_v61  ;;  %v3944_v48 = vpop.permute.xlu1 %3943 }
 0xaed   :  { %v12436_v7 = vadd.f32 %v9288_v13, %v4032_v17  ;;  %v4035_v34 = vpop.f32.mrb[42].mxu0  ;;  %v3949_v13 = vpop.permute.xlu0 %3948 }
 0xaee   :  { %vm4169_vm7 = vcmp.gt.f32.partialorder %v12431_v54, 0.0  ;;  %v4185_v25 = vmul.f32 0.2, %v12431_v54  ;;  %v4036_v28 = vadd.f32 %v4035_v34, %v3939_v59  ;;  %v4037_v3 = vpop.f32.mrb[43].mxu0 }
 0xaef   :  { %vm4170_vm8 = vcmp.gt.f32.partialorder %v12436_v7, 0.0  ;;  %v4186_v35 = vmul.f32 0.2, %v12436_v7  ;;  %v4038_v47 = vadd.f32 %v4037_v3, %v3939_v59 }
 0xaf0   :  { %v12445_v60 = vadd.f32 %v9289_v4, %v4036_v28  ;;  %v4118_v58 = vpop.f32.mrb[40].mxu1  ;;  %v4201_v38 = vsel %vm4169_vm7, %v12431_v54, %v4185_v25  ;;  %v9295_v28 = vld [vmem:[%s14182_s18 + $0x20] sm:$0xff]  ;;  %v9296_v4 = vld [vmem:[%s14182_s18 + $0x30] sm:$0xff] }
 0xaf1   :  { %v4202_v46 = vsel %vm4170_vm8, %v12436_v7, %v4186_v35  ;;  %v4119_v21 = vadd.f32 %v4118_v58, %v3934_v23  ;;  %v12449_v56 = vpop.f32.mrb[44].mxu0  ;;  %v4120_v62 = vpop.f32.mrb[41].mxu1  ;;  %v12483_v24 = vadd.f32 %v9293_v55, %v4038_v47 }
 0xaf2   :  { %v4121_v49 = vadd.f32 %v4120_v62, %v3934_v23  ;;  %v12451_v45 = vpop.f32.mrb[45].mxu0  ;;  %v4189_v15 = vmul.f32 0.2, %v12445_v60  ;;  %vm4173_vm3 = vcmp.gt.f32.partialorder %v12445_v60, 0.0  ;;  %v8416_v42 = vpack.i.bf16 %v4202_v46, %v4201_v38 }
 0xaf3   :  { %v12458_v30 = vadd.f32 %v9290_v41, %v4119_v21  ;;  %v4190_v53 = vmul.f32 0.2, %v12483_v24  ;;  %vm4174_vm4 = vcmp.gt.f32.partialorder %v12483_v24, 0.0  ;;  %v4044_v35 = vadd.f32 %v12451_v45, %v3944_v48  ;;  %v9297_v21 = vld [vmem:[%s14182_s18 + $0x28] sm:$0xff]  ;;  %v9298_v45 = vld [vmem:[%s14182_s18 + $0x70] sm:$0xff] }
 0xaf4   :  { %v12463_v12 = vadd.f32 %v9291_v26, %v4121_v49  ;;  %v4124_v31 = vpop.f32.mrb[42].mxu1  ;;  %8417 = vrot.lane.b32.xlu0 %v8416_v42, %s9462_s10  ;;  %v4205_v37 = vsel %vm4173_vm3, %v12445_v60, %v4189_v15  ;;  %8392 = vrot.lane.b32.xlu1 %v8416_v42, %s9457_s20 }
 0xaf5   :  { %v4047_v36 = vpop.f32.mrb[46].mxu0  ;;  %v4126_v8 = vpop.f32.mrb[43].mxu1  ;;  %v4125_v44 = vadd.f32 %v4124_v31, %v3939_v59  ;;  %v4187_v6 = vmul.f32 0.2, %v12458_v30  ;;  %vm4171_vm11 = vcmp.gt.f32.partialorder %v12458_v30, 0.0  ;;  %v8431_v16 = vpack.i.bf16 %v4205_v37, %v14342_v51 }
 0xaf6   :  { %14361 = vst [vmem:[#allocation34_spill] sm:$0xff] %v12463_v12  ;;  %v12467_v10 = vpop.f32.mrb[47].mxu0  ;;  %v4188_v43 = vmul.f32 0.2, %v12463_v12  ;;  %vm4172_vm14 = vcmp.gt.f32.partialorder %v12463_v12, 0.0  ;;  %v4127_v11 = vadd.f32 %v4126_v8, %v3939_v59  ;;  %v4206_v23 = vsel %vm4174_vm4, %v12483_v24, %v4190_v53 }
 0xaf7   :  { %v12478_v18 = vadd.f32 %v9292_v33, %v4125_v44  ;;  %v4203_v1 = vsel %vm4171_vm11, %v12458_v30, %v4187_v6  ;;  %v8451_v61 = vpack.i.bf16 %v4206_v23, %v4205_v37  ;;  %v4042_v59 = vadd.f32 %v12449_v56, %v3944_v48  ;;  %v9300_v6 = vld [vmem:[%s14182_s18 + $0x60] sm:$0xff] }
 0xaf8   :  { %v12471_v2 = vpop.f32.mrb[44].mxu1  ;;  %v4204_v29 = vsel %vm4172_vm14, %v12463_v12, %v4188_v43  ;;  %8432 = vrot.lane.b32.xlu0 %v8431_v16, %s9463_s17  ;;  %v12499_v32 = vadd.f32 %v9294_v50, %v4127_v11  ;;  %v8476_v34 = vpack.i.bf16 %v4203_v1, %v4206_v23  ;;  %v4048_v25 = vadd.f32 %v4047_v36, %v3949_v13  ;;  %v9302_v50 = vld [vmem:[%s14182_s18 + $0x78] sm:$0xff] }
 0xaf9   :  { %14362 = vst [vmem:[#allocation38_spill] sm:$0xff] %v12478_v18  ;;  %v4132_v22 = vpop.f32.mrb[45].mxu1  ;;  %vm4175_vm15 = vcmp.gt.f32.partialorder %v12478_v18, 0.0  ;;  %v4191_v20 = vmul.f32 0.2, %v12478_v18  ;;  %v8396_v63 = vpack.i.bf16 %v4204_v29, %v4203_v1  ;;  %v12522_v3 = vadd.f32 %v9295_v28, %v4042_v59 }
 0xafa   :  { %14363 = vst [vmem:[#allocation44_spill] sm:$0xff] %v12499_v32  ;;  %v4192_v19 = vmul.f32 0.2, %v12499_v32  ;;  %vm4176_vm5 = vcmp.gt.f32.partialorder %v12499_v32, 0.0  ;;  %v12529_v58 = vadd.f32 %v9296_v4, %v4048_v25  ;;  %v12536_v56 = vadd.f32 %v9297_v21, %v4044_v35 }
 0xafb   :  { %v4207_v57 = vsel %vm4175_vm15, %v12478_v18, %v4191_v20  ;;  %8397 = vrot.lane.b32.xlu1 %v8396_v63, %s9457_s20  ;;  %v4193_v46 = vmul.f32 0.2, %v12522_v3  ;;  %v4133_v62 = vadd.f32 %v4132_v22, %v3944_v48  ;;  %vm4177_vm6 = vcmp.gt.f32.partialorder %v12522_v3, 0.0 }
 0xafc   :  { %v4136_v9 = vpop.f32.mrb[46].mxu1  ;;  %v8436_v0 = vpack.i.bf16 %v4207_v57, %v4204_v29  ;;  %v4208_v27 = vsel %vm4176_vm5, %v12499_v32, %v4192_v19  ;;  %14364 = vst [vmem:[#allocation19_spill] sm:$0xff] %v12529_v58  ;;  %14365 = vst [vmem:[#allocation17_spill] sm:$0xff] %v12536_v56  ;;  %v4197_v49 = vmul.f32 0.2, %v12529_v58  ;;  %vm4181_vm7 = vcmp.gt.f32.partialorder %v12529_v58, 0.0 }
 0xafd   :  { %v12492_v40 = vpop.f32.mrb[47].mxu1  ;;  %v8456_v17 = vpack.i.bf16 %v4208_v27, %v4207_v57  ;;  %v4137_v38 = vadd.f32 %v4136_v9, %v3949_v13  ;;  %v4209_v41 = vsel %vm4177_vm6, %v12522_v3, %v4193_v46  ;;  %v4194_v26 = vmul.f32 0.2, %v12536_v56  ;;  %v9301_v29 = vld [vmem:[%s14182_s18 + $0x38] sm:$0xff] }
 0xafe   :  { %8437 = vrot.lane.b32.xlu0 %v8436_v0, %s9463_s17  ;;  %v4131_v31 = vadd.f32 %v12471_v2, %v3944_v48  ;;  %vm4178_vm8 = vcmp.gt.f32.partialorder %v12536_v56, 0.0  ;;  %v8496_v8 = vpack.i.bf16 %v4209_v41, %v4208_v27  ;;  %v4213_v47 = vsel %vm4181_vm7, %v12529_v58, %v4197_v49 }
 0xaff   :  { %8402 = vrot.lane.b32.xlu1 %v8416_v42, %s9458_s30  ;;  %v12544_v15 = vadd.f32 %v9298_v45, %v4137_v38  ;;  %v4210_v44 = vsel %vm4178_vm8, %v12536_v56, %v4194_v26  ;;  %v4050_v22 = vadd.f32 %v12467_v10, %v3949_v13  ;;  %v8501_v11 = vpack.i.bf16 %v4209_v41, %v14342_v51 }
 0xb00   :  { %v12566_v43 = vadd.f32 %v9300_v6, %v4131_v31  ;;  %v8526_v33 = vpack.i.bf16 %v4213_v47, %v4210_v44  ;;  %v4139_v9 = vadd.f32 %v12492_v40, %v3949_v13  ;;  %v8506_v51 = vpack.i.bf16 %v4210_v44, %v4209_v41 }
 0xb01   :  { %14366 = vst [vmem:[#allocation37_spill] sm:$0xff] %v12544_v15  ;;  %v4199_v37 = vmul.f32 0.2, %v12544_v15  ;;  %vm4183_vm3 = vcmp.gt.f32.partialorder %v12544_v15, 0.0  ;;  %v12582_v10 = vadd.f32 %v9301_v29, %v4050_v22  ;;  %vm4537_vm5 = vcmask 48128  }
 0xb02   :  { %8452 = vrot.lane.b32.xlu0 %v8451_v61, %s9457_s20  ;;  %14368 = vst [vmem:[#allocation16_spill] sm:$0xff] %v12566_v43  ;;  %vm4179_vm14 = vcmp.gt.f32.partialorder %v12566_v43, 0.0  ;;  %vm4287_vm6 = vcmask 973824   ;;  %vm4314_vm7 = vcmask 949248  }
 0xb03   :  { %8407 = vrot.lane.b32.xlu1 %v8396_v63, %s9458_s30  ;;  %v4215_v55 = vsel %vm4183_vm3, %v12544_v15, %v4199_v37  ;;  %14369 = vst [vmem:[#allocation21_spill] sm:$0xff] %v12582_v10  ;;  %v4198_v57 = vmul.f32 0.2, %v12582_v10  ;;  %vm4182_vm15 = vcmp.gt.f32.partialorder %v12582_v10, 0.0 }
 0xb06   :  { %8457 = vrot.lane.b32.xlu0 %v8456_v17, %s9457_s20 }
 0xb07   :  { %8412 = vrot.lane.b32.xlu1 %v8416_v42, %s9463_s17 }
 0xb0a   :  { %8462 = vrot.lane.b32.xlu0 %v8451_v61, %s9458_s30 }
 0xb0b   :  { %8422 = vrot.lane.b32.xlu1 %v8416_v42, %s9464_s29  ;;  %v9299_v42 = vld [vmem:[%s14182_s18 + $0x68] sm:$0xff] }
 0xb0c   :  { %v12554_v36 = vadd.f32 %v9299_v42, %v4133_v62 }
 0xb0e   :  { %8467 = vrot.lane.b32.xlu0 %v8456_v17, %s9458_s30  ;;  %14367 = vst [vmem:[#allocation18_spill] sm:$0xff] %v12554_v36  ;;  %v4196_v2 = vmul.f32 0.2, %v12554_v36  ;;  %vm4180_vm11 = vcmp.gt.f32.partialorder %v12554_v36, 0.0 }
 0xb0f   :  { %8427 = vrot.lane.b32.xlu1 %v8396_v63, %s9464_s29  ;;  %v12592_v63 = vadd.f32 %v9302_v50, %v4139_v9 }
 0xb10   :  { %v4212_v20 = vsel %vm4180_vm11, %v12554_v36, %v4196_v2 }
 0xb11   :  { %v8531_v1 = vpack.i.bf16 %v4215_v55, %v4212_v20  ;;  %14370 = vst [vmem:[#allocation25_spill] sm:$0xff] %v12592_v63  ;;  %v4200_v23 = vmul.f32 0.2, %v12592_v63  ;;  %vm4184_vm4 = vcmp.gt.f32.partialorder %v12592_v63, 0.0 }
 0xb12   :  { %8477 = vrot.lane.b32.xlu0 %v8476_v34, %s9462_s10 }
 0xb13   :  { %8442 = vrot.lane.b32.xlu1 %v8431_v16, %s9462_s10  ;;  %v4195_v16 = vmul.f32 0.2, %v12566_v43 }
 0xb15   :  { %v4211_v53 = vsel %vm4179_vm14, %v12566_v43, %v4195_v16 }
 0xb16   :  { %8482 = vrot.lane.b32.xlu0 %v8451_v61, %s9464_s29  ;;  %v8511_v40 = vpack.i.bf16 %v4212_v20, %v4211_v53  ;;  %v4216_v61 = vsel %vm4184_vm4, %v12592_v63, %v4200_v23 }
 0xb17   :  { %8447 = vrot.lane.b32.xlu1 %v8436_v0, %s9462_s10  ;;  %v4214_v0 = vsel %vm4182_vm15, %v12582_v10, %v4198_v57  ;;  %v8561_v27 = vpack.i.bf16 %v4216_v61, %v4215_v55 }
 0xb18   :  { %v8556_v19 = vpack.i.bf16 %v4214_v0, %v4213_v47 }
 0xb1a   :  { %8487 = vrot.lane.b32.xlu0 %v8456_v17, %s9464_s29  ;;  %v8576_v17 = vpack.i.bf16 %v4211_v53, %v4214_v0 }
 0xb1b   :  { %8472 = vrot.lane.b32.xlu1 %v8476_v34, %s9463_s17 }
 0xb1e   :  { %8497 = vrot.lane.b32.xlu0 %v8496_v8, %s9462_s10 }
 0xb1f   :  { %8492 = vrot.lane.b32.xlu1 %v8496_v8, %s9463_s17 }
 0xb22   :  { %8527 = vrot.lane.b32.xlu0 %v8526_v33, %s9463_s17 }
 0xb23   :  { %8502 = vrot.lane.b32.xlu1 %v8501_v11, %s9464_s29 }
 0xb26   :  { %8532 = vrot.lane.b32.xlu0 %v8531_v1, %s9463_s17 }
 0xb27   :  { %8507 = vrot.lane.b32.xlu1 %v8506_v51, %s9457_s20 }
 0xb2a   :  { %8547 = vrot.lane.b32.xlu0 %v8526_v33, %s9464_s29 }
 0xb2b   :  { %8512 = vrot.lane.b32.xlu1 %v8511_v40, %s9457_s20 }
 0xb2e   :  { %8552 = vrot.lane.b32.xlu0 %v8531_v1, %s9464_s29 }
 0xb2f   :  { %8517 = vrot.lane.b32.xlu1 %v8506_v51, %s9458_s30 }
 0xb32   :  { %8557 = vrot.lane.b32.xlu0 %v8556_v19, %s9457_s20 }
 0xb33   :  { %8522 = vrot.lane.b32.xlu1 %v8511_v40, %s9458_s30 }
 0xb36   :  { %8562 = vrot.lane.b32.xlu0 %v8561_v27, %s9457_s20 }
 0xb37   :  { %8537 = vrot.lane.b32.xlu1 %v8526_v33, %s9462_s10 }
 0xb3a   :  { %8567 = vrot.lane.b32.xlu0 %v8556_v19, %s9458_s30 }
 0xb3b   :  { %8542 = vrot.lane.b32.xlu1 %v8531_v1, %s9462_s10 }
 0xb3e   :  { %8572 = vrot.lane.b32.xlu0 %v8561_v27, %s9458_s30 }
 0xb3f   :  { %8577 = vrot.lane.b32.xlu1 %v8576_v17, %s9463_s17 }
 0xb42   :  { %8582 = vrot.lane.b32.xlu0 %v8576_v17, %s9462_s10 }
 0xb43   :  { %4389 = vrot.lane.b32.xlu1 %v4216_v61, %s9463_s17 }
 0xb46   :  { %4413 = vrot.lane.b32.xlu0 %v4216_v61, %s9462_s10 }
 0xb47   :  { %8587 = vrot.lane.b32.xlu1 %v8576_v17, %s9464_s29 }
 0xb66   :  { %v12615_v48 = vpop.permute.xlu0 %8417  ;;  %v12617_v59 = vpop.permute.xlu1 %8392 }
 0xb67   :  { %v8395_v13 = vunpack.i.h.bf16 %v12617_v59  ;;  %v8394_v34 = vunpack.i.l.bf16 %v12617_v59 }
 0xb69   :  { %v4242_v25 = vsel %vm1435_vm12, %v8394_v34, %v8395_v13  ;;  %v4241_v44 = vsel %vm1435_vm12, %v14358_v52, %v8394_v34 }
 0xb6a   :  { %v8591_v28 = vpack.i.bf16 %v4242_v25, %v4216_v61  ;;  %v12624_v35 = vpop.permute.xlu0 %8432 }
 0xb6c   :  { %8592 = vrot.lane.b32.xlu1 %v8591_v28, %s9464_s29 }
 0xb6d   :  { %v12627_v4 = vpop.permute.xlu1 %8397 }
 0xb6e   :  { %v14154_v46 = vunpack.i.h.bf16 %v12627_v4  ;;  %v8399_v21 = vunpack.i.l.bf16 %v12627_v4 }
 0xb70   :  { %v12629_v38 = vpop.permute.xlu0 %8437  ;;  %v4348_v41 = vsel %vm1435_vm12, %v8399_v21, %v14154_v46 }
 0xb71   :  { %v12633_v62 = vpop.permute.xlu1 %8402 }
 0xb72   :  { %v14142_v9 = vunpack.i.l.bf16 %v12633_v62 }
 0xb74   :  { %v12635_v49 = vpop.permute.xlu0 %8452 }
 0xb75   :  { %v8455_v45 = vunpack.i.h.bf16 %v12635_v49  ;;  %v12643_v26 = vpop.permute.xlu1 %8407 }
 0xb76   :  { %v14143_v47 = vunpack.i.h.bf16 %v12643_v26  ;;  %v8409_v37 = vunpack.i.l.bf16 %v12643_v26 }
 0xb77   :  { %v8611_v31 = vpack.i.bf16 %v4348_v41, %v8455_v45 }
 0xb78   :  { %v12647_v42 = vpop.permute.xlu0 %8457  ;;  %v4371_v11 = vsel %vm1458_vm13, %v8409_v37, %v14143_v47 }
 0xb79   :  { %v14156_v8 = vunpack.i.h.bf16 %v12647_v42  ;;  %8612 = vrot.lane.b32.xlu1 %v8611_v31, %s9464_s29  ;;  %v12655_v6 = vpop.permute.xlu1 %8412 }
 0xb7b   :  { %v8616_v2 = vpack.i.bf16 %v4241_v44, %v14156_v8 }
 0xb7c   :  { %v12659_v33 = vpop.permute.xlu0 %8462 }
 0xb7d   :  { %v14150_v22 = vunpack.i.h.bf16 %v12659_v33  ;;  %v14149_v55 = vunpack.i.l.bf16 %v12659_v33  ;;  %8617 = vrot.lane.b32.xlu1 %v8616_v2, %s9464_s29  ;;  %v12667_v16 = vpop.permute.xlu1 %8422 }
 0xb7e   :  { %v8425_v0 = vunpack.i.h.bf16 %v12667_v16  ;;  %v8424_v23 = vunpack.i.l.bf16 %v12667_v16  ;;  %v12704_v16 = vunpack.i.l.bf16 %v12624_v35 }
 0xb7f   :  { %v8626_v20 = vpack.i.bf16 %v4371_v11, %v14150_v22  ;;  %v8596_v1 = vpack.i.bf16 %v8409_v37, %v14149_v55  ;;  %v14146_v11 = vunpack.i.h.bf16 %v12624_v35 }
 0xb80   :  { %v12673_v29 = vpop.permute.xlu0 %8467  ;;  %v4539_v28 = vsel %vm4537_vm5, %v8424_v23, %v8425_v0 }
 0xb81   :  { %v14144_v51 = vunpack.i.h.bf16 %v12673_v29  ;;  %8597 = vrot.lane.b32.xlu0 %v8596_v1, %s9464_s29  ;;  %8627 = vrot.lane.b32.xlu1 %v8626_v20, %s9464_s29  ;;  %v12679_v53 = vpop.permute.xlu1 %8427  ;;  %v14145_v20 = vunpack.i.l.bf16 %v12629_v38 }
 0xb82   :  { %v8430_v34 = vunpack.i.h.bf16 %v12679_v53  ;;  %v8429_v25 = vunpack.i.l.bf16 %v12679_v53 }
 0xb83   :  { %v8631_v57 = vpack.i.bf16 %v14142_v9, %v14144_v51 }
 0xb84   :  { %v12685_v50 = vpop.permute.xlu0 %8477  ;;  %v4731_v0 = vsel %vm4537_vm5, %v8429_v25, %v8430_v34 }
 0xb85   :  { %8632 = vrot.lane.b32.xlu1 %v8631_v57, %s9464_s29  ;;  %v12688_v40 = vpop.permute.xlu1 %8442 }
 0xb88   :  { %v12692_v19 = vpop.permute.xlu0 %8482 }
 0xb89   :  { %v8485_v61 = vunpack.i.h.bf16 %v12692_v19  ;;  %v8484_v27 = vunpack.i.l.bf16 %v12692_v19  ;;  %v12696_v17 = vpop.permute.xlu1 %8447 }
 0xb8b   :  { %v4541_v41 = vsel %vm4537_vm5, %v8484_v27, %v8485_v61  ;;  %v8480_v61 = vunpack.i.h.bf16 %v12685_v50 }
 0xb8c   :  { %v8488_v31 = vpop.permute.xlu0 %8487  ;;  %v6366_v37 = vpack.c.bf16 %v4541_v41, %v4539_v28 }
 0xb8d   :  { %v8490_v44 = vunpack.i.h.bf16 %v8488_v31  ;;  %v8489_v2 = vunpack.i.l.bf16 %v8488_v31  ;;  %v12707_v1 = vpop.permute.xlu1 %8472  ;;  %v14148_v31 = vunpack.i.h.bf16 %v12688_v40 }
 0xb8e   :  { %6367 = vmatprep.subr.bf16.mxu0 %v6366_v37  ;;  %v8475_v53 = vunpack.i.h.bf16 %v12707_v1  ;;  %v14147_v57 = vunpack.i.l.bf16 %v12707_v1 }
 0xb8f   :  { %v4733_v19 = vsel %vm4537_vm5, %v8489_v2, %v8490_v44  ;;  %v8454_v44 = vunpack.i.l.bf16 %v12635_v49 }
 0xb90   :  { %v12714_v28 = vpop.permute.xlu0 %8497  ;;  %v6406_v41 = vpack.c.bf16 %v4733_v19, %v4731_v0  ;;  %v4391_v37 = vsel %vm4287_vm6, %v8475_v53, %v14145_v20  ;;  %v8601_v9 = vpack.i.bf16 %v8475_v53, %v14146_v11  ;;  %v4291_v34 = vsel %vm4287_vm6, %v14147_v57, %v12704_v16 }
 0xb91   :  { %v12727_v47 = vpop.permute.xlu1 %8492  ;;  %v8661_v0 = vpack.i.bf16 %v4391_v37, %v4291_v34  ;;  %v14153_v19 = vunpack.i.l.bf16 %v12696_v17  ;;  %v14152_v20 = vunpack.i.l.bf16 %v12655_v6  ;;  %v14155_v11 = vunpack.i.l.bf16 %v12685_v50 }
 0xb92   :  { %6407 = vmatprep.subr.bf16.mxu1 %v6406_v41  ;;  %v14151_v51 = vunpack.i.l.bf16 %v12727_v47  ;;  %8602 = vrot.lane.b32.xlu0 %v8601_v9, %s9464_s29  ;;  %v8606_v57 = vpack.i.bf16 %v8480_v61, %v14148_v31  ;;  %v12740_v41 = vunpack.i.l.bf16 %v12688_v40  ;;  %v4243_v9 = vsel %vm1435_vm12, %v14358_v52, %v8454_v44 }
 0xb93   :  { %8662 = vrot.lane.b32.xlu1 %v8661_v0, %s9464_s29  ;;  %v4415_v31 = vsel %vm4314_vm7, %v8480_v61, %v14153_v19  ;;  %v14157_v55 = vunpack.i.l.bf16 %v12714_v28  ;;  %v8459_v61 = vunpack.i.l.bf16 %v12647_v42 }
 0xb94   :  { %v12734_v53 = vpop.permute.xlu0 %8527  ;;  %v4394_v37 = vsel %vm4287_vm6, %v14151_v51, %v12704_v16  ;;  %v4347_v51 = vsel %vm1435_vm12, %v14358_v52, %v8399_v21 }
 0xb95   :  { %v12748_v34 = vpop.permute.xlu1 %8502  ;;  %v8671_v0 = vpack.i.bf16 %v14152_v20, %v4394_v37  ;;  %v4244_v37 = vsel %vm1435_vm12, %v8454_v44, %v8455_v45  ;;  %v8621_v19 = vpack.i.bf16 %v4347_v51, %v4243_v9 }
 0xb96   :  { %v12757_v22 = vunpack.i.l.bf16 %v12748_v34  ;;  %8607 = vrot.lane.b32.xlu0 %v8606_v57, %s9464_s29  ;;  %v4318_v57 = vsel %vm4314_vm7, %v14155_v11, %v12740_v41 }
 0xb97   :  { %8672 = vrot.lane.b32.xlu1 %v8671_v0, %s9464_s29  ;;  %v8681_v51 = vpack.i.bf16 %v4415_v31, %v4318_v57  ;;  %v14371_v31 = vunpack.i.h.bf16 %v12647_v42  ;;  %v14372_v42 = vunpack.i.h.bf16 %v12627_v4 }
 0xb98   :  { %v12768_v20 = vpop.permute.xlu0 %8532  ;;  %v4538_v46 = vsel %vm4537_vm5, %v12757_v22, %v8424_v23  ;;  %v4540_v49 = vsel %vm4537_vm5, %v12757_v22, %v8484_v27  ;;  %v4730_v45 = vsel %vm4537_vm5, %v12757_v22, %v8429_v25  ;;  %v4732_v44 = vsel %vm4537_vm5, %v12757_v22, %v8489_v2 }
 0xb99   :  { %v12777_v21 = vpop.permute.xlu1 %8507  ;;  %v4418_v23 = vsel %vm4314_vm7, %v14157_v55, %v12740_v41  ;;  %v6368_v11 = vpack.c.bf16 %v4540_v49, %v4538_v46  ;;  %v8419_v27 = vunpack.i.l.bf16 %v12615_v48  ;;  %v6408_v8 = vpack.c.bf16 %v4732_v44, %v4730_v45 }
 0xb9a   :  { %v14162_v9 = vunpack.i.h.bf16 %v12777_v21  ;;  %v8509_v0 = vunpack.i.l.bf16 %v12777_v21  ;;  %8622 = vrot.lane.b32.xlu0 %v8621_v19, %s9464_s29  ;;  %v8636_v2 = vpack.i.bf16 %v4244_v37, %v8395_v13  ;;  %v4350_v57 = vsel %vm1435_vm12, %v8459_v61, %v14371_v31 }
 0xb9b   :  { %8682 = vrot.lane.b32.xlu1 %v8681_v51, %s9464_s29  ;;  %6369 = vmatpush1.bf16.msra.mxu0 %v6368_v11  ;;  %v8691_v46 = vpack.i.bf16 %v8419_v27, %v4418_v23  ;;  %v4349_v13 = vsel %vm1435_vm12, %v14358_v52, %v8459_v61  ;;  %v14373_v11 = vunpack.i.h.bf16 %v12659_v33  ;;  %v14374_v37 = vunpack.i.l.bf16 %v12659_v33 }
 0xb9c   :  { %v12794_v25 = vpop.permute.xlu0 %8547  ;;  %6409 = vmatpush1.bf16.msra.mxu1 %v6408_v8  ;;  %v4246_v19 = vsel %vm1435_vm12, %v8509_v0, %v14162_v9  ;;  %v8641_v8 = vpack.i.bf16 %v4350_v57, %v14372_v42  ;;  %v8469_v45 = vunpack.i.l.bf16 %v12673_v29  ;;  %v14165_v23 = vunpack.i.h.bf16 %v12633_v62 }
 0xb9d   :  { %v12801_v55 = vpop.permute.xlu1 %8512  ;;  %v4266_v49 = vsel %vm1458_vm13, %v14374_v37, %v14373_v11  ;;  %v8696_v51 = vpack.i.bf16 %v4246_v19, %v4349_v13  ;;  %v14160_v31 = vunpack.i.h.bf16 %v12727_v47  ;;  %v14375_v19 = vunpack.i.h.bf16 %v12673_v29 }
 0xb9e   :  { %8637 = vrot.lane.b32.xlu0 %v8636_v2, %s9464_s29  ;;  %v14159_v2 = vunpack.i.l.bf16 %v12734_v53  ;;  %v8440_v37 = vunpack.i.h.bf16 %v12629_v38  ;;  %v14381_v9 = vunpack.i.l.bf16 %v12685_v50  ;;  %v14166_v50 = vunpack.i.h.bf16 %v12768_v20 }
 0xb9f   :  { %8692 = vrot.lane.b32.xlu1 %v8691_v46, %s9464_s29  ;;  %v8646_v46 = vpack.i.bf16 %v4266_v49, %v14165_v23  ;;  %v4372_v13 = vsel %vm1458_vm13, %v8469_v45, %v14375_v19  ;;  %v14376_v49 = vunpack.i.h.bf16 %v12643_v26 }
 0xba0   :  { %v12812_v59 = vpop.permute.xlu0 %8552  ;;  %v4292_v11 = vsel %vm4287_vm6, %v14160_v31, %v14159_v2 }
 0xba1   :  { %v12824_v44 = vpop.permute.xlu1 %8517  ;;  %v8651_v19 = vpack.i.bf16 %v4372_v13, %v14376_v49  ;;  %v14379_v13 = vunpack.i.l.bf16 %v12727_v47 }
 0xba2   :  { %v14158_v61 = vunpack.i.h.bf16 %v12824_v44  ;;  %v14161_v4 = vunpack.i.l.bf16 %v12824_v44  ;;  %8642 = vrot.lane.b32.xlu0 %v8641_v8, %s9464_s29 }
 0xba3   :  { %8697 = vrot.lane.b32.xlu1 %v8696_v51, %s9464_s29  ;;  %v8415_v51 = vunpack.i.h.bf16 %v12655_v6 }
 0xba4   :  { %v12832_v33 = vpop.permute.xlu0 %8557  ;;  %v4267_v57 = vsel %vm1458_vm13, %v14161_v4, %v14158_v61 }
 0xba5   :  { %v12845_v42 = vpop.permute.xlu1 %8522  ;;  %v8701_v8 = vpack.i.bf16 %v4267_v57, %v8469_v45  ;;  %v14377_v45 = vunpack.i.l.bf16 %v12707_v1  ;;  %v14378_v57 = vunpack.i.h.bf16 %v12624_v35  ;;  %v4289_v31 = vsel %vm4287_vm6, %v8415_v51, %v12704_v16 }
 0xba6   :  { %8647 = vrot.lane.b32.xlu0 %v8646_v46, %s9464_s29  ;;  %v8706_v46 = vpack.i.bf16 %v4292_v11, %v8440_v37  ;;  %v8450_v35 = vunpack.i.h.bf16 %v12696_v17  ;;  %v4393_v11 = vsel %vm4287_vm6, %v8440_v37, %v14379_v13 }
 0xba7   :  { %8702 = vrot.lane.b32.xlu1 %v8701_v8, %s9464_s29  ;;  %v4290_v61 = vsel %vm4287_vm6, %v14378_v57, %v14377_v45  ;;  %v14164_v8 = vunpack.i.h.bf16 %v12714_v28  ;;  %v8420_v45 = vunpack.i.h.bf16 %v12615_v48 }
 0xba8   :  { %v12856_v29 = vpop.permute.xlu0 %8562  ;;  %v8656_v1 = vpack.i.bf16 %v4290_v61, %v4289_v31  ;;  %v14380_v61 = vunpack.i.l.bf16 %v12629_v38 }
 0xba9   :  { %v12865_v2 = vpop.permute.xlu1 %8537 }
 0xbaa   :  { %8652 = vrot.lane.b32.xlu0 %v8651_v19, %s9464_s29  ;;  %v14163_v4 = vunpack.i.l.bf16 %v12865_v2  ;;  %v4392_v31 = vsel %vm4287_vm6, %v14380_v61, %v12704_v16 }
 0xbab   :  { %8707 = vrot.lane.b32.xlu1 %v8706_v46, %s9464_s29  ;;  %v8666_v13 = vpack.i.bf16 %v4393_v11, %v4392_v31  ;;  %v4315_v31 = vsel %vm4314_vm7, %v8419_v27, %v8420_v45  ;;  %v8505_v27 = vunpack.i.h.bf16 %v12748_v34 }
 0xbac   :  { %v12873_v26 = vpop.permute.xlu0 %8567  ;;  %v4319_v49 = vsel %vm4314_vm7, %v14164_v8, %v14163_v4  ;;  %v14382_v4 = vunpack.i.h.bf16 %v12688_v40 }
 0xbad   :  { %v12884_v19 = vpop.permute.xlu1 %8542  ;;  %v8711_v57 = vpack.i.bf16 %v4319_v49, %v8450_v35  ;;  %v4316_v49 = vsel %vm4314_vm7, %v8420_v45, %v12740_v41 }
 0xbae   :  { %8657 = vrot.lane.b32.xlu0 %v8656_v1, %s9464_s29  ;;  %v4317_v8 = vsel %vm4314_vm7, %v14382_v4, %v14381_v9  ;;  %v14383_v1 = vunpack.i.l.bf16 %v12655_v6  ;;  %v14384_v9 = vunpack.i.l.bf16 %v12714_v28 }
 0xbaf   :  { %8712 = vrot.lane.b32.xlu1 %v8711_v57, %s9464_s29  ;;  %v8676_v40 = vpack.i.bf16 %v4317_v8, %v4316_v49  ;;  %v8515_v57 = vunpack.i.h.bf16 %v12801_v55  ;;  %v8514_v8 = vunpack.i.l.bf16 %v12801_v55  ;;  %v8524_v49 = vunpack.i.l.bf16 %v12845_v42 }
 0xbb0   :  { %v12892_v46 = vpop.permute.xlu0 %8572  ;;  %v4288_v38 = vsel %vm4287_vm6, %v14383_v1, %v8415_v51  ;;  %v4417_v4 = vsel %vm4314_vm7, %v8450_v35, %v14384_v9  ;;  %v14385_v51 = vunpack.i.l.bf16 %v12696_v17  ;;  %v8731_v35 = vpack.i.bf16 %v4315_v31, %v14166_v50 }
 0xbb1   :  { %v14167_v37 = vunpack.i.l.bf16 %v12892_v46  ;;  %v12904_v23 = vpop.permute.xlu1 %8577  ;;  %v8549_v1 = vunpack.i.l.bf16 %v12794_v25  ;;  %v8560_v17 = vunpack.i.h.bf16 %v12832_v33  ;;  %v4352_v55 = vsel %vm1435_vm12, %v8514_v8, %v8515_v57 }
 0xbb2   :  { %8667 = vrot.lane.b32.xlu0 %v8666_v13, %s9464_s29  ;;  %v4416_v61 = vsel %vm4314_vm7, %v14385_v51, %v12740_v41  ;;  %v8550_v13 = vunpack.i.h.bf16 %v12794_v25  ;;  %v8565_v9 = vunpack.i.h.bf16 %v12856_v29 }
 0xbb3   :  { %v8721_v11 = vpack.i.bf16 %v4288_v38, %v14167_v37  ;;  %v8569_v38 = vunpack.i.l.bf16 %v12873_v26  ;;  %v8686_v48 = vpack.i.bf16 %v4417_v4, %v4416_v61  ;;  %v4543_v34 = vsel %vm4537_vm5, %v8505_v27, %v8549_v1 }
 0xbb4   :  { %v4544_v25 = vsel %vm4537_vm5, %v12757_v22, %v8550_v13  ;;  %v8564_v4 = vunpack.i.l.bf16 %v12856_v29  ;;  %v8580_v61 = vunpack.i.h.bf16 %v12904_v23  ;;  %v4245_v29 = vsel %vm1435_vm12, %v14358_v52, %v8509_v0 }
 0xbb5   :  { %v12915_v6 = vpop.permute.xlu1 %4389  ;;  %8722 = vrot.lane.b32.xlu1 %v8721_v11, %s9464_s29  ;;  %v8716_v51 = vpack.i.bf16 %v8524_v49, %v8569_v38  ;;  %v8741_v37 = vpack.i.bf16 %v4245_v29, %v8565_v9  ;;  %v8579_v29 = vunpack.i.l.bf16 %v12904_v23 }
 0xbb6   :  { %8677 = vrot.lane.b32.xlu0 %v8676_v40, %s9464_s29  ;;  %v8736_v40 = vpack.i.bf16 %v4352_v55, %v8560_v17  ;;  %v8530_v55 = vunpack.i.h.bf16 %v12734_v53 }
 0xbb9   :  { %v12935_v45 = vpop.permute.xlu1 %8587  ;;  %8732 = vrot.lane.b32.xlu1 %v8731_v35, %s9464_s29  ;;  %v4542_v35 = vsel %vm4537_vm5, %v12757_v22, %v8505_v27  ;;  %v8726_v27 = vpack.i.bf16 %v8580_v61, %v8530_v55 }
 0xbba   :  { %v8589_v11 = vunpack.i.l.bf16 %v12935_v45  ;;  %8687 = vrot.lane.b32.xlu0 %v8686_v48, %s9464_s29  ;;  %v8559_v48 = vunpack.i.l.bf16 %v12832_v33  ;;  %v6372_v1 = vpack.c.bf16 %v4544_v25, %v4542_v35  ;;  %v8525_v25 = vunpack.i.h.bf16 %v12845_v42 }
 0xbbb   :  { %v8575_v42 = vunpack.i.h.bf16 %v12892_v46 }
 0xbbc   :  { %v4545_v31 = vsel %vm4537_vm5, %v8550_v13, %v8589_v11  ;;  %v4353_v13 = vsel %vm1435_vm12, %v14358_v52, %v8564_v4  ;;  %v4247_v33 = vsel %vm1435_vm12, %v14358_v52, %v8559_v48  ;;  %v14386_v11 = vunpack.i.h.bf16 %v12633_v62 }
 0xbbd   :  { %8737 = vrot.lane.b32.xlu1 %v8736_v40, %s9464_s29  ;;  %v6370_v50 = vpack.c.bf16 %v4545_v31, %v4543_v34  ;;  %v14387_v40 = vunpack.i.l.bf16 %v12633_v62  ;;  %v8570_v34 = vunpack.i.h.bf16 %v12873_v26  ;;  %v4248_v35 = vsel %vm1435_vm12, %v8559_v48, %v8560_v17 }
 0xbbe   :  { %8717 = vrot.lane.b32.xlu0 %v8716_v51, %s9464_s29  ;;  %v4354_v26 = vsel %vm1435_vm12, %v8564_v4, %v8565_v9  ;;  %v8534_v17 = vunpack.i.l.bf16 %v12768_v20 }
 0xbbf   :  { %6371 = vmatprep.subr.bf16.mxu0 %v6370_v50  ;;  %v4265_v0 = vsel %vm1458_vm13, %v14387_v40, %v14386_v11  ;;  %v4351_v50 = vsel %vm1435_vm12, %v14358_v52, %v8514_v8  ;;  %v8771_v23 = vpack.i.bf16 %v4354_v26, %v8515_v57  ;;  %v14390_v40 = vunpack.i.h.bf16 %v12824_v44 }
 0xbc0   :  { %6373 = vmatpush1.bf16.msra.mxu0 %v6372_v1  ;;  %v8751_v51 = vpack.i.bf16 %v4265_v0, %v4353_v13  ;;  %v8746_v31 = vpack.i.bf16 %v4351_v50, %v4247_v33  ;;  %v14388_v1 = vunpack.i.h.bf16 %v12777_v21  ;;  %v4395_v13 = vsel %vm4287_vm6, %v8580_v61, %v8534_v17  ;;  %v12992_v33 = vpop.permute.xlu0 %8582 }
 0xbc1   :  { %8742 = vrot.lane.b32.xlu1 %v8741_v37, %s9464_s29  ;;  %v4373_v37 = vsel %vm1458_vm13, %v8524_v49, %v8525_v25  ;;  %v14389_v49 = vunpack.i.l.bf16 %v12824_v44  ;;  %v4268_v21 = vsel %vm1458_vm13, %v8569_v38, %v8570_v34  ;;  %v8585_v4 = vunpack.i.h.bf16 %v12992_v33 }
 0xbc2   :  { %8727 = vrot.lane.b32.xlu0 %v8726_v27, %s9464_s29  ;;  %v8756_v62 = vpack.i.bf16 %v4373_v37, %v8570_v34  ;;  %v8766_v8 = vpack.i.bf16 %v4248_v35, %v14388_v1  ;;  %v4295_v27 = vsel %vm4287_vm6, %v8579_v29, %v12704_v16  ;;  %v8584_v11 = vunpack.i.l.bf16 %v12992_v33 }
 0xbc3   :  { %v8761_v48 = vpack.i.bf16 %v14389_v49, %v8575_v42  ;;  %v8791_v9 = vpack.i.bf16 %v4395_v13, %v4295_v27  ;;  %v4398_v61 = vsel %vm4287_vm6, %v12915_v6, %v12704_v16  ;;  %v8776_v57 = vpack.i.bf16 %v4268_v21, %v14390_v40  ;;  %v4158_v40 = vld [vmem:[#allocation10 + $0x8] sm:$0xff] }
 0xbc4   :  { %v14391_v38 = vunpack.i.l.bf16 %v12892_v46  ;;  %v8544_v50 = vunpack.i.l.bf16 %v12884_v19  ;;  %v14392_v34 = vunpack.i.h.bf16 %v12727_v47  ;;  %v4322_v35 = vsel %vm4314_vm7, %v8584_v11, %v12740_v41  ;;  %v4414_v46 = vpop.permute.xlu0 %4413  ;;  %5998 = vmatprep.mubr.msk.f32.mxu0 %vm3096_vm2, %v4158_v40  ;;  %6002 = vmatprep.mubr.msk.f32.mxu1 %vm3096_vm2, %v4158_v40 }
 0xbc5   :  { %8752 = vrot.lane.b32.xlu1 %v8751_v51, %s9464_s29  ;;  %v4294_v37 = vsel %vm4287_vm6, %v8530_v55, %v8579_v29  ;;  %v4422_v1 = vsel %vm4314_vm7, %v4414_v46, %v12740_v41  ;;  %v8540_v29 = vunpack.i.h.bf16 %v12865_v2  ;;  %v14395_v26 = vunpack.i.h.bf16 %v12714_v28 }
 0xbc6   :  { %8747 = vrot.lane.b32.xlu0 %v8746_v31, %s9464_s29  ;;  %v4374_v0 = vsel %vm1458_vm13, %v14391_v38, %v8575_v42  ;;  %v8801_v51 = vpack.i.bf16 %v14392_v34, %v4398_v61  ;;  %v4419_v31 = vsel %vm4314_vm7, %v8585_v4, %v8544_v50  ;;  %v8590_v13 = vunpack.i.h.bf16 %v12935_v45 }
 0xbc7   :  { %v8781_v44 = vpack.i.bf16 %v4374_v0, %v8525_v25  ;;  %v8811_v47 = vpack.i.bf16 %v4419_v31, %v4322_v35  ;;  %v14394_v25 = vunpack.i.h.bf16 %v12768_v20  ;;  %v8826_v49 = vpack.i.bf16 %v14395_v26, %v4422_v1  ;;  %v1960_v31 = vld [vmem:[%s14036_s8] sm:$0xff] }
 0xbc8   :  { %v4321_v27 = vsel %vm4314_vm7, %v8540_v29, %v8584_v11  ;;  %v8555_v20 = vunpack.i.h.bf16 %v12812_v59  ;;  %v4734_v45 = vsel %vm4537_vm5, %v12757_v22, %v8590_v13  ;;  %v8821_v34 = vpack.i.bf16 %v8585_v4, %v8540_v29 }
 0xbc9   :  { %8757 = vrot.lane.b32.xlu1 %v8756_v62, %s9464_s29  ;;  %v14393_v62 = vunpack.i.l.bf16 %v12734_v53  ;;  %v4397_v55 = vsel %vm4287_vm6, %v14394_v25, %v12915_v6  ;;  %v4396_v53 = vsel %vm4287_vm6, %v8534_v17, %v12704_v16  ;;  %v8545_v17 = vunpack.i.h.bf16 %v12884_v19  ;;  %v4166_v19 = vld [vmem:[%s14042_s14 + $0x8] sm:$0xff] }
 0xbca   :  { %8767 = vrot.lane.b32.xlu0 %v8766_v8, %s9464_s29 }
 0xbcb   :  { %v4293_v42 = vsel %vm4287_vm6, %v14393_v62, %v12704_v16  ;;  %v14396_v16 = vunpack.i.l.bf16 %v12865_v2  ;;  %v4736_v2 = vsel %vm4537_vm5, %v12757_v22, %v8555_v20  ;;  %v4168_v22 = vld [vmem:[%s14042_s14 + $0x18] sm:$0xff] }
 0xbcc   :  { %v8786_v8 = vpack.i.bf16 %v4294_v37, %v4293_v42  ;;  %v6412_v38 = vpack.c.bf16 %v4736_v2, %v4734_v45 }
 0xbcd   :  { %8762 = vrot.lane.b32.xlu1 %v8761_v48, %s9464_s29  ;;  %v8796_v48 = vpack.i.bf16 %v4397_v55, %v4396_v53  ;;  %v4320_v28 = vsel %vm4314_vm7, %v14396_v16, %v12740_v41 }
 0xbce   :  { %8772 = vrot.lane.b32.xlu0 %v8771_v23, %s9464_s29  ;;  %v8554_v23 = vunpack.i.l.bf16 %v12812_v59  ;;  %v8806_v33 = vpack.i.bf16 %v4321_v27, %v4320_v28 }
 0xbd0   :  { %v4735_v11 = vsel %vm4537_vm5, %v8590_v13, %v8554_v23 }
 0xbd1   :  { %8792 = vrot.lane.b32.xlu1 %v8791_v9, %s9464_s29  ;;  %v4421_v9 = vsel %vm4314_vm7, %v8545_v17, %v4414_v46 }
 0xbd2   :  { %8777 = vrot.lane.b32.xlu0 %v8776_v57, %s9464_s29  ;;  %v4420_v57 = vsel %vm4314_vm7, %v8544_v50, %v12740_v41  ;;  %v4165_v41 = vld [vmem:[%s14042_s14] sm:$0xff] }
 0xbd3   :  { %v8816_v0 = vpack.i.bf16 %v4421_v9, %v4420_v57 }
 0xbd5   :  { %8802 = vrot.lane.b32.xlu1 %v8801_v51, %s9464_s29  ;;  %v4167_v51 = vld [vmem:[%s14042_s14 + $0x10] sm:$0xff] }
 0xbd6   :  { %8782 = vrot.lane.b32.xlu0 %v8781_v44, %s9464_s29 }
 0xbd9   :  { %8812 = vrot.lane.b32.xlu1 %v8811_v47, %s9464_s29 }
 0xbda   :  { %8787 = vrot.lane.b32.xlu0 %v8786_v8, %s9464_s29 }
 0xbdd   :  { %8827 = vrot.lane.b32.xlu1 %v8826_v49, %s9464_s29 }
 0xbde   :  { %8797 = vrot.lane.b32.xlu0 %v8796_v48, %s9464_s29  ;;  %v8593_v6 = vpop.permute.xlu1 %8592 }
 0xbdf   :  { %v8594_v21 = vunpack.i.l.bf16 %v8593_v6  ;;  %v8595_v55 = vunpack.i.h.bf16 %v8593_v6 }
 0xbe1   :  { %4724 = vrot.lane.b32.xlu1 %v8545_v17, %s9464_s29  ;;  %v4737_v59 = vsel %vm4537_vm5, %v8555_v20, %v8594_v21 }
 0xbe2   :  { %8807 = vrot.lane.b32.xlu0 %v8806_v33, %s9464_s29  ;;  %v6410_v61 = vpack.c.bf16 %v4737_v59, %v4735_v11 }
 0xbe4   :  { %6411 = vmatprep.subr.bf16.mxu1 %v6410_v61 }
 0xbe5   :  { %6413 = vmatpush1.bf16.msra.mxu1 %v6412_v38  ;;  %4817 = vperm.xlu1 %6870, %v4166_v19  }
 0xbe6   :  { %8817 = vrot.lane.b32.xlu0 %v8816_v0, %s9464_s29 }
 0xbe9   :  { %4827 = vperm.xlu1 %6870, %v4168_v22  }
 0xbea   :  { %8822 = vrot.lane.b32.xlu0 %v8821_v34, %s9464_s29 }
 0xbeb   :  { %v8613_v50 = vpop.permute.xlu1 %8612 }
 0xbec   :  { %v8614_v53 = vunpack.i.l.bf16 %v8613_v50  ;;  %v8615_v6 = vunpack.i.h.bf16 %v8613_v50 }
 0xbee   :  { %4812 = vperm.xlu0 %6869, %v4165_v41  }
 0xbef   :  { %v8618_v35 = vpop.permute.xlu1 %8617 }
 0xbf0   :  { %v8620_v25 = vunpack.i.h.bf16 %v8618_v35  ;;  %v8619_v33 = vunpack.i.l.bf16 %v8618_v35 }
 0xbf2   :  { %4822 = vperm.xlu0 %6869, %v4167_v51   ;;  %v4546_v27 = vsel %vm4537_vm5, %v8620_v25, %v8595_v55 }
 0xbf3   :  { %v13075_v4 = vpop.permute.xlu1 %8627  ;;  %v13077_v44 = vpop.permute.xlu0 %8597 }
 0xbf6   :  { %2342 = vperm.xlu0 %6869, %v1960_v31  }
 0xbf7   :  { %v13079_v37 = vpop.permute.xlu1 %8632 }
 0xbf8   :  { %v14397_v12 = vunpack.i.h.bf16 %v13079_v37 }
 0xc04   :  { %v13081_v46 = vpop.permute.xlu0 %8602 }
 0xc05   :  { %v13083_v62 = vpop.permute.xlu1 %8662 }
 0xc08   :  { %v13085_v42 = vpop.permute.xlu0 %8607 }
 0xc09   :  { %v13087_v47 = vpop.permute.xlu1 %8672 }
 0xc0c   :  { %v8623_v1 = vpop.permute.xlu0 %8622 }
 0xc0d   :  { %v13089_v8 = vpop.permute.xlu1 %8682  ;;  %v8624_v26 = vunpack.i.l.bf16 %v8623_v1  ;;  %v8625_v28 = vunpack.i.h.bf16 %v8623_v1 }
 0xc0f   :  { %v4738_v40 = vsel %vm4537_vm5, %v8625_v28, %v8615_v6  ;;  %v8629_v28 = vunpack.i.l.bf16 %v13075_v4 }
 0xc10   :  { %v8638_v29 = vpop.permute.xlu0 %8637 }
 0xc11   :  { %v8640_v49 = vunpack.i.h.bf16 %v8638_v29  ;;  %v8639_v48 = vunpack.i.l.bf16 %v8638_v29  ;;  %v13091_v13 = vpop.permute.xlu1 %8692 }
 0xc13   :  { %v4548_v20 = vsel %vm4537_vm5, %v8624_v26, %v8640_v49  ;;  %v4547_v23 = vsel %vm4537_vm5, %v8595_v55, %v8639_v48  ;;  %v4549_v16 = vsel %vm4537_vm5, %v8640_v49, %v8614_v53  ;;  %v8600_v53 = vunpack.i.h.bf16 %v13077_v44 }
 0xc14   :  { %v8643_v17 = vpop.permute.xlu0 %8642  ;;  %v6374_v21 = vpack.c.bf16 %v4549_v16, %v4547_v23  ;;  %v6376_v45 = vpack.c.bf16 %v4548_v20, %v4546_v27  ;;  %v8630_v26 = vunpack.i.h.bf16 %v13075_v4  ;;  %v8605_v27 = vunpack.i.h.bf16 %v13081_v46 }
 0xc15   :  { %v8645_v9 = vunpack.i.h.bf16 %v8643_v17  ;;  %v8644_v11 = vunpack.i.l.bf16 %v8643_v17  ;;  %v13097_v59 = vpop.permute.xlu1 %8697  ;;  %v8665_v20 = vunpack.i.h.bf16 %v13083_v62  ;;  %v8599_v23 = vunpack.i.l.bf16 %v13077_v44 }
 0xc16   :  { %v8699_v2 = vunpack.i.l.bf16 %v13097_v59  ;;  %6375 = vmatprep.subr.bf16.mxu0 %v6374_v21  ;;  %v13134_v16 = vsel %vm4537_vm5, %v8600_v53, %v8630_v26 }
 0xc17   :  { %6377 = vmatpush1.bf16.msra.mxu0 %v6376_v45  ;;  %v4739_v61 = vsel %vm4537_vm5, %v8615_v6, %v8644_v11  ;;  %v4741_v19 = vsel %vm4537_vm5, %v8645_v9, %v8619_v33  ;;  %v8634_v6 = vunpack.i.l.bf16 %v13079_v37  ;;  %v8604_v33 = vunpack.i.l.bf16 %v13081_v46 }
 0xc18   :  { %v4740_v57 = vsel %vm4537_vm5, %v8699_v2, %v8645_v9  ;;  %v13104_v38 = vpop.permute.xlu0 %8647  ;;  %v6414_v0 = vpack.c.bf16 %v4741_v19, %v4739_v61  ;;  %v8664_v9 = vunpack.i.l.bf16 %v13083_v62  ;;  %v13146_v44 = vsel %vm4537_vm5, %v8605_v27, %v8665_v20 }
 0xc19   :  { %v13106_v22 = vpop.permute.xlu1 %8702  ;;  %v6416_v34 = vpack.c.bf16 %v4740_v57, %v4738_v40  ;;  %v8650_v4 = vunpack.i.h.bf16 %v13104_v38  ;;  %v8674_v46 = vunpack.i.l.bf16 %v13087_v47 }
 0xc1a   :  { %6415 = vmatprep.subr.bf16.mxu1 %v6414_v0  ;;  %v8704_v19 = vunpack.i.l.bf16 %v13106_v22  ;;  %v8700_v0 = vunpack.i.h.bf16 %v13097_v59 }
 0xc1b   :  { %6417 = vmatpush1.bf16.msra.mxu1 %v6416_v34  ;;  %v13171_v34 = vsel %vm4537_vm5, %v8599_v23, %v8650_v4 }
 0xc1c   :  { %v8653_v41 = vpop.permute.xlu0 %8652 }
 0xc1d   :  { %v13108_v50 = vpop.permute.xlu1 %8707  ;;  %v8655_v21 = vunpack.i.h.bf16 %v8653_v41  ;;  %v8654_v11 = vunpack.i.l.bf16 %v8653_v41 }
 0xc1e   :  { %v8709_v63 = vunpack.i.l.bf16 %v13108_v50 }
 0xc1f   :  { %v13159_v53 = vsel %vm4537_vm5, %v8704_v19, %v8655_v21  ;;  %v13164_v57 = vsel %vm4537_vm5, %v8630_v26, %v8654_v11  ;;  %v13167_v62 = vsel %vm4537_vm5, %v8655_v21, %v8634_v6  ;;  %v8649_v19 = vunpack.i.l.bf16 %v13104_v38 }
 0xc20   :  { %v13110_v51 = vpop.permute.xlu0 %8657  ;;  %v4557_v26 = vsel %vm4537_vm5, %v8650_v4, %v8629_v28 }
 0xc21   :  { %v13112_v31 = vpop.permute.xlu1 %8712  ;;  %v8660_v61 = vunpack.i.h.bf16 %v13110_v51 }
 0xc23   :  { %v13187_v23 = vsel %vm4537_vm5, %v8604_v33, %v8660_v61  ;;  %v13194_v4 = vsel %vm4537_vm5, %v8660_v61, %v8664_v9 }
 0xc24   :  { %v13114_v35 = vpop.permute.xlu0 %8667 }
 0xc25   :  { %v8670_v40 = vunpack.i.h.bf16 %v13114_v35  ;;  %v8669_v15 = vunpack.i.l.bf16 %v13114_v35  ;;  %v8659_v35 = vunpack.i.l.bf16 %v13110_v51 }
 0xc27   :  { %v13116_v1 = vpop.permute.xlu1 %8722  ;;  %v13191_v41 = vsel %vm4537_vm5, %v8709_v63, %v8670_v40  ;;  %v13199_v33 = vsel %vm4537_vm5, %v8665_v20, %v8669_v15  ;;  %v13202_v51 = vsel %vm4537_vm5, %v8670_v40, %v8674_v46 }
 0xc28   :  { %v13118_v25 = vpop.permute.xlu0 %8677 }
 0xc2b   :  { %v13120_v55 = vpop.permute.xlu1 %8732 }
 0xc2c   :  { %v13122_v29 = vpop.permute.xlu0 %8687 }
 0xc2f   :  { %v13126_v49 = vpop.permute.xlu1 %8737 }
 0xc30   :  { %v13128_v48 = vpop.permute.xlu0 %8717  ;;  %v8739_v21 = vunpack.i.l.bf16 %v13126_v49 }
 0xc33   :  { %v13138_v45 = vpop.permute.xlu1 %8742 }
 0xc34   :  { %v13143_v2 = vpop.permute.xlu0 %8727  ;;  %v8745_v36 = vunpack.i.h.bf16 %v13138_v45  ;;  %v8744_v40 = vunpack.i.l.bf16 %v13138_v45 }
 0xc36   :  { %v4550_v58 = vsel %vm4537_vm5, %v8745_v36, %v8700_v0  ;;  %v8740_v36 = vunpack.i.h.bf16 %v13126_v49 }
 0xc37   :  { %v8753_v27 = vpop.permute.xlu1 %8752 }
 0xc38   :  { %v8748_v17 = vpop.permute.xlu0 %8747  ;;  %v8755_v6 = vunpack.i.h.bf16 %v8753_v27  ;;  %v8754_v46 = vunpack.i.l.bf16 %v8753_v27 }
 0xc39   :  { %v8749_v43 = vunpack.i.l.bf16 %v8748_v17  ;;  %v8750_v38 = vunpack.i.h.bf16 %v8748_v17 }
 0xc3a   :  { %v4555_v18 = vsel %vm4537_vm5, %v8755_v6, %v8649_v19 }
 0xc3b   :  { %v13180_v11 = vpop.permute.xlu1 %8757  ;;  %v6382_v19 = vpack.c.bf16 %v4557_v26, %v4555_v18  ;;  %v4742_v49 = vsel %vm4537_vm5, %v8750_v38, %v8740_v36  ;;  %v6432_v26 = vpack.c.bf16 %v13191_v41, %v13146_v44 }
 0xc3c   :  { %v8768_v28 = vpop.permute.xlu0 %8767  ;;  %v8759_v38 = vunpack.i.l.bf16 %v13180_v11 }
 0xc3d   :  { %v8770_v10 = vunpack.i.h.bf16 %v8768_v28  ;;  %v8769_v59 = vunpack.i.l.bf16 %v8768_v28  ;;  %v8725_v28 = vunpack.i.h.bf16 %v13116_v1 }
 0xc3f   :  { %v4552_v63 = vsel %vm4537_vm5, %v8749_v43, %v8770_v10  ;;  %v13205_v32 = vpop.permute.xlu1 %8762  ;;  %v4551_v9 = vsel %vm4537_vm5, %v8700_v0, %v8769_v59  ;;  %v4553_v61 = vsel %vm4537_vm5, %v8770_v10, %v8739_v21  ;;  %v4554_v0 = vsel %vm4537_vm5, %v14397_v12, %v8755_v6 }
 0xc40   :  { %v8773_v17 = vpop.permute.xlu0 %8772  ;;  %v6378_v15 = vpack.c.bf16 %v4553_v61, %v4551_v9  ;;  %v6380_v20 = vpack.c.bf16 %v4552_v63, %v4550_v58  ;;  %v8765_v10 = vunpack.i.h.bf16 %v13205_v32  ;;  %v6430_v21 = vpack.c.bf16 %v13202_v51, %v13199_v33 }
 0xc41   :  { %v8775_v56 = vunpack.i.h.bf16 %v8773_v17  ;;  %v8774_v43 = vunpack.i.l.bf16 %v8773_v17  ;;  %v8719_v12 = vunpack.i.l.bf16 %v13128_v48  ;;  %v6384_v61 = vpack.c.bf16 %v13171_v34, %v4554_v0 }
 0xc42   :  { %6379 = vmatprep.subr.bf16.mxu0 %v6378_v15  ;;  %v14398_v17 = vunpack.i.h.bf16 %v13087_v47  ;;  %v14399_v15 = vunpack.i.h.bf16 %v13106_v22  ;;  %v8680_v0 = vunpack.i.h.bf16 %v13118_v25  ;;  %v14408_v33 = vunpack.i.l.bf16 %v13091_v13 }
 0xc43   :  { %v4744_v58 = vsel %vm4537_vm5, %v8754_v46, %v8775_v56  ;;  %v13221_v59 = vpop.permute.xlu1 %8792  ;;  %6381 = vmatpush1.bf16.msra.mxu0 %v6380_v20  ;;  %v4743_v45 = vsel %vm4537_vm5, %v8740_v36, %v8774_v43  ;;  %v4745_v37 = vsel %vm4537_vm5, %v8775_v56, %v8744_v40  ;;  %v8760_v56 = vunpack.i.h.bf16 %v13180_v11 }
 0xc44   :  { %v8778_v27 = vpop.permute.xlu0 %8777  ;;  %6383 = vmatprep.subr.bf16.mxu0 %v6382_v19  ;;  %v6418_v6 = vpack.c.bf16 %v4745_v37, %v4743_v45  ;;  %v6420_v18 = vpack.c.bf16 %v4744_v58, %v4742_v49  ;;  %v4562_v36 = vsel %vm4537_vm5, %v14398_v17, %v8725_v28  ;;  %v4558_v20 = vsel %vm4537_vm5, %v8765_v10, %v14399_v15 }
 0xc45   :  { %v8780_v63 = vunpack.i.h.bf16 %v8778_v27  ;;  %v8779_v9 = vunpack.i.l.bf16 %v8778_v27  ;;  %v4563_v40 = vsel %vm4537_vm5, %v8725_v28, %v8659_v35  ;;  %v8724_v46 = vunpack.i.l.bf16 %v13116_v1 }
 0xc46   :  { %6419 = vmatprep.subr.bf16.mxu1 %v6418_v6  ;;  %v14400_v47 = vmov %v14399_v15  ;;  %v8720_v10 = vunpack.i.h.bf16 %v13128_v48  ;;  %v14401_v1 = vpack.c.bf16 %v13167_v62, %v13164_v57  ;;  %v8764_v58 = vunpack.i.l.bf16 %v13205_v32 }
 0xc47   :  { %v4560_v43 = vsel %vm4537_vm5, %v8719_v12, %v8780_v63  ;;  %v13240_v19 = vpop.permute.xlu1 %8802  ;;  %6385 = vmatpush1.bf16.msra.mxu0 %v6384_v61  ;;  %6421 = vmatpush1.bf16.msra.mxu1 %v6420_v18  ;;  %v4559_v34 = vsel %vm4537_vm5, %v14400_v47, %v8779_v9  ;;  %v4561_v11 = vsel %vm4537_vm5, %v8780_v63, %v8759_v38  ;;  %v8735_v12 = vunpack.i.h.bf16 %v13120_v55 }
 0xc48   :  { %v8783_v49 = vpop.permute.xlu0 %8782  ;;  %6423 = vmatprep.subr.bf16.mxu1 %v14401_v1  ;;  %v6386_v35 = vpack.c.bf16 %v4561_v11, %v4559_v34  ;;  %v6388_v28 = vpack.c.bf16 %v4560_v43, %v4558_v20  ;;  %v6390_v22 = vpack.c.bf16 %v13194_v4, %v4563_v40  ;;  %v4750_v27 = vsel %vm4537_vm5, %v8720_v10, %v8760_v56 }
 0xc49   :  { %v8785_v45 = vunpack.i.h.bf16 %v8783_v49  ;;  %v8784_v37 = vunpack.i.l.bf16 %v8783_v49  ;;  %v8805_v6 = vunpack.i.h.bf16 %v13240_v19  ;;  %v6392_v48 = vpack.c.bf16 %v13187_v23, %v4562_v36 }
 0xc4a   :  { %6387 = vmatprep.subr.bf16.mxu0 %v6386_v35  ;;  %v8679_v57 = vunpack.i.l.bf16 %v13118_v25  ;;  %v14402_v32 = vpack.c.bf16 %v13159_v53, %v13134_v16  ;;  %v8690_v38 = vunpack.i.h.bf16 %v13122_v29  ;;  %v14403_v23 = vunpack.i.l.bf16 %v13089_v8 }
 0xc4b   :  { %v4752_v62 = vsel %vm4537_vm5, %v8724_v46, %v8785_v45  ;;  %6389 = vmatpush1.bf16.msra.mxu0 %v6388_v28  ;;  %v4751_v4 = vsel %vm4537_vm5, %v8760_v56, %v8784_v37  ;;  %v4753_v18 = vsel %vm4537_vm5, %v8785_v45, %v8764_v58  ;;  %v8729_v36 = vunpack.i.l.bf16 %v13143_v2  ;;  %v8813_v1 = vpop.permute.xlu1 %8812 }
 0xc4c   :  { %6425 = vmatpush1.bf16.msra.mxu1 %v14402_v32  ;;  %v8788_v63 = vpop.permute.xlu0 %8787  ;;  %6391 = vmatprep.subr.bf16.mxu0 %v6390_v22  ;;  %v6426_v9 = vpack.c.bf16 %v4753_v18, %v4751_v4  ;;  %v6428_v61 = vpack.c.bf16 %v4752_v62, %v4750_v27  ;;  %v4573_v17 = vsel %vm4537_vm5, %v8680_v0, %v14403_v23  ;;  %v8794_v16 = vunpack.i.l.bf16 %v13221_v59 }
 0xc4d   :  { %v8790_v53 = vunpack.i.h.bf16 %v8788_v63  ;;  %v8789_v56 = vunpack.i.l.bf16 %v8788_v63  ;;  %v8689_v15 = vunpack.i.l.bf16 %v13122_v29  ;;  %v8795_v20 = vunpack.i.h.bf16 %v13221_v59 }
 0xc4e   :  { %v14404_v40 = vunpack.i.h.bf16 %v13108_v50  ;;  %6427 = vmatprep.subr.bf16.mxu1 %v6426_v9  ;;  %v4571_v43 = vsel %vm4537_vm5, %v8735_v12, %v8679_v57  ;;  %v8714_v47 = vunpack.i.l.bf16 %v13112_v31  ;;  %v8734_v59 = vunpack.i.l.bf16 %v13120_v55 }
 0xc4f   :  { %v4568_v34 = vsel %vm4537_vm5, %v8729_v36, %v8790_v53  ;;  %6393 = vmatpush1.bf16.msra.mxu0 %v6392_v48  ;;  %v4569_v29 = vsel %vm4537_vm5, %v8790_v53, %v8794_v16  ;;  %v8730_v49 = vunpack.i.h.bf16 %v13143_v2  ;;  %v14406_v45 = vunpack.i.h.bf16 %v13091_v13 }
 0xc50   :  { %v4566_v46 = vsel %vm4537_vm5, %v8805_v6, %v14404_v40  ;;  %6429 = vmatpush1.bf16.msra.mxu1 %v6428_v61  ;;  %v14405_v11 = vmov %v14404_v40  ;;  %v8798_v35 = vpop.permute.xlu0 %8797  ;;  %v8804_v37 = vunpack.i.l.bf16 %v13240_v19  ;;  %v6398_v2 = vpack.c.bf16 %v4573_v17, %v4571_v43 }
 0xc51   :  { %v4567_v10 = vsel %vm4537_vm5, %v14405_v11, %v8789_v56  ;;  %6431 = vmatprep.subr.bf16.mxu1 %v6430_v21  ;;  %v6396_v58 = vpack.c.bf16 %v4568_v34, %v4566_v46  ;;  %v4570_v50 = vsel %vm4537_vm5, %v14406_v45, %v8735_v12  ;;  %v8800_v22 = vunpack.i.h.bf16 %v8798_v35  ;;  %v4160_v45 = vld [vmem:[#allocation10 + $0x18] sm:$0xff] }
 0xc52   :  { %v6394_v28 = vpack.c.bf16 %v4569_v29, %v4567_v10  ;;  %v8799_v27 = vunpack.i.l.bf16 %v8798_v35  ;;  %v4758_v55 = vsel %vm4537_vm5, %v8730_v49, %v8795_v20  ;;  %v14407_v6 = vunpack.i.h.bf16 %v13089_v8 }
 0xc53   :  { %v4765_v51 = vsel %vm4537_vm5, %v8690_v38, %v14408_v33  ;;  %v8715_v21 = vunpack.i.h.bf16 %v13112_v31  ;;  %v4760_v12 = vsel %vm4537_vm5, %v8734_v59, %v8800_v22  ;;  %v4761_v57 = vsel %vm4537_vm5, %v8800_v22, %v8804_v37  ;;  %v4162_v37 = vld [vmem:[#allocation10 + $0x28] sm:$0xff]  ;;  %v4161_v22 = vld [vmem:[#allocation10 + $0x20] sm:$0xff] }
 0xc54   :  { %6395 = vmatprep.subr.bf16.mxu0 %v6394_v28  ;;  %v4763_v48 = vsel %vm4537_vm5, %v14407_v6, %v8689_v15  ;;  %6433 = vmatpush1.bf16.msra.mxu1 %v6432_v26  ;;  %v4759_v19 = vsel %vm4537_vm5, %v8795_v20, %v8799_v27  ;;  %v14409_v62 = vunpack.i.l.bf16 %v13085_v42  ;;  %v4764_v32 = vsel %vm4537_vm5, %v8714_v47, %v8690_v38  ;;  %v8808_v31 = vpop.permute.xlu0 %8807  ;;  %v8828_v26 = vpop.permute.xlu1 %8827  ;;  %v4164_v27 = vld [vmem:[#allocation10 + $0x38] sm:$0xff] }
 0xc55   :  { %6397 = vmatpush1.bf16.msra.mxu0 %v6396_v58  ;;  %v6434_v4 = vpack.c.bf16 %v4761_v57, %v4759_v19  ;;  %v6436_v18 = vpack.c.bf16 %v4760_v12, %v4758_v55  ;;  %v8814_v63 = vunpack.i.l.bf16 %v8813_v1  ;;  %v8810_v9 = vunpack.i.h.bf16 %v8808_v31  ;;  %v4157_v58 = vld [vmem:[#allocation10] sm:$0xff]  ;;  %v4163_v55 = vld [vmem:[#allocation10 + $0x30] sm:$0xff] }
 0xc56   :  { %v4572_v13 = vsel %vm4537_vm5, %v14409_v62, %v8680_v0  ;;  %6399 = vmatprep.subr.bf16.mxu0 %v6398_v2  ;;  %v8809_v44 = vunpack.i.l.bf16 %v8808_v31  ;;  %v6438_v61 = vpack.c.bf16 %v4765_v51, %v4763_v48  ;;  %v14410_v23 = vmov %v14407_v6 }
 0xc57   :  { %v6400_v41 = vpack.c.bf16 %v4572_v13, %v4570_v50  ;;  %6435 = vmatprep.subr.bf16.mxu1 %v6434_v4  ;;  %v14411_v25 = vunpack.i.h.bf16 %v13085_v42  ;;  %v4577_v38 = vsel %vm4537_vm5, %v8810_v9, %v8814_v63  ;;  %v8815_v56 = vunpack.i.h.bf16 %v8813_v1  ;;  %v4159_v50 = vld [vmem:[#allocation10 + $0x10] sm:$0xff] }
 0xc58   :  { %6437 = vmatpush1.bf16.msra.mxu1 %v6436_v18  ;;  %v4575_v0 = vsel %vm4537_vm5, %v8715_v21, %v8809_v44  ;;  %v8818_v36 = vpop.permute.xlu0 %8817  ;;  %v8829_v15 = vunpack.i.l.bf16 %v8828_v26  ;;  %v8830_v8 = vunpack.i.h.bf16 %v8828_v26  ;;  %v4725_v10 = vpop.permute.xlu1 %4724 }
 0xc59   :  { %v4762_v17 = vsel %vm4537_vm5, %v14411_v25, %v14410_v23  ;;  %6401 = vmatpush1.bf16.msra.mxu0 %v6400_v41  ;;  %6439 = vmatprep.subr.bf16.mxu1 %v6438_v61  ;;  %v6402_v16 = vpack.c.bf16 %v4577_v38, %v4575_v0  ;;  %v8820_v20 = vunpack.i.h.bf16 %v8818_v36  ;;  %v8819_v40 = vunpack.i.l.bf16 %v8818_v36 }
 0xc5a   :  { %v6440_v53 = vpack.c.bf16 %v4764_v32, %v4762_v17  ;;  %v4574_v29 = vsel %vm4537_vm5, %v8830_v8, %v8715_v21 }
 0xc5b   :  { %6403 = vmatprep.subr.bf16.mxu0 %v6402_v16  ;;  %v4767_v42 = vsel %vm4537_vm5, %v8815_v56, %v8819_v40  ;;  %v4769_v46 = vsel %vm4537_vm5, %v8820_v20, %v8829_v15  ;;  %v4768_v59 = vsel %vm4537_vm5, %v4725_v10, %v8820_v20 }
 0xc5c   :  { %6441 = vmatpush1.bf16.msra.mxu1 %v6440_v53  ;;  %v8823_v43 = vpop.permute.xlu0 %8822  ;;  %v6442_v47 = vpack.c.bf16 %v4769_v46, %v4767_v42 }
 0xc5d   :  { %v8825_v34 = vunpack.i.h.bf16 %v8823_v43  ;;  %v8824_v11 = vunpack.i.l.bf16 %v8823_v43 }
 0xc5e   :  { %6443 = vmatprep.subr.bf16.mxu1 %v6442_v47 }
 0xc5f   :  { %v4576_v49 = vsel %vm4537_vm5, %v8824_v11, %v8810_v9  ;;  %v4766_v1 = vsel %vm4537_vm5, %v8825_v34, %v8815_v56 }
 0xc60   :  { %v6404_v35 = vpack.c.bf16 %v4576_v49, %v4574_v29  ;;  %v6444_v28 = vpack.c.bf16 %v4768_v59, %v4766_v1 }
 0xc62   :  { %6405 = vmatpush1.bf16.msra.mxu0 %v6404_v35  ;;  %6445 = vmatpush1.bf16.msra.mxu1 %v6444_v28 }
 0xc64   :  { %v4818_v32 = vpop.permute.xlu1 %4817 }
 0xc65   :  { %4907 = vmatmul.mubr.f32.vlgmr.msra.gmra.mrb[48].mxu0 %v4157_v58  ;;  %4996 = vmatmul.mubr.f32.vlgmr.msra.gmra.mrb[48].mxu1 %v4157_v58 }
 0xc66   :  { %5999 = vmatprep.mubr.msk.f32.mxu0 %vm3096_vm2, %v4160_v45  ;;  %6003 = vmatprep.mubr.msk.f32.mxu1 %vm3096_vm2, %v4160_v45 }
 0xc69   :  { %4913 = vmatmul.mubr.f32.gmra.mrb[50].mxu0 %v4159_v50  ;;  %5002 = vmatmul.mubr.f32.gmra.mrb[50].mxu1 %v4159_v50 }
 0xc6a   :  { %6000 = vmatprep.mubr.msk.f32.mxu0 %vm3096_vm2, %v4162_v37  ;;  %6004 = vmatprep.mubr.msk.f32.mxu1 %vm3096_vm2, %v4162_v37 }
 0xc6d   :  { %4919 = vmatmul.mubr.f32.gmra.mrb[52].mxu0 %v4161_v22  ;;  %5008 = vmatmul.mubr.f32.gmra.mrb[52].mxu1 %v4161_v22  ;;  %v4813_v2 = vpop.permute.xlu0 %4812  ;;  %v4828_v22 = vpop.permute.xlu1 %4827 }
 0xc6e   :  { %6001 = vmatprep.mubr.msk.f32.mxu0 %vm3096_vm2, %v4164_v27  ;;  %6005 = vmatprep.mubr.msk.f32.mxu1 %vm3096_vm2, %v4164_v27 }
 0xc71   :  { %4925 = vmatmul.mubr.f32.gmra.mrb[54].mxu0 %v4163_v55  ;;  %5014 = vmatmul.mubr.f32.gmra.mrb[54].mxu1 %v4163_v55  ;;  %v4823_v15 = vpop.permute.xlu0 %4822 }
 0xd38   :  { %v4908_v6 = vpop.f32.mrb[48].mxu0  ;;  %v4997_v48 = vpop.f32.mrb[48].mxu1 }
 0xd39   :  { %v4909_v33 = vadd.f32 %v4908_v6, %v4813_v2  ;;  %v4998_v51 = vadd.f32 %v4997_v48, %v4813_v2  ;;  %v4910_v21 = vpop.f32.mrb[49].mxu0  ;;  %v4999_v12 = vpop.f32.mrb[49].mxu1 }
 0xd3a   :  { %v4911_v19 = vadd.f32 %v4910_v21, %v4813_v2  ;;  %v5000_v57 = vadd.f32 %v4999_v12, %v4813_v2 }
 0xd3b   :  { %vm5032_vm13 = vcmp.gt.f32.partialorder %v4909_v33, 0.0  ;;  %v5048_v62 = vmul.f32 0.2, %v4909_v33  ;;  %vm5034_vm8 = vcmp.gt.f32.partialorder %v4998_v51, 0.0  ;;  %v5050_v13 = vmul.f32 0.2, %v4998_v51 }
 0xd3c   :  { %vm5033_vm3 = vcmp.gt.f32.partialorder %v4911_v19, 0.0  ;;  %v5049_v31 = vmul.f32 0.2, %v4911_v19  ;;  %vm5035_vm11 = vcmp.gt.f32.partialorder %v5000_v57, 0.0  ;;  %v5051_v4 = vmul.f32 0.2, %v5000_v57 }
 0xd3d   :  { %v5064_v18 = vsel %vm5032_vm13, %v4909_v33, %v5048_v62  ;;  %v5066_v63 = vsel %vm5034_vm8, %v4998_v51, %v5050_v13  ;;  %v4914_v9 = vpop.f32.mrb[50].mxu0  ;;  %v5003_v44 = vpop.f32.mrb[50].mxu1 }
 0xd3e   :  { %v5065_v41 = vsel %vm5033_vm3, %v4911_v19, %v5049_v31  ;;  %v5067_v26 = vsel %vm5035_vm11, %v5000_v57, %v5051_v4  ;;  %v4915_v61 = vadd.f32 %v4914_v9, %v4818_v32  ;;  %v5004_v23 = vadd.f32 %v5003_v44, %v4818_v32  ;;  %v4916_v25 = vpop.f32.mrb[51].mxu0  ;;  %v5005_v17 = vpop.f32.mrb[51].mxu1 }
 0xd3f   :  { %v4917_v0 = vadd.f32 %v4916_v25, %v4818_v32  ;;  %v5006_v38 = vadd.f32 %v5005_v17, %v4818_v32  ;;  %v13332_v36 = vpack.i.bf16 %v5065_v41, %v5064_v18  ;;  %v13334_v16 = vpack.i.bf16 %v5067_v26, %v5066_v63  ;;  %v13388_v17 = vpop.permute.xlu0 %2342 }
 0xd40   :  { %vm5036_vm14 = vcmp.gt.f32.partialorder %v4915_v61, 0.0  ;;  %v5052_v53 = vmul.f32 0.2, %v4915_v61  ;;  %vm5038_vm15 = vcmp.gt.f32.partialorder %v5004_v23, 0.0  ;;  %v5054_v56 = vmul.f32 0.2, %v5004_v23 }
 0xd41   :  { %vm5037_vm4 = vcmp.gt.f32.partialorder %v4917_v0, 0.0  ;;  %v5053_v20 = vmul.f32 0.2, %v4917_v0  ;;  %vm5039_vm5 = vcmp.gt.f32.partialorder %v5006_v38, 0.0  ;;  %v5055_v40 = vmul.f32 0.2, %v5006_v38  ;;  %8832 = vrot.lane.b32.xlu1 %v13332_v36, %s9453_s19 }
 0xd42   :  { %v5068_v8 = vsel %vm5036_vm14, %v4915_v61, %v5052_v53  ;;  %v5070_v42 = vsel %vm5038_vm15, %v5004_v23, %v5054_v56  ;;  %v4920_v46 = vpop.f32.mrb[52].mxu0  ;;  %v5009_v43 = vpop.f32.mrb[52].mxu1 }
 0xd43   :  { %v5069_v47 = vsel %vm5037_vm4, %v4917_v0, %v5053_v20  ;;  %v5071_v34 = vsel %vm5039_vm5, %v5006_v38, %v5055_v40  ;;  %v4921_v11 = vadd.f32 %v4920_v46, %v4823_v15  ;;  %v5010_v10 = vadd.f32 %v5009_v43, %v4823_v15  ;;  %v4922_v29 = vpop.f32.mrb[53].mxu0  ;;  %v5011_v59 = vpop.f32.mrb[53].mxu1 }
 0xd44   :  { %v4923_v49 = vadd.f32 %v4922_v29, %v4823_v15  ;;  %v5012_v1 = vadd.f32 %v5011_v59, %v4823_v15  ;;  %v4926_v35 = vpop.f32.mrb[54].mxu0  ;;  %v5015_v28 = vpop.f32.mrb[54].mxu1  ;;  %v8881_v58 = vpack.i.bf16 %v5069_v47, %v5068_v8  ;;  %v8886_v45 = vpack.i.bf16 %v5071_v34, %v5070_v42 }
 0xd45   :  { %vm5040_vm6 = vcmp.gt.f32.partialorder %v4921_v11, 0.0  ;;  %v5056_v50 = vmul.f32 0.2, %v4921_v11  ;;  %vm5042_vm7 = vcmp.gt.f32.partialorder %v5010_v10, 0.0  ;;  %v5058_v37 = vmul.f32 0.2, %v5010_v10  ;;  %8837 = vrot.lane.b32.xlu1 %v13334_v16, %s9453_s19 }
 0xd46   :  { %vm5041_vm13 = vcmp.gt.f32.partialorder %v4923_v49, 0.0  ;;  %v5057_v27 = vmul.f32 0.2, %v4923_v49  ;;  %vm5043_vm8 = vcmp.gt.f32.partialorder %v5012_v1, 0.0  ;;  %v5059_v55 = vmul.f32 0.2, %v5012_v1  ;;  %8882 = vrot.lane.b32.xlu0 %v8881_v58, %s9453_s19 }
 0xd47   :  { %v5072_v2 = vsel %vm5040_vm6, %v4921_v11, %v5056_v50  ;;  %v5074_v6 = vsel %vm5042_vm7, %v5010_v10, %v5058_v37  ;;  %v4927_v48 = vadd.f32 %v4926_v35, %v4828_v22  ;;  %v5016_v33 = vadd.f32 %v5015_v28, %v4828_v22  ;;  %v4928_v51 = vpop.f32.mrb[55].mxu0  ;;  %v5017_v21 = vpop.f32.mrb[55].mxu1 }
 0xd48   :  { %v5073_v12 = vsel %vm5041_vm13, %v4923_v49, %v5057_v27  ;;  %v5075_v19 = vsel %vm5043_vm8, %v5012_v1, %v5059_v55  ;;  %v4929_v57 = vadd.f32 %v4928_v51, %v4828_v22  ;;  %v5018_v62 = vadd.f32 %v5017_v21, %v4828_v22 }
 0xd49   :  { %vm5044_vm3 = vcmp.gt.f32.partialorder %v4927_v48, 0.0  ;;  %v5060_v13 = vmul.f32 0.2, %v4927_v48  ;;  %vm5046_vm11 = vcmp.gt.f32.partialorder %v5016_v33, 0.0  ;;  %v5062_v32 = vmul.f32 0.2, %v5016_v33  ;;  %8842 = vrot.lane.b32.xlu1 %v13332_v36, %s9454_s26 }
 0xd4a   :  { %vm5045_vm14 = vcmp.gt.f32.partialorder %v4929_v57, 0.0  ;;  %v5061_v31 = vmul.f32 0.2, %v4929_v57  ;;  %vm5047_vm15 = vcmp.gt.f32.partialorder %v5018_v62, 0.0  ;;  %v5063_v4 = vmul.f32 0.2, %v5018_v62  ;;  %8887 = vrot.lane.b32.xlu0 %v8886_v45, %s9453_s19 }
 0xd4b   :  { %v5076_v18 = vsel %vm5044_vm3, %v4927_v48, %v5060_v13  ;;  %v5078_v63 = vsel %vm5046_vm11, %v5016_v33, %v5062_v32  ;;  %v8931_v41 = vpack.i.bf16 %v5073_v12, %v5072_v2  ;;  %v8936_v61 = vpack.i.bf16 %v5075_v19, %v5074_v6 }
 0xd4c   :  { %v5077_v9 = vsel %vm5045_vm14, %v4929_v57, %v5061_v31  ;;  %v5079_v44 = vsel %vm5047_vm15, %v5018_v62, %v5063_v4 }
 0xd4d   :  { %8847 = vrot.lane.b32.xlu1 %v13334_v16, %s9454_s26  ;;  %v8981_v26 = vpack.i.bf16 %v5077_v9, %v5076_v18  ;;  %v8986_v23 = vpack.i.bf16 %v5079_v44, %v5078_v63 }
 0xd4e   :  { %8892 = vrot.lane.b32.xlu0 %v8881_v58, %s9454_s26 }
 0xd51   :  { %8852 = vrot.lane.b32.xlu1 %v13332_v36, %s9457_s20 }
 0xd52   :  { %8897 = vrot.lane.b32.xlu0 %v8886_v45, %s9454_s26 }
 0xd55   :  { %8857 = vrot.lane.b32.xlu1 %v13334_v16, %s9457_s20 }
 0xd56   :  { %8902 = vrot.lane.b32.xlu0 %v8881_v58, %s9457_s20 }
 0xd59   :  { %8862 = vrot.lane.b32.xlu1 %v13332_v36, %s9460_s6 }
 0xd5a   :  { %8907 = vrot.lane.b32.xlu0 %v8886_v45, %s9457_s20 }
 0xd5d   :  { %8867 = vrot.lane.b32.xlu1 %v13334_v16, %s9460_s6 }
 0xd5e   :  { %8912 = vrot.lane.b32.xlu0 %v8881_v58, %s9460_s6 }
 0xd61   :  { %8872 = vrot.lane.b32.xlu1 %v13332_v36, %s9461_s22 }
 0xd62   :  { %8917 = vrot.lane.b32.xlu0 %v8886_v45, %s9460_s6 }
 0xd65   :  { %8877 = vrot.lane.b32.xlu1 %v13334_v16, %s9461_s22 }
 0xd66   :  { %8922 = vrot.lane.b32.xlu0 %v8881_v58, %s9461_s22 }
 0xd69   :  { %8932 = vrot.lane.b32.xlu1 %v8931_v41, %s9453_s19 }
 0xd6a   :  { %8927 = vrot.lane.b32.xlu0 %v8886_v45, %s9461_s22 }
 0xd6d   :  { %8937 = vrot.lane.b32.xlu1 %v8936_v61, %s9453_s19 }
 0xd6e   :  { %8982 = vrot.lane.b32.xlu0 %v8981_v26, %s9453_s19 }
 0xd71   :  { %8942 = vrot.lane.b32.xlu1 %v8931_v41, %s9454_s26 }
 0xd72   :  { %8987 = vrot.lane.b32.xlu0 %v8986_v23, %s9453_s19 }
 0xd75   :  { %8947 = vrot.lane.b32.xlu1 %v8936_v61, %s9454_s26 }
 0xd76   :  { %8992 = vrot.lane.b32.xlu0 %v8981_v26, %s9454_s26 }
 0xd79   :  { %8952 = vrot.lane.b32.xlu1 %v8931_v41, %s9457_s20 }
 0xd7a   :  { %8997 = vrot.lane.b32.xlu0 %v8986_v23, %s9454_s26 }
 0xd7d   :  { %8957 = vrot.lane.b32.xlu1 %v8936_v61, %s9457_s20 }
 0xd7e   :  { %9002 = vrot.lane.b32.xlu0 %v8981_v26, %s9457_s20 }
 0xd81   :  { %8962 = vrot.lane.b32.xlu1 %v8931_v41, %s9460_s6 }
 0xd82   :  { %9007 = vrot.lane.b32.xlu0 %v8986_v23, %s9457_s20 }
 0xd85   :  { %8967 = vrot.lane.b32.xlu1 %v8936_v61, %s9460_s6 }
 0xd86   :  { %9012 = vrot.lane.b32.xlu0 %v8981_v26, %s9460_s6 }
 0xd89   :  { %8972 = vrot.lane.b32.xlu1 %v8931_v41, %s9461_s22 }
 0xd8a   :  { %9017 = vrot.lane.b32.xlu0 %v8986_v23, %s9460_s6 }
 0xd8d   :  { %8977 = vrot.lane.b32.xlu1 %v8936_v61, %s9461_s22 }
 0xd8e   :  { %9022 = vrot.lane.b32.xlu0 %v8981_v26, %s9461_s22 }
 0xd92   :  { %9027 = vrot.lane.b32.xlu0 %v8986_v23, %s9461_s22 }
 0xdb3   :  { %v13386_v25 = vpop.permute.xlu1 %8832 }
 0xdb4   :  { %v8835_v0 = vunpack.i.h.bf16 %v13386_v25  ;;  %v8834_v38 = vunpack.i.l.bf16 %v13386_v25 }
 0xdb6   :  { %v5105_v36 = vsel %vm222_vm0, %v8834_v38, %v8835_v0 }
 0xdb7   :  { %v9031_v16 = vpack.i.bf16 %v8835_v0, %v5105_v36  ;;  %v8838_v53 = vpop.permute.xlu1 %8837 }
 0xdb8   :  { %v13395_v56 = vpop.permute.xlu0 %8882  ;;  %v8840_v15 = vunpack.i.h.bf16 %v8838_v53  ;;  %v8839_v20 = vunpack.i.l.bf16 %v8838_v53 }
 0xdb9   :  { %9032 = vrot.lane.b32.xlu1 %v9031_v16, %s9461_s22  ;;  %v8885_v44 = vunpack.i.h.bf16 %v13395_v56  ;;  %v8884_v41 = vunpack.i.l.bf16 %v13395_v56 }
 0xdba   :  { %v5205_v40 = vsel %vm222_vm0, %v8839_v20, %v8840_v15  ;;  %v5204_v23 = vsel %vm222_vm0, %v14359_v14, %v8839_v20  ;;  %v5104_v20 = vsel %vm222_vm0, %v14359_v14, %v8834_v38 }
 0xdbb   :  { %v9036_v8 = vpack.i.bf16 %v8840_v15, %v5205_v40  ;;  %v8843_v42 = vpop.permute.xlu1 %8842  ;;  %v5107_v56 = vsel %vm222_vm0, %v8884_v41, %v8885_v44  ;;  %v5106_v15 = vsel %vm222_vm0, %v14359_v14, %v8884_v41 }
 0xdbc   :  { %v13399_v46 = vpop.permute.xlu0 %8887  ;;  %v8845_v43 = vunpack.i.h.bf16 %v8843_v42  ;;  %v8844_v47 = vunpack.i.l.bf16 %v8843_v42 }
 0xdbd   :  { %9037 = vrot.lane.b32.xlu1 %v9036_v8, %s9461_s22  ;;  %v8889_v13 = vunpack.i.l.bf16 %v13399_v46  ;;  %v8890_v0 = vunpack.i.h.bf16 %v13399_v46 }
 0xdbe   :  { %v5128_v34 = vsel %vm246_vm1, %v8844_v47, %v8845_v43 }
 0xdbf   :  { %v9041_v11 = vpack.i.bf16 %v8845_v43, %v5128_v34  ;;  %v8848_v10 = vpop.permute.xlu1 %8847  ;;  %v5206_v26 = vsel %vm222_vm0, %v14359_v14, %v8889_v13  ;;  %v5207_v8 = vsel %vm222_vm0, %v8889_v13, %v8890_v0  ;;  %v9091_v43 = vpack.i.bf16 %v8885_v44, %v5107_v56 }
 0xdc0   :  { %v13403_v29 = vpop.permute.xlu0 %8892  ;;  %v8850_v59 = vunpack.i.h.bf16 %v8848_v10  ;;  %v8849_v49 = vunpack.i.l.bf16 %v8848_v10  ;;  %v9086_v36 = vpack.i.bf16 %v5206_v26, %v5204_v23 }
 0xdc1   :  { %9042 = vrot.lane.b32.xlu1 %v9041_v11, %s9461_s22  ;;  %v8894_v19 = vunpack.i.l.bf16 %v13403_v29  ;;  %v8895_v42 = vunpack.i.h.bf16 %v13403_v29 }
 0xdc2   :  { %v5228_v1 = vsel %vm246_vm1, %v8849_v49, %v8850_v59 }
 0xdc3   :  { %v9046_v35 = vpack.i.bf16 %v8850_v59, %v5228_v1  ;;  %v8853_v28 = vpop.permute.xlu1 %8852  ;;  %v9061_v4 = vpack.i.bf16 %v8894_v19, %v8844_v47  ;;  %v9081_v47 = vpack.i.bf16 %v5106_v15, %v5104_v20  ;;  %v9096_v59 = vpack.i.bf16 %v8890_v0, %v5207_v8 }
 0xdc4   :  { %v13407_v58 = vpop.permute.xlu0 %8897  ;;  %v8855_v45 = vunpack.i.h.bf16 %v8853_v28  ;;  %v8854_v50 = vunpack.i.l.bf16 %v8853_v28  ;;  %v5129_v25 = vsel %vm246_vm1, %v8894_v19, %v8895_v42 }
 0xdc5   :  { %v8899_v37 = vunpack.i.l.bf16 %v13407_v58  ;;  %9047 = vrot.lane.b32.xlu1 %v9046_v35, %s9461_s22  ;;  %v8900_v38 = vunpack.i.h.bf16 %v13407_v58 }
 0xdc6   :  { %v5149_v22 = vsel %vm1435_vm12, %v8855_v45, %v14358_v52  ;;  %v5148_v27 = vsel %vm1435_vm12, %v8854_v50, %v8855_v45 }
 0xdc7   :  { %v9066_v55 = vpack.i.bf16 %v8899_v37, %v8849_v49  ;;  %v9051_v2 = vpack.i.bf16 %v5149_v22, %v5148_v27  ;;  %v8858_v6 = vpop.permute.xlu1 %8857 }
 0xdc8   :  { %v13416_v48 = vpop.permute.xlu0 %8902  ;;  %v8860_v33 = vunpack.i.h.bf16 %v8858_v6  ;;  %v8859_v51 = vunpack.i.l.bf16 %v8858_v6 }
 0xdc9   :  { %9067 = vrot.lane.b32.xlu0 %v9066_v55, %s9461_s22  ;;  %9052 = vrot.lane.b32.xlu1 %v9051_v2, %s9461_s22  ;;  %v8904_v18 = vunpack.i.l.bf16 %v13416_v48  ;;  %v8905_v13 = vunpack.i.h.bf16 %v13416_v48 }
 0xdca   :  { %v5249_v21 = vsel %vm1435_vm12, %v8860_v33, %v14358_v52  ;;  %v5248_v12 = vsel %vm1435_vm12, %v8859_v51, %v8860_v33 }
 0xdcb   :  { %v9056_v57 = vpack.i.bf16 %v5249_v21, %v5248_v12  ;;  %v13424_v62 = vpop.permute.xlu1 %8862  ;;  %v9071_v16 = vpack.i.bf16 %v8904_v18, %v8854_v50  ;;  %v9101_v21 = vpack.i.bf16 %v8895_v42, %v5129_v25  ;;  %v5151_v20 = vsel %vm1435_vm12, %v8905_v13, %v14358_v52 }
 0xdcc   :  { %v13427_v32 = vpop.permute.xlu0 %8907 }
 0xdcd   :  { %v8909_v31 = vunpack.i.l.bf16 %v13427_v32  ;;  %9057 = vrot.lane.b32.xlu1 %v9056_v57, %s9461_s22  ;;  %v5229_v57 = vsel %vm246_vm1, %v8899_v37, %v8900_v38 }
 0xdce   :  { %v9106_v15 = vpack.i.bf16 %v8900_v38, %v5229_v57 }
 0xdcf   :  { %v9076_v63 = vpack.i.bf16 %v8909_v31, %v8859_v51  ;;  %v13434_v9 = vpop.permute.xlu1 %8867 }
 0xdd0   :  { %v13440_v61 = vpop.permute.xlu0 %8912 }
 0xdd1   :  { %9077 = vrot.lane.b32.xlu0 %v9076_v63, %s9461_s22  ;;  %9062 = vrot.lane.b32.xlu1 %v9061_v4, %s9461_s22 }
 0xdd3   :  { %v8873_v53 = vpop.permute.xlu1 %8872 }
 0xdd4   :  { %v13452_v40 = vpop.permute.xlu0 %8917  ;;  %v8874_v46 = vunpack.i.l.bf16 %v8873_v53  ;;  %v8875_v34 = vunpack.i.h.bf16 %v8873_v53 }
 0xdd5   :  { %9087 = vrot.lane.b32.xlu0 %v9086_v36, %s9461_s22  ;;  %9072 = vrot.lane.b32.xlu1 %v9071_v16, %s9461_s22 }
 0xdd6   :  { %v5392_v29 = vsel %vm2803_vm10, %v11286_v5, %v8874_v46  ;;  %v5393_v22 = vsel %vm2803_vm10, %v8874_v46, %v8875_v34  ;;  %v5150_v46 = vsel %vm1435_vm12, %v8904_v18, %v8905_v13 }
 0xdd7   :  { %v8878_v11 = vpop.permute.xlu1 %8877 }
 0xdd8   :  { %v8923_v10 = vpop.permute.xlu0 %8922  ;;  %v8879_v35 = vunpack.i.l.bf16 %v8878_v11  ;;  %v8880_v45 = vunpack.i.h.bf16 %v8878_v11 }
 0xdd9   :  { %v8925_v49 = vunpack.i.h.bf16 %v8923_v10  ;;  %v8924_v1 = vunpack.i.l.bf16 %v8923_v10  ;;  %9092 = vrot.lane.b32.xlu0 %v9091_v43, %s9461_s22  ;;  %9082 = vrot.lane.b32.xlu1 %v9081_v47, %s9461_s22  ;;  %v8910_v43 = vunpack.i.h.bf16 %v13427_v32 }
 0xdda   :  { %v5584_v4 = vsel %vm2803_vm10, %v11286_v5, %v8879_v35  ;;  %v5585_v58 = vsel %vm2803_vm10, %v8879_v35, %v8880_v45 }
 0xddb   :  { %v5394_v28 = vsel %vm2803_vm10, %v11286_v5, %v8924_v1  ;;  %v13470_v50 = vpop.permute.xlu1 %8932  ;;  %v5395_v27 = vsel %vm2803_vm10, %v8924_v1, %v8925_v49  ;;  %v5251_v48 = vsel %vm1435_vm12, %v8910_v43, %v14358_v52  ;;  %v5250_v18 = vsel %vm1435_vm12, %v8909_v31, %v8910_v43 }
 0xddc   :  { %v6448_v55 = vpack.c.bf16 %v5394_v28, %v5392_v29  ;;  %v8928_v2 = vpop.permute.xlu0 %8927  ;;  %v8935_v6 = vunpack.i.h.bf16 %v13470_v50  ;;  %v8934_v33 = vunpack.i.l.bf16 %v13470_v50  ;;  %v6446_v51 = vpack.c.bf16 %v5395_v27, %v5393_v22 }
 0xddd   :  { %v8930_v12 = vunpack.i.h.bf16 %v8928_v2  ;;  %v8929_v19 = vunpack.i.l.bf16 %v8928_v2  ;;  %9097 = vrot.lane.b32.xlu0 %v9096_v59, %s9461_s22  ;;  %v9111_v59 = vpack.i.bf16 %v5151_v20, %v5150_v46  ;;  %v9116_v28 = vpack.i.bf16 %v5251_v48, %v5250_v18 }
 0xdde   :  { %v5109_v63 = vsel %vm222_vm0, %v8934_v33, %v8935_v6  ;;  %6447 = vmatprep.subr.bf16.mxu0 %v6446_v51  ;;  %v8920_v43 = vunpack.i.h.bf16 %v13452_v40 }
 0xddf   :  { %v5586_v44 = vsel %vm2803_vm10, %v11286_v5, %v8929_v19  ;;  %v9121_v41 = vpack.i.bf16 %v8935_v6, %v5109_v63  ;;  %6449 = vmatpush1.bf16.msra.mxu0 %v6448_v55  ;;  %v13488_v26 = vpop.permute.xlu1 %8937  ;;  %v5587_v37 = vsel %vm2803_vm10, %v8929_v19, %v8930_v12 }
 0xde0   :  { %v6488_v23 = vpack.c.bf16 %v5586_v44, %v5584_v4  ;;  %v13492_v0 = vpop.permute.xlu0 %8982  ;;  %v8940_v36 = vunpack.i.h.bf16 %v13488_v26  ;;  %v8939_v16 = vunpack.i.l.bf16 %v13488_v26  ;;  %v6486_v53 = vpack.c.bf16 %v5587_v37, %v5585_v58 }
 0xde1   :  { %9102 = vrot.lane.b32.xlu0 %v9101_v21, %s9461_s22  ;;  %9122 = vrot.lane.b32.xlu1 %v9121_v41, %s9461_s22  ;;  %v8915_v44 = vunpack.i.h.bf16 %v13440_v61 }
 0xde2   :  { %v5209_v56 = vsel %vm222_vm0, %v8939_v16, %v8940_v36  ;;  %6487 = vmatprep.subr.bf16.mxu1 %v6486_v53 }
 0xde3   :  { %v9126_v8 = vpack.i.bf16 %v8940_v36, %v5209_v56  ;;  %6489 = vmatpush1.bf16.msra.mxu1 %v6488_v23  ;;  %v8943_v42 = vpop.permute.xlu1 %8942  ;;  %v8914_v23 = vunpack.i.l.bf16 %v13440_v61  ;;  %v5175_v56 = vsel %vm2628_vm9, %v8915_v44, %v14360_v39 }
 0xde4   :  { %v13507_v47 = vpop.permute.xlu0 %8987  ;;  %v8945_v34 = vunpack.i.h.bf16 %v8943_v42  ;;  %v8944_v11 = vunpack.i.l.bf16 %v8943_v42 }
 0xde5   :  { %9107 = vrot.lane.b32.xlu0 %v9106_v15, %s9461_s22  ;;  %9127 = vrot.lane.b32.xlu1 %v9126_v8, %s9461_s22  ;;  %v5174_v46 = vsel %vm2628_vm9, %v8914_v23, %v8915_v44 }
 0xde6   :  { %v5130_v10 = vsel %vm246_vm1, %v8944_v11, %v8945_v34 }
 0xde7   :  { %v9131_v49 = vpack.i.bf16 %v8945_v34, %v5130_v10  ;;  %v8948_v1 = vpop.permute.xlu1 %8947  ;;  %v8919_v34 = vunpack.i.l.bf16 %v13452_v40  ;;  %v8984_v10 = vunpack.i.l.bf16 %v13492_v0  ;;  %v5275_v40 = vsel %vm2628_vm9, %v8920_v43, %v14360_v39 }
 0xde8   :  { %v13517_v25 = vpop.permute.xlu0 %8992  ;;  %v8950_v38 = vunpack.i.h.bf16 %v8948_v1  ;;  %v8949_v29 = vunpack.i.l.bf16 %v8948_v1  ;;  %v9181_v1 = vpack.i.bf16 %v5175_v56, %v5174_v46 }
 0xde9   :  { %9112 = vrot.lane.b32.xlu0 %v9111_v59, %s9461_s22  ;;  %9132 = vrot.lane.b32.xlu1 %v9131_v49, %s9461_s22  ;;  %v8994_v41 = vunpack.i.l.bf16 %v13517_v25  ;;  %v8864_v49 = vunpack.i.l.bf16 %v13424_v62 }
 0xdea   :  { %v5230_v35 = vsel %vm246_vm1, %v8949_v29, %v8950_v38 }
 0xdeb   :  { %v9136_v45 = vpack.i.bf16 %v8950_v38, %v5230_v35  ;;  %v8953_v22 = vpop.permute.xlu1 %8952  ;;  %v9151_v15 = vpack.i.bf16 %v8994_v41, %v8944_v11  ;;  %v8865_v11 = vunpack.i.h.bf16 %v13424_v62  ;;  %v8870_v38 = vunpack.i.h.bf16 %v13434_v9 }
 0xdec   :  { %v13522_v27 = vpop.permute.xlu0 %8997  ;;  %v8955_v55 = vunpack.i.h.bf16 %v8953_v22  ;;  %v8954_v2 = vunpack.i.l.bf16 %v8953_v22  ;;  %v5110_v35 = vsel %vm222_vm0, %v14359_v14, %v8984_v10 }
 0xded   :  { %v8999_v32 = vunpack.i.l.bf16 %v13522_v27  ;;  %9117 = vrot.lane.b32.xlu0 %v9116_v28, %s9461_s22  ;;  %9137 = vrot.lane.b32.xlu1 %v9136_v45, %s9461_s22  ;;  %v5173_v45 = vsel %vm2628_vm9, %v8865_v11, %v14360_v39  ;;  %v5172_v22 = vsel %vm2628_vm9, %v8864_v49, %v8865_v11 }
 0xdee   :  { %v5153_v31 = vsel %vm1435_vm12, %v8955_v55, %v14358_v52  ;;  %v5152_v6 = vsel %vm1435_vm12, %v8954_v2, %v8955_v55  ;;  %v8869_v55 = vunpack.i.l.bf16 %v13434_v9 }
 0xdef   :  { %v9156_v51 = vpack.i.bf16 %v8999_v32, %v8949_v29  ;;  %v9141_v21 = vpack.i.bf16 %v5153_v31, %v5152_v6  ;;  %v8958_v12 = vpop.permute.xlu1 %8957  ;;  %v5274_v29 = vsel %vm2628_vm9, %v8919_v34, %v8920_v43  ;;  %v8989_v31 = vunpack.i.l.bf16 %v13507_v47 }
 0xdf0   :  { %v13532_v19 = vpop.permute.xlu0 %9002  ;;  %v8960_v57 = vunpack.i.h.bf16 %v8958_v12  ;;  %v8959_v13 = vunpack.i.l.bf16 %v8958_v12  ;;  %v9201_v44 = vpack.i.bf16 %v8919_v34, %v8869_v55 }
 0xdf1   :  { %9157 = vrot.lane.b32.xlu0 %v9156_v51, %s9461_s22  ;;  %9142 = vrot.lane.b32.xlu1 %v9141_v21, %s9461_s22  ;;  %v9004_v20 = vunpack.i.l.bf16 %v13532_v19  ;;  %v9191_v21 = vpack.i.bf16 %v5275_v40, %v5274_v29  ;;  %v5210_v56 = vsel %vm222_vm0, %v14359_v14, %v8989_v31 }
 0xdf2   :  { %v5253_v4 = vsel %vm1435_vm12, %v8960_v57, %v14358_v52  ;;  %v5252_v63 = vsel %vm1435_vm12, %v8959_v13, %v8960_v57  ;;  %v9176_v57 = vpack.i.bf16 %v5173_v45, %v5172_v22  ;;  %v8990_v45 = vunpack.i.h.bf16 %v13507_v47 }
 0xdf3   :  { %v9146_v58 = vpack.i.bf16 %v5253_v4, %v5252_v63  ;;  %v13541_v37 = vpop.permute.xlu1 %8962  ;;  %v9161_v48 = vpack.i.bf16 %v9004_v20, %v8954_v2  ;;  %v5108_v2 = vsel %vm222_vm0, %v14359_v14, %v8934_v33  ;;  %v5272_v63 = vsel %vm2628_vm9, %v8869_v55, %v8870_v38 }
 0xdf4   :  { %v13544_v36 = vpop.permute.xlu0 %9007  ;;  %v9171_v12 = vpack.i.bf16 %v5110_v35, %v5108_v2  ;;  %v8985_v33 = vunpack.i.h.bf16 %v13492_v0  ;;  %v5208_v0 = vsel %vm222_vm0, %v14359_v14, %v8939_v16  ;;  %v8965_v2 = vunpack.i.h.bf16 %v13541_v37 }
 0xdf5   :  { %v9009_v53 = vunpack.i.l.bf16 %v13544_v36  ;;  %9147 = vrot.lane.b32.xlu1 %v9146_v58, %s9461_s22  ;;  %v9221_v22 = vpack.i.bf16 %v5210_v56, %v5208_v0 }
 0xdf6   :  { %v5111_v35 = vsel %vm222_vm0, %v8984_v10, %v8985_v33 }
 0xdf7   :  { %v9166_v8 = vpack.i.bf16 %v9009_v53, %v8959_v13  ;;  %v13555_v42 = vpop.permute.xlu1 %8967  ;;  %v5273_v13 = vsel %vm2628_vm9, %v8870_v38, %v14360_v39  ;;  %v9226_v47 = vpack.i.bf16 %v8985_v33, %v5111_v35  ;;  %v5028_v35 = vld [vmem:[%s14044_s16] sm:$0xff] }
 0xdf8   :  { %v13563_v59 = vpop.permute.xlu0 %9012  ;;  %v9186_v29 = vpack.i.bf16 %v5273_v13, %v5272_v63  ;;  %v8970_v13 = vunpack.i.h.bf16 %v13555_v42 }
 0xdf9   :  { %9167 = vrot.lane.b32.xlu0 %v9166_v8, %s9461_s22  ;;  %9152 = vrot.lane.b32.xlu1 %v9151_v15, %s9461_s22  ;;  %v9014_v63 = vunpack.i.l.bf16 %v13563_v59 }
 0xdfb   :  { %v8973_v18 = vpop.permute.xlu1 %8972 }
 0xdfc   :  { %v13577_v28 = vpop.permute.xlu0 %9017  ;;  %v8975_v6 = vunpack.i.h.bf16 %v8973_v18  ;;  %v8974_v51 = vunpack.i.l.bf16 %v8973_v18 }
 0xdfd   :  { %9182 = vrot.lane.b32.xlu0 %v9181_v1, %s9461_s22  ;;  %9162 = vrot.lane.b32.xlu1 %v9161_v48, %s9461_s22 }
 0xdfe   :  { %v5396_v15 = vsel %vm2803_vm10, %v11286_v5, %v8974_v51  ;;  %v5397_v8 = vsel %vm2803_vm10, %v8974_v51, %v8975_v6  ;;  %v8964_v6 = vunpack.i.l.bf16 %v13541_v37  ;;  %v5177_v37 = vsel %vm2628_vm9, %v8965_v2, %v14360_v39 }
 0xdff   :  { %v8978_v4 = vpop.permute.xlu1 %8977 }
 0xe00   :  { %v9023_v9 = vpop.permute.xlu0 %9022  ;;  %v8980_v43 = vunpack.i.h.bf16 %v8978_v4  ;;  %v8979_v34 = vunpack.i.l.bf16 %v8978_v4 }
 0xe01   :  { %v9025_v58 = vunpack.i.h.bf16 %v9023_v9  ;;  %v9024_v50 = vunpack.i.l.bf16 %v9023_v9  ;;  %9192 = vrot.lane.b32.xlu0 %v9191_v21, %s9461_s22  ;;  %9172 = vrot.lane.b32.xlu1 %v9171_v12, %s9461_s22  ;;  %v5211_v21 = vsel %vm222_vm0, %v8989_v31, %v8990_v45  ;;  %v8995_v12 = vunpack.i.h.bf16 %v13517_v25 }
 0xe02   :  { %v5588_v55 = vsel %vm2803_vm10, %v11286_v5, %v8979_v34  ;;  %v5589_v14 = vsel %vm2803_vm10, %v8979_v34, %v8980_v43  ;;  %v8969_v9 = vunpack.i.l.bf16 %v13555_v42  ;;  %v9231_v62 = vpack.i.bf16 %v8990_v45, %v5211_v21 }
 0xe03   :  { %v5398_v46 = vsel %vm2803_vm10, %v11286_v5, %v9024_v50  ;;  %v5399_v11 = vsel %vm2803_vm10, %v9024_v50, %v9025_v58  ;;  %v5277_v31 = vsel %vm2628_vm9, %v8970_v13, %v14360_v39  ;;  %v9216_v50 = vpack.i.bf16 %v9014_v63, %v8964_v6 }
 0xe04   :  { %v6452_v1 = vpack.c.bf16 %v5398_v46, %v5396_v15  ;;  %v9028_v48 = vpop.permute.xlu0 %9027  ;;  %v6450_v18 = vpack.c.bf16 %v5399_v11, %v5397_v8  ;;  %v5276_v4 = vsel %vm2628_vm9, %v8969_v9, %v8970_v13  ;;  %v9010_v15 = vunpack.i.h.bf16 %v13544_v36  ;;  %v1963_v46 = vld [vmem:[%s14036_s8 + $0x18] sm:$0xff] }
 0xe05   :  { %v9030_v38 = vunpack.i.h.bf16 %v9028_v48  ;;  %v9029_v40 = vunpack.i.l.bf16 %v9028_v48  ;;  %9202 = vrot.lane.b32.xlu0 %v9201_v44, %s9461_s22  ;;  %9177 = vrot.lane.b32.xlu1 %v9176_v57, %s9461_s22  ;;  %v5176_v57 = vsel %vm2628_vm9, %v8964_v6, %v8965_v2  ;;  %v9211_v44 = vpack.i.bf16 %v5277_v31, %v5276_v4 }
 0xe06   :  { %6451 = vmatprep.subr.bf16.mxu0 %v6450_v18  ;;  %v9206_v61 = vpack.i.bf16 %v5177_v37, %v5176_v57  ;;  %v5255_v8 = vsel %vm1435_vm12, %v9010_v15, %v14358_v52  ;;  %v9019_v36 = vunpack.i.l.bf16 %v13577_v28 }
 0xe07   :  { %v5590_v26 = vsel %vm2803_vm10, %v11286_v5, %v9029_v40  ;;  %6453 = vmatpush1.bf16.msra.mxu0 %v6452_v1  ;;  %v5591_v16 = vsel %vm2803_vm10, %v9029_v40, %v9030_v38  ;;  %v9196_v5 = vpack.i.bf16 %v8914_v23, %v8864_v49  ;;  %v5131_v23 = vsel %vm246_vm1, %v8994_v41, %v8995_v12  ;;  %v5021_v1 = vld [vmem:[%s14043_s15 + $0x8] sm:$0xff] }
 0xe08   :  { %v6492_v10 = vpack.c.bf16 %v5590_v26, %v5588_v55  ;;  %v6490_v51 = vpack.c.bf16 %v5591_v16, %v5589_v14  ;;  %v9000_v49 = vunpack.i.h.bf16 %v13522_v27  ;;  %v9236_v42 = vpack.i.bf16 %v8995_v12, %v5131_v23  ;;  %v1961_v27 = vld [vmem:[%s14036_s8 + $0x8] sm:$0xff]  ;;  %6006 = vmatprep.mubr.msk.f32.mxu0 %vm3096_vm2, %v5021_v1  ;;  %6010 = vmatprep.mubr.msk.f32.mxu1 %vm3096_vm2, %v5021_v1 }
 0xe09   :  { %9222 = vrot.lane.b32.xlu0 %v9221_v22, %s9461_s22  ;;  %9187 = vrot.lane.b32.xlu1 %v9186_v29, %s9461_s22  ;;  %v9005_v41 = vunpack.i.h.bf16 %v13532_v19  ;;  %v5254_v19 = vsel %vm1435_vm12, %v9009_v53, %v9010_v15  ;;  %v5029_v53 = vld [vmem:[%s14044_s16 + $0x8] sm:$0xff]  ;;  %v9266_v38 = vpack.i.bf16 %v9019_v36, %v8969_v9  ;;  %v5030_v22 = vld [vmem:[%s14044_s16 + $0x10] sm:$0xff] }
 0xe0a   :  { %6491 = vmatprep.subr.bf16.mxu1 %v6490_v51  ;;  %v5231_v25 = vsel %vm246_vm1, %v8999_v32, %v9000_v49  ;;  %v9251_v43 = vpack.i.bf16 %v5255_v8, %v5254_v19 }
 0xe0b   :  { %6493 = vmatpush1.bf16.msra.mxu1 %v6492_v10  ;;  %v9241_v58 = vpack.i.bf16 %v9000_v49, %v5231_v25  ;;  %v5155_v33 = vsel %vm1435_vm12, %v9005_v41, %v14358_v52  ;;  %v5154_v56 = vsel %vm1435_vm12, %v9004_v20, %v9005_v41  ;;  %v9015_v20 = vunpack.i.h.bf16 %v13563_v59 }
 0xe0c   :  { %v9246_v32 = vpack.i.bf16 %v5155_v33, %v5154_v56  ;;  %v9020_v52 = vunpack.i.h.bf16 %v13577_v28  ;;  %v5031_v28 = vld [vmem:[%s14044_s16 + $0x18] sm:$0xff] }
 0xe0d   :  { %9227 = vrot.lane.b32.xlu0 %v9226_v47, %s9461_s22  ;;  %9197 = vrot.lane.b32.xlu1 %v9196_v5, %s9461_s22  ;;  %v5179_v34 = vsel %vm2628_vm9, %v9015_v20, %v14360_v39  ;;  %v5178_v11 = vsel %vm2628_vm9, %v9014_v63, %v9015_v20 }
 0xe0e   :  { %v9256_v59 = vpack.i.bf16 %v5179_v34, %v5178_v11  ;;  %v5279_v48 = vsel %vm2628_vm9, %v9020_v52, %v14360_v39  ;;  %v5278_v18 = vsel %vm2628_vm9, %v9019_v36, %v9020_v52  ;;  %v1962_v39 = vld [vmem:[%s14036_s8 + $0x10] sm:$0xff] }
 0xe0f   :  { %v9261_v0 = vpack.i.bf16 %v5279_v48, %v5278_v18 }
 0xe11   :  { %9232 = vrot.lane.b32.xlu0 %v9231_v62, %s9461_s22  ;;  %9207 = vrot.lane.b32.xlu1 %v9206_v61, %s9461_s22 }
 0xe15   :  { %9237 = vrot.lane.b32.xlu0 %v9236_v42, %s9461_s22  ;;  %9212 = vrot.lane.b32.xlu1 %v9211_v44, %s9461_s22 }
 0xe19   :  { %9242 = vrot.lane.b32.xlu0 %v9241_v58, %s9461_s22  ;;  %9217 = vrot.lane.b32.xlu1 %v9216_v50, %s9461_s22 }
 0xe1d   :  { %9247 = vrot.lane.b32.xlu0 %v9246_v32, %s9461_s22  ;;  %2347 = vperm.xlu1 %6870, %v1961_v27  }
 0xe21   :  { %9252 = vrot.lane.b32.xlu0 %v9251_v43, %s9461_s22  ;;  %2357 = vperm.xlu1 %6870, %v1963_v46  }
 0xe25   :  { %9257 = vrot.lane.b32.xlu0 %v9256_v59, %s9461_s22  ;;  %5671 = vperm.xlu1 %6870, %v5029_v53  }
 0xe29   :  { %9262 = vrot.lane.b32.xlu0 %v9261_v0, %s9461_s22  ;;  %5681 = vperm.xlu1 %6870, %v5031_v28  }
 0xe2b   :  { %v9033_v40 = vpop.permute.xlu1 %9032 }
 0xe2c   :  { %v9035_v49 = vunpack.i.h.bf16 %v9033_v40  ;;  %v9034_v31 = vunpack.i.l.bf16 %v9033_v40 }
 0xe2d   :  { %9267 = vrot.lane.b32.xlu0 %v9266_v38, %s9461_s22 }
 0xe2e   :  { %v5401_v56 = vsel %vm2803_vm10, %v9034_v31, %v9035_v49 }
 0xe2f   :  { %v9038_v29 = vpop.permute.xlu1 %9037 }
 0xe30   :  { %v9040_v50 = vunpack.i.h.bf16 %v9038_v29  ;;  %v9039_v33 = vunpack.i.l.bf16 %v9038_v29 }
 0xe31   :  { %2352 = vperm.xlu0 %6869, %v1962_v39  }
 0xe32   :  { %v5593_v53 = vsel %vm2803_vm10, %v9039_v33, %v9040_v50 }
 0xe33   :  { %v13703_v45 = vpop.permute.xlu1 %9042 }
 0xe34   :  { %v9044_v47 = vunpack.i.l.bf16 %v13703_v45 }
 0xe35   :  { %5666 = vperm.xlu0 %6869, %v5028_v35  }
 0xe37   :  { %v13708_v55 = vpop.permute.xlu1 %9047 }
 0xe38   :  { %v9049_v16 = vunpack.i.l.bf16 %v13708_v55 }
 0xe39   :  { %5676 = vperm.xlu0 %6869, %v5030_v22  }
 0xe3b   :  { %v9068_v26 = vpop.permute.xlu0 %9067  ;;  %v13710_v14 = vpop.permute.xlu1 %9052 }
 0xe3c   :  { %v9069_v2 = vunpack.i.l.bf16 %v9068_v26  ;;  %v9054_v61 = vunpack.i.l.bf16 %v13710_v14  ;;  %v9070_v22 = vunpack.i.h.bf16 %v9068_v26 }
 0xe3e   :  { %v13716_v6 = vsel %vm2803_vm10, %v9069_v2, %v9049_v16 }
 0xe3f   :  { %v13718_v10 = vpop.permute.xlu1 %9057 }
 0xe40   :  { %v9059_v21 = vunpack.i.l.bf16 %v13718_v10 }
 0xe43   :  { %v13720_v51 = vpop.permute.xlu0 %9077  ;;  %v9063_v5 = vpop.permute.xlu1 %9062 }
 0xe44   :  { %v9079_v12 = vunpack.i.l.bf16 %v13720_v51  ;;  %v9064_v37 = vunpack.i.l.bf16 %v9063_v5  ;;  %v9065_v0 = vunpack.i.h.bf16 %v9063_v5 }
 0xe46   :  { %v13728_v57 = vsel %vm2803_vm10, %v9079_v12, %v9059_v21  ;;  %v13733_v13 = vsel %vm2803_vm10, %v9064_v37, %v9044_v47 }
 0xe47   :  { %v9088_v9 = vpop.permute.xlu0 %9087  ;;  %v9073_v62 = vpop.permute.xlu1 %9072 }
 0xe48   :  { %v9074_v23 = vunpack.i.l.bf16 %v9073_v62  ;;  %v9089_v15 = vunpack.i.l.bf16 %v9088_v9  ;;  %v9090_v43 = vunpack.i.h.bf16 %v9088_v9 }
 0xe4a   :  { %v13739_v4 = vsel %vm2803_vm10, %v9074_v23, %v9054_v61  ;;  %v5592_v52 = vsel %vm2803_vm10, %v9089_v15, %v9039_v33  ;;  %v9075_v23 = vunpack.i.h.bf16 %v9073_v62 }
 0xe4b   :  { %v9093_v42 = vpop.permute.xlu0 %9092  ;;  %v9083_v63 = vpop.permute.xlu1 %9082 }
 0xe4c   :  { %v9095_v44 = vunpack.i.h.bf16 %v9093_v42  ;;  %v9094_v25 = vunpack.i.l.bf16 %v9093_v42  ;;  %v9085_v41 = vunpack.i.h.bf16 %v9083_v63  ;;  %v9084_v58 = vunpack.i.l.bf16 %v9083_v63 }
 0xe4e   :  { %v5400_v27 = vsel %vm2803_vm10, %v9084_v58, %v9034_v31  ;;  %v5402_v32 = vsel %vm2803_vm10, %v9085_v41, %v9094_v25  ;;  %v5403_v8 = vsel %vm2803_vm10, %v9094_v25, %v9095_v44  ;;  %v9080_v44 = vunpack.i.h.bf16 %v13720_v51 }
 0xe4f   :  { %v6456_v19 = vpack.c.bf16 %v5402_v32, %v5400_v27  ;;  %v9098_v20 = vpop.permute.xlu0 %9097  ;;  %v6454_v46 = vpack.c.bf16 %v5403_v8, %v5401_v56 }
 0xe50   :  { %v9100_v34 = vunpack.i.h.bf16 %v9098_v20  ;;  %v9099_v11 = vunpack.i.l.bf16 %v9098_v20 }
 0xe51   :  { %6455 = vmatprep.subr.bf16.mxu0 %v6454_v46 }
 0xe52   :  { %v5594_v36 = vsel %vm2803_vm10, %v9090_v43, %v9099_v11  ;;  %6457 = vmatpush1.bf16.msra.mxu0 %v6456_v19  ;;  %v5595_v59 = vsel %vm2803_vm10, %v9099_v11, %v9100_v34  ;;  %v9045_v43 = vunpack.i.h.bf16 %v13703_v45  ;;  %v9050_v34 = vunpack.i.h.bf16 %v13708_v55 }
 0xe53   :  { %v6496_v1 = vpack.c.bf16 %v5594_v36, %v5592_v52  ;;  %v9103_v48 = vpop.permute.xlu0 %9102  ;;  %v13749_v18 = vpop.permute.xlu1 %9122  ;;  %v6494_v28 = vpack.c.bf16 %v5595_v59, %v5593_v53  ;;  %v9055_v52 = vunpack.i.h.bf16 %v13710_v14  ;;  %v9060_v36 = vunpack.i.h.bf16 %v13718_v10 }
 0xe54   :  { %v9104_v38 = vunpack.i.l.bf16 %v9103_v48  ;;  %v9105_v46 = vunpack.i.h.bf16 %v9103_v48  ;;  %v9125_v53 = vunpack.i.h.bf16 %v13749_v18  ;;  %v9124_v59 = vunpack.i.l.bf16 %v13749_v18 }
 0xe55   :  { %6495 = vmatprep.subr.bf16.mxu1 %v6494_v28  ;;  %v13838_v45 = vsel %vm2803_vm10, %v9059_v21, %v9060_v36 }
 0xe56   :  { %v13752_v40 = vsel %vm2803_vm10, %v9065_v0, %v9104_v38  ;;  %6497 = vmatpush1.bf16.msra.mxu1 %v6496_v1 }
 0xe57   :  { %v6464_v39 = vpack.c.bf16 %v13752_v40, %v13733_v13  ;;  %v9108_v29 = vpop.permute.xlu0 %9107  ;;  %v13756_v35 = vpop.permute.xlu1 %9127 }
 0xe58   :  { %v9109_v2 = vunpack.i.l.bf16 %v9108_v29  ;;  %v9110_v11 = vunpack.i.h.bf16 %v9108_v29  ;;  %v9130_v0 = vunpack.i.h.bf16 %v13756_v35  ;;  %v9129_v48 = vunpack.i.l.bf16 %v13756_v35 }
 0xe59   :  { %v5409_v29 = vsel %vm2803_vm10, %v9044_v47, %v9045_v43  ;;  %v5405_v35 = vsel %vm2803_vm10, %v9124_v59, %v9125_v53 }
 0xe5a   :  { %v13759_v12 = vsel %vm2803_vm10, %v9070_v22, %v9109_v2  ;;  %v5411_v22 = vsel %vm2803_vm10, %v9104_v38, %v9105_v46  ;;  %v13826_v18 = vsel %vm2803_vm10, %v9109_v2, %v9110_v11  ;;  %v13833_v38 = vsel %vm2803_vm10, %v9054_v61, %v9055_v52 }
 0xe5b   :  { %v13763_v37 = vpop.permute.xlu0 %9112  ;;  %v13765_v9 = vpop.permute.xlu1 %9132  ;;  %v6462_v2 = vpack.c.bf16 %v5411_v22, %v5409_v29  ;;  %v5597_v14 = vsel %vm2803_vm10, %v9129_v48, %v9130_v0 }
 0xe5c   :  { %v9114_v49 = vunpack.i.l.bf16 %v13763_v37  ;;  %v9115_v41 = vunpack.i.h.bf16 %v13763_v37  ;;  %v9135_v46 = vunpack.i.h.bf16 %v13765_v9 }
 0xe5e   :  { %v13769_v31 = vsel %vm2803_vm10, %v9075_v23, %v9114_v49  ;;  %v5419_v53 = vsel %vm2803_vm10, %v9114_v49, %v9115_v41 }
 0xe5f   :  { %v13773_v42 = vpop.permute.xlu0 %9117  ;;  %v13775_v63 = vpop.permute.xlu1 %9137 }
 0xe60   :  { %v9119_v25 = vunpack.i.l.bf16 %v13773_v42  ;;  %v9120_v37 = vunpack.i.h.bf16 %v13773_v42  ;;  %v9140_v22 = vunpack.i.h.bf16 %v13775_v63 }
 0xe62   :  { %v13782_v62 = vsel %vm2803_vm10, %v9080_v44, %v9119_v25  ;;  %v13823_v44 = vsel %vm2803_vm10, %v9049_v16, %v9050_v34 }
 0xe63   :  { %v13786_v58 = vpop.permute.xlu1 %9142  ;;  %v13788_v50 = vpop.permute.xlu0 %9157  ;;  %v6502_v61 = vpack.c.bf16 %v13826_v18, %v13823_v44  ;;  %v9139_v44 = vunpack.i.l.bf16 %v13775_v63 }
 0xe64   :  { %v9144_v63 = vunpack.i.l.bf16 %v13786_v58 }
 0xe67   :  { %v13790_v33 = vpop.permute.xlu1 %9147 }
 0xe6b   :  { %v13792_v56 = vpop.permute.xlu0 %9167  ;;  %v13794_v15 = vpop.permute.xlu1 %9152 }
 0xe6c   :  { %v9154_v18 = vunpack.i.l.bf16 %v13794_v15  ;;  %v9170_v13 = vunpack.i.h.bf16 %v13792_v56 }
 0xe6f   :  { %v13796_v51 = vpop.permute.xlu0 %9182  ;;  %v13798_v27 = vpop.permute.xlu1 %9162 }
 0xe70   :  { %v9164_v40 = vunpack.i.l.bf16 %v13798_v27 }
 0xe73   :  { %v13800_v32 = vpop.permute.xlu0 %9192  ;;  %v9173_v8 = vpop.permute.xlu1 %9172 }
 0xe74   :  { %v9174_v23 = vunpack.i.l.bf16 %v9173_v8  ;;  %v9175_v55 = vunpack.i.h.bf16 %v9173_v8 }
 0xe76   :  { %v5404_v10 = vsel %vm2803_vm10, %v9174_v23, %v9124_v59  ;;  %v9159_v59 = vunpack.i.l.bf16 %v13788_v50  ;;  %v9145_v23 = vunpack.i.h.bf16 %v13786_v58  ;;  %v5605_v58 = vsel %vm2803_vm10, %v9139_v44, %v9140_v22 }
 0xe77   :  { %v13802_v19 = vpop.permute.xlu0 %9202  ;;  %v13804_v20 = vpop.permute.xlu1 %9177  ;;  %v9185_v22 = vunpack.i.h.bf16 %v13796_v51 }
 0xe7b   :  { %v9223_v1 = vpop.permute.xlu0 %9222  ;;  %v13812_v28 = vpop.permute.xlu1 %9187 }
 0xe7c   :  { %v9224_v34 = vunpack.i.l.bf16 %v9223_v1  ;;  %v9225_v0 = vunpack.i.h.bf16 %v9223_v1 }
 0xe7e   :  { %v5596_v49 = vsel %vm2803_vm10, %v9224_v34, %v9129_v48 }
 0xe7f   :  { %v9228_v26 = vpop.permute.xlu0 %9227  ;;  %v13842_v43 = vpop.permute.xlu1 %9197 }
 0xe80   :  { %v9230_v16 = vunpack.i.h.bf16 %v9228_v26  ;;  %v9229_v47 = vunpack.i.l.bf16 %v9228_v26  ;;  %v9134_v26 = vunpack.i.l.bf16 %v13765_v9  ;;  %v13859_v9 = vsel %vm2803_vm10, %v9119_v25, %v9120_v37 }
 0xe81   :  { %v9155_v37 = vunpack.i.h.bf16 %v13794_v15  ;;  %v9160_v15 = vunpack.i.h.bf16 %v13788_v50  ;;  %v9179_v50 = vunpack.i.l.bf16 %v13804_v20 }
 0xe82   :  { %v5406_v21 = vsel %vm2803_vm10, %v9175_v55, %v9229_v47  ;;  %v5407_v8 = vsel %vm2803_vm10, %v9229_v47, %v9230_v16  ;;  %v9149_v47 = vunpack.i.l.bf16 %v13790_v33  ;;  %v5413_v34 = vsel %vm2803_vm10, %v9134_v26, %v9135_v46 }
 0xe83   :  { %v6460_v11 = vpack.c.bf16 %v5406_v21, %v5404_v10  ;;  %v9233_v52 = vpop.permute.xlu0 %9232  ;;  %v6458_v36 = vpack.c.bf16 %v5407_v8, %v5405_v35  ;;  %v9150_v35 = vunpack.i.h.bf16 %v13790_v33  ;;  %v13867_v16 = vpop.permute.xlu1 %9207  ;;  %v6510_v21 = vpack.c.bf16 %v13859_v9, %v13838_v45 }
 0xe84   :  { %v9235_v29 = vunpack.i.h.bf16 %v9233_v52  ;;  %v9234_v5 = vunpack.i.l.bf16 %v9233_v52  ;;  %v5412_v8 = vsel %vm2803_vm10, %v9154_v18, %v9134_v26  ;;  %v5421_v26 = vsel %vm2803_vm10, %v9144_v63, %v9145_v23 }
 0xe85   :  { %6459 = vmatprep.subr.bf16.mxu0 %v6458_v36  ;;  %v13886_v36 = vsel %vm2803_vm10, %v9149_v47, %v9150_v35  ;;  %v5420_v35 = vsel %vm2803_vm10, %v9164_v40, %v9144_v63 }
 0xe86   :  { %v5598_v41 = vsel %vm2803_vm10, %v9225_v0, %v9234_v5  ;;  %6461 = vmatpush1.bf16.msra.mxu0 %v6460_v11  ;;  %v5599_v1 = vsel %vm2803_vm10, %v9234_v5, %v9235_v29  ;;  %v6470_v5 = vpack.c.bf16 %v5419_v53, %v13833_v38  ;;  %v5604_v38 = vsel %vm2803_vm10, %v9159_v59, %v9139_v44 }
 0xe87   :  { %v6500_v55 = vpack.c.bf16 %v5598_v41, %v5596_v49  ;;  %v9238_v42 = vpop.permute.xlu0 %9237  ;;  %6463 = vmatprep.subr.bf16.mxu0 %v6462_v2  ;;  %v6498_v25 = vpack.c.bf16 %v5599_v1, %v5597_v14  ;;  %v13892_v53 = vpop.permute.xlu1 %9212  ;;  %v14412_v29 = vpack.c.bf16 %v13759_v12, %v13716_v6  ;;  %v9184_v59 = vunpack.i.l.bf16 %v13796_v51 }
 0xe88   :  { %v9240_v48 = vunpack.i.h.bf16 %v9238_v42  ;;  %v9239_v10 = vunpack.i.l.bf16 %v9238_v42  ;;  %v9194_v49 = vunpack.i.l.bf16 %v13800_v32  ;;  %v9200_v6 = vunpack.i.h.bf16 %v13842_v43 }
 0xe89   :  { %6499 = vmatprep.subr.bf16.mxu1 %v6498_v25  ;;  %v9199_v12 = vunpack.i.l.bf16 %v13842_v43 }
 0xe8a   :  { %v5414_v2 = vsel %vm2803_vm10, %v9155_v37, %v9239_v10  ;;  %6465 = vmatpush1.bf16.msra.mxu0 %v6464_v39  ;;  %6501 = vmatpush1.bf16.msra.mxu1 %v6500_v55  ;;  %v5415_v33 = vsel %vm2803_vm10, %v9239_v10, %v9240_v48  ;;  %v9180_v39 = vunpack.i.h.bf16 %v13804_v20  ;;  %v9165_v20 = vunpack.i.h.bf16 %v13798_v27 }
 0xe8b   :  { %v6468_v46 = vpack.c.bf16 %v5414_v2, %v5412_v8  ;;  %v9243_v14 = vpop.permute.xlu0 %9242  ;;  %6503 = vmatprep.subr.bf16.mxu1 %v6502_v61  ;;  %v6466_v11 = vpack.c.bf16 %v5415_v33, %v5413_v34  ;;  %v9169_v61 = vunpack.i.l.bf16 %v13792_v56  ;;  %v9195_v56 = vunpack.i.h.bf16 %v13800_v32  ;;  %v9218_v37 = vpop.permute.xlu1 %9217 }
 0xe8c   :  { %v9245_v45 = vunpack.i.h.bf16 %v9243_v14  ;;  %v9244_v52 = vunpack.i.l.bf16 %v9243_v14  ;;  %v5425_v51 = vsel %vm2803_vm10, %v9179_v50, %v9180_v39  ;;  %v9190_v27 = vunpack.i.h.bf16 %v13812_v28 }
 0xe8d   :  { %6467 = vmatprep.subr.bf16.mxu0 %v6466_v11  ;;  %v9189_v55 = vunpack.i.l.bf16 %v13812_v28  ;;  %v14413_v32 = vpack.c.bf16 %v13769_v31, %v13739_v4  ;;  %v5612_v25 = vsel %vm2803_vm10, %v9169_v61, %v9149_v47  ;;  %v5427_v34 = vsel %vm2803_vm10, %v9184_v59, %v9185_v22 }
 0xe8e   :  { %v5606_v0 = vsel %vm2803_vm10, %v9160_v15, %v9244_v52  ;;  %6469 = vmatpush1.bf16.msra.mxu0 %v6468_v46  ;;  %6505 = vmatpush1.bf16.msra.mxu1 %v14412_v29  ;;  %v5607_v44 = vsel %vm2803_vm10, %v9244_v52, %v9245_v45  ;;  %v5619_v8 = vsel %vm2803_vm10, %v9194_v49, %v9195_v56  ;;  %v9210_v2 = vunpack.i.h.bf16 %v13867_v16 }
 0xe8f   :  { %v6508_v23 = vpack.c.bf16 %v5606_v0, %v5604_v38  ;;  %v9248_v9 = vpop.permute.xlu0 %9247  ;;  %6471 = vmatprep.subr.bf16.mxu0 %v6470_v5  ;;  %v6506_v18 = vpack.c.bf16 %v5607_v44, %v5605_v58  ;;  %v6478_v58 = vpack.c.bf16 %v5427_v34, %v5425_v51  ;;  %v5424_v4 = vsel %vm2803_vm10, %v9199_v12, %v9179_v50 }
 0xe90   :  { %v9250_v41 = vunpack.i.h.bf16 %v9248_v9  ;;  %v9249_v1 = vunpack.i.l.bf16 %v9248_v9  ;;  %v5426_v31 = vsel %vm2803_vm10, %v9200_v6, %v9184_v59  ;;  %v9209_v47 = vunpack.i.l.bf16 %v13867_v16 }
 0xe91   :  { %6507 = vmatprep.subr.bf16.mxu1 %v6506_v18  ;;  %v9219_v33 = vunpack.i.l.bf16 %v9218_v37  ;;  %v14414_v15 = vpack.c.bf16 %v13782_v62, %v13728_v57  ;;  %v5617_v46 = vsel %vm2803_vm10, %v9189_v55, %v9190_v27  ;;  %v9205_v14 = vunpack.i.h.bf16 %v13802_v19 }
 0xe92   :  { %v5422_v42 = vsel %vm2803_vm10, %v9165_v20, %v9249_v1  ;;  %6473 = vmatpush1.bf16.msra.mxu0 %v14413_v32  ;;  %6509 = vmatpush1.bf16.msra.mxu1 %v6508_v23  ;;  %v5423_v63 = vsel %vm2803_vm10, %v9249_v1, %v9250_v41  ;;  %v9204_v11 = vunpack.i.l.bf16 %v13802_v19  ;;  %v9215_v62 = vunpack.i.h.bf16 %v13892_v53  ;;  %v5025_v32 = vld [vmem:[%s14043_s15 + $0x28] sm:$0xff] }
 0xe93   :  { %v6476_v43 = vpack.c.bf16 %v5422_v42, %v5420_v35  ;;  %v9253_v48 = vpop.permute.xlu0 %9252  ;;  %6511 = vmatprep.subr.bf16.mxu1 %v6510_v21  ;;  %v6474_v10 = vpack.c.bf16 %v5423_v63, %v5421_v26  ;;  %v6480_v26 = vpack.c.bf16 %v5426_v31, %v5424_v4  ;;  %v6518_v50 = vpack.c.bf16 %v5619_v8, %v5617_v46  ;;  %v5023_v35 = vld [vmem:[%s14043_s15 + $0x18] sm:$0xff]  ;;  %v5024_v63 = vld [vmem:[%s14043_s15 + $0x20] sm:$0xff] }
 0xe94   :  { %v9255_v5 = vunpack.i.h.bf16 %v9253_v48  ;;  %v9254_v28 = vunpack.i.l.bf16 %v9253_v48  ;;  %v5616_v57 = vsel %vm2803_vm10, %v9204_v11, %v9189_v55  ;;  %v5429_v61 = vsel %vm2803_vm10, %v9209_v47, %v9210_v2  ;;  %v5022_v55 = vld [vmem:[%s14043_s15 + $0x10] sm:$0xff]  ;;  %v14417_v4 = vld [vmem:[#allocation47_spill] sm:$0xff] }
 0xe95   :  { %6475 = vmatprep.subr.bf16.mxu0 %v6474_v10  ;;  %v9214_v22 = vunpack.i.l.bf16 %v13892_v53  ;;  %v5428_v19 = vsel %vm2803_vm10, %v9219_v33, %v9209_v47  ;;  %v5618_v29 = vsel %vm2803_vm10, %v9205_v14, %v9194_v49  ;;  %v5020_v53 = vld [vmem:[%s14043_s15] sm:$0xff]  ;;  %v14415_v10 = vld [vmem:[#allocation45_spill] sm:$0xff]  ;;  %v14418_v47 = vld [vmem:[#allocation50_spill] sm:$0xff] }
 0xe96   :  { %v5614_v21 = vsel %vm2803_vm10, %v9170_v13, %v9254_v28  ;;  %6477 = vmatpush1.bf16.msra.mxu0 %v6476_v43  ;;  %6513 = vmatpush1.bf16.msra.mxu1 %v14414_v15  ;;  %v5615_v38 = vsel %vm2803_vm10, %v9254_v28, %v9255_v5  ;;  %v9220_v13 = vunpack.i.h.bf16 %v9218_v37  ;;  %v6520_v23 = vpack.c.bf16 %v5618_v29, %v5616_v57  ;;  %v5026_v37 = vld [vmem:[%s14043_s15 + $0x30] sm:$0xff]  ;;  %v14422_v57 = vld [vmem:[#allocation55_spill] sm:$0xff] }
 0xe97   :  { %v6516_v45 = vpack.c.bf16 %v5614_v21, %v5612_v25  ;;  %v9258_v52 = vpop.permute.xlu0 %9257  ;;  %6479 = vmatprep.subr.bf16.mxu0 %v6478_v58  ;;  %v6514_v16 = vpack.c.bf16 %v5615_v38, %v13886_v36  ;;  %v5621_v56 = vsel %vm2803_vm10, %v9214_v22, %v9215_v62  ;;  %v5027_v25 = vld [vmem:[%s14043_s15 + $0x38] sm:$0xff]  ;;  %v6526_v34 = vadd.f32 %v13388_v17, %v14415_v10  ;;  %v14416_v5 = vld [vmem:[#allocation46_spill] sm:$0xff]  ;;  %v14419_v38 = vld [vmem:[#allocation48_spill] sm:$0xff]  ;;  %s9465_s15 = smov [#allocation11]  }
 0xe98   :  { %v9260_v40 = vunpack.i.h.bf16 %v9258_v52  ;;  %v9259_v39 = vunpack.i.l.bf16 %v9258_v52  ;;  %v6530_v28 = vadd.f32 %v13388_v17, %v14416_v5  ;;  %v6558_v46 = vadd.f32 %v13388_v17, %v14419_v38  ;;  %v14420_v52 = vld [vmem:[#allocation49_spill] sm:$0xff]  ;;  %v14431_v10 = vld [vmem:[#allocation44_spill] sm:$0xff]  ;;  %v14432_v5 = vld [vmem:[#allocation58_spill] sm:$0xff]  ;;  %s5928_s26 = sshll.u32 %s9465_s15, 4  ;;  %s5929_s26 = int_to_ptr.vmem [resolvable:$true] %s5928_s26 }
 0xe99   :  { %6515 = vmatprep.subr.bf16.mxu1 %v6514_v16  ;;  %v6527_v2 = vadd.f32 %v6526_v34, %v12431_v54  ;;  %v6562_v16 = vadd.f32 %v13388_v17, %v14420_v52  ;;  %v14435_v52 = vld [vmem:[#allocation56_spill] sm:$0xff]  ;;  %s9413_s20 = scalar_lea.vmem %s5929_s26, 2048  ;;  %p9418_p13 = scmp.lt.s32.totalorder %s5929_s26, %s5929_s26 }
 0xe9a   :  { %v5430_v0 = vsel %vm2803_vm10, %v9220_v13, %v9259_v39  ;;  %6481 = vmatpush1.bf16.msra.mxu0 %v6480_v26  ;;  %6517 = vmatpush1.bf16.msra.mxu1 %v6516_v45  ;;  %v5431_v36 = vsel %vm2803_vm10, %v9259_v39, %v9260_v40  ;;  %v6531_v21 = vadd.f32 %v6530_v28, %v12436_v7  ;;  %v14421_v26 = vld [vmem:[#allocation53_spill] sm:$0xff]  ;;  %p9414_p12 = scmp.ne.s32.totalorder %s5929_s26, %s9413_s20  ;;  %p9419_p0 = scmp.lt.s32.totalorder %s9413_s20, %s9413_s20 }
 0xe9b   :  { %v6484_v44 = vpack.c.bf16 %v5430_v0, %v5428_v19  ;;  %v9263_v59 = vpop.permute.xlu0 %9262  ;;  %6519 = vmatprep.subr.bf16.mxu1 %v6518_v50  ;;  %v6482_v20 = vpack.c.bf16 %v5431_v36, %v5429_v61  ;;  %v14423_v61 = vld [vmem:[#allocation51_spill] sm:$0xff]  ;;  %v14424_v0 = vld [vmem:[#allocation52_spill] sm:$0xff] }
 0xe9c   :  { %v9265_v9 = vunpack.i.h.bf16 %v9263_v59  ;;  %v9264_v18 = vunpack.i.l.bf16 %v9263_v59  ;;  %v2348_v43 = vpop.permute.xlu1 %2347  ;;  %v6559_v59 = vadd.f32 %v6558_v46, %v12458_v30  ;;  %p9420_p1 = por %p9419_p0, %p9418_p13 }
 0xe9d   :  { %6483 = vmatprep.subr.bf16.mxu0 %v6482_v20  ;;  %v6534_v31 = vadd.f32 %v2348_v43, %v14417_v4  ;;  %v6538_v33 = vadd.f32 %v2348_v43, %v14418_v47  ;;  %v6570_v36 = vadd.f32 %v2348_v43, %v14424_v0  ;;  %v14425_v20 = vld [vmem:[#allocation54_spill] sm:$0xff]  ;;  %v14433_v47 = vld [vmem:[#allocation19_spill] sm:$0xff] }
 0xe9e   :  { %6485 = vmatpush1.bf16.msra.mxu0 %v6484_v44  ;;  %6521 = vmatpush1.bf16.msra.mxu1 %v6520_v23  ;;  %v5623_v41 = vsel %vm2803_vm10, %v9264_v18, %v9265_v9  ;;  %p9421_p2 = pnand %p9420_p1, %p9414_p12 }
 0xe9f   :  { %v9268_v1 = vpop.permute.xlu0 %9267  ;;  %v6522_v49 = vpack.c.bf16 %v5623_v41, %v5621_v56  ;;  %v6535_v54 = vadd.f32 %v6534_v31, %v12445_v60  ;;  %v6539_v7 = vadd.f32 %v6538_v33, %v12483_v24  ;;  %v14426_v24 = vld [vmem:[#allocation34_spill] sm:$0xff]  ;;  %v14427_v56 = vld [vmem:[#allocation59_spill] sm:$0xff]  ;;  %v6571_v34 = vadd.f32 %v6570_v36, %v14431_v10 }
 0xea0   :  { %v9270_v6 = vunpack.i.h.bf16 %v9268_v1  ;;  %v9269_v12 = vunpack.i.l.bf16 %v9268_v1  ;;  %v13975_v58 = vpop.permute.xlu1 %2357 }
 0xea1   :  { %5761 = vmatmul.mubr.f32.vlgmr.msra.gmra.mrb[24].mxu0 %v5020_v53  ;;  %6523 = vmatprep.subr.bf16.mxu1 %v6522_v49  ;;  %v6550_v60 = vadd.f32 %v13975_v58, %v14425_v20  ;;  %v6554_v41 = vadd.f32 %v13975_v58, %v14427_v56  ;;  %v14439_v20 = vld [vmem:[#allocation37_spill] sm:$0xff] }
 0xea2   :  { %v5620_v51 = vsel %vm2803_vm10, %v9269_v12, %v9214_v22  ;;  %v5622_v27 = vsel %vm2803_vm10, %v9270_v6, %v9264_v18  ;;  %6007 = vmatprep.mubr.msk.f32.mxu0 %vm3096_vm2, %v5023_v35  ;;  %v6566_v22 = vadd.f32 %v2348_v43, %v14423_v61 }
 0xea3   :  { %v6524_v42 = vpack.c.bf16 %v5622_v27, %v5620_v51  ;;  %v6551_v33 = vadd.f32 %v6550_v60, %v14433_v47 }
 0xea4   :  { %v5672_v14 = vpop.permute.xlu1 %5671 }
 0xea5   :  { %5767 = vmatmul.mubr.f32.gmra.mrb[26].mxu0 %v5022_v55  ;;  %6525 = vmatpush1.bf16.msra.mxu1 %v6524_v42  ;;  %v6536_v19 = vadd.f32 %v6535_v54, %v5672_v14  ;;  %v6540_v44 = vadd.f32 %v6539_v7, %v5672_v14 }
 0xea6   :  { %6008 = vmatprep.mubr.msk.f32.mxu0 %vm3096_vm2, %v5025_v32 }
 0xea8   :  { %5850 = vmatmul.mubr.f32.vlgmr.msra.gmra.mrb[24].mxu1 %v5020_v53  ;;  %v6563_v53 = vadd.f32 %v6562_v16, %v14426_v24  ;;  %v5682_v12 = vpop.permute.xlu1 %5681  ;;  %v6582_v16 = vadd.f32 %v13975_v58, %v14435_v52 }
 0xea9   :  { %5773 = vmatmul.mubr.f32.gmra.mrb[28].mxu0 %v5024_v63  ;;  %6011 = vmatprep.mubr.msk.f32.mxu1 %vm3096_vm2, %v5023_v35  ;;  %v14428_v35 = vld [vmem:[#allocation17_spill] sm:$0xff] }
 0xeaa   :  { %6009 = vmatprep.mubr.msk.f32.mxu0 %vm3096_vm2, %v5027_v25  ;;  %v6583_v60 = vadd.f32 %v6582_v16, %v14439_v20 }
 0xeac   :  { %5856 = vmatmul.mubr.f32.gmra.mrb[26].mxu1 %v5022_v55  ;;  %v14429_v55 = vld [vmem:[#allocation38_spill] sm:$0xff] }
 0xead   :  { %5779 = vmatmul.mubr.f32.gmra.mrb[30].mxu0 %v5026_v37  ;;  %6012 = vmatprep.mubr.msk.f32.mxu1 %vm3096_vm2, %v5025_v32  ;;  %v6567_v42 = vadd.f32 %v6566_v22, %v14429_v55  ;;  %v14430_v32 = vld [vmem:[#allocation57_spill] sm:$0xff]  ;;  %v14438_v22 = vld [vmem:[#allocation18_spill] sm:$0xff] }
 0xeb0   :  { %5862 = vmatmul.mubr.f32.gmra.mrb[28].mxu1 %v5024_v63  ;;  %v2353_v48 = vpop.permute.xlu0 %2352 }
 0xeb1   :  { %6013 = vmatprep.mubr.msk.f32.mxu1 %vm3096_vm2, %v5027_v25  ;;  %v6542_v13 = vadd.f32 %v2353_v48, %v14421_v26  ;;  %v6546_v62 = vadd.f32 %v2353_v48, %v14422_v57  ;;  %v6574_v63 = vadd.f32 %v2353_v48, %v14430_v32  ;;  %v6578_v28 = vadd.f32 %v2353_v48, %v14432_v5  ;;  %v14437_v57 = vld [vmem:[#allocation60_spill] sm:$0xff] }
 0xeb3   :  { %v6543_v18 = vadd.f32 %v6542_v13, %v12522_v3  ;;  %v6547_v6 = vadd.f32 %v6546_v62, %v14428_v35  ;;  %v6586_v62 = vadd.f32 %v13975_v58, %v14437_v57 }
 0xeb4   :  { %5868 = vmatmul.mubr.f32.gmra.mrb[30].mxu1 %v5026_v37  ;;  %v5667_v8 = vpop.permute.xlu0 %5666 }
 0xeb5   :  { %v6528_v15 = vadd.f32 %v6527_v2, %v5667_v8  ;;  %v6532_v45 = vadd.f32 %v6531_v21, %v5667_v8  ;;  %v6560_v49 = vadd.f32 %v6559_v59, %v5667_v8  ;;  %v6564_v27 = vadd.f32 %v6563_v53, %v5667_v8 }
 0xeb6   :  { %v6568_v21 = vadd.f32 %v6567_v42, %v5672_v14 }
 0xeb8   :  { %v5677_v29 = vpop.permute.xlu0 %5676 }
 0xeb9   :  { %v6544_v30 = vadd.f32 %v6543_v18, %v5677_v29  ;;  %v6548_v43 = vadd.f32 %v6547_v6, %v5677_v29  ;;  %v6584_v18 = vadd.f32 %v6583_v60, %v5682_v12 }
 0xf74   :  { %v5762_v11 = vpop.f32.mrb[24].mxu0 }
 0xf75   :  { %v6529_v40 = vadd.f32 %v6528_v15, %v5762_v11  ;;  %v5764_v39 = vpop.f32.mrb[25].mxu0  ;;  %v14434_v15 = vld [vmem:[#allocation21_spill] sm:$0xff]  ;;  %v6552_v11 = vadd.f32 %v6551_v33, %v5682_v12 }
 0xf76   :  { %v6533_v50 = vadd.f32 %v6532_v45, %v5764_v39  ;;  %v6555_v38 = vadd.f32 %v6554_v41, %v14434_v15  ;;  %v6572_v45 = vadd.f32 %v6571_v34, %v5672_v14  ;;  %v14436_v39 = vld [vmem:[#allocation16_spill] sm:$0xff] }
 0xf77   :  { %5906 = vst [vmem:[#allocation11] sm:$0xff] %v6529_v40  ;;  %v6575_v54 = vadd.f32 %v6574_v63, %v14436_v39 }
 0xf78   :  { %5907 = vst [vmem:[#allocation11 + $0x8] sm:$0xff] %v6533_v50  ;;  %v5768_v17 = vpop.f32.mrb[26].mxu0  ;;  %v6556_v40 = vadd.f32 %v6555_v38, %v5682_v12 }
 0xf79   :  { %v6537_v23 = vadd.f32 %v6536_v19, %v5768_v17  ;;  %v5770_v9 = vpop.f32.mrb[27].mxu0  ;;  %v6579_v19 = vadd.f32 %v6578_v28, %v14438_v22  ;;  %v6576_v0 = vadd.f32 %v6575_v54, %v5677_v29 }
 0xf7a   :  { %v6541_v1 = vadd.f32 %v6540_v44, %v5770_v9  ;;  %v14440_v9 = vld [vmem:[#allocation25_spill] sm:$0xff] }
 0xf7b   :  { %5908 = vst [vmem:[#allocation11 + $0x10] sm:$0xff] %v6537_v23  ;;  %v5851_v51 = vpop.f32.mrb[24].mxu1  ;;  %v6580_v17 = vadd.f32 %v6579_v19, %v5677_v29  ;;  %v6587_v58 = vadd.f32 %v6586_v62, %v14440_v9 }
 0xf7c   :  { %5909 = vst [vmem:[#allocation11 + $0x18] sm:$0xff] %v6541_v1  ;;  %v6561_v3 = vadd.f32 %v6560_v49, %v5851_v51  ;;  %v5774_v25 = vpop.f32.mrb[28].mxu0  ;;  %v5853_v37 = vpop.f32.mrb[25].mxu1 }
 0xf7d   :  { %v6545_v4 = vadd.f32 %v6544_v30, %v5774_v25  ;;  %v6565_v31 = vadd.f32 %v6564_v27, %v5853_v37  ;;  %v5776_v2 = vpop.f32.mrb[29].mxu0  ;;  %v6588_v53 = vadd.f32 %v6587_v58, %v5682_v12 }
 0xf7e   :  { %5915 = vst [vmem:[#allocation11 + $0x40] sm:$0xff] %v6561_v3  ;;  %v6549_v8 = vadd.f32 %v6548_v43, %v5776_v2 }
 0xf7f   :  { %5910 = vst [vmem:[#allocation11 + $0x20] sm:$0xff] %v6545_v4  ;;  %5916 = vst [vmem:[#allocation11 + $0x48] sm:$0xff] %v6565_v31  ;;  %v5857_v46 = vpop.f32.mrb[26].mxu1 }
 0xf80   :  { %5911 = vst [vmem:[#allocation11 + $0x28] sm:$0xff] %v6549_v8  ;;  %v6569_v48 = vadd.f32 %v6568_v21, %v5857_v46  ;;  %v5780_v26 = vpop.f32.mrb[30].mxu0  ;;  %v5859_v13 = vpop.f32.mrb[27].mxu1 }
 0xf81   :  { %v6553_v50 = vadd.f32 %v6552_v11, %v5780_v26  ;;  %v6573_v7 = vadd.f32 %v6572_v45, %v5859_v13  ;;  %v5782_v61 = vpop.f32.mrb[31].mxu0 }
 0xf82   :  { %5917 = vst [vmem:[#allocation11 + $0x50] sm:$0xff] %v6569_v48  ;;  %v6557_v14 = vadd.f32 %v6556_v40, %v5782_v61 }
 0xf83   :  { %5912 = vst [vmem:[#allocation11 + $0x30] sm:$0xff] %v6553_v50  ;;  %5918 = vst [vmem:[#allocation11 + $0x58] sm:$0xff] %v6573_v7  ;;  %v5863_v36 = vpop.f32.mrb[28].mxu1 }
 0xf84   :  { %5913 = vst [vmem:[#allocation11 + $0x38] sm:$0xff] %v6557_v14  ;;  %v6577_v44 = vadd.f32 %v6576_v0, %v5863_v36  ;;  %v5865_v59 = vpop.f32.mrb[29].mxu1 }
 0xf85   :  { %v6581_v23 = vadd.f32 %v6580_v17, %v5865_v59 }
 0xf86   :  { %5919 = vst [vmem:[#allocation11 + $0x60] sm:$0xff] %v6577_v44 }
 0xf87   :  { %5920 = vst [vmem:[#allocation11 + $0x68] sm:$0xff] %v6581_v23  ;;  %v5869_v24 = vpop.f32.mrb[30].mxu1 }
 0xf88   :  { %v6585_v56 = vadd.f32 %v6584_v18, %v5869_v24  ;;  %v5871_v41 = vpop.f32.mrb[31].mxu1 }
 0xf89   :  { %v6589_v1 = vadd.f32 %v6588_v53, %v5871_v41 }
 0xf8a   :  { %5921 = vst [vmem:[#allocation11 + $0x70] sm:$0xff] %v6585_v56 }
 0xf8b   :  { %5922 = vst [vmem:[#allocation11 + $0x78] sm:$0xff] %v6589_v1 }
 0xf8c   :  { %9424 = shalt.err (!%p9421_p2)
}
 0xf8d   :  { %s14441_s7 = sld [smem:[#allocation64_spill]] }
 0xf93   :  { %s9425_s27 = scalar_lea.hbm %s14441_s7, 2048 }
 0xf94   :  { %p9426_p3 = scmp.ne.s32.totalorder %s14441_s7, %s9425_s27  ;;  %p9429_p4 = scmp.lt.u32.totalorder %s9425_s27, %s14441_s7 }
 0xf96   :  { %p9431_p5 = pnand %p9429_p4, %p9426_p3 }
 0xf98   :  { %9434 = shalt.err (!%p9431_p5)
}
 0xf99   :  { %5934 = dma.vmem_to_hbm [thread:$0]  %s5929_s26, 2048, %s14441_s7, [#allocation4], %s9450_s5, %s9450_s5, %s9451_s21  }
 0xf9a   :  { %9441 = dma.done.wait [#allocation4], 2048  }
 0xf9b   :  { %9442 = vsyncadd [#allocation4], 4294965248 }
 0xf9c   :  { %5938 = vsyncpa [#allocation3], 1 }
 0xf9d   :  { %5939 = vsyncpa [#allocation6], 1 }
 0xf9e   :  { %5940 = vsyncpa [#allocation9], 1 }
 0xf9f   :  { %5941 = vsyncpa [#allocation4], 1 }

</bundles_post_ra>
